<compile_context>
chip_gen: v7x
topology: tpu7x:2x2x1
jax: 0.10.0
libtpu: 0.0.40
codegen_flags: <defaults>
</compile_context>

<pallas_src>
import math

import jax
import jax.numpy as jnp
import numpy as np
from jax import lax
from jax.experimental import pallas as pl
from jax.experimental.pallas import tpu as pltpu


# ---------------------------------------------------------------------------
# Fused forward kernel (one image per grid step)
# ---------------------------------------------------------------------------

def _make_fused_kernel(H, W, in_ch, conv_dim, num_conv, dense_dim, cmax):
    Ho, Wo = H // 2, W // 2
    nsp = Ho * Wo                     # spatial positions after the stride-2 conv
    in0 = in_ch + 1 + 4               # channels after the concat

    def kernel(*refs):
        (xp_ref, mask_ref, wpos_ref, bpos_ref) = refs[:4]
        conv_refs = refs[4:4 + 2 * num_conv]
        (sel_ref, wfc1_ref, bfc1_ref, wfc2_ref, bfc2_ref,
         wsor_ref, bsor_ref, o_ref, pbuf) = refs[4 + 2 * num_conv:]

        f32 = jnp.float32
        # Fresh zero-padded activation buffer.  Only the interior is ever
        # written, so the border stays zero -> this IS the conv padding=1.
        pbuf[...] = jnp.zeros((H + 2, W + 2, cmax), f32)

        # ---- build the concatenated input feature map inside pbuf ----------
        xp = xp_ref[0]                                          # (H, W, in_ch+2)
        pbuf[1:H + 1, 1:W + 1, 0:in_ch] = xp[:, :, 0:in_ch]                       # x
        pbuf[1:H + 1, 1:W + 1, in_ch + 1:in_ch + 3] = xp[:, :, in_ch:in_ch + 2]   # pos

        # 2x2 / stride-2 max pool of the mask (phases come from a free
        # wrapper-side reshape; only elementwise max happens here).
        m = mask_ref[0]                                         # (H, 2, W, 2)
        r = jnp.maximum(m[:, 0, :, :], m[:, 1, :, :])           # (H, W, 2)
        mp = jnp.maximum(r[:, :, 0:1], r[:, :, 1:2])            # (H, W, 1)
        pbuf[1:H + 1, 1:W + 1, in_ch:in_ch + 1] = mp

        def conv3x3(lo, hi, w_ref, b_ref):
            """'same' 3x3 conv + relu over pbuf channels [lo, hi): one matmul."""
            a = pbuf[...]
            taps = [a[dy:dy + H, dx:dx + W, lo:hi]
                    for dy in range(3) for dx in range(3)]
            col = jnp.concatenate(taps, axis=2).reshape(H * W, 9 * (hi - lo))
            y = jnp.dot(col, w_ref[...], preferred_element_type=f32) + b_ref[...]
            return jnp.maximum(y, 0.0)                          # (H*W, cout)

        # pos_conv -> channels [in_ch+3, in_ch+5)
        pf = conv3x3(in_ch + 1, in_ch + 3, wpos_ref, bpos_ref)  # (H*W, 2)
        pbuf[1:H + 1, 1:W + 1, in_ch + 3:in_ch + 5] = pf.reshape(H, W, 2)

        # conv trunk: every layer evaluated densely (stride 1); the final
        # stride-2 is applied afterwards as a row-selection matmul.
        cin = in0
        h = None
        for k in range(num_conv):
            h = conv3x3(0, cin, conv_refs[2 * k], conv_refs[2 * k + 1])
            if k + 1 < num_conv:
                pbuf[1:H + 1, 1:W + 1, 0:conv_dim] = h.reshape(H, W, conv_dim)
            cin = conv_dim

        # stride-2 subsample via a constant one-hot selection matrix (MXU).
        feat = jnp.dot(sel_ref[...], h, preferred_element_type=f32)   # (nsp, conv_dim)

        # fc1: the torch NCHW flatten order is baked into wfc1 (column block p
        # holds the weights for spatial position p); the block-diagonal part of
        # feat @ wfc1 is picked out with an iota mask and a halving-tree sum,
        # so no in-kernel flatten / transpose is needed at all.
        g = jnp.dot(feat, wfc1_ref[...], preferred_element_type=f32)  # (nsp, nsp*D1)
        row = lax.broadcasted_iota(jnp.int32, g.shape, 0)
        col = lax.broadcasted_iota(jnp.int32, g.shape, 1)
        lo_j = row * dense_dim
        q = jnp.sum(jnp.where((col >= lo_j) & (col < lo_j + dense_dim), g, 0.0),
                    axis=0, keepdims=True)                      # (1, nsp*D1)
        blocks = nsp
        while blocks % 2 == 0 and blocks > 1:                   # halving tree
            blocks //= 2
            q = q[:, :blocks * dense_dim] + q[:, blocks * dense_dim:]
        if blocks > 1:                                          # non power-of-two spatial
            q = sum(q[:, i * dense_dim:(i + 1) * dense_dim] for i in range(blocks))

        h1 = jnp.maximum(q + bfc1_ref[...], 0.0)                # (1, dense_dim)
        h2 = jnp.maximum(jnp.dot(h1, wfc2_ref[...], preferred_element_type=f32)
                         + bfc2_ref[...], 0.0)                  # (1, obj_dim)
        y = jnp.dot(h2, wsor_ref[...], preferred_element_type=f32) + bsor_ref[...]
        o_ref[0] = y.astype(o_ref.dtype)                        # (1, num_ranks)

    return kernel


# ---------------------------------------------------------------------------
# Module
# ---------------------------------------------------------------------------

class SinglePredictorWithPosPallas:
    """JAX/Pallas port of SinglePredictorWithPos (deterministic synthetic init)."""

    def __init__(self, key, *, in_channels, width, num_ranks, conv_dim,
                 num_conv, dense_dim, obj_dim):
        assert width % 2 == 0
        input_channels = in_channels + 1 + 4
        resolution = width // 2
        H = W = width
        Ho = Wo = width // 2
        keys = jax.random.split(key, num_conv + 4)

        def kaiming_conv(k, cout, cin):                 # fan_out, relu
            std = math.sqrt(2.0 / (cout * 9))
            return std * jax.random.normal(k, (cout, cin, 3, 3), jnp.float32)

        def kaiming_linear(k, fout, fin):               # fan_out, relu
            std = math.sqrt(2.0 / fout)
            return std * jax.random.normal(k, (fout, fin), jnp.float32)

        # ---- torch-layout parameters (OIHW conv, (out,in) linear) ----------
        self.conv_w, self.conv_b, self.conv_stride = [], [], []
        cin = input_channels
        for k in range(num_conv):
            stride = 2 if k + 1 == num_conv else 1
            self.conv_w.append(kaiming_conv(keys[k], conv_dim, cin))
            self.conv_b.append(jnp.zeros((conv_dim,), jnp.float32))
            self.conv_stride.append(stride)
            cin = conv_dim
        self.pos_conv_w = kaiming_conv(keys[num_conv], 2, 2)
        self.pos_conv_b = jnp.zeros((2,), jnp.float32)
        self.fc1_w = kaiming_linear(keys[num_conv + 1], dense_dim,
                                    conv_dim * resolution ** 2)
        self.fc1_b = jnp.zeros((dense_dim,), jnp.float32)
        self.fc2_w = kaiming_linear(keys[num_conv + 2], obj_dim, dense_dim)
        self.fc2_b = jnp.zeros((obj_dim,), jnp.float32)
        self.sor_w = 0.01 * jax.random.normal(keys[num_conv + 3],
                                              (num_ranks, obj_dim), jnp.float32)
        self.sor_b = jnp.zeros((num_ranks,), jnp.float32)

        self._cfg = dict(H=H, W=W, in_ch=in_channels, conv_dim=conv_dim,
                         num_conv=num_conv, dense_dim=dense_dim,
                         obj_dim=obj_dim, num_ranks=num_ranks,
                         cmax=max(input_channels, conv_dim))

        # ---- kernel-layout parameters (precomputed once, free at runtime) --
        def conv_mat(w):                # (Cout,Cin,3,3) -> (9*Cin, Cout), tap-major
            cout, cin_ = w.shape[0], w.shape[1]
            return jnp.transpose(w, (2, 3, 1, 0)).reshape(9 * cin_, cout)

        self.k_conv_w = [conv_mat(w) for w in self.conv_w]
        self.k_conv_b = [b[None, :] for b in self.conv_b]
        self.k_pos_w = conv_mat(self.pos_conv_w)
        self.k_pos_b = self.pos_conv_b[None, :]

        # constant one-hot matrix implementing the stride-2 subsample
        sel = np.zeros((Ho * Wo, H * W), np.float32)
        for oy in range(Ho):
            for ox in range(Wo):
                sel[oy * Wo + ox, (2 * oy) * W + 2 * ox] = 1.0
        self.k_sel = jnp.asarray(sel)

        # fc1 weight re-laid-out so the torch (c, h, w) flatten order is baked
        # in: column block p (width dense_dim) holds the weights of spatial p.
        self.k_fc1_w = jnp.transpose(
            self.fc1_w.reshape(dense_dim, conv_dim, Ho * Wo), (1, 2, 0)
        ).reshape(conv_dim, Ho * Wo * dense_dim)
        self.k_fc1_b = self.fc1_b[None, :]
        self.k_fc2_w = self.fc2_w.T
        self.k_fc2_b = self.fc2_b[None, :]
        self.k_sor_w = self.sor_w.T
        self.k_sor_b = self.sor_b[None, :]

        self._jit_forward = jax.jit(self._forward)

    # -----------------------------------------------------------------------
    def _forward(self, x_nchw, mask_nchw, pos_nchw):
        cfg = self._cfg
        H, W = cfg['H'], cfg['W']
        in_ch, conv_dim = cfg['in_ch'], cfg['conv_dim']
        num_conv, dense_dim = cfg['num_conv'], cfg['dense_dim']
        num_ranks, cmax = cfg['num_ranks'], cfg['cmax']
        N = x_nchw.shape[0]

        # Boundary layout glue only: NCHW -> NHWC for (x ++ pos), and a free
        # metadata reshape exposing the mask's four 2x2 pooling phases.
        xp = jnp.transpose(jnp.concatenate([x_nchw, pos_nchw], axis=1),
                           (0, 2, 3, 1))                         # (N, H, W, in_ch+2)
        mask_r = mask_nchw.reshape(N, H, 2, W, 2)

        kernel = _make_fused_kernel(H, W, in_ch, conv_dim, num_conv,
                                    dense_dim, cmax)

        def whole(a):                    # full-array block, constant index map
            nd = a.ndim
            return pl.BlockSpec(a.shape, lambda n, _nd=nd: (0,) * _nd)

        operands = [xp, mask_r, self.k_pos_w, self.k_pos_b]
        for w, b in zip(self.k_conv_w, self.k_conv_b):
            operands += [w, b]
        operands += [self.k_sel, self.k_fc1_w, self.k_fc1_b,
                     self.k_fc2_w, self.k_fc2_b, self.k_sor_w, self.k_sor_b]

        in_specs = [
            pl.BlockSpec((1, H, W, in_ch + 2), lambda n: (n, 0, 0, 0)),
            pl.BlockSpec((1, H, 2, W, 2), lambda n: (n, 0, 0, 0, 0)),
        ] + [whole(a) for a in operands[2:]]

        out = pl.pallas_call(
            kernel,
            out_shape=jax.ShapeDtypeStruct((N, 1, num_ranks), jnp.float32),
            grid=(N,),
            in_specs=in_specs,
            out_specs=pl.BlockSpec((1, 1, num_ranks), lambda n: (n, 0, 0)),
            scratch_shapes=[pltpu.VMEM((H + 2, W + 2, cmax), jnp.float32)],
            compiler_params=pltpu.CompilerParams(
                dimension_semantics=("parallel",)),
        )(*operands)
        return out.reshape(N, num_ranks)

    def __call__(self, x, mask, pos):
        return self._jit_forward(x, mask, pos)

    # pure-JAX NCHW reference (mirrors the PyTorch forward) for validation
    def reference(self, x, mask, pos):
        def conv(h, w, b, stride):
            y = lax.conv_general_dilated(
                h, w, window_strides=(stride, stride),
                padding=((1, 1), (1, 1)),
                dimension_numbers=('NCHW', 'OIHW', 'NCHW'))
            return jax.nn.relu(y + b[None, :, None, None])

        mask_pool = lax.reduce_window(mask, -jnp.inf, lax.max,
                                      (1, 1, 2, 2), (1, 1, 2, 2), 'VALID')
        h = jnp.concatenate(
            [x, mask_pool, pos,
             conv(pos, self.pos_conv_w, self.pos_conv_b, 1)], axis=1)
        for w, b, s in zip(self.conv_w, self.conv_b, self.conv_stride):
            h = conv(h, w, b, s)
        h = h.reshape(h.shape[0], -1)
        h = jax.nn.relu(h @ self.fc1_w.T + self.fc1_b)
        h = jax.nn.relu(h @ self.fc2_w.T + self.fc2_b)
        return h @ self.sor_w.T + self.sor_b


if __name__ == "__main__":
    key = jax.random.PRNGKey(0)
    N, C, H, W = 2, 4, 16, 16            # input_shape.channels=4, width=16
    kx, km, kp, kparam = jax.random.split(key, 4)
    x = jax.random.normal(kx, (N, C, H, W), jnp.float32)
    mask = jax.random.normal(km, (N, 1, 2 * H, 2 * W), jnp.float32)
    pos = jax.random.normal(kp, (N, 2, H, W), jnp.float32)

    model = SinglePredictorWithPosPallas(
        kparam, in_channels=C, width=W, num_ranks=5, conv_dim=16,
        num_conv=3, dense_dim=32, obj_dim=32)

    out = jax.block_until_ready(model(x, mask, pos))
    assert out.shape == (N, 5)

    ref = jax.block_until_ready(model.reference(x, mask, pos))
    np.testing.assert_allclose(np.asarray(out), np.asarray(ref),
                               rtol=2e-2, atol=2e-2)
    print("KERNEL_OK")
</pallas_src>

<mosaic_0001>
module attributes {stable_mosaic.version = 11 : i64} {
  func.func @kernel(%arg0: i32, %arg1: memref<1x16x16x6xf32, #tpu.memory_space<vmem>>, %arg2: memref<1x16x2x16x2xf32, #tpu.memory_space<vmem>>, %arg3: memref<18x2xf32, #tpu.memory_space<vmem>>, %arg4: memref<1x2xf32, #tpu.memory_space<vmem>>, %arg5: memref<81x16xf32, #tpu.memory_space<vmem>>, %arg6: memref<1x16xf32, #tpu.memory_space<vmem>>, %arg7: memref<144x16xf32, #tpu.memory_space<vmem>>, %arg8: memref<1x16xf32, #tpu.memory_space<vmem>>, %arg9: memref<144x16xf32, #tpu.memory_space<vmem>>, %arg10: memref<1x16xf32, #tpu.memory_space<vmem>>, %arg11: memref<64x256xf32, #tpu.memory_space<vmem>>, %arg12: memref<16x2048xf32, #tpu.memory_space<vmem>>, %arg13: memref<1x32xf32, #tpu.memory_space<vmem>>, %arg14: memref<32x32xf32, #tpu.memory_space<vmem>>, %arg15: memref<1x32xf32, #tpu.memory_space<vmem>>, %arg16: memref<32x5xf32, #tpu.memory_space<vmem>>, %arg17: memref<1x5xf32, #tpu.memory_space<vmem>>, %arg18: memref<1x1x5xf32, #tpu.memory_space<vmem>>, %arg19: memref<18x18x16xf32, #tpu.memory_space<vmem>>) attributes {dimension_semantics = [#tpu.dimension_semantics<parallel>], iteration_bounds = array<i64: 2>, scalar_prefetch = 0 : i64, scratch_operands = 1 : i64, tpu.core_type = #tpu.core_type<tc>, window_params = [{transform_indices = @transform_0, window_bounds = array<i64: 1, 16, 16, 6>}, {transform_indices = @transform_1, window_bounds = array<i64: 1, 16, 2, 16, 2>}, {pipeline_mode = #tpu.pipeline_mode<synchronous>, transform_indices = @transform_2, window_bounds = array<i64: 18, 2>}, {pipeline_mode = #tpu.pipeline_mode<synchronous>, transform_indices = @transform_3, window_bounds = array<i64: 1, 2>}, {pipeline_mode = #tpu.pipeline_mode<synchronous>, transform_indices = @transform_4, window_bounds = array<i64: 81, 16>}, {pipeline_mode = #tpu.pipeline_mode<synchronous>, transform_indices = @transform_5, window_bounds = array<i64: 1, 16>}, {pipeline_mode = #tpu.pipeline_mode<synchronous>, transform_indices = @transform_6, window_bounds = array<i64: 144, 16>}, {pipeline_mode = #tpu.pipeline_mode<synchronous>, transform_indices = @transform_7, window_bounds = array<i64: 1, 16>}, {pipeline_mode = #tpu.pipeline_mode<synchronous>, transform_indices = @transform_8, window_bounds = array<i64: 144, 16>}, {pipeline_mode = #tpu.pipeline_mode<synchronous>, transform_indices = @transform_9, window_bounds = array<i64: 1, 16>}, {pipeline_mode = #tpu.pipeline_mode<synchronous>, transform_indices = @transform_10, window_bounds = array<i64: 64, 256>}, {pipeline_mode = #tpu.pipeline_mode<synchronous>, transform_indices = @transform_11, window_bounds = array<i64: 16, 2048>}, {pipeline_mode = #tpu.pipeline_mode<synchronous>, transform_indices = @transform_12, window_bounds = array<i64: 1, 32>}, {pipeline_mode = #tpu.pipeline_mode<synchronous>, transform_indices = @transform_13, window_bounds = array<i64: 32, 32>}, {pipeline_mode = #tpu.pipeline_mode<synchronous>, transform_indices = @transform_14, window_bounds = array<i64: 1, 32>}, {pipeline_mode = #tpu.pipeline_mode<synchronous>, transform_indices = @transform_15, window_bounds = array<i64: 32, 5>}, {pipeline_mode = #tpu.pipeline_mode<synchronous>, transform_indices = @transform_16, window_bounds = array<i64: 1, 5>}, {transform_indices = @transform_17, window_bounds = array<i64: 1, 1, 5>}]} {
    %cst = arith.constant 0.000000e+00 : f32
    %0 = vector.broadcast %cst : f32 to vector<18x18x16xf32>
    %c0 = arith.constant 0 : index
    %c0_0 = arith.constant 0 : index
    %c0_1 = arith.constant 0 : index
    %1 = vector.load %arg19[%c0, %c0_0, %c0_1] : memref<18x18x16xf32, #tpu.memory_space<vmem>>, vector<18x18x16xf32>
    tpu.vector_store %arg19[%c0, %c0_0, %c0_1], %0 {strides = array<i32>} : memref<18x18x16xf32, #tpu.memory_space<vmem>>, vector<18x18x16xf32>,
    %c0_2 = arith.constant 0 : index
    %c0_3 = arith.constant 0 : index
    %c0_4 = arith.constant 0 : index
    %c0_5 = arith.constant 0 : index
    %2 = vector.load %arg1[%c0_2, %c0_3, %c0_4, %c0_5] : memref<1x16x16x6xf32, #tpu.memory_space<vmem>>, vector<1x16x16x6xf32>
    %3 = vector.shape_cast %2 : vector<1x16x16x6xf32> to vector<16x16x6xf32>
    %4 = vector.extract_strided_slice %3 {offsets = [0, 0, 0], sizes = [16, 16, 4], strides = [1, 1, 1]} : vector<16x16x6xf32> to vector<16x16x4xf32>
    %c1 = arith.constant 1 : index
    %c1_6 = arith.constant 1 : index
    %c0_7 = arith.constant 0 : index
    %5 = vector.load %arg19[%c1, %c1_6, %c0_7] : memref<18x18x16xf32, #tpu.memory_space<vmem>>, vector<16x16x4xf32>
    tpu.vector_store %arg19[%c1, %c1_6, %c0_7], %4 {strides = array<i32>} : memref<18x18x16xf32, #tpu.memory_space<vmem>>, vector<16x16x4xf32>,
    %6 = vector.extract_strided_slice %3 {offsets = [0, 0, 4], sizes = [16, 16, 2], strides = [1, 1, 1]} : vector<16x16x6xf32> to vector<16x16x2xf32>
    %c1_8 = arith.constant 1 : index
    %c1_9 = arith.constant 1 : index
    %c5 = arith.constant 5 : index
    %7 = vector.load %arg19[%c1_8, %c1_9, %c5] : memref<18x18x16xf32, #tpu.memory_space<vmem>>, vector<16x16x2xf32>
    tpu.vector_store %arg19[%c1_8, %c1_9, %c5], %6 {strides = array<i32>} : memref<18x18x16xf32, #tpu.memory_space<vmem>>, vector<16x16x2xf32>,
    %c0_10 = arith.constant 0 : index
    %c0_11 = arith.constant 0 : index
    %c0_12 = arith.constant 0 : index
    %c0_13 = arith.constant 0 : index
    %c0_14 = arith.constant 0 : index
    %8 = vector.load %arg2[%c0_10, %c0_11, %c0_12, %c0_13, %c0_14] : memref<1x16x2x16x2xf32, #tpu.memory_space<vmem>>, vector<1x16x2x16x2xf32>
    %9 = vector.shape_cast %8 : vector<1x16x2x16x2xf32> to vector<16x2x16x2xf32>
    %10 = vector.extract_strided_slice %9 {offsets = [0, 0, 0, 0], sizes = [16, 1, 16, 2], strides = [1, 1, 1, 1]} : vector<16x2x16x2xf32> to vector<16x1x16x2xf32>
    %11 = vector.shape_cast %10 : vector<16x1x16x2xf32> to vector<16x16x2xf32>
    %12 = vector.extract_strided_slice %9 {offsets = [0, 1, 0, 0], sizes = [16, 1, 16, 2], strides = [1, 1, 1, 1]} : vector<16x2x16x2xf32> to vector<16x1x16x2xf32>
    %13 = vector.shape_cast %12 : vector<16x1x16x2xf32> to vector<16x16x2xf32>
    %14 = arith.maximumf %11, %13 : vector<16x16x2xf32>
    %15 = vector.extract_strided_slice %14 {offsets = [0, 0, 0], sizes = [16, 16, 1], strides = [1, 1, 1]} : vector<16x16x2xf32> to vector<16x16x1xf32>
    %16 = vector.extract_strided_slice %14 {offsets = [0, 0, 1], sizes = [16, 16, 1], strides = [1, 1, 1]} : vector<16x16x2xf32> to vector<16x16x1xf32>
    %17 = arith.maximumf %15, %16 : vector<16x16x1xf32>
    %c1_15 = arith.constant 1 : index
    %c1_16 = arith.constant 1 : index
    %c4 = arith.constant 4 : index
    %18 = vector.load %arg19[%c1_15, %c1_16, %c4] : memref<18x18x16xf32, #tpu.memory_space<vmem>>, vector<16x16x1xf32>
    tpu.vector_store %arg19[%c1_15, %c1_16, %c4], %17 {strides = array<i32>} : memref<18x18x16xf32, #tpu.memory_space<vmem>>, vector<16x16x1xf32>,
    %c0_17 = arith.constant 0 : index
    %c0_18 = arith.constant 0 : index
    %c0_19 = arith.constant 0 : index
    %19 = vector.load %arg19[%c0_17, %c0_18, %c0_19] : memref<18x18x16xf32, #tpu.memory_space<vmem>>, vector<18x18x16xf32>
    %20 = vector.extract_strided_slice %19 {offsets = [0, 0, 5], sizes = [16, 16, 2], strides = [1, 1, 1]} : vector<18x18x16xf32> to vector<16x16x2xf32>
    %21 = vector.extract_strided_slice %19 {offsets = [0, 1, 5], sizes = [16, 16, 2], strides = [1, 1, 1]} : vector<18x18x16xf32> to vector<16x16x2xf32>
    %22 = vector.extract_strided_slice %19 {offsets = [0, 2, 5], sizes = [16, 16, 2], strides = [1, 1, 1]} : vector<18x18x16xf32> to vector<16x16x2xf32>
    %23 = vector.extract_strided_slice %19 {offsets = [1, 0, 5], sizes = [16, 16, 2], strides = [1, 1, 1]} : vector<18x18x16xf32> to vector<16x16x2xf32>
    %24 = vector.extract_strided_slice %19 {offsets = [1, 1, 5], sizes = [16, 16, 2], strides = [1, 1, 1]} : vector<18x18x16xf32> to vector<16x16x2xf32>
    %25 = vector.extract_strided_slice %19 {offsets = [1, 2, 5], sizes = [16, 16, 2], strides = [1, 1, 1]} : vector<18x18x16xf32> to vector<16x16x2xf32>
    %26 = vector.extract_strided_slice %19 {offsets = [2, 0, 5], sizes = [16, 16, 2], strides = [1, 1, 1]} : vector<18x18x16xf32> to vector<16x16x2xf32>
    %27 = vector.extract_strided_slice %19 {offsets = [2, 1, 5], sizes = [16, 16, 2], strides = [1, 1, 1]} : vector<18x18x16xf32> to vector<16x16x2xf32>
    %28 = vector.extract_strided_slice %19 {offsets = [2, 2, 5], sizes = [16, 16, 2], strides = [1, 1, 1]} : vector<18x18x16xf32> to vector<16x16x2xf32>
    %29 = tpu.concatenate %20, %21, %22, %23, %24, %25, %26, %27, %28 in 2 : vector<16x16x2xf32>, vector<16x16x2xf32>, vector<16x16x2xf32>, vector<16x16x2xf32>, vector<16x16x2xf32>, vector<16x16x2xf32>, vector<16x16x2xf32>, vector<16x16x2xf32>, vector<16x16x2xf32> -> vector<16x16x18xf32>
    %30 = vector.shape_cast %29 : vector<16x16x18xf32> to vector<256x18xf32>
    %c0_20 = arith.constant 0 : index
    %c0_21 = arith.constant 0 : index
    %31 = vector.load %arg3[%c0_20, %c0_21] : memref<18x2xf32, #tpu.memory_space<vmem>>, vector<18x2xf32>
    %cst_22 = arith.constant dense<0.000000e+00> : vector<256x2xf32>
    %32 = tpu.matmul %30, %31, %cst_22 {dimension_numbers = #tpu.dot_dimension_numbers<[1], [0], [0], [1], [0, 0, 1, 1], [], []>} : vector<256x18xf32>, vector<18x2xf32>, vector<256x2xf32> -> vector<256x2xf32>
    %c0_23 = arith.constant 0 : index
    %c0_24 = arith.constant 0 : index
    %33 = vector.load %arg4[%c0_23, %c0_24] : memref<1x2xf32, #tpu.memory_space<vmem>>, vector<1x2xf32>
    %34 = vector.broadcast %33 : vector<1x2xf32> to vector<256x2xf32>
    %35 = arith.addf %32, %34 : vector<256x2xf32>
    %cst_25 = arith.constant 0.000000e+00 : f32
    %36 = vector.broadcast %cst_25 : f32 to vector<256x2xf32>
    %37 = arith.maximumf %35, %36 : vector<256x2xf32>
    %38 = vector.shape_cast %37 : vector<256x2xf32> to vector<16x16x2xf32>
    %c1_26 = arith.constant 1 : index
    %c1_27 = arith.constant 1 : index
    %c7 = arith.constant 7 : index
    %39 = vector.load %arg19[%c1_26, %c1_27, %c7] : memref<18x18x16xf32, #tpu.memory_space<vmem>>, vector<16x16x2xf32>
    tpu.vector_store %arg19[%c1_26, %c1_27, %c7], %38 {strides = array<i32>} : memref<18x18x16xf32, #tpu.memory_space<vmem>>, vector<16x16x2xf32>,
    %c0_28 = arith.constant 0 : index
    %c0_29 = arith.constant 0 : index
    %c0_30 = arith.constant 0 : index
    %40 = vector.load %arg19[%c0_28, %c0_29, %c0_30] : memref<18x18x16xf32, #tpu.memory_space<vmem>>, vector<18x18x16xf32>
    %41 = vector.extract_strided_slice %40 {offsets = [0, 0, 0], sizes = [16, 16, 9], strides = [1, 1, 1]} : vector<18x18x16xf32> to vector<16x16x9xf32>
    %42 = vector.extract_strided_slice %40 {offsets = [0, 1, 0], sizes = [16, 16, 9], strides = [1, 1, 1]} : vector<18x18x16xf32> to vector<16x16x9xf32>
    %43 = vector.extract_strided_slice %40 {offsets = [0, 2, 0], sizes = [16, 16, 9], strides = [1, 1, 1]} : vector<18x18x16xf32> to vector<16x16x9xf32>
    %44 = vector.extract_strided_slice %40 {offsets = [1, 0, 0], sizes = [16, 16, 9], strides = [1, 1, 1]} : vector<18x18x16xf32> to vector<16x16x9xf32>
    %45 = vector.extract_strided_slice %40 {offsets = [1, 1, 0], sizes = [16, 16, 9], strides = [1, 1, 1]} : vector<18x18x16xf32> to vector<16x16x9xf32>
    %46 = vector.extract_strided_slice %40 {offsets = [1, 2, 0], sizes = [16, 16, 9], strides = [1, 1, 1]} : vector<18x18x16xf32> to vector<16x16x9xf32>
    %47 = vector.extract_strided_slice %40 {offsets = [2, 0, 0], sizes = [16, 16, 9], strides = [1, 1, 1]} : vector<18x18x16xf32> to vector<16x16x9xf32>
    %48 = vector.extract_strided_slice %40 {offsets = [2, 1, 0], sizes = [16, 16, 9], strides = [1, 1, 1]} : vector<18x18x16xf32> to vector<16x16x9xf32>
    %49 = vector.extract_strided_slice %40 {offsets = [2, 2, 0], sizes = [16, 16, 9], strides = [1, 1, 1]} : vector<18x18x16xf32> to vector<16x16x9xf32>
    %50 = tpu.concatenate %41, %42, %43, %44, %45, %46, %47, %48, %49 in 2 : vector<16x16x9xf32>, vector<16x16x9xf32>, vector<16x16x9xf32>, vector<16x16x9xf32>, vector<16x16x9xf32>, vector<16x16x9xf32>, vector<16x16x9xf32>, vector<16x16x9xf32>, vector<16x16x9xf32> -> vector<16x16x81xf32>
    %51 = vector.shape_cast %50 : vector<16x16x81xf32> to vector<256x81xf32>
    %c0_31 = arith.constant 0 : index
    %c0_32 = arith.constant 0 : index
    %52 = vector.load %arg5[%c0_31, %c0_32] : memref<81x16xf32, #tpu.memory_space<vmem>>, vector<81x16xf32>
    %cst_33 = arith.constant dense<0.000000e+00> : vector<256x16xf32>
    %53 = tpu.matmul %51, %52, %cst_33 {dimension_numbers = #tpu.dot_dimension_numbers<[1], [0], [0], [1], [0, 0, 1, 1], [], []>} : vector<256x81xf32>, vector<81x16xf32>, vector<256x16xf32> -> vector<256x16xf32>
    %c0_34 = arith.constant 0 : index
    %c0_35 = arith.constant 0 : index
    %54 = vector.load %arg6[%c0_34, %c0_35] : memref<1x16xf32, #tpu.memory_space<vmem>>, vector<1x16xf32>
    %55 = vector.broadcast %54 : vector<1x16xf32> to vector<256x16xf32>
    %56 = arith.addf %53, %55 : vector<256x16xf32>
    %cst_36 = arith.constant 0.000000e+00 : f32
    %57 = vector.broadcast %cst_36 : f32 to vector<256x16xf32>
    %58 = arith.maximumf %56, %57 : vector<256x16xf32>
    %59 = vector.shape_cast %58 : vector<256x16xf32> to vector<16x16x16xf32>
    %c1_37 = arith.constant 1 : index
    %c1_38 = arith.constant 1 : index
    %c0_39 = arith.constant 0 : index
    %60 = vector.load %arg19[%c1_37, %c1_38, %c0_39] : memref<18x18x16xf32, #tpu.memory_space<vmem>>, vector<16x16x16xf32>
    tpu.vector_store %arg19[%c1_37, %c1_38, %c0_39], %59 {strides = array<i32>} : memref<18x18x16xf32, #tpu.memory_space<vmem>>, vector<16x16x16xf32>,
    %c0_40 = arith.constant 0 : index
    %c0_41 = arith.constant 0 : index
    %c0_42 = arith.constant 0 : index
    %61 = vector.load %arg19[%c0_40, %c0_41, %c0_42] : memref<18x18x16xf32, #tpu.memory_space<vmem>>, vector<18x18x16xf32>
    %62 = vector.extract_strided_slice %61 {offsets = [0, 0, 0], sizes = [16, 16, 16], strides = [1, 1, 1]} : vector<18x18x16xf32> to vector<16x16x16xf32>
    %63 = vector.extract_strided_slice %61 {offsets = [0, 1, 0], sizes = [16, 16, 16], strides = [1, 1, 1]} : vector<18x18x16xf32> to vector<16x16x16xf32>
    %64 = vector.extract_strided_slice %61 {offsets = [0, 2, 0], sizes = [16, 16, 16], strides = [1, 1, 1]} : vector<18x18x16xf32> to vector<16x16x16xf32>
    %65 = vector.extract_strided_slice %61 {offsets = [1, 0, 0], sizes = [16, 16, 16], strides = [1, 1, 1]} : vector<18x18x16xf32> to vector<16x16x16xf32>
    %66 = vector.extract_strided_slice %61 {offsets = [1, 1, 0], sizes = [16, 16, 16], strides = [1, 1, 1]} : vector<18x18x16xf32> to vector<16x16x16xf32>
    %67 = vector.extract_strided_slice %61 {offsets = [1, 2, 0], sizes = [16, 16, 16], strides = [1, 1, 1]} : vector<18x18x16xf32> to vector<16x16x16xf32>
    %68 = vector.extract_strided_slice %61 {offsets = [2, 0, 0], sizes = [16, 16, 16], strides = [1, 1, 1]} : vector<18x18x16xf32> to vector<16x16x16xf32>
    %69 = vector.extract_strided_slice %61 {offsets = [2, 1, 0], sizes = [16, 16, 16], strides = [1, 1, 1]} : vector<18x18x16xf32> to vector<16x16x16xf32>
    %70 = vector.extract_strided_slice %61 {offsets = [2, 2, 0], sizes = [16, 16, 16], strides = [1, 1, 1]} : vector<18x18x16xf32> to vector<16x16x16xf32>
    %71 = tpu.concatenate %62, %63, %64, %65, %66, %67, %68, %69, %70 in 2 : vector<16x16x16xf32>, vector<16x16x16xf32>, vector<16x16x16xf32>, vector<16x16x16xf32>, vector<16x16x16xf32>, vector<16x16x16xf32>, vector<16x16x16xf32>, vector<16x16x16xf32>, vector<16x16x16xf32> -> vector<16x16x144xf32>
    %72 = vector.shape_cast %71 : vector<16x16x144xf32> to vector<256x144xf32>
    %c0_43 = arith.constant 0 : index
    %c0_44 = arith.constant 0 : index
    %73 = vector.load %arg7[%c0_43, %c0_44] : memref<144x16xf32, #tpu.memory_space<vmem>>, vector<144x16xf32>
    %cst_45 = arith.constant dense<0.000000e+00> : vector<256x16xf32>
    %74 = tpu.matmul %72, %73, %cst_45 {dimension_numbers = #tpu.dot_dimension_numbers<[1], [0], [0], [1], [0, 0, 1, 1], [], []>} : vector<256x144xf32>, vector<144x16xf32>, vector<256x16xf32> -> vector<256x16xf32>
    %c0_46 = arith.constant 0 : index
    %c0_47 = arith.constant 0 : index
    %75 = vector.load %arg8[%c0_46, %c0_47] : memref<1x16xf32, #tpu.memory_space<vmem>>, vector<1x16xf32>
    %76 = vector.broadcast %75 : vector<1x16xf32> to vector<256x16xf32>
    %77 = arith.addf %74, %76 : vector<256x16xf32>
    %cst_48 = arith.constant 0.000000e+00 : f32
    %78 = vector.broadcast %cst_48 : f32 to vector<256x16xf32>
    %79 = arith.maximumf %77, %78 : vector<256x16xf32>
    %80 = vector.shape_cast %79 : vector<256x16xf32> to vector<16x16x16xf32>
    %c1_49 = arith.constant 1 : index
    %c1_50 = arith.constant 1 : index
    %c0_51 = arith.constant 0 : index
    %81 = vector.load %arg19[%c1_49, %c1_50, %c0_51] : memref<18x18x16xf32, #tpu.memory_space<vmem>>, vector<16x16x16xf32>
    tpu.vector_store %arg19[%c1_49, %c1_50, %c0_51], %80 {strides = array<i32>} : memref<18x18x16xf32, #tpu.memory_space<vmem>>, vector<16x16x16xf32>,
    %c0_52 = arith.constant 0 : index
    %c0_53 = arith.constant 0 : index
    %c0_54 = arith.constant 0 : index
    %82 = vector.load %arg19[%c0_52, %c0_53, %c0_54] : memref<18x18x16xf32, #tpu.memory_space<vmem>>, vector<18x18x16xf32>
    %83 = vector.extract_strided_slice %82 {offsets = [0, 0, 0], sizes = [16, 16, 16], strides = [1, 1, 1]} : vector<18x18x16xf32> to vector<16x16x16xf32>
    %84 = vector.extract_strided_slice %82 {offsets = [0, 1, 0], sizes = [16, 16, 16], strides = [1, 1, 1]} : vector<18x18x16xf32> to vector<16x16x16xf32>
    %85 = vector.extract_strided_slice %82 {offsets = [0, 2, 0], sizes = [16, 16, 16], strides = [1, 1, 1]} : vector<18x18x16xf32> to vector<16x16x16xf32>
    %86 = vector.extract_strided_slice %82 {offsets = [1, 0, 0], sizes = [16, 16, 16], strides = [1, 1, 1]} : vector<18x18x16xf32> to vector<16x16x16xf32>
    %87 = vector.extract_strided_slice %82 {offsets = [1, 1, 0], sizes = [16, 16, 16], strides = [1, 1, 1]} : vector<18x18x16xf32> to vector<16x16x16xf32>
    %88 = vector.extract_strided_slice %82 {offsets = [1, 2, 0], sizes = [16, 16, 16], strides = [1, 1, 1]} : vector<18x18x16xf32> to vector<16x16x16xf32>
    %89 = vector.extract_strided_slice %82 {offsets = [2, 0, 0], sizes = [16, 16, 16], strides = [1, 1, 1]} : vector<18x18x16xf32> to vector<16x16x16xf32>
    %90 = vector.extract_strided_slice %82 {offsets = [2, 1, 0], sizes = [16, 16, 16], strides = [1, 1, 1]} : vector<18x18x16xf32> to vector<16x16x16xf32>
    %91 = vector.extract_strided_slice %82 {offsets = [2, 2, 0], sizes = [16, 16, 16], strides = [1, 1, 1]} : vector<18x18x16xf32> to vector<16x16x16xf32>
    %92 = tpu.concatenate %83, %84, %85, %86, %87, %88, %89, %90, %91 in 2 : vector<16x16x16xf32>, vector<16x16x16xf32>, vector<16x16x16xf32>, vector<16x16x16xf32>, vector<16x16x16xf32>, vector<16x16x16xf32>, vector<16x16x16xf32>, vector<16x16x16xf32>, vector<16x16x16xf32> -> vector<16x16x144xf32>
    %93 = vector.shape_cast %92 : vector<16x16x144xf32> to vector<256x144xf32>
    %c0_55 = arith.constant 0 : index
    %c0_56 = arith.constant 0 : index
    %94 = vector.load %arg9[%c0_55, %c0_56] : memref<144x16xf32, #tpu.memory_space<vmem>>, vector<144x16xf32>
    %cst_57 = arith.constant dense<0.000000e+00> : vector<256x16xf32>
    %95 = tpu.matmul %93, %94, %cst_57 {dimension_numbers = #tpu.dot_dimension_numbers<[1], [0], [0], [1], [0, 0, 1, 1], [], []>} : vector<256x144xf32>, vector<144x16xf32>, vector<256x16xf32> -> vector<256x16xf32>
    %c0_58 = arith.constant 0 : index
    %c0_59 = arith.constant 0 : index
    %96 = vector.load %arg10[%c0_58, %c0_59] : memref<1x16xf32, #tpu.memory_space<vmem>>, vector<1x16xf32>
    %97 = vector.broadcast %96 : vector<1x16xf32> to vector<256x16xf32>
    %98 = arith.addf %95, %97 : vector<256x16xf32>
    %cst_60 = arith.constant 0.000000e+00 : f32
    %99 = vector.broadcast %cst_60 : f32 to vector<256x16xf32>
    %100 = arith.maximumf %98, %99 : vector<256x16xf32>
    %c0_61 = arith.constant 0 : index
    %c0_62 = arith.constant 0 : index
    %101 = vector.load %arg11[%c0_61, %c0_62] : memref<64x256xf32, #tpu.memory_space<vmem>>, vector<64x256xf32>
    %cst_63 = arith.constant dense<0.000000e+00> : vector<64x16xf32>
    %102 = tpu.matmul %101, %100, %cst_63 {dimension_numbers = #tpu.dot_dimension_numbers<[1], [0], [0], [1], [0, 0, 1, 1], [], []>} : vector<64x256xf32>, vector<256x16xf32>, vector<64x16xf32> -> vector<64x16xf32>
    %c0_64 = arith.constant 0 : index
    %c0_65 = arith.constant 0 : index
    %103 = vector.load %arg12[%c0_64, %c0_65] : memref<16x2048xf32, #tpu.memory_space<vmem>>, vector<16x2048xf32>
    %cst_66 = arith.constant dense<0.000000e+00> : vector<64x2048xf32>
    %104 = tpu.matmul %102, %103, %cst_66 {dimension_numbers = #tpu.dot_dimension_numbers<[1], [0], [0], [1], [0, 0, 1, 1], [], []>} : vector<64x16xf32>, vector<16x2048xf32>, vector<64x2048xf32> -> vector<64x2048xf32>
    %105 = tpu.iota {dimensions = array<i32: 0>} : vector<64x2048xi32>
    %106 = tpu.iota {dimensions = array<i32: 1>} : vector<64x2048xi32>
    %c32_i32 = arith.constant 32 : i32
    %107 = vector.broadcast %c32_i32 : i32 to vector<64x2048xi32>
    %108 = arith.muli %105, %107 : vector<64x2048xi32>
    %109 = arith.cmpi sge, %106, %108 : vector<64x2048xi32>
    %c32_i32_67 = arith.constant 32 : i32
    %110 = vector.broadcast %c32_i32_67 : i32 to vector<64x2048xi32>
    %111 = arith.addi %108, %110 : vector<64x2048xi32>
    %112 = arith.cmpi slt, %106, %111 : vector<64x2048xi32>
    %113 = arith.andi %109, %112 : vector<64x2048xi1>
    %cst_68 = arith.constant 0.000000e+00 : f32
    %114 = vector.broadcast %cst_68 : f32 to vector<64x2048xf32>
    %115 = arith.select %113, %104, %114 : vector<64x2048xi1>, vector<64x2048xf32>
    %cst_69 = arith.constant dense<0.000000e+00> : vector<2048xf32>
    %116 = vector.multi_reduction <add>, %115, %cst_69 [0] : vector<64x2048xf32> to vector<2048xf32>
    %117 = vector.shape_cast %116 : vector<2048xf32> to vector<1x2048xf32>
    %118 = vector.extract_strided_slice %117 {offsets = [0, 0], sizes = [1, 1024], strides = [1, 1]} : vector<1x2048xf32> to vector<1x1024xf32>
    %119 = vector.extract_strided_slice %117 {offsets = [0, 1024], sizes = [1, 1024], strides = [1, 1]} : vector<1x2048xf32> to vector<1x1024xf32>
    %120 = arith.addf %118, %119 : vector<1x1024xf32>
    %121 = vector.extract_strided_slice %120 {offsets = [0, 0], sizes = [1, 512], strides = [1, 1]} : vector<1x1024xf32> to vector<1x512xf32>
    %122 = vector.extract_strided_slice %120 {offsets = [0, 512], sizes = [1, 512], strides = [1, 1]} : vector<1x1024xf32> to vector<1x512xf32>
    %123 = arith.addf %121, %122 : vector<1x512xf32>
    %124 = vector.extract_strided_slice %123 {offsets = [0, 0], sizes = [1, 256], strides = [1, 1]} : vector<1x512xf32> to vector<1x256xf32>
    %125 = vector.extract_strided_slice %123 {offsets = [0, 256], sizes = [1, 256], strides = [1, 1]} : vector<1x512xf32> to vector<1x256xf32>
    %126 = arith.addf %124, %125 : vector<1x256xf32>
    %127 = vector.extract_strided_slice %126 {offsets = [0, 0], sizes = [1, 128], strides = [1, 1]} : vector<1x256xf32> to vector<1x128xf32>
    %128 = vector.extract_strided_slice %126 {offsets = [0, 128], sizes = [1, 128], strides = [1, 1]} : vector<1x256xf32> to vector<1x128xf32>
    %129 = arith.addf %127, %128 : vector<1x128xf32>
    %130 = vector.extract_strided_slice %129 {offsets = [0, 0], sizes = [1, 64], strides = [1, 1]} : vector<1x128xf32> to vector<1x64xf32>
    %131 = vector.extract_strided_slice %129 {offsets = [0, 64], sizes = [1, 64], strides = [1, 1]} : vector<1x128xf32> to vector<1x64xf32>
    %132 = arith.addf %130, %131 : vector<1x64xf32>
    %133 = vector.extract_strided_slice %132 {offsets = [0, 0], sizes = [1, 32], strides = [1, 1]} : vector<1x64xf32> to vector<1x32xf32>
    %134 = vector.extract_strided_slice %132 {offsets = [0, 32], sizes = [1, 32], strides = [1, 1]} : vector<1x64xf32> to vector<1x32xf32>
    %135 = arith.addf %133, %134 : vector<1x32xf32>
    %c0_70 = arith.constant 0 : index
    %c0_71 = arith.constant 0 : index
    %136 = vector.load %arg13[%c0_70, %c0_71] : memref<1x32xf32, #tpu.memory_space<vmem>>, vector<1x32xf32>
    %137 = arith.addf %135, %136 : vector<1x32xf32>
    %cst_72 = arith.constant 0.000000e+00 : f32
    %138 = vector.broadcast %cst_72 : f32 to vector<1x32xf32>
    %139 = arith.maximumf %137, %138 : vector<1x32xf32>
    %c0_73 = arith.constant 0 : index
    %c0_74 = arith.constant 0 : index
    %140 = vector.load %arg14[%c0_73, %c0_74] : memref<32x32xf32, #tpu.memory_space<vmem>>, vector<32x32xf32>
    %cst_75 = arith.constant dense<0.000000e+00> : vector<1x32xf32>
    %141 = tpu.matmul %139, %140, %cst_75 {dimension_numbers = #tpu.dot_dimension_numbers<[1], [0], [0], [1], [0, 0, 1, 1], [], []>} : vector<1x32xf32>, vector<32x32xf32>, vector<1x32xf32> -> vector<1x32xf32>
    %c0_76 = arith.constant 0 : index
    %c0_77 = arith.constant 0 : index
    %142 = vector.load %arg15[%c0_76, %c0_77] : memref<1x32xf32, #tpu.memory_space<vmem>>, vector<1x32xf32>
    %143 = arith.addf %141, %142 : vector<1x32xf32>
    %cst_78 = arith.constant 0.000000e+00 : f32
    %144 = vector.broadcast %cst_78 : f32 to vector<1x32xf32>
    %145 = arith.maximumf %143, %144 : vector<1x32xf32>
    %c0_79 = arith.constant 0 : index
    %c0_80 = arith.constant 0 : index
    %146 = vector.load %arg16[%c0_79, %c0_80] : memref<32x5xf32, #tpu.memory_space<vmem>>, vector<32x5xf32>
    %cst_81 = arith.constant dense<0.000000e+00> : vector<1x5xf32>
    %147 = tpu.matmul %145, %146, %cst_81 {dimension_numbers = #tpu.dot_dimension_numbers<[1], [0], [0], [1], [0, 0, 1, 1], [], []>} : vector<1x32xf32>, vector<32x5xf32>, vector<1x5xf32> -> vector<1x5xf32>
    %c0_82 = arith.constant 0 : index
    %c0_83 = arith.constant 0 : index
    %148 = vector.load %arg17[%c0_82, %c0_83] : memref<1x5xf32, #tpu.memory_space<vmem>>, vector<1x5xf32>
    %149 = arith.addf %147, %148 : vector<1x5xf32>
    %c0_84 = arith.constant 0 : index
    %c0_85 = arith.constant 0 : index
    %c0_86 = arith.constant 0 : index
    %150 = vector.load %arg18[%c0_84, %c0_85, %c0_86] : memref<1x1x5xf32, #tpu.memory_space<vmem>>, vector<1x1x5xf32>
    %151 = vector.shape_cast %150 : vector<1x1x5xf32> to vector<1x5xf32>
    %152 = vector.shape_cast %149 : vector<1x5xf32> to vector<1x1x5xf32>
    tpu.vector_store %arg18[%c0_84, %c0_85, %c0_86], %152 {strides = array<i32>} : memref<1x1x5xf32, #tpu.memory_space<vmem>>, vector<1x1x5xf32>,
    return
  }
  func.func @transform_0(%arg0: i32) -> (i32, i32, i32, i32) {
    %c0_i32 = arith.constant 0 : i32
    %c0_i32_0 = arith.constant 0 : i32
    %c0_i32_1 = arith.constant 0 : i32
    %c0_i32_2 = arith.constant 0 : i32
    return %arg0, %c0_i32, %c0_i32_0, %c0_i32_1 : i32, i32, i32, i32
  }
  func.func @transform_1(%arg0: i32) -> (i32, i32, i32, i32, i32) {
    %c0_i32 = arith.constant 0 : i32
    %c0_i32_0 = arith.constant 0 : i32
    %c0_i32_1 = arith.constant 0 : i32
    %c0_i32_2 = arith.constant 0 : i32
    %c0_i32_3 = arith.constant 0 : i32
    return %arg0, %c0_i32, %c0_i32_0, %c0_i32_1, %c0_i32_2 : i32, i32, i32, i32, i32
  }
  func.func @transform_2(%arg0: i32) -> (i32, i32) {
    %c0_i32 = arith.constant 0 : i32
    %c0_i32_0 = arith.constant 0 : i32
    %c0_i32_1 = arith.constant 0 : i32
    return %c0_i32, %c0_i32_0 : i32, i32
  }
  func.func @transform_3(%arg0: i32) -> (i32, i32) {
    %c0_i32 = arith.constant 0 : i32
    %c0_i32_0 = arith.constant 0 : i32
    %c0_i32_1 = arith.constant 0 : i32
    return %c0_i32, %c0_i32_0 : i32, i32
  }
  func.func @transform_4(%arg0: i32) -> (i32, i32) {
    %c0_i32 = arith.constant 0 : i32
    %c0_i32_0 = arith.constant 0 : i32
    %c0_i32_1 = arith.constant 0 : i32
    return %c0_i32, %c0_i32_0 : i32, i32
  }
  func.func @transform_5(%arg0: i32) -> (i32, i32) {
    %c0_i32 = arith.constant 0 : i32
    %c0_i32_0 = arith.constant 0 : i32
    %c0_i32_1 = arith.constant 0 : i32
    return %c0_i32, %c0_i32_0 : i32, i32
  }
  func.func @transform_6(%arg0: i32) -> (i32, i32) {
    %c0_i32 = arith.constant 0 : i32
    %c0_i32_0 = arith.constant 0 : i32
    %c0_i32_1 = arith.constant 0 : i32
    return %c0_i32, %c0_i32_0 : i32, i32
  }
  func.func @transform_7(%arg0: i32) -> (i32, i32) {
    %c0_i32 = arith.constant 0 : i32
    %c0_i32_0 = arith.constant 0 : i32
    %c0_i32_1 = arith.constant 0 : i32
    return %c0_i32, %c0_i32_0 : i32, i32
  }
  func.func @transform_8(%arg0: i32) -> (i32, i32) {
    %c0_i32 = arith.constant 0 : i32
    %c0_i32_0 = arith.constant 0 : i32
    %c0_i32_1 = arith.constant 0 : i32
    return %c0_i32, %c0_i32_0 : i32, i32
  }
  func.func @transform_9(%arg0: i32) -> (i32, i32) {
    %c0_i32 = arith.constant 0 : i32
    %c0_i32_0 = arith.constant 0 : i32
    %c0_i32_1 = arith.constant 0 : i32
    return %c0_i32, %c0_i32_0 : i32, i32
  }
  func.func @transform_10(%arg0: i32) -> (i32, i32) {
    %c0_i32 = arith.constant 0 : i32
    %c0_i32_0 = arith.constant 0 : i32
    %c0_i32_1 = arith.constant 0 : i32
    return %c0_i32, %c0_i32_0 : i32, i32
  }
  func.func @transform_11(%arg0: i32) -> (i32, i32) {
    %c0_i32 = arith.constant 0 : i32
    %c0_i32_0 = arith.constant 0 : i32
    %c0_i32_1 = arith.constant 0 : i32
    return %c0_i32, %c0_i32_0 : i32, i32
  }
  func.func @transform_12(%arg0: i32) -> (i32, i32) {
    %c0_i32 = arith.constant 0 : i32
    %c0_i32_0 = arith.constant 0 : i32
    %c0_i32_1 = arith.constant 0 : i32
    return %c0_i32, %c0_i32_0 : i32, i32
  }
  func.func @transform_13(%arg0: i32) -> (i32, i32) {
    %c0_i32 = arith.constant 0 : i32
    %c0_i32_0 = arith.constant 0 : i32
    %c0_i32_1 = arith.constant 0 : i32
    return %c0_i32, %c0_i32_0 : i32, i32
  }
  func.func @transform_14(%arg0: i32) -> (i32, i32) {
    %c0_i32 = arith.constant 0 : i32
    %c0_i32_0 = arith.constant 0 : i32
    %c0_i32_1 = arith.constant 0 : i32
    return %c0_i32, %c0_i32_0 : i32, i32
  }
  func.func @transform_15(%arg0: i32) -> (i32, i32) {
    %c0_i32 = arith.constant 0 : i32
    %c0_i32_0 = arith.constant 0 : i32
    %c0_i32_1 = arith.constant 0 : i32
    return %c0_i32, %c0_i32_0 : i32, i32
  }
  func.func @transform_16(%arg0: i32) -> (i32, i32) {
    %c0_i32 = arith.constant 0 : i32
    %c0_i32_0 = arith.constant 0 : i32
    %c0_i32_1 = arith.constant 0 : i32
    return %c0_i32, %c0_i32_0 : i32, i32
  }
  func.func @transform_17(%arg0: i32) -> (i32, i32, i32) {
    %c0_i32 = arith.constant 0 : i32
    %c0_i32_0 = arith.constant 0 : i32
    %c0_i32_1 = arith.constant 0 : i32
    return %arg0, %c0_i32, %c0_i32_0 : i32, i32, i32
  }
}

</mosaic_0001>

<bundles_post_ra>
// kernel: _forward.1
= control target key start
LH: loop header
LB: loop body
LE: loop exit
PB: predicated region body
PF: predicated region fallthrough
CT: control target
= control target key end

     0   :  { %s19950_s0 = inlined_call_operand.vmem [shape: f32[2,16,16,6], index: 0, kind: input, shape index: {}]   ;;  %s19951_s1 = inlined_call_operand.vmem [shape: f32[2,16,2,16,2], index: 1, kind: input, shape index: {}]   ;;  %s19952_s2 = inlined_call_operand.vmem [shape: f32[18,2], index: 2, kind: input, shape index: {}]   ;;  %s19953_s3 = inlined_call_operand.vmem [shape: f32[1,2], index: 3, kind: input, shape index: {}]   ;;  %s19954_s4 = inlined_call_operand.vmem [shape: f32[81,16], index: 4, kind: input, shape index: {}]   ;;  %s19955_s5 = inlined_call_operand.vmem [shape: f32[1,16], index: 5, kind: input, shape index: {}, may-alias: {5,7,9}]   ;;  %s19956_s6 = inlined_call_operand.vmem [shape: f32[144,16], index: 6, kind: input, shape index: {}]   ;;  %s19957_s7 = inlined_call_operand.vmem [shape: f32[1,16], index: 7, kind: input, shape index: {}, may-alias: {5,7,9}]   ;;  %s19958_s8 = inlined_call_operand.vmem [shape: f32[144,16], index: 8, kind: input, shape index: {}]   ;;  %s19959_s9 = inlined_call_operand.vmem [shape: f32[1,16], index: 9, kind: input, shape index: {}, may-alias: {5,7,9}]   ;;  %s19960_s10 = inlined_call_operand.vmem [shape: f32[64,256], index: 10, kind: input, shape index: {}]   ;;  %s19961_s11 = inlined_call_operand.vmem [shape: f32[16,2048], index: 11, kind: input, shape index: {}]   ;;  %s19962_s12 = inlined_call_operand.vmem [shape: f32[1,32], index: 12, kind: input, shape index: {}, may-alias: {12,14}]   ;;  %s19963_s13 = inlined_call_operand.vmem [shape: f32[32,32], index: 13, kind: input, shape index: {}]   ;;  %s19964_s14 = inlined_call_operand.vmem [shape: f32[1,32], index: 14, kind: input, shape index: {}, may-alias: {12,14}]   ;;  %s19965_s15 = inlined_call_operand.vmem [shape: f32[32,5], index: 15, kind: input, shape index: {}]   ;;  %s19966_s16 = inlined_call_operand.vmem [shape: f32[1,5], index: 16, kind: input, shape index: {}]   ;;  %s19967_s17 = inlined_call_operand.hbm [shape: f32[2,1,5], index: 17, kind: output, shape index: {}]  }
   0x1   :  { %20008 = sst [smem:[#allocation10_spill]] %s19950_s0 }
   0x2   :  { %20009 = sst [smem:[#allocation11_spill]] %s19951_s1 }
   0x3   :  { %20010 = sst [smem:[#allocation12_spill]] %s19952_s2 }
   0x4   :  { %20011 = sst [smem:[#allocation13_spill]] %s19953_s3 }
   0x5   :  { %22 = vsyncpa [#allocation4], 0 }
   0x6   :  { %24 = vsyncpa [#allocation4 + $0x1], 0  ;;  %s12211_s24 = smov 0   ;;  %s12213_s25 = smov 0  }
   0x7   :  { %s12215_s26 = smov 0   ;;  %s12217_s27 = smov 0  }
   0x8 LB: > { %20012 = sst [smem:[#allocation6_spill]] %s12087_s26  ;;  %s12232_s28 = sadd.s32 4294967295, %s12091_s27   ;;  %s12091_s27 = sphi %s12217_s27, %s20448_s27   ;;  %s12087_s26 = sphi %s12215_s26, %s20450_s26   ;;  %s12083_s25 = sphi %s12213_s25, %s20452_s25   ;;  %s12079_s24 = sphi %s12211_s24, %s20451_s24  }
   0x9   : > { %s10146_s29 = sadd.s32 4294967294, %s12091_s27   ;;  %s12236_s0 = sadd.s32 1, %s12091_s27  }
   0xa   : > { %20013 = sst [smem:[#allocation7_spill]] %s12236_s0  ;;  %s404_s30 = sadd.s32 1, %s12087_s26 }
   0xb   : > { %s401_s18 = ssub.s32 %s12091_s27, %s12236_s0  ;;  %p414_p0 = scmp.ne.s32.totalorder %s12087_s26, %s12083_s25 }
   0xc   : > { %p402_p1 = scmp.eq.s32.totalorder %s401_s18, 0  ;;  %p415_p2 = scmp.eq.s32.totalorder %s12232_s28, 1 }
   0xd   : > { %p420_p3 = scmp.ne.s32.totalorder %s12083_s25, %s12079_s24  ;;  %p421_p4 = scmp.eq.s32.totalorder %s10146_s29, 1 }
   0xe   : > { %s12247_s19 = scalar_select %p402_p1, %s12087_s26, %s404_s30  }
   0xf   : > { %p12249_p5 = por %p415_p2, %p414_p0  ;;  %p12253_p6 = por %p421_p4, %p420_p3 }
  0x10   : > { %20014 = sst [smem:[#allocation8_spill]] %s12247_s19  ;;  %p10149_p7 = scmp.ge.s32.totalorder %s12091_s27, 1 }
  0x11   : > { %s20016_s20 = scalar_select %p12253_p6, 1, 0 }
  0x12   : > { %p500_p8 = scmp.lt.s32.totalorder %s12091_s27, 3 }
  0x13   : > { %20017 = sst [smem:[#allocation9_spill]] %s20016_s20 }
  0x14   : > { %p501_p9 = pnand %p10149_p7, %p500_p8 }
  0x15   : > { %p556_p10 = scmp.lt.s32.totalorder (!%p501_p9), %s12232_s28, 1  ;;  %s20018_s30 = sld [smem:[#allocation11_spill]] (!%p501_p9)  ;;  %vm566_vm0 = vcmask (!%p501_p9), 130048   ;;  %vm569_vm1 = vcmask (!%p501_p9), 123904   ;;  %vm655_vm2 = vcmask (!%p501_p9), 31744   ;;  %vm816_vm3 = vcmask (!%p501_p9), 56360  }
  0x16   : > { %504 = sbr.rel (%p501_p9) target bundleno = 3882 (0xf2a), region = 88  ;;  %s20019_s19 = sld [smem:[#allocation10_spill]] (!%p501_p9)  ;;  %vm1464_vm4 = vcmask (!%p501_p9), 1046528   ;;  %vm1641_vm5 = vcmask (!%p501_p9), 1045504   ;;  %vm1233_vm6 = vcmask (!%p501_p9), 39968   ;;  %vm2789_vm7 = vcmask (!%p501_p9), 1041408  }
  0x17   : > { %s19975_s29 = smov (!%p501_p9), 7   ;;  %s20020_s2 = sld [smem:[#allocation12_spill]] (!%p501_p9)  ;;  %vm2420_vm8 = vcmask (!%p501_p9), 15360   ;;  %vm2485_vm9 = vcmask (!%p501_p9), 48128   ;;  %vm2518_vm10 = vcmask (!%p501_p9), 64512   ;;  %vm2551_vm11 = vcmask (!%p501_p9), 80896  }
  0x18   : > { %s20030_s0 = smov (!%p501_p9), 11   ;;  %vm2584_vm12 = vcmask (!%p501_p9), 97280   ;;  %vm2617_vm13 = vcmask (!%p501_p9), 113664   ;;  %vm2692_vm14 = vcmask (!%p501_p9), 146432   ;;  %s20031_s3 = sld [smem:[#allocation13_spill]] (!%p501_p9)  ;;  %vm3178_vm15 = vcmask (!%p501_p9), 72760  }
  0x19   : > { %s20035_s20 = smov (!%p501_p9), 36  }
  0x1d   : > { %s12261_s21 = scalar_select %p556_p10, %s12232_s28, 1 }
  0x1f   : > { %s10358_s22 = sshll.u32 %s12261_s21, 9  ;;  %s10357_s23 = sshll.u32 %s12261_s21, 8 }
  0x20   : > { %s12267_s18 = scalar_lea.vmem %s20018_s30, %s10358_s22  ;;  %s19983_s22 = smov 127  }
  0x21   : > { %v849_v0 = vld [vmem:[%s12267_s18] sm:$0xff]  ;;  %v851_v1 = vld [vmem:[%s12267_s18 + $0x10] sm:$0xff]  ;;  %v850_v5 = vld [vmem:[%s12267_s18 + $0x8] sm:$0xff]  ;;  %s12369_s26 = scalar_lea.vmem %s20019_s19, %s10357_s23  ;;  %s19973_s19 = smov 1  }
  0x22   : > { %v853_v2 = vld [vmem:[%s12267_s18 + $0x20] sm:$0xff]  ;;  %v12272_v3 = vmax.f32 %v849_v0, %v851_v1  ;;  %v855_v4 = vld [vmem:[%s12267_s18 + $0x30] sm:$0xff]  ;;  %v852_v6 = vld [vmem:[%s12267_s18 + $0x18] sm:$0xff]  ;;  %s19969_s21 = smov 4   ;;  %s19979_s23 = smov 125  }
  0x23   : > { %v12277_v7 = vmax.f32 %v853_v2, %v855_v4  ;;  %v854_v8 = vld [vmem:[%s12267_s18 + $0x28] sm:$0xff]  ;;  %v856_v9 = vld [vmem:[%s12267_s18 + $0x38] sm:$0xff]  ;;  %v12283_v10 = vmax.f32 %v850_v5, %v852_v6  ;;  %v857_v12 = vld [vmem:[%s12267_s18 + $0x40] sm:$0xff]  ;;  %s19977_s30 = smov 3  }
  0x24   : > { %977 = vrot.lane.b32.xlu0 %v12272_v3, %s19983_s22  ;;  %v12287_v11 = vmax.f32 %v854_v8, %v856_v9  ;;  %v859_v13 = vld [vmem:[%s12267_s18 + $0x50] sm:$0xff]  ;;  %v858_v14 = vld [vmem:[%s12267_s18 + $0x48] sm:$0xff]  ;;  %v860_v15 = vld [vmem:[%s12267_s18 + $0x58] sm:$0xff] }
  0x25   : > { %981 = vrot.lane.b32.xlu1 %v12277_v7, %s19983_s22  ;;  %v12295_v16 = vmax.f32 %v857_v12, %v859_v13  ;;  %v12299_v17 = vmax.f32 %v858_v14, %v860_v15  ;;  %v861_v18 = vld [vmem:[%s12267_s18 + $0x60] sm:$0xff]  ;;  %v863_v19 = vld [vmem:[%s12267_s18 + $0x70] sm:$0xff]  ;;  %v862_v20 = vld [vmem:[%s12267_s18 + $0x68] sm:$0xff]  ;;  %v12094_v12 = vmov 0.0  }
  0x26   : > { %v864_v21 = vld [vmem:[%s12267_s18 + $0x78] sm:$0xff]  ;;  %v12307_v22 = vmax.f32 %v861_v18, %v863_v19  ;;  %v865_v24 = vld [vmem:[%s12267_s18 + $0x80] sm:$0xff]  ;;  %v867_v25 = vld [vmem:[%s12267_s18 + $0x90] sm:$0xff]  ;;  %572 = vst.msk [vmem:[#allocation2 + $0x20] sm:$0xff] %vm566_vm0, %v12094_v12 }
  0x27   : > { %v12311_v23 = vmax.f32 %v862_v20, %v864_v21  ;;  %v866_v26 = vld [vmem:[%s12267_s18 + $0x88] sm:$0xff]  ;;  %v868_v27 = vld [vmem:[%s12267_s18 + $0x98] sm:$0xff]  ;;  %v12319_v28 = vmax.f32 %v865_v24, %v867_v25  ;;  %v869_v30 = vld [vmem:[%s12267_s18 + $0xa0] sm:$0xff]  ;;  %573 = vst.msk [vmem:[#allocation2 + $0x28] sm:$0x3] %vm569_vm1, %v12094_v12 }
  0x28   : > { %979 = vrot.lane.b32.xlu0 %v12283_v10, %s19983_s22  ;;  %v12323_v29 = vmax.f32 %v866_v26, %v868_v27  ;;  %v871_v31 = vld [vmem:[%s12267_s18 + $0xb0] sm:$0xff]  ;;  %v870_v32 = vld [vmem:[%s12267_s18 + $0xa8] sm:$0xff]  ;;  %v872_v33 = vld [vmem:[%s12267_s18 + $0xb8] sm:$0xff]  ;;  %567 = vst.msk [vmem:[#allocation2] sm:$0xff] %vm566_vm0, %v12094_v12 }
  0x29   : > { %983 = vrot.lane.b32.xlu1 %v12287_v11, %s19983_s22  ;;  %v12331_v34 = vmax.f32 %v869_v30, %v871_v31  ;;  %v12335_v35 = vmax.f32 %v870_v32, %v872_v33  ;;  %v873_v36 = vld [vmem:[%s12267_s18 + $0xc0] sm:$0xff]  ;;  %v875_v37 = vld [vmem:[%s12267_s18 + $0xd0] sm:$0xff]  ;;  %v874_v38 = vld [vmem:[%s12267_s18 + $0xc8] sm:$0xff]  ;;  %568 = vst.msk [vmem:[#allocation2 + $0x8] sm:$0xff] %vm566_vm0, %v12094_v12 }
  0x2a   : > { %v876_v39 = vld [vmem:[%s12267_s18 + $0xd8] sm:$0xff]  ;;  %v12343_v40 = vmax.f32 %v873_v36, %v875_v37  ;;  %v877_v42 = vld [vmem:[%s12267_s18 + $0xe0] sm:$0xff]  ;;  %v879_v43 = vld [vmem:[%s12267_s18 + $0xf0] sm:$0xff]  ;;  %570 = vst.msk [vmem:[#allocation2 + $0x10] sm:$0x3] %vm569_vm1, %v12094_v12 }
  0x2b   : > { %v12347_v41 = vmax.f32 %v874_v38, %v876_v39  ;;  %v878_v44 = vld [vmem:[%s12267_s18 + $0xe8] sm:$0xff]  ;;  %v880_v45 = vld [vmem:[%s12267_s18 + $0xf8] sm:$0xff]  ;;  %v12356_v46 = vmax.f32 %v877_v42, %v879_v43  ;;  %v881_v50 = vld [vmem:[%s12267_s18 + $0x100] sm:$0xff]  ;;  %571 = vst.msk [vmem:[#allocation2 + $0x18] sm:$0xff] %vm566_vm0, %v12094_v12 }
  0x2c   : > { %985 = vrot.lane.b32.xlu0 %v12295_v16, %s19983_s22  ;;  %v882_v47 = vld [vmem:[%s12267_s18 + $0x108] sm:$0xff]  ;;  %v12361_v48 = vmax.f32 %v878_v44, %v880_v45  ;;  %v884_v49 = vld [vmem:[%s12267_s18 + $0x118] sm:$0xff]  ;;  %v883_v51 = vld [vmem:[%s12267_s18 + $0x110] sm:$0xff]  ;;  %574 = vst.msk [vmem:[#allocation2 + $0x30] sm:$0xff] %vm566_vm0, %v12094_v12 }
  0x2d   : > { %987 = vrot.lane.b32.xlu1 %v12299_v17, %s19983_s22  ;;  %v12373_v52 = vmax.f32 %v882_v47, %v884_v49  ;;  %v12375_v53 = vmax.f32 %v881_v50, %v883_v51  ;;  %v12378_v54 = vld [vmem:[%s12369_s26 + $0x8] sm:$0xff]  ;;  %v12381_v55 = vld [vmem:[%s12369_s26] sm:$0xff]  ;;  %v12384_v56 = vld [vmem:[%s12369_s26 + $0x18] sm:$0xff]  ;;  %575 = vst.msk [vmem:[#allocation2 + $0x38] sm:$0xff] %vm566_vm0, %v12094_v12 }
  0x2e   : > { %v12387_v57 = vld [vmem:[%s12369_s26 + $0x10] sm:$0xff]  ;;  %v12390_v58 = vld [vmem:[%s12369_s26 + $0x28] sm:$0xff]  ;;  %v12393_v59 = vld [vmem:[%s12369_s26 + $0x20] sm:$0xff]  ;;  %576 = vst.msk [vmem:[#allocation2 + $0x40] sm:$0x3] %vm569_vm1, %v12094_v12 }
  0x2f   : > { %v12396_v60 = vld [vmem:[%s12369_s26 + $0x30] sm:$0xff]  ;;  %v12399_v61 = vld [vmem:[%s12369_s26 + $0x38] sm:$0xff]  ;;  %v12402_v62 = vld [vmem:[%s12369_s26 + $0x40] sm:$0xff]  ;;  %577 = vst.msk [vmem:[#allocation2 + $0x48] sm:$0xff] %vm566_vm0, %v12094_v12 }
  0x30   : > { %989 = vrot.lane.b32.xlu0 %v12307_v22, %s19983_s22  ;;  %v12405_v63 = vld [vmem:[%s12369_s26 + $0x48] sm:$0xff]  ;;  %v12408_v0 = vld [vmem:[%s12369_s26 + $0x50] sm:$0xff]  ;;  %v12411_v1 = vld [vmem:[%s12369_s26 + $0x58] sm:$0xff]  ;;  %578 = vst.msk [vmem:[#allocation2 + $0x50] sm:$0xff] %vm566_vm0, %v12094_v12 }
  0x31   : > { %991 = vrot.lane.b32.xlu1 %v12311_v23, %s19983_s22  ;;  %v12414_v2 = vld [vmem:[%s12369_s26 + $0x60] sm:$0xff]  ;;  %v12417_v4 = vld [vmem:[%s12369_s26 + $0x68] sm:$0xff]  ;;  %v12422_v5 = vld [vmem:[%s12369_s26 + $0x70] sm:$0xff]  ;;  %579 = vst.msk [vmem:[#allocation2 + $0x58] sm:$0x3] %vm569_vm1, %v12094_v12 }
  0x32   : > { %v12425_v6 = vld [vmem:[%s12369_s26 + $0x78] sm:$0xff]  ;;  %v12428_v8 = vld [vmem:[%s12369_s26 + $0x88] sm:$0xff]  ;;  %v12431_v9 = vld [vmem:[%s12369_s26 + $0x80] sm:$0xff]  ;;  %580 = vst.msk [vmem:[#allocation2 + $0x60] sm:$0xff] %vm566_vm0, %v12094_v12 }
  0x33   : > { %581 = vst.msk [vmem:[#allocation2 + $0x68] sm:$0xff] %vm566_vm0, %v12094_v12  ;;  %583 = vst.msk [vmem:[#allocation2 + $0x78] sm:$0xff] %vm566_vm0, %v12094_v12  ;;  %v12542_v13 = vld [vmem:[%s12369_s26 + $0x98] sm:$0xff]  ;;  %v885_v14 = vld [vmem:[%s12267_s18 + $0x120] sm:$0xff] }
  0x34   : > { %993 = vrot.lane.b32.xlu0 %v12319_v28, %s19983_s22  ;;  %582 = vst.msk [vmem:[#allocation2 + $0x70] sm:$0x3] %vm569_vm1, %v12094_v12  ;;  %585 = vst.msk [vmem:[#allocation2 + $0x88] sm:$0x3] %vm569_vm1, %v12094_v12  ;;  %v887_v15 = vld [vmem:[%s12267_s18 + $0x130] sm:$0xff]  ;;  %v886_v19 = vld [vmem:[%s12267_s18 + $0x128] sm:$0xff] }
  0x35   : > { %995 = vrot.lane.b32.xlu1 %v12323_v29, %s19983_s22  ;;  %584 = vst.msk [vmem:[#allocation2 + $0x80] sm:$0xff] %vm566_vm0, %v12094_v12  ;;  %586 = vst.msk [vmem:[#allocation2 + $0x90] sm:$0xff] %vm566_vm0, %v12094_v12  ;;  %v12589_v18 = vld [vmem:[%s12369_s26 + $0x90] sm:$0xff]  ;;  %v888_v20 = vld [vmem:[%s12267_s18 + $0x138] sm:$0xff]  ;;  %v12597_v21 = vmax.f32 %v885_v14, %v887_v15 }
  0x36   : > { %587 = vst.msk [vmem:[#allocation2 + $0x98] sm:$0xff] %vm566_vm0, %v12094_v12  ;;  %589 = vst.msk [vmem:[#allocation2 + $0xa8] sm:$0xff] %vm566_vm0, %v12094_v12  ;;  %v12601_v24 = vmax.f32 %v886_v19, %v888_v20  ;;  %v12604_v25 = vld [vmem:[%s12369_s26 + $0xa8] sm:$0xff]  ;;  %v12613_v26 = vld [vmem:[%s12369_s26 + $0xa0] sm:$0xff] }
  0x37   : > { %588 = vst.msk [vmem:[#allocation2 + $0xa0] sm:$0x3] %vm569_vm1, %v12094_v12  ;;  %591 = vst.msk [vmem:[#allocation2 + $0xb8] sm:$0x3] %vm569_vm1, %v12094_v12  ;;  %v889_v27 = vld [vmem:[%s12267_s18 + $0x140] sm:$0xff]  ;;  %v891_v30 = vld [vmem:[%s12267_s18 + $0x150] sm:$0xff] }
  0x38   : > { %997 = vrot.lane.b32.xlu0 %v12331_v34, %s19983_s22  ;;  %590 = vst.msk [vmem:[#allocation2 + $0xb0] sm:$0xff] %vm566_vm0, %v12094_v12  ;;  %592 = vst.msk [vmem:[#allocation2 + $0xc0] sm:$0xff] %vm566_vm0, %v12094_v12  ;;  %v890_v31 = vld [vmem:[%s12267_s18 + $0x148] sm:$0xff]  ;;  %v892_v32 = vld [vmem:[%s12267_s18 + $0x158] sm:$0xff]  ;;  %v12627_v33 = vmax.f32 %v889_v27, %v891_v30 }
  0x39   : > { %999 = vrot.lane.b32.xlu1 %v12335_v35, %s19983_s22  ;;  %593 = vst.msk [vmem:[#allocation2 + $0xc8] sm:$0xff] %vm566_vm0, %v12094_v12  ;;  %595 = vst.msk [vmem:[#allocation2 + $0xd8] sm:$0xff] %vm566_vm0, %v12094_v12  ;;  %v12631_v36 = vmax.f32 %v890_v31, %v892_v32  ;;  %v893_v37 = vld [vmem:[%s12267_s18 + $0x160] sm:$0xff]  ;;  %v895_v38 = vld [vmem:[%s12267_s18 + $0x170] sm:$0xff] }
  0x3a   : > { %594 = vst.msk [vmem:[#allocation2 + $0xd0] sm:$0x3] %vm569_vm1, %v12094_v12  ;;  %597 = vst.msk [vmem:[#allocation2 + $0xe8] sm:$0x3] %vm569_vm1, %v12094_v12  ;;  %v894_v39 = vld [vmem:[%s12267_s18 + $0x168] sm:$0xff]  ;;  %v896_v42 = vld [vmem:[%s12267_s18 + $0x178] sm:$0xff]  ;;  %v12643_v43 = vmax.f32 %v893_v37, %v895_v38 }
  0x3b   : > { %596 = vst.msk [vmem:[#allocation2 + $0xe0] sm:$0xff] %vm566_vm0, %v12094_v12  ;;  %598 = vst.msk [vmem:[#allocation2 + $0xf0] sm:$0xff] %vm566_vm0, %v12094_v12  ;;  %v12647_v44 = vmax.f32 %v894_v39, %v896_v42  ;;  %v12650_v45 = vld [vmem:[%s12369_s26 + $0xb8] sm:$0xff]  ;;  %v897_v47 = vld [vmem:[%s12267_s18 + $0x180] sm:$0xff] }
  0x3c   : > { %1001 = vrot.lane.b32.xlu0 %v12343_v40, %s19983_s22  ;;  %599 = vst.msk [vmem:[#allocation2 + $0xf8] sm:$0xff] %vm566_vm0, %v12094_v12  ;;  %601 = vst.msk [vmem:[#allocation2 + $0x108] sm:$0xff] %vm566_vm0, %v12094_v12  ;;  %v899_v49 = vld [vmem:[%s12267_s18 + $0x190] sm:$0xff]  ;;  %v898_v51 = vld [vmem:[%s12267_s18 + $0x188] sm:$0xff] }
  0x3d   : > { %1003 = vrot.lane.b32.xlu1 %v12347_v41, %s19983_s22  ;;  %600 = vst.msk [vmem:[#allocation2 + $0x100] sm:$0x3] %vm569_vm1, %v12094_v12  ;;  %603 = vst.msk [vmem:[#allocation2 + $0x118] sm:$0x3] %vm569_vm1, %v12094_v12  ;;  %v12661_v50 = vld [vmem:[%s12369_s26 + $0xb0] sm:$0xff]  ;;  %v908_v15 = vld [vmem:[%s12267_s18 + $0x1d8] sm:$0xff] }
  0x3e   : > { %602 = vst.msk [vmem:[#allocation2 + $0x110] sm:$0xff] %vm566_vm0, %v12094_v12  ;;  %604 = vst.msk [vmem:[#allocation2 + $0x120] sm:$0xff] %vm566_vm0, %v12094_v12  ;;  %v907_v14 = vld [vmem:[%s12267_s18 + $0x1d0] sm:$0xff]  ;;  %v909_v20 = vld [vmem:[%s12267_s18 + $0x1e0] sm:$0xff] }
  0x3f   : > { %605 = vst.msk [vmem:[#allocation2 + $0x128] sm:$0xff] %vm566_vm0, %v12094_v12  ;;  %607 = vst.msk [vmem:[#allocation2 + $0x138] sm:$0xff] %vm566_vm0, %v12094_v12  ;;  %v911_v27 = vld [vmem:[%s12267_s18 + $0x1f0] sm:$0xff]  ;;  %v910_v30 = vld [vmem:[%s12267_s18 + $0x1e8] sm:$0xff] }
  0x40   : > { %1005 = vrot.lane.b32.xlu0 %v12356_v46, %s19983_s22  ;;  %606 = vst.msk [vmem:[#allocation2 + $0x130] sm:$0x3] %vm569_vm1, %v12094_v12  ;;  %609 = vst.msk [vmem:[#allocation2 + $0x148] sm:$0x3] %vm569_vm1, %v12094_v12  ;;  %v912_v31 = vld [vmem:[%s12267_s18 + $0x1f8] sm:$0xff] }
  0x41   : > { %1007 = vrot.lane.b32.xlu1 %v12361_v48, %s19983_s22  ;;  %608 = vst.msk [vmem:[#allocation2 + $0x140] sm:$0xff] %vm566_vm0, %v12094_v12  ;;  %610 = vst.msk [vmem:[#allocation2 + $0x150] sm:$0xff] %vm566_vm0, %v12094_v12 }
  0x42   : > { %611 = vst.msk [vmem:[#allocation2 + $0x158] sm:$0xff] %vm566_vm0, %v12094_v12  ;;  %613 = vst.msk [vmem:[#allocation2 + $0x168] sm:$0xff] %vm566_vm0, %v12094_v12 }
  0x43   : > { %612 = vst.msk [vmem:[#allocation2 + $0x160] sm:$0x3] %vm569_vm1, %v12094_v12  ;;  %615 = vst.msk [vmem:[#allocation2 + $0x178] sm:$0x3] %vm569_vm1, %v12094_v12 }
  0x44   : > { %614 = vst.msk [vmem:[#allocation2 + $0x170] sm:$0xff] %vm566_vm0, %v12094_v12  ;;  %616 = vst.msk [vmem:[#allocation2 + $0x180] sm:$0xff] %vm566_vm0, %v12094_v12  ;;  %1009 = vrot.lane.b32.xlu0 %v12375_v53, %s19983_s22 }
  0x45   : > { %617 = vst.msk [vmem:[#allocation2 + $0x188] sm:$0xff] %vm566_vm0, %v12094_v12  ;;  %619 = vst.msk [vmem:[#allocation2 + $0x198] sm:$0xff] %vm566_vm0, %v12094_v12  ;;  %1011 = vrot.lane.b32.xlu1 %v12373_v52, %s19983_s22 }
  0x46   : > { %618 = vst.msk [vmem:[#allocation2 + $0x190] sm:$0x3] %vm569_vm1, %v12094_v12  ;;  %621 = vst.msk [vmem:[#allocation2 + $0x1a8] sm:$0x3] %vm569_vm1, %v12094_v12  ;;  %vm4645_vm1 = vcmask 1040384  }
  0x47   : > { %620 = vst.msk [vmem:[#allocation2 + $0x1a0] sm:$0xff] %vm566_vm0, %v12094_v12 }
  0x48   : > { %657 = vst.msk [vmem:[#allocation2 + $0x21] sm:$0xff] %vm655_vm2, %v12378_v54  ;;  %656 = vst.msk [vmem:[#allocation2 + $0x19] sm:$0xff] %vm655_vm2, %v12381_v55  ;;  %720 = vrot.lane.b32.xlu0 %v12381_v55, %s19973_s19  ;;  %v12669_v55 = vmax.f32 %v897_v47, %v899_v49 }
  0x49   : > { %658 = vst.msk [vmem:[#allocation2 + $0x31] sm:$0xff] %vm655_vm2, %v12387_v57  ;;  %659 = vst.msk [vmem:[#allocation2 + $0x39] sm:$0xff] %vm655_vm2, %v12384_v56  ;;  %722 = vrot.lane.b32.xlu1 %v12378_v54, %s19973_s19  ;;  %v900_v54 = vld [vmem:[%s12267_s18 + $0x198] sm:$0xff] }
  0x4a   : > { %660 = vst.msk [vmem:[#allocation2 + $0x49] sm:$0xff] %vm655_vm2, %v12393_v59  ;;  %661 = vst.msk [vmem:[#allocation2 + $0x51] sm:$0xff] %vm655_vm2, %v12390_v58 }
  0x4b   : > { %662 = vst.msk [vmem:[#allocation2 + $0x61] sm:$0xff] %vm655_vm2, %v12396_v60  ;;  %663 = vst.msk [vmem:[#allocation2 + $0x69] sm:$0xff] %vm655_vm2, %v12399_v61 }
  0x4c   : > { %664 = vst.msk [vmem:[#allocation2 + $0x79] sm:$0xff] %vm655_vm2, %v12402_v62  ;;  %665 = vst.msk [vmem:[#allocation2 + $0x81] sm:$0xff] %vm655_vm2, %v12405_v63  ;;  %1013 = vrot.lane.b32.xlu0 %v12597_v21, %s19983_s22 }
  0x4d   : > { %666 = vst.msk [vmem:[#allocation2 + $0x91] sm:$0xff] %vm655_vm2, %v12408_v0  ;;  %667 = vst.msk [vmem:[#allocation2 + $0x99] sm:$0xff] %vm655_vm2, %v12411_v1  ;;  %1015 = vrot.lane.b32.xlu1 %v12601_v24, %s19983_s22 }
  0x4e   : > { %668 = vst.msk [vmem:[#allocation2 + $0xa9] sm:$0xff] %vm655_vm2, %v12414_v2  ;;  %669 = vst.msk [vmem:[#allocation2 + $0xb1] sm:$0xff] %vm655_vm2, %v12417_v4 }
  0x4f   : > { %670 = vst.msk [vmem:[#allocation2 + $0xc1] sm:$0xff] %vm655_vm2, %v12422_v5  ;;  %671 = vst.msk [vmem:[#allocation2 + $0xc9] sm:$0xff] %vm655_vm2, %v12425_v6 }
  0x50   : > { %672 = vst.msk [vmem:[#allocation2 + $0xd9] sm:$0xff] %vm655_vm2, %v12431_v9  ;;  %673 = vst.msk [vmem:[#allocation2 + $0xe1] sm:$0xff] %vm655_vm2, %v12428_v8  ;;  %724 = vrot.lane.b32.xlu0 %v12387_v57, %s19973_s19  ;;  %v901_v57 = vld [vmem:[%s12267_s18 + $0x1a0] sm:$0xff] }
  0x51   : > { %675 = vst.msk [vmem:[#allocation2 + $0xf9] sm:$0xff] %vm655_vm2, %v12542_v13  ;;  %674 = vst.msk [vmem:[#allocation2 + $0xf1] sm:$0xff] %vm655_vm2, %v12589_v18  ;;  %726 = vrot.lane.b32.xlu1 %v12384_v56, %s19973_s19  ;;  %v12673_v56 = vmax.f32 %v898_v51, %v900_v54 }
  0x52   : > { %677 = vst.msk [vmem:[#allocation2 + $0x111] sm:$0xff] %vm655_vm2, %v12604_v25  ;;  %676 = vst.msk [vmem:[#allocation2 + $0x109] sm:$0xff] %vm655_vm2, %v12613_v26 }
  0x53   : > { %679 = vst.msk [vmem:[#allocation2 + $0x129] sm:$0xff] %vm655_vm2, %v12650_v45  ;;  %678 = vst.msk [vmem:[#allocation2 + $0x121] sm:$0xff] %vm655_vm2, %v12661_v50 }
  0x54   : > { %728 = vrot.lane.b32.xlu0 %v12393_v59, %s19973_s19  ;;  %v902_v59 = vld [vmem:[%s12267_s18 + $0x1a8] sm:$0xff] }
  0x55   : > { %730 = vrot.lane.b32.xlu1 %v12390_v58, %s19973_s19  ;;  %v903_v58 = vld [vmem:[%s12267_s18 + $0x1b0] sm:$0xff] }
  0x58   : > { %1017 = vrot.lane.b32.xlu0 %v12627_v33, %s19983_s22 }
  0x59   : > { %1019 = vrot.lane.b32.xlu1 %v12631_v36, %s19983_s22 }
  0x5c   : > { %732 = vrot.lane.b32.xlu0 %v12396_v60, %s19973_s19  ;;  %v904_v60 = vld [vmem:[%s12267_s18 + $0x1b8] sm:$0xff] }
  0x5d   : > { %734 = vrot.lane.b32.xlu1 %v12399_v61, %s19973_s19  ;;  %v12685_v61 = vmax.f32 %v901_v57, %v903_v58 }
  0x60   : > { %1021 = vrot.lane.b32.xlu0 %v12643_v43, %s19983_s22 }
  0x61   : > { %1023 = vrot.lane.b32.xlu1 %v12647_v44, %s19983_s22 }
  0x64   : > { %736 = vrot.lane.b32.xlu0 %v12402_v62, %s19973_s19  ;;  %v12689_v62 = vmax.f32 %v902_v59, %v904_v60 }
  0x65   : > { %738 = vrot.lane.b32.xlu1 %v12405_v63, %s19973_s19  ;;  %v905_v63 = vld [vmem:[%s12267_s18 + $0x1c0] sm:$0xff] }
  0x66   : > { %v12701_v19 = vmax.f32 %v905_v63, %v907_v14 }
  0x68   : > { %1025 = vrot.lane.b32.xlu0 %v12669_v55, %s19983_s22 }
  0x69   : > { %1027 = vrot.lane.b32.xlu1 %v12673_v56, %s19983_s22 }
  0x6c   : > { %740 = vrot.lane.b32.xlu0 %v12408_v0, %s19973_s19  ;;  %v906_v0 = vld [vmem:[%s12267_s18 + $0x1c8] sm:$0xff]  ;;  %s19971_s18 = smov 123  }
  0x6d   : > { %742 = vrot.lane.b32.xlu1 %v12411_v1, %s19973_s19  ;;  %v12705_v1 = vmax.f32 %v906_v0, %v908_v15 }
  0x70   : > { %1029 = vrot.lane.b32.xlu0 %v12685_v61, %s19983_s22 }
  0x71   : > { %1031 = vrot.lane.b32.xlu1 %v12689_v62, %s19983_s22 }
  0x74   : > { %744 = vrot.lane.b32.xlu0 %v12414_v2, %s19973_s19  ;;  %v12717_v2 = vmax.f32 %v909_v20, %v911_v27 }
  0x75   : > { %746 = vrot.lane.b32.xlu1 %v12417_v4, %s19973_s19  ;;  %v12721_v4 = vmax.f32 %v910_v30, %v912_v31 }
  0x78   : > { %1033 = vrot.lane.b32.xlu0 %v12701_v19, %s19983_s22 }
  0x79   : > { %1035 = vrot.lane.b32.xlu1 %v12705_v1, %s19983_s22 }
  0x7c   : > { %748 = vrot.lane.b32.xlu0 %v12422_v5, %s19973_s19 }
  0x7d   : > { %750 = vrot.lane.b32.xlu1 %v12425_v6, %s19973_s19 }
  0x80   : > { %1037 = vrot.lane.b32.xlu0 %v12717_v2, %s19983_s22 }
  0x81   : > { %1039 = vrot.lane.b32.xlu1 %v12721_v4, %s19983_s22 }
  0x96   : > { %v978_v32 = vpop.permute.xlu0 %977 }
  0x97   : > { %v1073_v37 = vmax.f32 %v12272_v3, %v978_v32  ;;  %v982_v38 = vpop.permute.xlu1 %981 }
  0x98   : > { %v1075_v5 = vmax.f32 %v12277_v7, %v982_v38 }
  0x99   : > { %1137 = vrot.lane.b32.xlu0 %v1073_v37, %s19969_s21 }
  0x9a   : > { %v980_v39 = vpop.permute.xlu0 %979 }
  0x9b   : > { %v1074_v6 = vmax.f32 %v12283_v10, %v980_v39  ;;  %v984_v42 = vpop.permute.xlu1 %983 }
  0x9c   : > { %v1076_v47 = vmax.f32 %v12287_v11, %v984_v42 }
  0x9d   : > { %1139 = vrot.lane.b32.xlu1 %v1074_v6, %s19969_s21  ;;  %1141 = vrot.lane.b32.xlu0 %v1075_v5, %s19969_s21  ;;  %v1267_v5 = vld [vmem:[#allocation2 + $0x8] sm:$0xff] }
  0x9e   : > { %v986_v49 = vpop.permute.xlu0 %985  ;;  %v1466_v39 = vrot.slane %v1267_v5, 1 }
  0x9f   : > { %v988_v51 = vpop.permute.xlu1 %987  ;;  %v1077_v3 = vmax.f32 %v12295_v16, %v986_v49  ;;  %v1268_v49 = vld [vmem:[#allocation2 + $0x10] sm:$0x3] }
  0xa0   : > { %v1078_v54 = vmax.f32 %v12299_v17, %v988_v51 }
  0xa1   : > { %1143 = vrot.lane.b32.xlu1 %v1076_v47, %s19969_s21  ;;  %1145 = vrot.lane.b32.xlu0 %v1077_v3, %s19969_s21  ;;  %v1643_v3 = vrot.slane %v1267_v5, 2 }
  0xa2   : > { %v990_v7 = vpop.permute.xlu0 %989 }
  0xa3   : > { %v992_v57 = vpop.permute.xlu1 %991  ;;  %v1079_v10 = vmax.f32 %v12307_v22, %v990_v7 }
  0xa4   : > { %v1080_v11 = vmax.f32 %v12311_v23, %v992_v57 }
  0xa5   : > { %1147 = vrot.lane.b32.xlu1 %v1078_v54, %s19969_s21  ;;  %1149 = vrot.lane.b32.xlu0 %v1079_v10, %s19969_s21  ;;  %v1645_v10 = vrot.slane %v1268_v49, 2 }
  0xa6   : > { %v994_v58 = vpop.permute.xlu0 %993 }
  0xa7   : > { %v996_v59 = vpop.permute.xlu1 %995  ;;  %v1081_v16 = vmax.f32 %v12319_v28, %v994_v58 }
  0xa8   : > { %v1082_v17 = vmax.f32 %v12323_v29, %v996_v59  ;;  %v1646_v59 = vsel %vm1641_vm5, %v1643_v3, %v1645_v10 }
  0xa9   : > { %1151 = vrot.lane.b32.xlu1 %v1080_v11, %s19969_s21  ;;  %1153 = vrot.lane.b32.xlu0 %v1081_v16, %s19969_s21 }
  0xaa   : > { %v998_v60 = vpop.permute.xlu0 %997 }
  0xab   : > { %v1000_v63 = vpop.permute.xlu1 %999  ;;  %v1083_v22 = vmax.f32 %v12331_v34, %v998_v60 }
  0xac   : > { %v1084_v23 = vmax.f32 %v12335_v35, %v1000_v63 }
  0xad   : > { %1155 = vrot.lane.b32.xlu1 %v1082_v17, %s19969_s21  ;;  %1157 = vrot.lane.b32.xlu0 %v1083_v22, %s19969_s21 }
  0xae   : > { %v1002_v14 = vpop.permute.xlu0 %1001 }
  0xaf   : > { %v1004_v0 = vpop.permute.xlu1 %1003  ;;  %v1085_v28 = vmax.f32 %v12343_v40, %v1002_v14 }
  0xb0   : > { %v1086_v29 = vmax.f32 %v12347_v41, %v1004_v0 }
  0xb1   : > { %1159 = vrot.lane.b32.xlu1 %v1084_v23, %s19969_s21  ;;  %1161 = vrot.lane.b32.xlu0 %v1085_v28, %s19969_s21 }
  0xb2   : > { %v1006_v15 = vpop.permute.xlu0 %1005 }
  0xb3   : > { %v1008_v20 = vpop.permute.xlu1 %1007  ;;  %v1087_v34 = vmax.f32 %v12356_v46, %v1006_v15  ;;  %v12830_v15 = vld [vmem:[%s12369_s26 + $0xc0] sm:$0xff] }
  0xb4   : > { %v1088_v35 = vmax.f32 %v12361_v48, %v1008_v20  ;;  %680 = vst.msk [vmem:[#allocation2 + $0x139] sm:$0xff] %vm655_vm2, %v12830_v15  ;;  %v12835_v20 = vld [vmem:[%s12369_s26 + $0xc8] sm:$0xff] }
  0xb5   : > { %1163 = vrot.lane.b32.xlu1 %v1086_v29, %s19969_s21  ;;  %1165 = vrot.lane.b32.xlu0 %v1087_v34, %s19969_s21  ;;  %681 = vst.msk [vmem:[#allocation2 + $0x141] sm:$0xff] %vm655_vm2, %v12835_v20 }
  0xb6   : > { %v1010_v27 = vpop.permute.xlu0 %1009 }
  0xb7   : > { %v1012_v30 = vpop.permute.xlu1 %1011  ;;  %v1089_v40 = vmax.f32 %v12375_v53, %v1010_v27 }
  0xb8   : > { %v1090_v46 = vmax.f32 %v12373_v52, %v1012_v30 }
  0xb9   : > { %1167 = vrot.lane.b32.xlu1 %v1088_v35, %s19969_s21  ;;  %752 = vrot.lane.b32.xlu0 %v12431_v9, %s19973_s19 }
  0xba   : > { %v721_v41 = vpop.permute.xlu0 %720 }
  0xbb   : > { %v723_v31 = vpop.permute.xlu1 %722  ;;  %817 = vst.msk [vmem:[#allocation2 + $0x19] sm:$0xff] %vm816_vm3, %v721_v41 }
  0xbc   : > { %818 = vst.msk [vmem:[#allocation2 + $0x21] sm:$0xff] %vm816_vm3, %v723_v31 }
  0xbd   : > { %754 = vrot.lane.b32.xlu1 %v12428_v8, %s19973_s19  ;;  %1169 = vrot.lane.b32.xlu0 %v1089_v40, %s19969_s21 }
  0xbe   : > { %v1014_v48 = vpop.permute.xlu0 %1013 }
  0xbf   : > { %v1016_v32 = vpop.permute.xlu1 %1015  ;;  %v1091_v53 = vmax.f32 %v12597_v21, %v1014_v48 }
  0xc0   : > { %v1092_v52 = vmax.f32 %v12601_v24, %v1016_v32 }
  0xc1   : > { %1171 = vrot.lane.b32.xlu1 %v1090_v46, %s19969_s21  ;;  %756 = vrot.lane.b32.xlu0 %v12589_v18, %s19973_s19  ;;  %v1266_v18 = vld [vmem:[#allocation2] sm:$0xff] }
  0xc2   : > { %v725_v9 = vpop.permute.xlu0 %724  ;;  %v1465_v21 = vrot.slane %v1266_v18, 1  ;;  %v1642_v54 = vrot.slane %v1266_v18, 2 }
  0xc3   : > { %v727_v37 = vpop.permute.xlu1 %726  ;;  %819 = vst.msk [vmem:[#allocation2 + $0x31] sm:$0xff] %vm816_vm3, %v725_v9 }
  0xc4   : > { %820 = vst.msk [vmem:[#allocation2 + $0x39] sm:$0xff] %vm816_vm3, %v727_v37  ;;  %v1467_v42 = vsel %vm1464_vm4, %v1465_v21, %v1466_v39  ;;  %v1644_v11 = vsel %vm1641_vm5, %v1642_v54, %v1643_v3 }
  0xc5   : > { %758 = vrot.lane.b32.xlu1 %v12542_v13, %s19973_s19  ;;  %1173 = vrot.lane.b32.xlu0 %v1091_v53, %s19969_s21 }
  0xc6   : > { %v729_v8 = vpop.permute.xlu0 %728 }
  0xc7   : > { %v731_v38 = vpop.permute.xlu1 %730  ;;  %821 = vst.msk [vmem:[#allocation2 + $0x49] sm:$0xff] %vm816_vm3, %v729_v8  ;;  %v12867_v8 = vld [vmem:[%s12369_s26 + $0xd0] sm:$0xff] }
  0xc8   : > { %822 = vst.msk [vmem:[#allocation2 + $0x51] sm:$0xff] %vm816_vm3, %v731_v38 }
  0xc9   : > { %1175 = vrot.lane.b32.xlu1 %v1092_v52, %s19969_s21  ;;  %760 = vrot.lane.b32.xlu0 %v12613_v26, %s19973_s19  ;;  %682 = vst.msk [vmem:[#allocation2 + $0x151] sm:$0xff] %vm655_vm2, %v12867_v8 }
  0xca   : > { %v1018_v13 = vpop.permute.xlu0 %1017 }
  0xcb   : > { %v1020_v24 = vpop.permute.xlu1 %1019  ;;  %v1093_v6 = vmax.f32 %v12627_v33, %v1018_v13  ;;  %v12886_v13 = vld [vmem:[%s12369_s26 + $0xd8] sm:$0xff] }
  0xcc   : > { %v1094_v51 = vmax.f32 %v12631_v36, %v1020_v24  ;;  %683 = vst.msk [vmem:[#allocation2 + $0x159] sm:$0xff] %vm655_vm2, %v12886_v13 }
  0xcd   : > { %762 = vrot.lane.b32.xlu1 %v12604_v25, %s19973_s19  ;;  %1352 = vrot.lane.b32.xlu0 %v1266_v18, %s19971_s18  ;;  %v1468_v25 = vrot.slane %v1268_v49, 1 }
  0xce   : > { %v733_v47 = vpop.permute.xlu0 %732 }
  0xcf   : > { %823 = vst.msk [vmem:[#allocation2 + $0x61] sm:$0xff] %vm816_vm3, %v733_v47  ;;  %v735_v26 = vpop.permute.xlu1 %734  ;;  %v1469_v57 = vsel %vm1464_vm4, %v1466_v39, %v1468_v25 }
  0xd0   : > { %824 = vst.msk [vmem:[#allocation2 + $0x69] sm:$0xff] %vm816_vm3, %v735_v26 }
  0xd1   : > { %1545 = vrot.lane.b32.xlu1 %v1467_v42, %s19979_s23  ;;  %1177 = vrot.lane.b32.xlu0 %v1093_v6, %s19969_s21 }
  0xd2   : > { %v1022_v33 = vpop.permute.xlu0 %1021 }
  0xd3   : > { %v1024_v7 = vpop.permute.xlu1 %1023  ;;  %v1095_v23 = vmax.f32 %v12643_v43, %v1022_v33 }
  0xd4   : > { %v1096_v60 = vmax.f32 %v12647_v44, %v1024_v7 }
  0xd5   : > { %1179 = vrot.lane.b32.xlu1 %v1094_v51, %s19969_s21  ;;  %1354 = vrot.lane.b32.xlu0 %v1267_v5, %s19971_s18 }
  0xd6   : > { %v737_v58 = vpop.permute.xlu0 %736 }
  0xd7   : > { %825 = vst.msk [vmem:[#allocation2 + $0x79] sm:$0xff] %vm816_vm3, %v737_v58  ;;  %v739_v36 = vpop.permute.xlu1 %738 }
  0xd8   : > { %826 = vst.msk [vmem:[#allocation2 + $0x81] sm:$0xff] %vm816_vm3, %v739_v36 }
  0xd9   : > { %1547 = vrot.lane.b32.xlu1 %v1469_v57, %s19979_s23  ;;  %1722 = vrot.lane.b32.xlu0 %v1644_v11, %s19983_s22 }
  0xda   : > { %v12802_v16 = vpop.permute.xlu0 %1025 }
  0xdb   : > { %v12804_v17 = vpop.permute.xlu1 %1027 }
  0xdd   : > { %1724 = vrot.lane.b32.xlu1 %v1646_v59, %s19983_s22  ;;  %764 = vrot.lane.b32.xlu0 %v12661_v50, %s19973_s19 }
  0xde   : > { %v741_v63 = vpop.permute.xlu0 %740 }
  0xdf   : > { %827 = vst.msk [vmem:[#allocation2 + $0x91] sm:$0xff] %vm816_vm3, %v741_v63  ;;  %v743_v22 = vpop.permute.xlu1 %742 }
  0xe0   : > { %828 = vst.msk [vmem:[#allocation2 + $0x99] sm:$0xff] %vm816_vm3, %v743_v22 }
  0xe1   : > { %766 = vrot.lane.b32.xlu1 %v12650_v45, %s19973_s19  ;;  %1183 = vrot.lane.b32.xlu0 %v1096_v60, %s19969_s21 }
  0xe2   : > { %v12816_v14 = vpop.permute.xlu0 %1029 }
  0xe3   : > { %v12818_v50 = vpop.permute.xlu1 %1031 }
  0xe5   : > { %1181 = vrot.lane.b32.xlu1 %v1095_v23, %s19969_s21  ;;  %s19981_s21 = smov 5  }
  0xe6   : > { %v745_v44 = vpop.permute.xlu0 %744 }
  0xe7   : > { %829 = vst.msk [vmem:[#allocation2 + $0xa9] sm:$0xff] %vm816_vm3, %v745_v44  ;;  %v747_v0 = vpop.permute.xlu1 %746 }
  0xe8   : > { %830 = vst.msk [vmem:[#allocation2 + $0xb1] sm:$0xff] %vm816_vm3, %v747_v0 }
  0xea   : > { %v12823_v43 = vpop.permute.xlu0 %1033 }
  0xeb   : > { %v12825_v28 = vpop.permute.xlu1 %1035 }
  0xee   : > { %v749_v45 = vpop.permute.xlu0 %748 }
  0xef   : > { %831 = vst.msk [vmem:[#allocation2 + $0xc1] sm:$0xff] %vm816_vm3, %v749_v45  ;;  %v751_v29 = vpop.permute.xlu1 %750 }
  0xf0   : > { %832 = vst.msk [vmem:[#allocation2 + $0xc9] sm:$0xff] %vm816_vm3, %v751_v29 }
  0xf2   : > { %v12839_v34 = vpop.permute.xlu0 %1037 }
  0xf3   : > { %v12841_v35 = vpop.permute.xlu1 %1039 }
 0x10b   : > { %v1138_v27 = vpop.permute.xlu0 %1137 }
 0x10c   : > { %1234 = vst.msk [vmem:[#allocation2 + $0x19] sm:$0xff] %vm1233_vm6, %v1138_v27  ;;  %v2682_v27 = vld [vmem:[%s20020_s2] sm:$0xff] }
 0x10f   : > { %v1140_v30 = vpop.permute.xlu1 %1139  ;;  %v1142_v40 = vpop.permute.xlu0 %1141 }
 0x110   : > { %1235 = vst.msk [vmem:[#allocation2 + $0x21] sm:$0xff] %vm1233_vm6, %v1140_v30  ;;  %1236 = vst.msk [vmem:[#allocation2 + $0x31] sm:$0xff] %vm1233_vm6, %v1142_v40  ;;  %v2683_v30 = vld [vmem:[%s20020_s2 + $0x8] sm:$0xff] }
 0x111   : > { %v10649_v40 = vpack.c.bf16 %v2683_v30, %v2682_v27 }
 0x113   : > { %v1144_v41 = vpop.permute.xlu1 %1143  ;;  %v12846_v31 = vld [vmem:[#allocation2 + $0x18] sm:$0xff]  ;;  %v1146_v46 = vpop.permute.xlu0 %1145  ;;  %10650 = vmatprep.subr.bf16.mxu0 %v10649_v40 }
 0x114   : > { %1237 = vst.msk [vmem:[#allocation2 + $0x39] sm:$0xff] %vm1233_vm6, %v1144_v41  ;;  %1820 = vrot.lane.b32.xlu0 %v12846_v31, %s19973_s19  ;;  %1238 = vst.msk [vmem:[#allocation2 + $0x49] sm:$0xff] %vm1233_vm6, %v1146_v46  ;;  %v1470_v51 = vrot.slane %v12846_v31, 1  ;;  %v1647_v36 = vrot.slane %v12846_v31, 2  ;;  %10652 = vmatpush3.bf16.msra.mxu0 %v10649_v40 }
 0x117   : > { %v12852_v48 = vld [vmem:[#allocation2 + $0x20] sm:$0xff]  ;;  %v1148_v32 = vpop.permute.xlu1 %1147  ;;  %v1150_v53 = vpop.permute.xlu0 %1149  ;;  %v12877_v5 = vld [vmem:[#allocation2 + $0x30] sm:$0xff]  ;;  %v1271_v7 = vld [vmem:[#allocation2 + $0x28] sm:$0x3] }
 0x118   : > { %1822 = vrot.lane.b32.xlu1 %v12852_v48, %s19973_s19  ;;  %1239 = vst.msk [vmem:[#allocation2 + $0x51] sm:$0xff] %vm1233_vm6, %v1148_v32  ;;  %1240 = vst.msk [vmem:[#allocation2 + $0x61] sm:$0xff] %vm1233_vm6, %v1150_v53  ;;  %v1471_v47 = vrot.slane %v12852_v48, 1  ;;  %v1473_v57 = vrot.slane %v1271_v7, 1  ;;  %v1648_v10 = vrot.slane %v12852_v48, 2  ;;  %v1475_v23 = vrot.slane %v12877_v5, 1 }
 0x119   : > { %v1650_v0 = vrot.slane %v1271_v7, 2  ;;  %v2684_v53 = vld [vmem:[%s20020_s2 + $0x10] sm:$0x3]  ;;  %s20029_s2 = smov 9  }
 0x11a   : > { %v1472_v3 = vsel %vm1464_vm4, %v1470_v51, %v1471_v47  ;;  %v1474_v59 = vsel %vm1464_vm4, %v1471_v47, %v1473_v57  ;;  %v1649_v60 = vsel %vm1641_vm5, %v1647_v36, %v1648_v10  ;;  %10507 = vmatprep.subr.msk.mxu0 %vm2789_vm7, %v2684_v53 }
 0x11b   : > { %v12858_v9 = vld [vmem:[#allocation2 + $0x38] sm:$0xff]  ;;  %v1152_v37 = vpop.permute.xlu1 %1151  ;;  %v1154_v52 = vpop.permute.xlu0 %1153  ;;  %v12906_v25 = vld [vmem:[#allocation2 + $0x48] sm:$0xff]  ;;  %v1274_v32 = vld [vmem:[#allocation2 + $0x40] sm:$0x3]  ;;  %10508 = vmatpush3.msk.msra.mxu0 %vm2789_vm7, %v2684_v53  ;;  %vm4398_vm7 = vcmask 367616  }
 0x11c   : > { %1356 = vrot.lane.b32.xlu1 %v12846_v31, %s19971_s18  ;;  %2123 = vrot.lane.b32.xlu0 %v12858_v9, %s19975_s29  ;;  %1241 = vst.msk [vmem:[#allocation2 + $0x69] sm:$0xff] %vm1233_vm6, %v1152_v37  ;;  %1242 = vst.msk [vmem:[#allocation2 + $0x79] sm:$0xff] %vm1233_vm6, %v1154_v52  ;;  %v1476_v44 = vrot.slane %v12858_v9, 1  ;;  %v1651_v31 = vsel %vm1641_vm5, %v1648_v10, %v1650_v0  ;;  %v1652_v37 = vrot.slane %v12877_v5, 2  ;;  %v1653_v52 = vrot.slane %v12858_v9, 2 }
 0x11d   : > { %v1480_v7 = vrot.slane %v12906_v25, 1 }
 0x11e   : > { %v1477_v41 = vsel %vm1464_vm4, %v1475_v23, %v1476_v44 }
 0x11f   : > { %v1156_v38 = vpop.permute.xlu1 %1155  ;;  %v1158_v18 = vpop.permute.xlu0 %1157  ;;  %v12888_v24 = vld [vmem:[#allocation2 + $0x50] sm:$0xff]  ;;  %v13010_v27 = vld [vmem:[#allocation2 + $0x60] sm:$0xff] }
 0x120   : > { %1358 = vrot.lane.b32.xlu1 %v12852_v48, %s19971_s18  ;;  %1826 = vrot.lane.b32.xlu0 %v12858_v9, %s19973_s19  ;;  %1243 = vst.msk [vmem:[#allocation2 + $0x81] sm:$0xff] %vm1233_vm6, %v1156_v38  ;;  %1244 = vst.msk [vmem:[#allocation2 + $0x91] sm:$0xff] %vm1233_vm6, %v1158_v18  ;;  %v1478_v38 = vrot.slane %v1274_v32, 1  ;;  %v1481_v57 = vrot.slane %v12888_v24, 1  ;;  %v1662_v53 = vrot.slane %v13010_v27, 2 }
 0x123   : > { %v1160_v21 = vpop.permute.xlu1 %1159  ;;  %v1162_v39 = vpop.permute.xlu0 %1161  ;;  %v1280_v30 = vld [vmem:[#allocation2 + $0x70] sm:$0x3] }
 0x124   : > { %2121 = vrot.lane.b32.xlu1 %v12877_v5, %s19975_s29  ;;  %1360 = vrot.lane.b32.xlu0 %v12877_v5, %s19971_s18  ;;  %1245 = vst.msk [vmem:[#allocation2 + $0x99] sm:$0xff] %vm1233_vm6, %v1160_v21  ;;  %1246 = vst.msk [vmem:[#allocation2 + $0xa9] sm:$0xff] %vm1233_vm6, %v1162_v39  ;;  %v1654_v39 = vsel %vm1641_vm5, %v1652_v37, %v1653_v52 }
 0x127   : > { %v1164_v6 = vpop.permute.xlu1 %1163  ;;  %v1166_v42 = vpop.permute.xlu0 %1165 }
 0x128   : > { %1824 = vrot.lane.b32.xlu1 %v12877_v5, %s19973_s19  ;;  %2127 = vrot.lane.b32.xlu0 %v12888_v24, %s19975_s29  ;;  %1247 = vst.msk [vmem:[#allocation2 + $0xb1] sm:$0xff] %vm1233_vm6, %v1164_v6  ;;  %1248 = vst.msk [vmem:[#allocation2 + $0xc1] sm:$0xff] %vm1233_vm6, %v1166_v42  ;;  %v1479_v6 = vsel %vm1464_vm4, %v1476_v44, %v1478_v38  ;;  %v1665_v38 = vrot.slane %v1280_v30, 2 }
 0x12b   : > { %v1168_v49 = vpop.permute.xlu1 %1167  ;;  %v753_v26 = vpop.permute.xlu0 %752 }
 0x12c   : > { %1362 = vrot.lane.b32.xlu1 %v12858_v9, %s19971_s18  ;;  %1830 = vrot.lane.b32.xlu0 %v12888_v24, %s19973_s19  ;;  %1249 = vst.msk [vmem:[#allocation2 + $0xc9] sm:$0xff] %vm1233_vm6, %v1168_v49  ;;  %v1655_v9 = vrot.slane %v1274_v32, 2  ;;  %s20023_s18 = smov 7  }
 0x12d   : > { %833 = vst.msk [vmem:[#allocation2 + $0xd9] sm:$0xff] %vm816_vm3, %v753_v26  ;;  %v12968_v26 = vld [vmem:[%s12369_s26 + $0xe0] sm:$0xff] }
 0x12e   : > { %684 = vst.msk [vmem:[#allocation2 + $0x169] sm:$0xff] %vm655_vm2, %v12968_v26  ;;  %v1656_v51 = vsel %vm1641_vm5, %v1653_v52, %v1655_v9  ;;  %v13094_v9 = vld [vmem:[#allocation2 + $0x78] sm:$0xff] }
 0x12f   : > { %v755_v54 = vpop.permute.xlu1 %754  ;;  %v1170_v33 = vpop.permute.xlu0 %1169 }
 0x130   : > { %2125 = vrot.lane.b32.xlu1 %v12906_v25, %s19975_s29  ;;  %1922 = vrot.lane.b32.xlu0 %v1472_v3, %s19977_s30  ;;  %834 = vst.msk [vmem:[#allocation2 + $0xe1] sm:$0xff] %vm816_vm3, %v755_v54  ;;  %s20021_s29 = smov 3  }
 0x131   : > { %1250 = vst.msk [vmem:[#allocation2 + $0xd9] sm:$0xff] %vm1233_vm6, %v1170_v33  ;;  %v12981_v33 = vld [vmem:[%s12369_s26 + $0xe8] sm:$0xff] }
 0x132   : > { %685 = vst.msk [vmem:[#allocation2 + $0x171] sm:$0xff] %vm655_vm2, %v12981_v33 }
 0x133   : > { %v1172_v11 = vpop.permute.xlu1 %1171  ;;  %v757_v58 = vpop.permute.xlu0 %756 }
 0x134   : > { %1828 = vrot.lane.b32.xlu1 %v12906_v25, %s19973_s19  ;;  %1549 = vrot.lane.b32.xlu0 %v1472_v3, %s19979_s23  ;;  %1251 = vst.msk [vmem:[#allocation2 + $0xe1] sm:$0xff] %vm1233_vm6, %v1172_v11  ;;  %s20022_s19 = smov 125  }
 0x135   : > { %835 = vst.msk [vmem:[#allocation2 + $0xf1] sm:$0xff] %vm816_vm3, %v757_v58  ;;  %v1482_v58 = vsel %vm1464_vm4, %v1480_v7, %v1481_v57 }
 0x137   : > { %v759_v63 = vpop.permute.xlu1 %758  ;;  %v1174_v22 = vpop.permute.xlu0 %1173 }
 0x138   : > { %1924 = vrot.lane.b32.xlu1 %v1474_v59, %s19977_s30  ;;  %2023 = vrot.lane.b32.xlu0 %v1649_v60, %s19981_s21  ;;  %836 = vst.msk [vmem:[#allocation2 + $0xf9] sm:$0xff] %vm816_vm3, %v759_v63  ;;  %s19987_s30 = smov 11   ;;  %v1658_v63 = vrot.slane %v12888_v24, 2 }
 0x139   : > { %1252 = vst.msk [vmem:[#allocation2 + $0xf1] sm:$0xff] %vm1233_vm6, %v1174_v22 }
 0x13b   : > { %v1176_v45 = vpop.permute.xlu1 %1175  ;;  %v761_v29 = vpop.permute.xlu0 %760 }
 0x13c   : > { %1726 = vrot.lane.b32.xlu1 %v1649_v60, %s19983_s22  ;;  %1551 = vrot.lane.b32.xlu0 %v1474_v59, %s19979_s23  ;;  %1253 = vst.msk [vmem:[#allocation2 + $0xf9] sm:$0xff] %vm1233_vm6, %v1176_v45  ;;  %s19985_s23 = smov 9   ;;  %v1277_v59 = vld [vmem:[#allocation2 + $0x58] sm:$0x3]  ;;  %v1657_v60 = vrot.slane %v12906_v25, 2 }
 0x13d   : > { %837 = vst.msk [vmem:[#allocation2 + $0x109] sm:$0xff] %vm816_vm3, %v761_v29  ;;  %v1483_v22 = vrot.slane %v1277_v59, 1  ;;  %v1660_v0 = vrot.slane %v1277_v59, 2  ;;  %v13008_v29 = vld [vmem:[#allocation2 + $0x68] sm:$0xff] }
 0x13e   : > { %v1659_v23 = vsel %vm1641_vm5, %v1657_v60, %v1658_v63  ;;  %v1486_v40 = vrot.slane %v13008_v29, 1  ;;  %v1663_v37 = vrot.slane %v13008_v29, 2 }
 0x13f   : > { %v763_v46 = vpop.permute.xlu1 %762  ;;  %v12941_v48 = vpop.permute.xlu0 %1352  ;;  %v1484_v44 = vsel %vm1464_vm4, %v1481_v57, %v1483_v22  ;;  %v1661_v45 = vsel %vm1641_vm5, %v1658_v63, %v1660_v0  ;;  %v1667_v63 = vrot.slane %v13094_v9, 2 }
 0x140   : > { %2223 = vrot.lane.b32.xlu1 %v1477_v41, %s19985_s23  ;;  %2025 = vrot.lane.b32.xlu0 %v1651_v31, %s19981_s21  ;;  %838 = vst.msk [vmem:[#allocation2 + $0x111] sm:$0xff] %vm816_vm3, %v763_v46  ;;  %v13031_v52 = vsel %vm1641_vm5, %v1662_v53, %v1663_v37 }
 0x143   : > { %v12951_v18 = vpop.permute.xlu1 %1545  ;;  %v1178_v21 = vpop.permute.xlu0 %1177 }
 0x144   : > { %1926 = vrot.lane.b32.xlu1 %v1477_v41, %s20021_s29  ;;  %1728 = vrot.lane.b32.xlu0 %v1651_v31, %s19983_s22  ;;  %1254 = vst.msk [vmem:[#allocation2 + $0x109] sm:$0xff] %vm1233_vm6, %v1178_v21  ;;  %v1485_v31 = vrot.slane %v13010_v27, 1  ;;  %v13038_v21 = vld [vmem:[%s12369_s26 + $0xf0] sm:$0xff] }
 0x145   : > { %686 = vst.msk [vmem:[#allocation2 + $0x181] sm:$0xff] %vm655_vm2, %v13038_v21 }
 0x146   : > { %v13022_v32 = vsel %vm1464_vm4, %v1485_v31, %v1486_v40 }
 0x147   : > { %v1180_v42 = vpop.permute.xlu1 %1179  ;;  %v12958_v5 = vpop.permute.xlu0 %1354 }
 0x148   : > { %2324 = vrot.lane.b32.xlu1 %v1654_v39, %s19987_s30  ;;  %2225 = vrot.lane.b32.xlu0 %v1479_v6, %s19985_s23  ;;  %1255 = vst.msk [vmem:[#allocation2 + $0x111] sm:$0xff] %vm1233_vm6, %v1180_v42 }
 0x14b   : > { %v12963_v47 = vpop.permute.xlu1 %1547  ;;  %v12965_v49 = vpop.permute.xlu0 %1722 }
 0x14c   : > { %1553 = vrot.lane.b32.xlu1 %v1477_v41, %s20022_s19  ;;  %1928 = vrot.lane.b32.xlu0 %v1479_v6, %s20021_s29  ;;  %v1488_v41 = vrot.slane %v1280_v30, 1 }
 0x14e   : > { %v13019_v46 = vsel %vm1464_vm4, %v1486_v40, %v1488_v41 }
 0x14f   : > { %v12975_v3 = vpop.permute.xlu1 %1724  ;;  %v765_v54 = vpop.permute.xlu0 %764 }
 0x150   : > { %2027 = vrot.lane.b32.xlu1 %v1654_v39, %s19981_s21  ;;  %2326 = vrot.lane.b32.xlu0 %v1656_v51, %s19987_s30  ;;  %839 = vst.msk [vmem:[#allocation2 + $0x121] sm:$0xff] %vm816_vm3, %v765_v54 }
 0x153   : > { %v767_v10 = vpop.permute.xlu1 %766  ;;  %v1184_v11 = vpop.permute.xlu0 %1183 }
 0x154   : > { %1730 = vrot.lane.b32.xlu1 %v1654_v39, %s19983_s22  ;;  %1555 = vrot.lane.b32.xlu0 %v1479_v6, %s20022_s19  ;;  %840 = vst.msk [vmem:[#allocation2 + $0x129] sm:$0xff] %vm816_vm3, %v767_v10  ;;  %v13047_v39 = vsel %vm1641_vm5, %v1663_v37, %v1665_v38 }
 0x155   : > { %1257 = vst.msk [vmem:[#allocation2 + $0x129] sm:$0xff] %vm1233_vm6, %v1184_v11  ;;  %v1490_v11 = vrot.slane %v13094_v9, 1 }
 0x157   : > { %v1182_v36 = vpop.permute.xlu1 %1181 }
 0x158   : > { %2227 = vrot.lane.b32.xlu1 %v1482_v58, %s19985_s23  ;;  %2029 = vrot.lane.b32.xlu0 %v1656_v51, %s19981_s21  ;;  %1256 = vst.msk [vmem:[#allocation2 + $0x121] sm:$0xff] %vm1233_vm6, %v1182_v36 }
 0x15c   : > { %1930 = vrot.lane.b32.xlu1 %v1482_v58, %s20021_s29  ;;  %1732 = vrot.lane.b32.xlu0 %v1656_v51, %s19983_s22  ;;  %s20025_s22 = smov 123   ;;  %v1283_v51 = vld [vmem:[#allocation2 + $0x88] sm:$0x3] }
 0x15d   : > { %v1493_v10 = vrot.slane %v1283_v51, 1  ;;  %v1670_v40 = vrot.slane %v1283_v51, 2 }
 0x160   : > { %2328 = vrot.lane.b32.xlu1 %v1659_v23, %s19987_s30  ;;  %2229 = vrot.lane.b32.xlu0 %v1484_v44, %s19985_s23 }
 0x164   : > { %2031 = vrot.lane.b32.xlu1 %v1659_v23, %s19981_s21  ;;  %1932 = vrot.lane.b32.xlu0 %v1484_v44, %s20021_s29 }
 0x168   : > { %2033 = vrot.lane.b32.xlu1 %v1661_v45, %s19981_s21  ;;  %2330 = vrot.lane.b32.xlu0 %v1661_v45, %s19987_s30  ;;  %s20024_s21 = smov 1  }
 0x16c   : > { %2131 = vrot.lane.b32.xlu1 %v13008_v29, %s20023_s18  ;;  %2129 = vrot.lane.b32.xlu0 %v13010_v27, %s20023_s18 }
 0x170   : > { %2233 = vrot.lane.b32.xlu1 %v13019_v46, %s19985_s23  ;;  %2231 = vrot.lane.b32.xlu0 %v13022_v32, %s19985_s23  ;;  %s20026_s23 = smov 4  }
 0x174   : > { %768 = vrot.lane.b32.xlu1 %v12830_v15, %s20024_s21  ;;  %2332 = vrot.lane.b32.xlu0 %v13031_v52, %s19987_s30  ;;  %v13053_v15 = vld [vmem:[%s12369_s26 + $0xf8] sm:$0xff]  ;;  %s20027_s26 = smov 127  }
 0x175   : > { %687 = vst.msk [vmem:[#allocation2 + $0x189] sm:$0xff] %vm655_vm2, %v13053_v15 }
 0x178   : > { %1364 = vrot.lane.b32.xlu1 %v12906_v25, %s20025_s22  ;;  %770 = vrot.lane.b32.xlu0 %v12835_v20, %s20024_s21  ;;  %v1097_v25 = vmax.f32 %v12669_v55, %v12802_v16  ;;  %v1098_v20 = vmax.f32 %v12673_v56, %v12804_v17 }
 0x17c   : > { %2334 = vrot.lane.b32.xlu1 %v13047_v39, %s19987_s30  ;;  %1557 = vrot.lane.b32.xlu0 %v1482_v58, %s20022_s19  ;;  %s20028_s30 = smov 5  }
 0x180   : > { %1187 = vrot.lane.b32.xlu1 %v1098_v20, %s20026_s23  ;;  %1185 = vrot.lane.b32.xlu0 %v1097_v25, %s20026_s23 }
 0x184   : > { %1559 = vrot.lane.b32.xlu1 %v1484_v44, %s20022_s19  ;;  %1366 = vrot.lane.b32.xlu0 %v12888_v24, %s20025_s22  ;;  %v13092_v24 = vld [vmem:[#allocation2 + $0x80] sm:$0xff] }
 0x185   : > { %v1491_v57 = vrot.slane %v13092_v24, 1  ;;  %v1668_v22 = vrot.slane %v13092_v24, 2 }
 0x186   : > { %v13068_v6 = vpop.permute.xlu0 %1820 }
 0x187   : > { %v13109_v59 = vsel %vm1464_vm4, %v1491_v57, %v1493_v10  ;;  %v13112_v60 = vsel %vm1464_vm4, %v1490_v11, %v1491_v57  ;;  %v13125_v0 = vsel %vm1641_vm5, %v1667_v63, %v1668_v22  ;;  %v13142_v53 = vsel %vm1641_vm5, %v1668_v22, %v1670_v40  ;;  %v13204_v11 = vld [vmem:[#allocation2 + $0x90] sm:$0xff]  ;;  %v1286_v63 = vld [vmem:[#allocation2 + $0xa0] sm:$0x3] }
 0x188   : > { %1736 = vrot.lane.b32.xlu1 %v1661_v45, %s20027_s26  ;;  %1734 = vrot.lane.b32.xlu0 %v1659_v23, %s20027_s26 }
 0x18a   : > { %v13070_v42 = vpop.permute.xlu1 %1822 }
 0x18c   : > { %1834 = vrot.lane.b32.xlu1 %v13008_v29, %s20024_s21  ;;  %1832 = vrot.lane.b32.xlu0 %v13010_v27, %s20024_s21 }
 0x18e   : > { %v13076_v55 = vpop.permute.xlu1 %1356  ;;  %v13078_v56 = vpop.permute.xlu0 %2123 }
 0x190   : > { %1936 = vrot.lane.b32.xlu1 %v13019_v46, %s20021_s29  ;;  %1934 = vrot.lane.b32.xlu0 %v13022_v32, %s20021_s29 }
 0x192   : > { %v13084_v16 = vpop.permute.xlu1 %1358  ;;  %v13086_v17 = vpop.permute.xlu0 %1826 }
 0x194   : > { %2037 = vrot.lane.b32.xlu1 %v13047_v39, %s20028_s30  ;;  %2035 = vrot.lane.b32.xlu0 %v13031_v52, %s20028_s30 }
 0x196   : > { %v2122_v54 = vpop.permute.xlu1 %2121  ;;  %v13096_v7 = vpop.permute.xlu0 %1360 }
 0x198   : > { %2135 = vrot.lane.b32.xlu1 %v13092_v24, %s20023_s18  ;;  %2133 = vrot.lane.b32.xlu0 %v13094_v9, %s20023_s18 }
 0x19a   : > { %v13104_v58 = vpop.permute.xlu1 %1824  ;;  %v13106_v36 = vpop.permute.xlu0 %2127 }
 0x19c   : > { %2237 = vrot.lane.b32.xlu1 %v13109_v59, %s20029_s2  ;;  %2235 = vrot.lane.b32.xlu0 %v13112_v60, %s20029_s2 }
 0x19e   : > { %v13120_v23 = vpop.permute.xlu1 %1362  ;;  %v13122_v44 = vpop.permute.xlu0 %1830 }
 0x1a0   : > { %772 = vrot.lane.b32.xlu1 %v12867_v8, %s20024_s21  ;;  %2336 = vrot.lane.b32.xlu0 %v13125_v0, %s20030_s0  ;;  %v1099_v8 = vmax.f32 %v12685_v61, %v12816_v14 }
 0x1a2   : > { %v13131_v45 = vpop.permute.xlu1 %2125  ;;  %v1923_v30 = vpop.permute.xlu0 %1922 }
 0x1a4   : > { %1368 = vrot.lane.b32.xlu1 %v13010_v27, %s20025_s22  ;;  %774 = vrot.lane.b32.xlu0 %v12886_v13, %s20024_s21  ;;  %v1100_v27 = vmax.f32 %v12689_v62, %v12818_v50 }
 0x1a6   : > { %v13137_v41 = vpop.permute.xlu1 %1828  ;;  %v13139_v31 = vpop.permute.xlu0 %1549 }
 0x1a8   : > { %2338 = vrot.lane.b32.xlu1 %v13142_v53, %s20030_s0  ;;  %1561 = vrot.lane.b32.xlu0 %v13022_v32, %s20022_s19  ;;  %v2421_v32 = vsel %vm2420_vm8, %v12941_v48, %v12951_v18 }
 0x1a9   : > { %v2453_v14 = vsel %vm655_vm2, %v2421_v32, %v12965_v49  ;;  %v2422_v49 = vsel %vm2420_vm8, %v12958_v5, %v12963_v47  ;;  %v1495_v32 = vrot.slane %v13204_v11, 1 }
 0x1aa   : > { %v1925_v13 = vpop.permute.xlu1 %1924  ;;  %v2024_v37 = vpop.permute.xlu0 %2023  ;;  %v2486_v50 = vsel %vm2485_vm9, %v2453_v14, %v13068_v6  ;;  %v2454_v51 = vsel %vm655_vm2, %v2422_v49, %v12975_v3 }
 0x1ab   : > { %v2519_v48 = vsel %vm2518_vm10, %v2486_v50, %v1923_v30  ;;  %v2487_v5 = vsel %vm2485_vm9, %v2454_v51, %v13070_v42  ;;  %v13202_v42 = vld [vmem:[#allocation2 + $0x98] sm:$0xff]  ;;  %v1672_v50 = vrot.slane %v13204_v11, 2 }
 0x1ac   : > { %1191 = vrot.lane.b32.xlu1 %v1100_v27, %s20026_s23  ;;  %1189 = vrot.lane.b32.xlu0 %v1099_v8, %s20026_s23  ;;  %v2552_v18 = vsel %vm2551_vm11, %v2519_v48, %v2024_v37  ;;  %v2520_v47 = vsel %vm2518_vm10, %v2487_v5, %v1925_v13  ;;  %v1496_v13 = vrot.slane %v13202_v42, 1  ;;  %v1498_v37 = vrot.slane %v1286_v63, 1 }
 0x1ad   : > { %v1673_v48 = vrot.slane %v13202_v42, 2 }
 0x1ae   : > { %v13154_v38 = vpop.permute.xlu1 %1726  ;;  %v13156_v25 = vpop.permute.xlu0 %1551  ;;  %v13223_v14 = vsel %vm1464_vm4, %v1495_v32, %v1496_v13 }
 0x1af   : > { %v2424_v5 = vsel %vm2420_vm8, %v13084_v16, %v13156_v25 }
 0x1b0   : > { %1563 = vrot.lane.b32.xlu1 %v13019_v46, %s20022_s19  ;;  %1370 = vrot.lane.b32.xlu0 %v13008_v29, %s20025_s22 }
 0x1b2   : > { %v2224_v61 = vpop.permute.xlu1 %2223  ;;  %v2026_v62 = vpop.permute.xlu0 %2025 }
 0x1b4   : > { %1740 = vrot.lane.b32.xlu1 %v13047_v39, %s20027_s26  ;;  %1738 = vrot.lane.b32.xlu0 %v13031_v52, %s20027_s26  ;;  %v2585_v52 = vsel %vm2584_vm12, %v2552_v18, %v2122_v54  ;;  %v2553_v54 = vsel %vm2551_vm11, %v2520_v47, %v2026_v62  ;;  %v13220_v62 = vsel %vm1464_vm4, %v1496_v13, %v1498_v37 }
 0x1b5   : > { %v2618_v39 = vsel %vm2617_vm13, %v2585_v52, %v2224_v61  ;;  %v2586_v22 = vsel %vm2584_vm12, %v2553_v54, %v13078_v56  ;;  %v2423_v18 = vsel %vm2420_vm8, %v13076_v55, %v13139_v31 }
 0x1b6   : > { %v1927_v29 = vpop.permute.xlu1 %1926  ;;  %v1729_v46 = vpop.permute.xlu0 %1728  ;;  %v2455_v49 = vsel %vm655_vm2, %v2423_v18, %v13154_v38  ;;  %v13324_v18 = vld [vmem:[#allocation2 + $0xb0] sm:$0xff] }
 0x1b8   : > { %1838 = vrot.lane.b32.xlu1 %v13092_v24, %s20024_s21  ;;  %1836 = vrot.lane.b32.xlu0 %v13094_v9, %s20024_s21 }
 0x1ba   : > { %v2325_v20 = vpop.permute.xlu1 %2324  ;;  %v2226_v6 = vpop.permute.xlu0 %2225 }
 0x1bb   : > { %v2650_v57 = vsel %vm566_vm0, %v2618_v39, %v2325_v20  ;;  %v2619_v30 = vsel %vm2617_vm13, %v2586_v22, %v2226_v6  ;;  %v13237_v20 = vsel %vm1641_vm5, %v1672_v50, %v1673_v48  ;;  %v2488_v6 = vsel %vm2485_vm9, %v2455_v49, %v13104_v58  ;;  %v13326_v49 = vld [vmem:[#allocation2 + $0xa8] sm:$0xff] }
 0x1bc   : > { %1940 = vrot.lane.b32.xlu1 %v13109_v59, %s20021_s29  ;;  %1938 = vrot.lane.b32.xlu0 %v13112_v60, %s20021_s29  ;;  %v2521_v55 = vsel %vm2518_vm10, %v2488_v6, %v1927_v29 }
 0x1bd   : > { %10509 = vmatprep.mubr.msk.f32.mxu0 %vm2692_vm14, %v2650_v57  ;;  %v1675_v57 = vrot.slane %v1286_v63, 2 }
 0x1be   : > { %v13196_v10 = vpop.permute.xlu1 %1553  ;;  %v1929_v3 = vpop.permute.xlu0 %1928 }
 0x1bf   : > { %v13260_v22 = vsel %vm1641_vm5, %v1673_v48, %v1675_v57  ;;  %v1500_v57 = vrot.slane %v13326_v49, 1 }
 0x1c0   : > { %2041 = vrot.lane.b32.xlu1 %v13142_v53, %s20028_s30  ;;  %2039 = vrot.lane.b32.xlu0 %v13125_v0, %s20028_s30 }
 0x1c2   : > { %v2028_v40 = vpop.permute.xlu1 %2027  ;;  %v2327_v8 = vpop.permute.xlu0 %2326 }
 0x1c3   : > { %v2651_v27 = vsel %vm566_vm0, %v2619_v30, %v2327_v8  ;;  %v2554_v31 = vsel %vm2551_vm11, %v2521_v55, %v2028_v40 }
 0x1c4   : > { %2139 = vrot.lane.b32.xlu1 %v13202_v42, %s20023_s18  ;;  %2137 = vrot.lane.b32.xlu0 %v13204_v11, %s20023_s18  ;;  %v2587_v58 = vsel %vm2584_vm12, %v2554_v31, %v13131_v45  ;;  %v1102_v45 = vmax.f32 %v12705_v1, %v12825_v28  ;;  %v2425_v1 = vsel %vm2420_vm8, %v13096_v7, %v13196_v10 }
 0x1c5   : > { %10510 = vmatmul.mubr.msk.f32.vlgmr.msra.gmra.mrb[0].mxu0 %vm2692_vm14, %v2651_v27 }
 0x1c6   : > { %v1731_v56 = vpop.permute.xlu1 %1730  ;;  %v13217_v61 = vpop.permute.xlu0 %1555 }
 0x1c8   : > { %2241 = vrot.lane.b32.xlu1 %v13220_v62, %s20029_s2  ;;  %2239 = vrot.lane.b32.xlu0 %v13223_v14, %s20029_s2 }
 0x1ca   : > { %v2228_v52 = vpop.permute.xlu1 %2227  ;;  %v2030_v39 = vpop.permute.xlu0 %2029 }
 0x1cb   : > { %v2620_v29 = vsel %vm2617_vm13, %v2587_v58, %v2228_v52  ;;  %v1289_v52 = vld [vmem:[#allocation2 + $0xb8] sm:$0x3] }
 0x1cc   : > { %776 = vrot.lane.b32.xlu1 %v12968_v26, %s20024_s21  ;;  %2340 = vrot.lane.b32.xlu0 %v13237_v20, %s20030_s0  ;;  %v2456_v26 = vsel %vm655_vm2, %v2424_v5, %v1729_v46 }
 0x1cd   : > { %v2489_v16 = vsel %vm2485_vm9, %v2456_v26, %v13086_v17 }
 0x1ce   : > { %v1931_v51 = vpop.permute.xlu1 %1930  ;;  %v1733_v38 = vpop.permute.xlu0 %1732 }
 0x1d0   : > { %1372 = vrot.lane.b32.xlu1 %v13094_v9, %s20025_s22  ;;  %778 = vrot.lane.b32.xlu0 %v12981_v33, %s20024_s21  ;;  %v2522_v33 = vsel %vm2518_vm10, %v2489_v16, %v1929_v3  ;;  %v1101_v9 = vmax.f32 %v12701_v19, %v12823_v43 }
 0x1d1   : > { %v2555_v25 = vsel %vm2551_vm11, %v2522_v33, %v2030_v39 }
 0x1d2   : > { %v2329_v47 = vpop.permute.xlu1 %2328  ;;  %v2230_v54 = vpop.permute.xlu0 %2229 }
 0x1d3   : > { %v2652_v63 = vsel %vm566_vm0, %v2620_v29, %v2329_v47  ;;  %v1677_v47 = vrot.slane %v13326_v49, 2 }
 0x1d4   : > { %2342 = vrot.lane.b32.xlu1 %v13260_v22, %s20030_s0  ;;  %1565 = vrot.lane.b32.xlu0 %v13112_v60, %s20022_s19  ;;  %v2588_v60 = vsel %vm2584_vm12, %v2555_v25, %v13106_v36  ;;  %v2457_v36 = vsel %vm655_vm2, %v2425_v1, %v1731_v56  ;;  %v1680_v25 = vrot.slane %v1289_v52, 2 }
 0x1d5   : > { %10512 = vmatprep.mubr.msk.f32.mxu0 %vm2692_vm14, %v2652_v63  ;;  %v2621_v3 = vsel %vm2617_vm13, %v2588_v60, %v2230_v54  ;;  %v1678_v54 = vrot.slane %v13324_v18, 2 }
 0x1d6   : > { %v2032_v46 = vpop.permute.xlu1 %2031  ;;  %v1933_v17 = vpop.permute.xlu0 %1932 }
 0x1d7   : > { %v13353_v33 = vsel %vm1641_vm5, %v1677_v47, %v1678_v54  ;;  %v13364_v60 = vsel %vm1641_vm5, %v1678_v54, %v1680_v25 }
 0x1d8   : > { %1195 = vrot.lane.b32.xlu1 %v1102_v45, %s20026_s23  ;;  %1193 = vrot.lane.b32.xlu0 %v1101_v9, %s20026_s23 }
 0x1da   : > { %v2034_v30 = vpop.permute.xlu1 %2033  ;;  %v2331_v40 = vpop.permute.xlu0 %2330 }
 0x1db   : > { %v2653_v19 = vsel %vm566_vm0, %v2621_v3, %v2331_v40 }
 0x1dc   : > { %1567 = vrot.lane.b32.xlu1 %v13109_v59, %s20022_s19  ;;  %1374 = vrot.lane.b32.xlu0 %v13092_v24, %s20025_s22  ;;  %v2490_v59 = vsel %vm2485_vm9, %v2457_v36, %v13137_v41 }
 0x1dd   : > { %10513 = vmatmul.mubr.msk.f32.gmra.mrb[2].mxu0 %vm2692_vm14, %v2653_v19  ;;  %v2523_v27 = vsel %vm2518_vm10, %v2490_v59, %v1931_v51  ;;  %v1501_v51 = vrot.slane %v13324_v18, 1 }
 0x1de   : > { %v2132_v43 = vpop.permute.xlu1 %2131  ;;  %v2130_v28 = vpop.permute.xlu0 %2129  ;;  %v2556_v13 = vsel %vm2551_vm11, %v2523_v27, %v2032_v46 }
 0x1df   : > { %v2589_v7 = vsel %vm2584_vm12, %v2556_v13, %v2130_v28  ;;  %v13344_v29 = vsel %vm1464_vm4, %v1500_v57, %v1501_v51 }
 0x1e0   : > { %1744 = vrot.lane.b32.xlu1 %v13142_v53, %s20027_s26  ;;  %1742 = vrot.lane.b32.xlu0 %v13125_v0, %s20027_s26  ;;  %v2426_v0 = vsel %vm2420_vm8, %v13120_v23, %v13217_v61 }
 0x1e1   : > { %v2458_v37 = vsel %vm655_vm2, %v2426_v0, %v1733_v38  ;;  %v1503_v38 = vrot.slane %v1289_v52, 1 }
 0x1e2   : > { %v2234_v24 = vpop.permute.xlu1 %2233  ;;  %v2232_v8 = vpop.permute.xlu0 %2231  ;;  %v2491_v23 = vsel %vm2485_vm9, %v2458_v37, %v13122_v44 }
 0x1e3   : > { %v2622_v41 = vsel %vm2617_vm13, %v2589_v7, %v2232_v8  ;;  %v2524_v50 = vsel %vm2518_vm10, %v2491_v23, %v1933_v17  ;;  %v13341_v58 = vsel %vm1464_vm4, %v1501_v51, %v1503_v38 }
 0x1e4   : > { %1842 = vrot.lane.b32.xlu1 %v13202_v42, %s20024_s21  ;;  %1840 = vrot.lane.b32.xlu0 %v13204_v11, %s20024_s21  ;;  %v2557_v48 = vsel %vm2551_vm11, %v2524_v50, %v2034_v30 }
 0x1e5   : > { %v2590_v44 = vsel %vm2584_vm12, %v2557_v48, %v2132_v43 }
 0x1e6   : > { %v769_v53 = vpop.permute.xlu1 %768  ;;  %v2333_v10 = vpop.permute.xlu0 %2332  ;;  %v2623_v39 = vsel %vm2617_vm13, %v2590_v44, %v2234_v24 }
 0x1e7   : > { %841 = vst.msk [vmem:[#allocation2 + $0x139] sm:$0xff] %vm816_vm3, %v769_v53  ;;  %v2654_v32 = vsel %vm566_vm0, %v2622_v41, %v2333_v10  ;;  %v13412_v41 = vld [vmem:[#allocation2 + $0xc8] sm:$0xff]  ;;  %v13414_v53 = vld [vmem:[#allocation2 + $0xc0] sm:$0xff]  ;;  %v1292_v10 = vld [vmem:[#allocation2 + $0xd0] sm:$0x3] }
 0x1e8   : > { %1944 = vrot.lane.b32.xlu1 %v13220_v62, %s20021_s29  ;;  %1942 = vrot.lane.b32.xlu0 %v13223_v14, %s20021_s29  ;;  %v1506_v50 = vrot.slane %v13412_v41, 1  ;;  %v1508_v48 = vrot.slane %v1292_v10, 1  ;;  %v1505_v52 = vrot.slane %v13414_v53, 1  ;;  %v1683_v51 = vrot.slane %v13412_v41, 2 }
 0x1e9   : > { %10515 = vmatprep.mubr.msk.f32.mxu0 %vm2692_vm14, %v2654_v32 }
 0x1ea   : > { %v1365_v56 = vpop.permute.xlu1 %1364  ;;  %v771_v61 = vpop.permute.xlu0 %770 }
 0x1eb   : > { %842 = vst.msk [vmem:[#allocation2 + $0x141] sm:$0xff] %vm816_vm3, %v771_v61 }
 0x1ec   : > { %2045 = vrot.lane.b32.xlu1 %v13260_v22, %s20028_s30  ;;  %2043 = vrot.lane.b32.xlu0 %v13237_v20, %s20028_s30 }
 0x1ee   : > { %v2335_v6 = vpop.permute.xlu1 %2334  ;;  %v1558_v55 = vpop.permute.xlu0 %1557 }
 0x1ef   : > { %v2655_v31 = vsel %vm566_vm0, %v2623_v39, %v2335_v6  ;;  %v13429_v6 = vsel %vm1464_vm4, %v1506_v50, %v1508_v48 }
 0x1f0   : > { %2143 = vrot.lane.b32.xlu1 %v13324_v18, %s20023_s18  ;;  %2141 = vrot.lane.b32.xlu0 %v13326_v49, %s20023_s18 }
 0x1f1   : > { %10516 = vmatmul.mubr.msk.f32.gmra.mrb[4].mxu0 %vm2692_vm14, %v2655_v31  ;;  %v1682_v31 = vrot.slane %v13414_v53, 2 }
 0x1f2   : > { %v1188_v5 = vpop.permute.xlu1 %1187  ;;  %v1186_v26 = vpop.permute.xlu0 %1185 }
 0x1f3   : > { %1259 = vst.msk [vmem:[#allocation2 + $0x141] sm:$0xff] %vm1233_vm6, %v1188_v5  ;;  %1258 = vst.msk [vmem:[#allocation2 + $0x139] sm:$0xff] %vm1233_vm6, %v1186_v26  ;;  %v13441_v5 = vsel %vm1641_vm5, %v1682_v31, %v1683_v51  ;;  %v1685_v26 = vrot.slane %v1292_v10, 2 }
 0x1f4   : > { %2245 = vrot.lane.b32.xlu1 %v13341_v58, %s20029_s2  ;;  %2243 = vrot.lane.b32.xlu0 %v13344_v29, %s20029_s2 }
 0x1f6   : > { %v1560_v63 = vpop.permute.xlu1 %1559  ;;  %v1367_v16 = vpop.permute.xlu0 %1366 }
 0x1f7   : > { %v2428_v59 = vsel %vm2420_vm8, %v1367_v16, %v1560_v63  ;;  %v13448_v63 = vsel %vm1641_vm5, %v1683_v51, %v1685_v26  ;;  %v1298_v26 = vld [vmem:[#allocation2 + $0x100] sm:$0x3] }
 0x1f8   : > { %780 = vrot.lane.b32.xlu1 %v13038_v21, %s20024_s21  ;;  %2344 = vrot.lane.b32.xlu0 %v13353_v33, %s20030_s0  ;;  %v1103_v21 = vmax.f32 %v12717_v2, %v12839_v34  ;;  %v2427_v2 = vsel %vm2420_vm8, %v1365_v56, %v1558_v55  ;;  %v13432_v55 = vsel %vm1464_vm4, %v1505_v52, %v1506_v50 }
 0x1fa   : > { %v1737_v9 = vpop.permute.xlu1 %1736  ;;  %v1735_v45 = vpop.permute.xlu0 %1734 }
 0x1fb   : > { %v2460_v24 = vsel %vm655_vm2, %v2428_v59, %v1737_v9 }
 0x1fc   : > { %1376 = vrot.lane.b32.xlu1 %v13204_v11, %s20025_s22  ;;  %782 = vrot.lane.b32.xlu0 %v13053_v15, %s20024_s21  ;;  %v1104_v11 = vmax.f32 %v12721_v4, %v12841_v35  ;;  %v2459_v4 = vsel %vm655_vm2, %v2427_v2, %v1735_v45 }
 0x1fe   : > { %v1835_v46 = vpop.permute.xlu1 %1834  ;;  %v1833_v17 = vpop.permute.xlu0 %1832 }
 0x1ff   : > { %v2492_v34 = vsel %vm2485_vm9, %v2459_v4, %v1833_v17  ;;  %v2493_v8 = vsel %vm2485_vm9, %v2460_v24, %v1835_v46 }
 0x200   : > { %2346 = vrot.lane.b32.xlu1 %v13364_v60, %s20030_s0  ;;  %1569 = vrot.lane.b32.xlu0 %v13223_v14, %s20022_s19 }
 0x202   : > { %v1937_v3 = vpop.permute.xlu1 %1936  ;;  %v1935_v30 = vpop.permute.xlu0 %1934 }
 0x203   : > { %v2526_v7 = vsel %vm2518_vm10, %v2493_v8, %v1937_v3 }
 0x204   : > { %1199 = vrot.lane.b32.xlu1 %v1104_v11, %s20026_s23  ;;  %1197 = vrot.lane.b32.xlu0 %v1103_v21, %s20026_s23  ;;  %s19993_s23 = smov 27  }
 0x206   : > { %v2038_v15 = vpop.permute.xlu1 %2037  ;;  %v2036_v40 = vpop.permute.xlu0 %2035 }
 0x207   : > { %v2559_v0 = vsel %vm2551_vm11, %v2526_v7, %v2038_v15  ;;  %v13481_v15 = vld [vmem:[#allocation2 + $0xd8] sm:$0xff] }
 0x208   : > { %1571 = vrot.lane.b32.xlu1 %v13220_v62, %s20022_s19  ;;  %1378 = vrot.lane.b32.xlu0 %v13202_v42, %s20025_s22  ;;  %v2525_v62 = vsel %vm2518_vm10, %v2492_v34, %v1935_v30  ;;  %v13479_v30 = vld [vmem:[#allocation2 + $0xe0] sm:$0xff] }
 0x209   : > { %v2558_v42 = vsel %vm2551_vm11, %v2525_v62, %v2036_v40  ;;  %v1295_v40 = vld [vmem:[#allocation2 + $0xe8] sm:$0x3]  ;;  %v1510_v62 = vrot.slane %v13481_v15, 1 }
 0x20a   : > { %v2136_v14 = vpop.permute.xlu1 %2135  ;;  %v2134_v19 = vpop.permute.xlu0 %2133 }
 0x20b   : > { %v2592_v37 = vsel %vm2584_vm12, %v2559_v0, %v2136_v14 }
 0x20c   : > { %1748 = vrot.lane.b32.xlu1 %v13260_v22, %s20027_s26  ;;  %1746 = vrot.lane.b32.xlu0 %v13237_v20, %s20027_s26  ;;  %v2591_v22 = vsel %vm2584_vm12, %v2558_v42, %v2134_v19 }
 0x20e   : > { %v2238_v35 = vpop.permute.xlu1 %2237  ;;  %v2236_v1 = vpop.permute.xlu0 %2235 }
 0x20f   : > { %v2624_v20 = vsel %vm2617_vm13, %v2591_v22, %v2236_v1  ;;  %v2625_v32 = vsel %vm2617_vm13, %v2592_v37, %v2238_v35  ;;  %v1511_v35 = vrot.slane %v13479_v30, 1  ;;  %v1513_v1 = vrot.slane %v1295_v40, 1 }
 0x210   : > { %1846 = vrot.lane.b32.xlu1 %v13324_v18, %s20024_s21  ;;  %1844 = vrot.lane.b32.xlu0 %v13326_v49, %s20024_s21 }
 0x211   : > { %v13501_v24 = vsel %vm1464_vm4, %v1511_v35, %v1513_v1  ;;  %v13504_v8 = vsel %vm1464_vm4, %v1510_v62, %v1511_v35 }
 0x212   : > { %v773_v43 = vpop.permute.xlu1 %772  ;;  %v2337_v28 = vpop.permute.xlu0 %2336 }
 0x213   : > { %843 = vst.msk [vmem:[#allocation2 + $0x151] sm:$0xff] %vm816_vm3, %v773_v43  ;;  %v2656_v36 = vsel %vm566_vm0, %v2624_v20, %v2337_v28 }
 0x214   : > { %1948 = vrot.lane.b32.xlu1 %v13341_v58, %s20021_s29  ;;  %1946 = vrot.lane.b32.xlu0 %v13344_v29, %s20021_s29 }
 0x215   : > { %10518 = vmatprep.mubr.msk.f32.mxu0 %vm2692_vm14, %v2656_v36  ;;  %v1687_v36 = vrot.slane %v13481_v15, 2 }
 0x216   : > { %v1369_v27 = vpop.permute.xlu1 %1368  ;;  %v775_v13 = vpop.permute.xlu0 %774 }
 0x217   : > { %844 = vst.msk [vmem:[#allocation2 + $0x159] sm:$0xff] %vm816_vm3, %v775_v13 }
 0x218   : > { %2049 = vrot.lane.b32.xlu1 %v13364_v60, %s20028_s30  ;;  %2047 = vrot.lane.b32.xlu0 %v13353_v33, %s20028_s30 }
 0x21a   : > { %v2339_v23 = vpop.permute.xlu1 %2338  ;;  %v1562_v56 = vpop.permute.xlu0 %1561 }
 0x21b   : > { %v2657_v61 = vsel %vm566_vm0, %v2625_v32, %v2339_v23 }
 0x21c   : > { %2147 = vrot.lane.b32.xlu1 %v13412_v41, %s20023_s18  ;;  %2145 = vrot.lane.b32.xlu0 %v13414_v53, %s20023_s18 }
 0x21d   : > { %10519 = vmatmul.mubr.msk.f32.gmra.mrb[6].mxu0 %vm2692_vm14, %v2657_v61 }
 0x21e   : > { %v1192_v44 = vpop.permute.xlu1 %1191  ;;  %v1190_v39 = vpop.permute.xlu0 %1189 }
 0x21f   : > { %1261 = vst.msk [vmem:[#allocation2 + $0x159] sm:$0xff] %vm1233_vm6, %v1192_v44  ;;  %1260 = vst.msk [vmem:[#allocation2 + $0x151] sm:$0xff] %vm1233_vm6, %v1190_v39 }
 0x220   : > { %2249 = vrot.lane.b32.xlu1 %v13429_v6, %s20029_s2  ;;  %2247 = vrot.lane.b32.xlu0 %v13432_v55, %s20029_s2 }
 0x222   : > { %v1564_v38 = vpop.permute.xlu1 %1563  ;;  %v1371_v57 = vpop.permute.xlu0 %1370 }
 0x223   : > { %v2430_v42 = vsel %vm2420_vm8, %v1371_v57, %v1564_v38  ;;  %v13552_v57 = vld [vmem:[#allocation2 + $0xf8] sm:$0xff] }
 0x224   : > { %1380 = vrot.lane.b32.xlu1 %v13326_v49, %s20025_s22  ;;  %2348 = vrot.lane.b32.xlu0 %v13441_v5, %s20030_s0 }
 0x226   : > { %v1741_v47 = vpop.permute.xlu1 %1740  ;;  %v1739_v54 = vpop.permute.xlu0 %1738 }
 0x227   : > { %v2462_v22 = vsel %vm655_vm2, %v2430_v42, %v1741_v47 }
 0x228   : > { %2350 = vrot.lane.b32.xlu1 %v13448_v63, %s20030_s0  ;;  %1573 = vrot.lane.b32.xlu0 %v13344_v29, %s20022_s19 }
 0x22a   : > { %v1839_v16 = vpop.permute.xlu1 %1838  ;;  %v1837_v9 = vpop.permute.xlu0 %1836 }
 0x22b   : > { %v2495_v20 = vsel %vm2485_vm9, %v2462_v22, %v1839_v16  ;;  %v1518_v16 = vrot.slane %v1298_v26, 1 }
 0x22c   : > { %1575 = vrot.lane.b32.xlu1 %v13341_v58, %s20022_s19  ;;  %1382 = vrot.lane.b32.xlu0 %v13324_v18, %s20025_s22  ;;  %v2429_v18 = vsel %vm2420_vm8, %v1369_v27, %v1562_v56  ;;  %v1688_v27 = vrot.slane %v13479_v30, 2  ;;  %v1690_v56 = vrot.slane %v1295_v40, 2 }
 0x22e   : > { %v1941_v49 = vpop.permute.xlu1 %1940  ;;  %v1939_v45 = vpop.permute.xlu0 %1938  ;;  %v13516_v23 = vsel %vm1641_vm5, %v1687_v36, %v1688_v27  ;;  %v13526_v48 = vsel %vm1641_vm5, %v1688_v27, %v1690_v56  ;;  %v1301_v56 = vld [vmem:[#allocation2 + $0x118] sm:$0x3] }
 0x22f   : > { %v2528_v59 = vsel %vm2518_vm10, %v2495_v20, %v1941_v49 }
 0x230   : > { %1752 = vrot.lane.b32.xlu1 %v13364_v60, %s20027_s26  ;;  %1750 = vrot.lane.b32.xlu0 %v13353_v33, %s20027_s26  ;;  %v2461_v33 = vsel %vm655_vm2, %v2429_v18, %v1739_v54 }
 0x231   : > { %v2494_v17 = vsel %vm2485_vm9, %v2461_v33, %v1837_v9 }
 0x232   : > { %v2042_v25 = vpop.permute.xlu1 %2041  ;;  %v2040_v46 = vpop.permute.xlu0 %2039  ;;  %v2527_v11 = vsel %vm2518_vm10, %v2494_v17, %v1939_v45 }
 0x233   : > { %v2560_v3 = vsel %vm2551_vm11, %v2527_v11, %v2040_v46  ;;  %v2561_v13 = vsel %vm2551_vm11, %v2528_v59, %v2042_v25 }
 0x234   : > { %1850 = vrot.lane.b32.xlu1 %v13412_v41, %s20024_s21  ;;  %1848 = vrot.lane.b32.xlu0 %v13414_v53, %s20024_s21 }
 0x236   : > { %v2140_v58 = vpop.permute.xlu1 %2139  ;;  %v2138_v29 = vpop.permute.xlu0 %2137 }
 0x237   : > { %v2593_v14 = vsel %vm2584_vm12, %v2560_v3, %v2138_v29  ;;  %v2594_v7 = vsel %vm2584_vm12, %v2561_v13, %v2140_v58 }
 0x238   : > { %1952 = vrot.lane.b32.xlu1 %v13429_v6, %s20021_s29  ;;  %1950 = vrot.lane.b32.xlu0 %v13432_v55, %s20021_s29 }
 0x23a   : > { %v2242_v60 = vpop.permute.xlu1 %2241  ;;  %v2240_v21 = vpop.permute.xlu0 %2239 }
 0x23b   : > { %v2626_v19 = vsel %vm2617_vm13, %v2593_v14, %v2240_v21  ;;  %v2627_v0 = vsel %vm2617_vm13, %v2594_v7, %v2242_v60  ;;  %v1693_v60 = vrot.slane %v13552_v57, 2 }
 0x23c   : > { %2053 = vrot.lane.b32.xlu1 %v13448_v63, %s20028_s30  ;;  %2051 = vrot.lane.b32.xlu0 %v13441_v5, %s20028_s30 }
 0x23e   : > { %v777_v2 = vpop.permute.xlu1 %776  ;;  %v2341_v4 = vpop.permute.xlu0 %2340 }
 0x23f   : > { %845 = vst.msk [vmem:[#allocation2 + $0x169] sm:$0xff] %vm816_vm3, %v777_v2  ;;  %v2658_v34 = vsel %vm566_vm0, %v2626_v19, %v2341_v4  ;;  %v1695_v4 = vrot.slane %v1298_v26, 2 }
 0x240   : > { %2151 = vrot.lane.b32.xlu1 %v13479_v30, %s20023_s18  ;;  %2149 = vrot.lane.b32.xlu0 %v13481_v15, %s20023_s18 }
 0x241   : > { %10521 = vmatprep.mubr.msk.f32.mxu0 %vm2692_vm14, %v2658_v34  ;;  %v13597_v20 = vsel %vm1641_vm5, %v1693_v60, %v1695_v4 }
 0x242   : > { %v1373_v43 = vpop.permute.xlu1 %1372  ;;  %v779_v28 = vpop.permute.xlu0 %778 }
 0x243   : > { %846 = vst.msk [vmem:[#allocation2 + $0x171] sm:$0xff] %vm816_vm3, %v779_v28 }
 0x244   : > { %2253 = vrot.lane.b32.xlu1 %v13501_v24, %s20029_s2  ;;  %2251 = vrot.lane.b32.xlu0 %v13504_v8, %s20029_s2 }
 0x246   : > { %v2343_v10 = vpop.permute.xlu1 %2342  ;;  %v1566_v37 = vpop.permute.xlu0 %1565 }
 0x247   : > { %v2659_v32 = vsel %vm566_vm0, %v2627_v0, %v2343_v10  ;;  %v2431_v49 = vsel %vm2420_vm8, %v1373_v43, %v1566_v37 }
 0x248   : > { %1384 = vrot.lane.b32.xlu1 %v13414_v53, %s20025_s22  ;;  %2352 = vrot.lane.b32.xlu0 %v13516_v23, %s20030_s0 }
 0x249   : > { %10522 = vmatmul.mubr.msk.f32.gmra.mrb[8].mxu0 %vm2692_vm14, %v2659_v32  ;;  %v13630_v32 = vld [vmem:[#allocation2 + $0x110] sm:$0xff] }
 0x24a   : > { %v1196_v61 = vpop.permute.xlu1 %1195  ;;  %v1194_v50 = vpop.permute.xlu0 %1193 }
 0x24b   : > { %1263 = vst.msk [vmem:[#allocation2 + $0x171] sm:$0xff] %vm1233_vm6, %v1196_v61  ;;  %1262 = vst.msk [vmem:[#allocation2 + $0x169] sm:$0xff] %vm1233_vm6, %v1194_v50 }
 0x24c   : > { %2354 = vrot.lane.b32.xlu1 %v13526_v48, %s20030_s0  ;;  %1577 = vrot.lane.b32.xlu0 %v13432_v55, %s20022_s19 }
 0x24e   : > { %v1568_v53 = vpop.permute.xlu1 %1567  ;;  %v1375_v52 = vpop.permute.xlu0 %1374 }
 0x24f   : > { %v2432_v34 = vsel %vm2420_vm8, %v1375_v52, %v1568_v53  ;;  %v1523_v53 = vrot.slane %v1301_v56, 1 }
 0x250   : > { %1579 = vrot.lane.b32.xlu1 %v13429_v6, %s20022_s19  ;;  %1386 = vrot.lane.b32.xlu0 %v13412_v41, %s20025_s22 }
 0x252   : > { %v1745_v44 = vpop.permute.xlu1 %1744  ;;  %v1743_v39 = vpop.permute.xlu0 %1742 }
 0x253   : > { %v2463_v45 = vsel %vm655_vm2, %v2431_v49, %v1743_v39  ;;  %v2464_v35 = vsel %vm655_vm2, %v2432_v34, %v1745_v44 }
 0x254   : > { %1756 = vrot.lane.b32.xlu1 %v13448_v63, %s20027_s26  ;;  %1754 = vrot.lane.b32.xlu0 %v13441_v5, %s20027_s26  ;;  %v13554_v5 = vld [vmem:[#allocation2 + $0xf0] sm:$0xff]  ;;  %v1516_v63 = vrot.slane %v13552_v57, 1 }
 0x255   : > { %v1515_v9 = vrot.slane %v13554_v5, 1  ;;  %v1692_v29 = vrot.slane %v13554_v5, 2 }
 0x256   : > { %v1843_v31 = vpop.permute.xlu1 %1842  ;;  %v1841_v51 = vpop.permute.xlu0 %1840  ;;  %v13568_v33 = vsel %vm1464_vm4, %v1516_v63, %v1518_v16 }
 0x257   : > { %v2496_v25 = vsel %vm2485_vm9, %v2463_v45, %v1841_v51  ;;  %v13571_v17 = vsel %vm1464_vm4, %v1515_v9, %v1516_v63  ;;  %v13584_v2 = vsel %vm1641_vm5, %v1692_v29, %v1693_v60  ;;  %v2497_v1 = vsel %vm2485_vm9, %v2464_v35, %v1843_v31 }
 0x258   : > { %1854 = vrot.lane.b32.xlu1 %v13479_v30, %s20024_s21  ;;  %1852 = vrot.lane.b32.xlu0 %v13481_v15, %s20024_s21 }
 0x25a   : > { %v1945_v6 = vpop.permute.xlu1 %1944  ;;  %v1943_v55 = vpop.permute.xlu0 %1942 }
 0x25b   : > { %v2529_v18 = vsel %vm2518_vm10, %v2496_v25, %v1943_v55  ;;  %v2530_v22 = vsel %vm2518_vm10, %v2497_v1, %v1945_v6  ;;  %v1698_v55 = vrot.slane %v13630_v32, 2 }
 0x25c   : > { %1956 = vrot.lane.b32.xlu1 %v13501_v24, %s20021_s29  ;;  %1954 = vrot.lane.b32.xlu0 %v13504_v8, %s20021_s29 }
 0x25e   : > { %v2046_v41 = vpop.permute.xlu1 %2045  ;;  %v2044_v38 = vpop.permute.xlu0 %2043 }
 0x25f   : > { %v2562_v21 = vsel %vm2551_vm11, %v2529_v18, %v2044_v38 }
 0x260   : > { %2057 = vrot.lane.b32.xlu1 %v13526_v48, %s20028_s30  ;;  %2055 = vrot.lane.b32.xlu0 %v13516_v23, %s20028_s30 }
 0x262   : > { %v2144_v47 = vpop.permute.xlu1 %2143  ;;  %v2142_v54 = vpop.permute.xlu0 %2141 }
 0x263   : > { %v2595_v11 = vsel %vm2584_vm12, %v2562_v21, %v2142_v54 }
 0x264   : > { %2155 = vrot.lane.b32.xlu1 %v13552_v57, %s20023_s18  ;;  %2153 = vrot.lane.b32.xlu0 %v13554_v5, %s20023_s18 }
 0x266   : > { %v2246_v46 = vpop.permute.xlu1 %2245  ;;  %v2244_v58 = vpop.permute.xlu0 %2243 }
 0x267   : > { %v2628_v3 = vsel %vm2617_vm13, %v2595_v11, %v2244_v58 }
 0x268   : > { %2257 = vrot.lane.b32.xlu1 %v13568_v33, %s20029_s2  ;;  %2255 = vrot.lane.b32.xlu0 %v13571_v17, %s20029_s2 }
 0x26a   : > { %v781_v40 = vpop.permute.xlu1 %780  ;;  %v2345_v14 = vpop.permute.xlu0 %2344 }
 0x26b   : > { %847 = vst.msk [vmem:[#allocation2 + $0x181] sm:$0xff] %vm816_vm3, %v781_v40  ;;  %v2660_v19 = vsel %vm566_vm0, %v2628_v3, %v2345_v14 }
 0x26c   : > { %1388 = vrot.lane.b32.xlu1 %v13481_v15, %s20025_s22  ;;  %2356 = vrot.lane.b32.xlu0 %v13584_v2, %s20030_s0  ;;  %v2563_v15 = vsel %vm2551_vm11, %v2530_v22, %v2046_v41 }
 0x26d   : > { %10524 = vmatprep.mubr.msk.f32.mxu0 %vm2692_vm14, %v2660_v19  ;;  %v2596_v43 = vsel %vm2584_vm12, %v2563_v15, %v2144_v47  ;;  %v1700_v47 = vrot.slane %v1301_v56, 2  ;;  %v13708_v15 = vld [vmem:[#allocation2 + $0x128] sm:$0xff] }
 0x26e   : > { %v1377_v62 = vpop.permute.xlu1 %1376  ;;  %v783_v42 = vpop.permute.xlu0 %782  ;;  %v2629_v28 = vsel %vm2617_vm13, %v2596_v43, %v2246_v46  ;;  %v13710_v43 = vld [vmem:[#allocation2 + $0x120] sm:$0xff] }
 0x26f   : > { %848 = vst.msk [vmem:[#allocation2 + $0x189] sm:$0xff] %vm816_vm3, %v783_v42  ;;  %v13664_v25 = vsel %vm1641_vm5, %v1698_v55, %v1700_v47  ;;  %vm4332_vm3 = vcmask 220160  }
 0x270   : > { %2358 = vrot.lane.b32.xlu1 %v13597_v20, %s20030_s0  ;;  %1581 = vrot.lane.b32.xlu0 %v13504_v8, %s20022_s19 }
 0x272   : > { %v2347_v36 = vpop.permute.xlu1 %2346  ;;  %v1570_v59 = vpop.permute.xlu0 %1569 }
 0x273   : > { %v2661_v27 = vsel %vm566_vm0, %v2629_v28, %v2347_v36  ;;  %v2433_v54 = vsel %vm2420_vm8, %v1377_v62, %v1570_v59  ;;  %v1304_v28 = vld [vmem:[#allocation2 + $0x130] sm:$0x3] }
 0x274   : > { %1583 = vrot.lane.b32.xlu1 %v13501_v24, %s20022_s19  ;;  %1390 = vrot.lane.b32.xlu0 %v13479_v30, %s20025_s22 }
 0x275   : > { %10525 = vmatmul.mubr.msk.f32.gmra.mrb[10].mxu0 %vm2692_vm14, %v2661_v27  ;;  %v1526_v27 = vrot.slane %v13708_v15, 1 }
 0x276   : > { %v1200_v13 = vpop.permute.xlu1 %1199  ;;  %v1198_v7 = vpop.permute.xlu0 %1197 }
 0x277   : > { %1265 = vst.msk [vmem:[#allocation2 + $0x189] sm:$0xff] %vm1233_vm6, %v1200_v13  ;;  %1264 = vst.msk [vmem:[#allocation2 + $0x181] sm:$0xff] %vm1233_vm6, %v1198_v7  ;;  %v1528_v13 = vrot.slane %v1304_v28, 1  ;;  %v1525_v7 = vrot.slane %v13710_v43, 1  ;;  %vm4365_vm6 = vcmask 293888  }
 0x278   : > { %1760 = vrot.lane.b32.xlu1 %v13526_v48, %s20027_s26  ;;  %1758 = vrot.lane.b32.xlu0 %v13516_v23, %s20027_s26  ;;  %v13632_v23 = vld [vmem:[#allocation2 + $0x108] sm:$0xff]  ;;  %v1521_v48 = vrot.slane %v13630_v32, 1 }
 0x279   : > { %v1520_v52 = vrot.slane %v13632_v23, 1  ;;  %v1697_v6 = vrot.slane %v13632_v23, 2 }
 0x27a   : > { %v1572_v8 = vpop.permute.xlu1 %1571  ;;  %v1379_v0 = vpop.permute.xlu0 %1378  ;;  %v13641_v31 = vsel %vm1464_vm4, %v1521_v48, %v1523_v53 }
 0x27b   : > { %v13644_v51 = vsel %vm1464_vm4, %v1520_v52, %v1521_v48  ;;  %v13653_v26 = vsel %vm1641_vm5, %v1697_v6, %v1698_v55  ;;  %v2434_v46 = vsel %vm2420_vm8, %v1379_v0, %v1572_v8  ;;  %v1705_v52 = vrot.slane %v1304_v28, 2 }
 0x27c   : > { %1858 = vrot.lane.b32.xlu1 %v13552_v57, %s20024_s21  ;;  %1856 = vrot.lane.b32.xlu0 %v13554_v5, %s20024_s21 }
 0x27e   : > { %v1749_v30 = vpop.permute.xlu1 %1748  ;;  %v1747_v24 = vpop.permute.xlu0 %1746 }
 0x27f   : > { %v2465_v63 = vsel %vm655_vm2, %v2433_v54, %v1747_v24  ;;  %v13722_v24 = vsel %vm1464_vm4, %v1525_v7, %v1526_v27 }
 0x280   : > { %1960 = vrot.lane.b32.xlu1 %v13568_v33, %s20021_s29  ;;  %1958 = vrot.lane.b32.xlu0 %v13571_v17, %s20021_s29 }
 0x282   : > { %v1847_v10 = vpop.permute.xlu1 %1846  ;;  %v1845_v37 = vpop.permute.xlu0 %1844 }
 0x283   : > { %v2498_v16 = vsel %vm2485_vm9, %v2465_v63, %v1845_v37  ;;  %v1703_v37 = vrot.slane %v13708_v15, 2 }
 0x284   : > { %2061 = vrot.lane.b32.xlu1 %v13597_v20, %s20028_s30  ;;  %2059 = vrot.lane.b32.xlu0 %v13584_v2, %s20028_s30 }
 0x285   : > { %v13746_v47 = vsel %vm1641_vm5, %v1703_v37, %v1705_v52 }
 0x286   : > { %v1949_v61 = vpop.permute.xlu1 %1948  ;;  %v1947_v50 = vpop.permute.xlu0 %1946 }
 0x287   : > { %v2531_v45 = vsel %vm2518_vm10, %v2498_v16, %v1947_v50 }
 0x288   : > { %2159 = vrot.lane.b32.xlu1 %v13630_v32, %s20023_s18  ;;  %2157 = vrot.lane.b32.xlu0 %v13632_v23, %s20023_s18 }
 0x28a   : > { %v2050_v44 = vpop.permute.xlu1 %2049  ;;  %v2048_v39 = vpop.permute.xlu0 %2047 }
 0x28b   : > { %v2564_v58 = vsel %vm2551_vm11, %v2531_v45, %v2048_v39 }
 0x28c   : > { %2261 = vrot.lane.b32.xlu1 %v13641_v31, %s20029_s2  ;;  %2259 = vrot.lane.b32.xlu0 %v13644_v51, %s20029_s2 }
 0x28e   : > { %v2148_v41 = vpop.permute.xlu1 %2147  ;;  %v2146_v38 = vpop.permute.xlu0 %2145 }
 0x28f   : > { %v2597_v29 = vsel %vm2584_vm12, %v2564_v58, %v2146_v38 }
 0x290   : > { %1392 = vrot.lane.b32.xlu1 %v13554_v5, %s20025_s22  ;;  %2360 = vrot.lane.b32.xlu0 %v13653_v26, %s20030_s0  ;;  %v2466_v5 = vsel %vm655_vm2, %v2434_v46, %v1749_v30  ;;  %v13719_v30 = vsel %vm1464_vm4, %v1526_v27, %v1528_v13 }
 0x291   : > { %v2499_v18 = vsel %vm2485_vm9, %v2466_v5, %v1847_v10  ;;  %v1702_v10 = vrot.slane %v13710_v43, 2 }
 0x292   : > { %v2250_v9 = vpop.permute.xlu1 %2249  ;;  %v2248_v49 = vpop.permute.xlu0 %2247  ;;  %v2532_v3 = vsel %vm2518_vm10, %v2499_v18, %v1949_v61 }
 0x293   : > { %v2630_v60 = vsel %vm2617_vm13, %v2597_v29, %v2248_v49  ;;  %v2565_v14 = vsel %vm2551_vm11, %v2532_v3, %v2050_v44  ;;  %v13735_v53 = vsel %vm1641_vm5, %v1702_v10, %v1703_v37 }
 0x294   : > { %2362 = vrot.lane.b32.xlu1 %v13664_v25, %s20030_s0  ;;  %1585 = vrot.lane.b32.xlu0 %v13571_v17, %s20022_s19  ;;  %v2598_v17 = vsel %vm2584_vm12, %v2565_v14, %v2148_v41 }
 0x295   : > { %v2631_v34 = vsel %vm2617_vm13, %v2598_v17, %v2250_v9 }
 0x296   : > { %v1381_v21 = vpop.permute.xlu1 %1380  ;;  %v2349_v11 = vpop.permute.xlu0 %2348 }
 0x297   : > { %v2662_v40 = vsel %vm566_vm0, %v2630_v60, %v2349_v11 }
 0x298   : > { %v13679_v19 = vpop.f32.mrb[0].mxu0  ;;  %1587 = vrot.lane.b32.xlu1 %v13568_v33, %s20022_s19  ;;  %1394 = vrot.lane.b32.xlu0 %v13552_v57, %s20025_s22 }
 0x299   : > { %v13686_v4 = vpop.f32.mrb[1].mxu0  ;;  %10527 = vmatprep.mubr.msk.f32.mxu0 %vm2692_vm14, %v2662_v40 }
 0x29a   : > { %v2351_v35 = vpop.permute.xlu1 %2350  ;;  %v1574_v1 = vpop.permute.xlu0 %1573 }
 0x29b   : > { %v2663_v62 = vsel %vm566_vm0, %v2631_v34, %v2351_v35  ;;  %v2435_v44 = vsel %vm2420_vm8, %v1381_v21, %v1574_v1  ;;  %v13790_v34 = vld [vmem:[#allocation2 + $0x140] sm:$0xff]  ;;  %v13792_v35 = vld [vmem:[#allocation2 + $0x138] sm:$0xff]  ;;  %v1307_v1 = vld [vmem:[#allocation2 + $0x148] sm:$0x3] }
 0x29c   : > { %1764 = vrot.lane.b32.xlu1 %v13597_v20, %s20027_s26  ;;  %1762 = vrot.lane.b32.xlu0 %v13584_v2, %s20027_s26  ;;  %v1708_v27 = vrot.slane %v13790_v34, 2 }
 0x29d   : > { %10528 = vmatmul.mubr.msk.f32.gmra.mrb[12].mxu0 %vm2692_vm14, %v2663_v62 }
 0x29e   : > { %v1576_v57 = vpop.permute.xlu1 %1575  ;;  %v1383_v33 = vpop.permute.xlu0 %1382 }
 0x29f   : > { %v2436_v54 = vsel %vm2420_vm8, %v1383_v33, %v1576_v57  ;;  %v1531_v33 = vrot.slane %v13790_v34, 1 }
 0x2a0   : > { %1862 = vrot.lane.b32.xlu1 %v13630_v32, %s20024_s21  ;;  %1860 = vrot.lane.b32.xlu0 %v13632_v23, %s20024_s21 }
 0x2a2   : > { %v1753_v42 = vpop.permute.xlu1 %1752  ;;  %v1751_v22 = vpop.permute.xlu0 %1750 }
 0x2a3   : > { %v2467_v39 = vsel %vm655_vm2, %v2435_v44, %v1751_v22  ;;  %v1530_v22 = vrot.slane %v13792_v35, 1 }
 0x2a4   : > { %1964 = vrot.lane.b32.xlu1 %v13641_v31, %s20021_s29  ;;  %1962 = vrot.lane.b32.xlu0 %v13644_v51, %s20021_s29 }
 0x2a6   : > { %v1851_v20 = vpop.permute.xlu1 %1850  ;;  %v1849_v2 = vpop.permute.xlu0 %1848 }
 0x2a7   : > { %v2500_v6 = vsel %vm2485_vm9, %v2467_v39, %v1849_v2 }
 0x2a8   : > { %2065 = vrot.lane.b32.xlu1 %v13664_v25, %s20028_s30  ;;  %2063 = vrot.lane.b32.xlu0 %v13653_v26, %s20028_s30 }
 0x2aa   : > { %v1953_v36 = vpop.permute.xlu1 %1952  ;;  %v1951_v59 = vpop.permute.xlu0 %1950 }
 0x2ab   : > { %v2533_v38 = vsel %vm2518_vm10, %v2500_v6, %v1951_v59  ;;  %v1707_v59 = vrot.slane %v13792_v35, 2 }
 0x2ac   : > { %2163 = vrot.lane.b32.xlu1 %v13708_v15, %s20023_s18  ;;  %2161 = vrot.lane.b32.xlu0 %v13710_v43, %s20023_s18 }
 0x2ae   : > { %v2054_v8 = vpop.permute.xlu1 %2053  ;;  %v2052_v0 = vpop.permute.xlu0 %2051 }
 0x2af   : > { %v2566_v63 = vsel %vm2551_vm11, %v2533_v38, %v2052_v0  ;;  %v1710_v0 = vrot.slane %v1307_v1, 2 }
 0x2b0   : > { %v13726_v56 = vpop.f32.mrb[2].mxu0  ;;  %2265 = vrot.lane.b32.xlu1 %v13719_v30, %s20029_s2  ;;  %2263 = vrot.lane.b32.xlu0 %v13722_v24, %s20029_s2 }
 0x2b1   : > { %v13732_v61 = vpop.f32.mrb[3].mxu0  ;;  %v13824_v39 = vsel %vm1641_vm5, %v1708_v27, %v1710_v0 }
 0x2b2   : > { %v2152_v50 = vpop.permute.xlu1 %2151  ;;  %v2150_v48 = vpop.permute.xlu0 %2149 }
 0x2b3   : > { %v2599_v16 = vsel %vm2584_vm12, %v2566_v63, %v2150_v48 }
 0x2b4   : > { %1396 = vrot.lane.b32.xlu1 %v13632_v23, %s20025_s22  ;;  %2364 = vrot.lane.b32.xlu0 %v13735_v53, %s20030_s0  ;;  %v2468_v23 = vsel %vm655_vm2, %v2436_v54, %v1753_v42  ;;  %v1533_v42 = vrot.slane %v1307_v1, 1 }
 0x2b5   : > { %v2501_v9 = vsel %vm2485_vm9, %v2468_v23, %v1851_v20 }
 0x2b6   : > { %v2254_v55 = vpop.permute.xlu1 %2253  ;;  %v2252_v41 = vpop.permute.xlu0 %2251  ;;  %v2534_v58 = vsel %vm2518_vm10, %v2501_v9, %v1953_v36  ;;  %v13801_v28 = vsel %vm1464_vm4, %v1531_v33, %v1533_v42  ;;  %v13804_v36 = vsel %vm1464_vm4, %v1530_v22, %v1531_v33 }
 0x2b7   : > { %v2632_v49 = vsel %vm2617_vm13, %v2599_v16, %v2252_v41  ;;  %v2567_v29 = vsel %vm2551_vm11, %v2534_v58, %v2054_v8  ;;  %v13813_v8 = vsel %vm1641_vm5, %v1707_v59, %v1708_v27 }
 0x2b8   : > { %2366 = vrot.lane.b32.xlu1 %v13746_v47, %s20030_s0  ;;  %1589 = vrot.lane.b32.xlu0 %v13644_v51, %s20022_s19  ;;  %v2600_v51 = vsel %vm2584_vm12, %v2567_v29, %v2152_v50 }
 0x2b9   : > { %v2633_v18 = vsel %vm2617_vm13, %v2600_v51, %v2254_v55 }
 0x2ba   : > { %v1385_v45 = vpop.permute.xlu1 %1384  ;;  %v2353_v46 = vpop.permute.xlu0 %2352 }
 0x2bb   : > { %v2664_v5 = vsel %vm566_vm0, %v2632_v49, %v2353_v46 }
 0x2bc   : > { %1591 = vrot.lane.b32.xlu1 %v13641_v31, %s20022_s19  ;;  %1398 = vrot.lane.b32.xlu0 %v13630_v32, %s20025_s22 }
 0x2bd   : > { %10530 = vmatprep.mubr.msk.f32.mxu0 %vm2692_vm14, %v2664_v5 }
 0x2be   : > { %v2355_v60 = vpop.permute.xlu1 %2354  ;;  %v1578_v21 = vpop.permute.xlu0 %1577 }
 0x2bf   : > { %v2665_v11 = vsel %vm566_vm0, %v2633_v18, %v2355_v60  ;;  %v2437_v10 = vsel %vm2420_vm8, %v1385_v45, %v1578_v21  ;;  %v13866_v60 = vld [vmem:[#allocation2 + $0x158] sm:$0xff]  ;;  %v13868_v21 = vld [vmem:[#allocation2 + $0x150] sm:$0xff] }
 0x2c0   : > { %1768 = vrot.lane.b32.xlu1 %v13664_v25, %s20027_s26  ;;  %1766 = vrot.lane.b32.xlu0 %v13653_v26, %s20027_s26  ;;  %v1712_v42 = vrot.slane %v13868_v21, 2  ;;  %v1713_v22 = vrot.slane %v13866_v60, 2 }
 0x2c1   : > { %10531 = vmatmul.mubr.msk.f32.gmra.mrb[14].mxu0 %vm2692_vm14, %v2665_v11  ;;  %v1310_v11 = vld [vmem:[#allocation2 + $0x160] sm:$0x3] }
 0x2c2   : > { %v1580_v31 = vpop.permute.xlu1 %1579  ;;  %v1387_v32 = vpop.permute.xlu0 %1386  ;;  %v13891_v59 = vsel %vm1641_vm5, %v1712_v42, %v1713_v22  ;;  %v1715_v27 = vrot.slane %v1310_v11, 2 }
 0x2c3   : > { %v2438_v6 = vsel %vm2420_vm8, %v1387_v32, %v1580_v31 }
 0x2c4   : > { %v13774_v3 = vpop.f32.mrb[4].mxu0  ;;  %1866 = vrot.lane.b32.xlu1 %v13708_v15, %s20024_s21  ;;  %1864 = vrot.lane.b32.xlu0 %v13710_v43, %s20024_s21 }
 0x2c5   : > { %v13780_v40 = vpop.f32.mrb[5].mxu0 }
 0x2c6   : > { %v1757_v14 = vpop.permute.xlu1 %1756  ;;  %v1755_v17 = vpop.permute.xlu0 %1754 }
 0x2c7   : > { %v2469_v37 = vsel %vm655_vm2, %v2437_v10, %v1755_v17  ;;  %v1536_v17 = vrot.slane %v13866_v60, 1 }
 0x2c8   : > { %1968 = vrot.lane.b32.xlu1 %v13719_v30, %s20021_s29  ;;  %1966 = vrot.lane.b32.xlu0 %v13722_v24, %s20021_s29 }
 0x2ca   : > { %v1855_v26 = vpop.permute.xlu1 %1854  ;;  %v1853_v25 = vpop.permute.xlu0 %1852 }
 0x2cb   : > { %v2502_v50 = vsel %vm2485_vm9, %v2469_v37, %v1853_v25  ;;  %v1535_v25 = vrot.slane %v13868_v21, 1 }
 0x2cc   : > { %2069 = vrot.lane.b32.xlu1 %v13746_v47, %s20028_s30  ;;  %2067 = vrot.lane.b32.xlu0 %v13735_v53, %s20028_s30 }
 0x2cd   : > { %v13882_v33 = vsel %vm1464_vm4, %v1535_v25, %v1536_v17 }
 0x2ce   : > { %v1957_v62 = vpop.permute.xlu1 %1956  ;;  %v1955_v57 = vpop.permute.xlu0 %1954 }
 0x2cf   : > { %v2535_v44 = vsel %vm2518_vm10, %v2502_v50, %v1955_v57 }
 0x2d0   : > { %2167 = vrot.lane.b32.xlu1 %v13790_v34, %s20023_s18  ;;  %2165 = vrot.lane.b32.xlu0 %v13792_v35, %s20023_s18 }
 0x2d2   : > { %v2058_v20 = vpop.permute.xlu1 %2057  ;;  %v2056_v2 = vpop.permute.xlu0 %2055 }
 0x2d3   : > { %v2568_v55 = vsel %vm2551_vm11, %v2535_v44, %v2056_v2 }
 0x2d4   : > { %2269 = vrot.lane.b32.xlu1 %v13801_v28, %s20029_s2  ;;  %2267 = vrot.lane.b32.xlu0 %v13804_v36, %s20029_s2 }
 0x2d6   : > { %v2156_v13 = vpop.permute.xlu1 %2155  ;;  %v2154_v7 = vpop.permute.xlu0 %2153 }
 0x2d7   : > { %v2601_v41 = vsel %vm2584_vm12, %v2568_v55, %v2154_v7 }
 0x2d8   : > { %1400 = vrot.lane.b32.xlu1 %v13710_v43, %s20025_s22  ;;  %2368 = vrot.lane.b32.xlu0 %v13813_v8, %s20030_s0  ;;  %v2470_v43 = vsel %vm655_vm2, %v2438_v6, %v1757_v14 }
 0x2d9   : > { %v2503_v38 = vsel %vm2485_vm9, %v2470_v43, %v1855_v26  ;;  %v1538_v26 = vrot.slane %v1310_v11, 1 }
 0x2da   : > { %v2258_v48 = vpop.permute.xlu1 %2257  ;;  %v2256_v52 = vpop.permute.xlu0 %2255  ;;  %v2536_v16 = vsel %vm2518_vm10, %v2503_v38, %v1957_v62 }
 0x2db   : > { %v2634_v54 = vsel %vm2617_vm13, %v2601_v41, %v2256_v52  ;;  %v2569_v49 = vsel %vm2551_vm11, %v2536_v16, %v2058_v20  ;;  %v13879_v57 = vsel %vm1464_vm4, %v1536_v17, %v1538_v26 }
 0x2dc   : > { %2370 = vrot.lane.b32.xlu1 %v13824_v39, %s20030_s0  ;;  %1593 = vrot.lane.b32.xlu0 %v13722_v24, %s20022_s19  ;;  %v2602_v24 = vsel %vm2584_vm12, %v2569_v49, %v2156_v13 }
 0x2dd   : > { %v2635_v45 = vsel %vm2617_vm13, %v2602_v24, %v2258_v48  ;;  %v13902_v48 = vsel %vm1641_vm5, %v1713_v22, %v1715_v27 }
 0x2de   : > { %v1389_v63 = vpop.permute.xlu1 %1388  ;;  %v2357_v23 = vpop.permute.xlu0 %2356 }
 0x2df   : > { %v2666_v9 = vsel %vm566_vm0, %v2634_v54, %v2357_v23 }
 0x2e0   : > { %1595 = vrot.lane.b32.xlu1 %v13719_v30, %s20022_s19  ;;  %1402 = vrot.lane.b32.xlu0 %v13708_v15, %s20025_s22 }
 0x2e1   : > { %10533 = vmatprep.mubr.msk.f32.mxu0 %vm2692_vm14, %v2666_v9 }
 0x2e2   : > { %v2359_v46 = vpop.permute.xlu1 %2358  ;;  %v1582_v58 = vpop.permute.xlu0 %1581 }
 0x2e3   : > { %v2667_v5 = vsel %vm566_vm0, %v2635_v45, %v2359_v46  ;;  %v2439_v13 = vsel %vm2420_vm8, %v1389_v63, %v1582_v58  ;;  %v13942_v58 = vld [vmem:[#allocation2 + $0x170] sm:$0xff] }
 0x2e4   : > { %1772 = vrot.lane.b32.xlu1 %v13746_v47, %s20027_s26  ;;  %1770 = vrot.lane.b32.xlu0 %v13735_v53, %s20027_s26  ;;  %v1718_v25 = vrot.slane %v13942_v58, 2 }
 0x2e5   : > { %10534 = vmatmul.mubr.msk.f32.gmra.mrb[16].mxu0 %vm2692_vm14, %v2667_v5  ;;  %v13944_v5 = vld [vmem:[#allocation2 + $0x168] sm:$0xff] }
 0x2e6   : > { %v1584_v30 = vpop.permute.xlu1 %1583  ;;  %v1391_v15 = vpop.permute.xlu0 %1390  ;;  %v1717_v26 = vrot.slane %v13944_v5, 2 }
 0x2e7   : > { %v2440_v52 = vsel %vm2420_vm8, %v1391_v15, %v1584_v30  ;;  %v1313_v30 = vld [vmem:[#allocation2 + $0x178] sm:$0x3] }
 0x2e8   : > { %1870 = vrot.lane.b32.xlu1 %v13790_v34, %s20024_s21  ;;  %1868 = vrot.lane.b32.xlu0 %v13792_v35, %s20024_s21 }
 0x2ea   : > { %v1761_v29 = vpop.permute.xlu1 %1760  ;;  %v1759_v51 = vpop.permute.xlu0 %1758 }
 0x2eb   : > { %v2471_v7 = vsel %vm655_vm2, %v2439_v13, %v1759_v51  ;;  %v1541_v51 = vrot.slane %v13942_v58, 1 }
 0x2ec   : > { %1972 = vrot.lane.b32.xlu1 %v13801_v28, %s20021_s29  ;;  %1970 = vrot.lane.b32.xlu0 %v13804_v36, %s20021_s29 }
 0x2ee   : > { %v1859_v47 = vpop.permute.xlu1 %1858  ;;  %v1857_v53 = vpop.permute.xlu0 %1856 }
 0x2ef   : > { %v2504_v0 = vsel %vm2485_vm9, %v2471_v7, %v1857_v53  ;;  %v1540_v53 = vrot.slane %v13944_v5, 1 }
 0x2f0   : > { %v13860_v18 = vpop.f32.mrb[6].mxu0  ;;  %2073 = vrot.lane.b32.xlu1 %v13824_v39, %s20028_s30  ;;  %2071 = vrot.lane.b32.xlu0 %v13813_v8, %s20028_s30 }
 0x2f1   : > { %v13870_v31 = vpop.f32.mrb[7].mxu0  ;;  %v13956_v17 = vsel %vm1464_vm4, %v1540_v53, %v1541_v51 }
 0x2f2   : > { %v1961_v32 = vpop.permute.xlu1 %1960  ;;  %v1959_v14 = vpop.permute.xlu0 %1958 }
 0x2f3   : > { %v2537_v50 = vsel %vm2518_vm10, %v2504_v0, %v1959_v14 }
 0x2f4   : > { %2171 = vrot.lane.b32.xlu1 %v13866_v60, %s20023_s18  ;;  %2169 = vrot.lane.b32.xlu0 %v13868_v21, %s20023_s18 }
 0x2f6   : > { %v2062_v1 = vpop.permute.xlu1 %2061  ;;  %v2060_v62 = vpop.permute.xlu0 %2059 }
 0x2f7   : > { %v2570_v44 = vsel %vm2551_vm11, %v2537_v50, %v2060_v62 }
 0x2f8   : > { %2273 = vrot.lane.b32.xlu1 %v13879_v57, %s20029_s2  ;;  %2271 = vrot.lane.b32.xlu0 %v13882_v33, %s20029_s2 }
 0x2fa   : > { %v2160_v20 = vpop.permute.xlu1 %2159  ;;  %v2158_v2 = vpop.permute.xlu0 %2157 }
 0x2fb   : > { %v2603_v6 = vsel %vm2584_vm12, %v2570_v44, %v2158_v2  ;;  %v1720_v2 = vrot.slane %v1313_v30, 2 }
 0x2fc   : > { %1404 = vrot.lane.b32.xlu1 %v13792_v35, %s20025_s22  ;;  %2372 = vrot.lane.b32.xlu0 %v13891_v59, %s20030_s0  ;;  %v2472_v35 = vsel %vm655_vm2, %v2440_v52, %v1761_v29 }
 0x2fd   : > { %v2505_v55 = vsel %vm2485_vm9, %v2472_v35, %v1859_v47  ;;  %v1543_v47 = vrot.slane %v1313_v30, 1  ;;  %v13980_v50 = vsel %vm1641_vm5, %v1718_v25, %v1720_v2 }
 0x2fe   : > { %v2262_v10 = vpop.permute.xlu1 %2261  ;;  %v2260_v37 = vpop.permute.xlu0 %2259  ;;  %v2538_v54 = vsel %vm2518_vm10, %v2505_v55, %v1961_v32 }
 0x2ff   : > { %v2636_v43 = vsel %vm2617_vm13, %v2603_v6, %v2260_v37  ;;  %v2571_v23 = vsel %vm2551_vm11, %v2538_v54, %v2062_v1  ;;  %v13953_v14 = vsel %vm1464_vm4, %v1541_v51, %v1543_v47 }
 0x300   : > { %2374 = vrot.lane.b32.xlu1 %v13902_v48, %s20030_s0  ;;  %1597 = vrot.lane.b32.xlu0 %v13804_v36, %s20022_s19  ;;  %v2604_v36 = vsel %vm2584_vm12, %v2571_v23, %v2160_v20  ;;  %v13969_v20 = vsel %vm1641_vm5, %v1717_v26, %v1718_v25 }
 0x301   : > { %v2637_v16 = vsel %vm2617_vm13, %v2604_v36, %v2262_v10 }
 0x302   : > { %v1393_v41 = vpop.permute.xlu1 %1392  ;;  %v2361_v38 = vpop.permute.xlu0 %2360 }
 0x303   : > { %v2668_v63 = vsel %vm566_vm0, %v2636_v43, %v2361_v38 }
 0x304   : > { %1599 = vrot.lane.b32.xlu1 %v13801_v28, %s20022_s19  ;;  %1406 = vrot.lane.b32.xlu0 %v13790_v34, %s20025_s22 }
 0x305   : > { %10536 = vmatprep.mubr.msk.f32.mxu0 %vm2692_vm14, %v2668_v63 }
 0x306   : > { %v2363_v9 = vpop.permute.xlu1 %2362  ;;  %v1586_v49 = vpop.permute.xlu0 %1585 }
 0x307   : > { %v2669_v24 = vsel %vm566_vm0, %v2637_v16, %v2363_v9  ;;  %v2441_v27 = vsel %vm2420_vm8, %v1393_v41, %v1586_v49 }
 0x308   : > { %1776 = vrot.lane.b32.xlu1 %v13824_v39, %s20027_s26  ;;  %1774 = vrot.lane.b32.xlu0 %v13813_v8, %s20027_s26 }
 0x309   : > { %10537 = vmatmul.mubr.msk.f32.gmra.mrb[18].mxu0 %vm2692_vm14, %v2669_v24 }
 0x30a   : > { %v1588_v28 = vpop.permute.xlu1 %1587  ;;  %v1395_v34 = vpop.permute.xlu0 %1394 }
 0x30b   : > { %v2442_v52 = vsel %vm2420_vm8, %v1395_v34, %v1588_v28  ;;  %v1315_v28 = vld [vmem:[#allocation2 + $0x188] sm:$0xff]  ;;  %v1314_v34 = vld [vmem:[#allocation2 + $0x180] sm:$0xff] }
 0x30c   : > { %1874 = vrot.lane.b32.xlu1 %v13866_v60, %s20024_s21  ;;  %1872 = vrot.lane.b32.xlu0 %v13868_v21, %s20024_s21 }
 0x30e   : > { %v1765_v45 = vpop.permute.xlu1 %1764  ;;  %v1763_v46 = vpop.permute.xlu0 %1762 }
 0x30f   : > { %v2473_v13 = vsel %vm655_vm2, %v2441_v27, %v1763_v46 }
 0x310   : > { %1976 = vrot.lane.b32.xlu1 %v13879_v57, %s20021_s29  ;;  %1974 = vrot.lane.b32.xlu0 %v13882_v33, %s20021_s29 }
 0x312   : > { %v1863_v39 = vpop.permute.xlu1 %1862  ;;  %v1861_v8 = vpop.permute.xlu0 %1860 }
 0x313   : > { %v2506_v7 = vsel %vm2485_vm9, %v2473_v13, %v1861_v8  ;;  %v1918_v8 = vrot.slane %v1315_v28, 1 }
 0x314   : > { %2077 = vrot.lane.b32.xlu1 %v13902_v48, %s20028_s30  ;;  %2075 = vrot.lane.b32.xlu0 %v13891_v59, %s20028_s30 }
 0x316   : > { %v1965_v15 = vpop.permute.xlu1 %1964  ;;  %v1963_v29 = vpop.permute.xlu0 %1962 }
 0x317   : > { %v2539_v37 = vsel %vm2518_vm10, %v2506_v7, %v1963_v29 }
 0x318   : > { %2175 = vrot.lane.b32.xlu1 %v13942_v58, %s20023_s18  ;;  %2173 = vrot.lane.b32.xlu0 %v13944_v5, %s20023_s18 }
 0x31a   : > { %v2066_v11 = vpop.permute.xlu1 %2065  ;;  %v2064_v32 = vpop.permute.xlu0 %2063 }
 0x31b   : > { %v2572_v44 = vsel %vm2551_vm11, %v2539_v37, %v2064_v32  ;;  %v2019_v32 = vrot.slane %v1315_v28, 2 }
 0x31c   : > { %v13960_v1 = vpop.f32.mrb[8].mxu0  ;;  %2277 = vrot.lane.b32.xlu1 %v13953_v14, %s20029_s2  ;;  %2275 = vrot.lane.b32.xlu0 %v13956_v17, %s20029_s2 }
 0x31d   : > { %v13966_v62 = vpop.f32.mrb[9].mxu0 }
 0x31e   : > { %v2164_v42 = vpop.permute.xlu1 %2163  ;;  %v2162_v22 = vpop.permute.xlu0 %2161 }
 0x31f   : > { %v2605_v35 = vsel %vm2584_vm12, %v2572_v44, %v2162_v22 }
 0x320   : > { %1408 = vrot.lane.b32.xlu1 %v13868_v21, %s20025_s22  ;;  %2376 = vrot.lane.b32.xlu0 %v13969_v20, %s20030_s0  ;;  %v2474_v21 = vsel %vm655_vm2, %v2442_v52, %v1765_v45  ;;  %v1316_v45 = vld [vmem:[#allocation2 + $0x190] sm:$0x3] }
 0x321   : > { %v2507_v6 = vsel %vm2485_vm9, %v2474_v21, %v1863_v39  ;;  %v1920_v30 = vrot.slane %v1316_v45, 1  ;;  %v2021_v22 = vrot.slane %v1316_v45, 2 }
 0x322   : > { %v2266_v0 = vpop.permute.xlu1 %2265  ;;  %v2264_v10 = vpop.permute.xlu0 %2263  ;;  %v2540_v38 = vsel %vm2518_vm10, %v2507_v6, %v1965_v15  ;;  %v1917_v15 = vrot.slane %v1314_v34, 1 }
 0x323   : > { %v2638_v55 = vsel %vm2617_vm13, %v2605_v35, %v2264_v10  ;;  %v2573_v63 = vsel %vm2551_vm11, %v2540_v38, %v2066_v11  ;;  %v1921_v47 = vsel %vm1464_vm4, %v1918_v8, %v1920_v30  ;;  %v2018_v11 = vrot.slane %v1314_v34, 2 }
 0x324   : > { %2378 = vrot.lane.b32.xlu1 %v13980_v50, %s20030_s0  ;;  %1601 = vrot.lane.b32.xlu0 %v13882_v33, %s20022_s19  ;;  %v2606_v33 = vsel %vm2584_vm12, %v2573_v63, %v2164_v42  ;;  %v1919_v53 = vsel %vm1464_vm4, %v1917_v15, %v1918_v8  ;;  %v2022_v37 = vsel %vm1641_vm5, %v2019_v32, %v2021_v22 }
 0x325   : > { %v2639_v23 = vsel %vm2617_vm13, %v2606_v33, %v2266_v0  ;;  %v2020_v42 = vsel %vm1641_vm5, %v2018_v11, %v2019_v32 }
 0x326   : > { %v1397_v43 = vpop.permute.xlu1 %1396  ;;  %v2365_v41 = vpop.permute.xlu0 %2364 }
 0x327   : > { %v2670_v54 = vsel %vm566_vm0, %v2638_v55, %v2365_v41 }
 0x328   : > { %1603 = vrot.lane.b32.xlu1 %v13879_v57, %s20022_s19  ;;  %1410 = vrot.lane.b32.xlu0 %v13866_v60, %s20025_s22 }
 0x329   : > { %10539 = vmatprep.mubr.msk.f32.mxu0 %vm2692_vm14, %v2670_v54 }
 0x32a   : > { %v2367_v36 = vpop.permute.xlu1 %2366  ;;  %v1590_v16 = vpop.permute.xlu0 %1589 }
 0x32b   : > { %v2671_v9 = vsel %vm566_vm0, %v2639_v23, %v2367_v36  ;;  %v2443_v2 = vsel %vm2420_vm8, %v1397_v43, %v1590_v16 }
 0x32c   : > { %1780 = vrot.lane.b32.xlu1 %v13902_v48, %s20027_s26  ;;  %1778 = vrot.lane.b32.xlu0 %v13891_v59, %s20027_s26 }
 0x32d   : > { %10540 = vmatmul.mubr.msk.f32.gmra.mrb[20].mxu0 %vm2692_vm14, %v2671_v9 }
 0x32e   : > { %v1592_v57 = vpop.permute.xlu1 %1591  ;;  %v1399_v60 = vpop.permute.xlu0 %1398 }
 0x32f   : > { %v2444_v52 = vsel %vm2420_vm8, %v1399_v60, %v1592_v57 }
 0x330   : > { %1878 = vrot.lane.b32.xlu1 %v13942_v58, %s20024_s21  ;;  %1876 = vrot.lane.b32.xlu0 %v13944_v5, %s20024_s21 }
 0x332   : > { %v1769_v49 = vpop.permute.xlu1 %1768  ;;  %v1767_v24 = vpop.permute.xlu0 %1766 }
 0x333   : > { %v2475_v27 = vsel %vm655_vm2, %v2443_v2, %v1767_v24 }
 0x334   : > { %1980 = vrot.lane.b32.xlu1 %v13953_v14, %s20021_s29  ;;  %1978 = vrot.lane.b32.xlu0 %v13956_v17, %s20021_s29 }
 0x336   : > { %v1867_v48 = vpop.permute.xlu1 %1866  ;;  %v1865_v59 = vpop.permute.xlu0 %1864 }
 0x337   : > { %v2508_v13 = vsel %vm2485_vm9, %v2475_v27, %v1865_v59  ;;  %v1319_v59 = vld [vmem:[#allocation2 + $0x1a8] sm:$0x3] }
 0x338   : > { %2081 = vrot.lane.b32.xlu1 %v13980_v50, %s20028_s30  ;;  %2079 = vrot.lane.b32.xlu0 %v13969_v20, %s20028_s30 }
 0x33a   : > { %v1969_v46 = vpop.permute.xlu1 %1968  ;;  %v1967_v39 = vpop.permute.xlu0 %1966 }
 0x33b   : > { %v2541_v10 = vsel %vm2518_vm10, %v2508_v13, %v1967_v39 }
 0x33c   : > { %2179 = vrot.lane.b32.xlu1 %v1315_v28, %s20023_s18  ;;  %2177 = vrot.lane.b32.xlu0 %v1314_v34, %s20023_s18 }
 0x33e   : > { %v2070_v29 = vpop.permute.xlu1 %2069  ;;  %v2068_v51 = vpop.permute.xlu0 %2067 }
 0x33f   : > { %v2574_v44 = vsel %vm2551_vm11, %v2541_v10, %v2068_v51 }
 0x340   : > { %2281 = vrot.lane.b32.xlu1 %v1921_v47, %s20029_s2  ;;  %2279 = vrot.lane.b32.xlu0 %v1919_v53, %s20029_s2 }
 0x342   : > { %v2168_v26 = vpop.permute.xlu1 %2167  ;;  %v2166_v25 = vpop.permute.xlu0 %2165 }
 0x343   : > { %v2607_v35 = vsel %vm2584_vm12, %v2574_v44, %v2166_v25 }
 0x344   : > { %1412 = vrot.lane.b32.xlu1 %v13944_v5, %s20025_s22  ;;  %2380 = vrot.lane.b32.xlu0 %v2020_v42, %s20030_s0  ;;  %v2476_v5 = vsel %vm655_vm2, %v2444_v52, %v1769_v49 }
 0x345   : > { %v2509_v55 = vsel %vm2485_vm9, %v2476_v5, %v1867_v48  ;;  %v1317_v48 = vld [vmem:[#allocation2 + $0x198] sm:$0xff] }
 0x346   : > { %v2270_v7 = vpop.permute.xlu1 %2269  ;;  %v2268_v0 = vpop.permute.xlu0 %2267  ;;  %v2542_v54 = vsel %vm2518_vm10, %v2509_v55, %v1969_v46  ;;  %v2218_v45 = vrot.slane %v1317_v48, 1  ;;  %v2319_v8 = vrot.slane %v1317_v48, 2 }
 0x347   : > { %v2640_v43 = vsel %vm2617_vm13, %v2607_v35, %v2268_v0  ;;  %v2575_v33 = vsel %vm2551_vm11, %v2542_v54, %v2070_v29  ;;  %v2322_v29 = vrot.slane %v1319_v59, 2 }
 0x348   : > { %v14037_v21 = vpop.f32.mrb[10].mxu0  ;;  %2382 = vrot.lane.b32.xlu1 %v2022_v37, %s20030_s0  ;;  %1605 = vrot.lane.b32.xlu0 %v13956_v17, %s20022_s19  ;;  %v2608_v17 = vsel %vm2584_vm12, %v2575_v33, %v2168_v26 }
 0x349   : > { %v14044_v6 = vpop.f32.mrb[11].mxu0  ;;  %v2641_v23 = vsel %vm2617_vm13, %v2608_v17, %v2270_v7 }
 0x34a   : > { %v1401_v41 = vpop.permute.xlu1 %1400  ;;  %v2369_v38 = vpop.permute.xlu0 %2368 }
 0x34b   : > { %v2672_v63 = vsel %vm566_vm0, %v2640_v43, %v2369_v38 }
 0x34c   : > { %1607 = vrot.lane.b32.xlu1 %v13953_v14, %s20022_s19  ;;  %1414 = vrot.lane.b32.xlu0 %v13942_v58, %s20025_s22  ;;  %s20033_s22 = smov 27   ;;  %s20034_s19 = smov 54  }
 0x34d   : > { %10542 = vmatprep.mubr.msk.f32.mxu0 %vm2692_vm14, %v2672_v63 }
 0x34e   : > { %v2371_v36 = vpop.permute.xlu1 %2370  ;;  %v1594_v16 = vpop.permute.xlu0 %1593 }
 0x34f   : > { %v2673_v9 = vsel %vm566_vm0, %v2641_v23, %v2371_v36  ;;  %v2445_v2 = vsel %vm2420_vm8, %v1401_v41, %v1594_v16 }
 0x350   : > { %1784 = vrot.lane.b32.xlu1 %v13980_v50, %s20027_s26  ;;  %1782 = vrot.lane.b32.xlu0 %v13969_v20, %s20027_s26  ;;  %v1318_v50 = vld [vmem:[#allocation2 + $0x1a0] sm:$0xff]  ;;  %s20032_s26 = smov 45  }
 0x351   : > { %10543 = vmatmul.mubr.msk.f32.gmra.mrb[22].mxu0 %vm2692_vm14, %v2673_v9  ;;  %v2219_v20 = vrot.slane %v1318_v50, 1  ;;  %v2320_v39 = vrot.slane %v1318_v50, 2 }
 0x352   : > { %v1596_v14 = vpop.permute.xlu1 %1595  ;;  %v1403_v58 = vpop.permute.xlu0 %1402 }
 0x353   : > { %v2220_v15 = vsel %vm1464_vm4, %v2218_v45, %v2219_v20  ;;  %v2323_v11 = vsel %vm1641_vm5, %v2320_v39, %v2322_v29  ;;  %v2321_v32 = vsel %vm1641_vm5, %v2319_v8, %v2320_v39  ;;  %v2446_v44 = vsel %vm2420_vm8, %v1403_v58, %v1596_v14 }
 0x354   : > { %1882 = vrot.lane.b32.xlu1 %v1315_v28, %s20024_s21  ;;  %1880 = vrot.lane.b32.xlu0 %v1314_v34, %s20024_s21  ;;  %v2221_v28 = vrot.slane %v1319_v59, 1  ;;  %s12115_s21 = smov 48  }
 0x356   : > { %v1773_v57 = vpop.permute.xlu1 %1772  ;;  %v1771_v60 = vpop.permute.xlu0 %1770  ;;  %v2222_v30 = vsel %vm1464_vm4, %v2219_v20, %v2221_v28 }
 0x357   : > { %v2477_v13 = vsel %vm655_vm2, %v2445_v2, %v1771_v60 }
 0x358   : > { %1984 = vrot.lane.b32.xlu1 %v1921_v47, %s20021_s29  ;;  %1982 = vrot.lane.b32.xlu0 %v1919_v53, %s20021_s29  ;;  %v14077_v53 = vld [vmem:[%s20031_s3] ss:$0 sm:$0xff]  ;;  %s19991_s29 = smov 36  }
 0x359   : > { %v2865_v26 = vadd.f32 %v13679_v19, %v14077_v53  ;;  %v2860_v25 = vadd.f32 %v14077_v53, %v13686_v4  ;;  %v2875_v27 = vadd.f32 %v13726_v56, %v14077_v53  ;;  %v2870_v19 = vadd.f32 %v14077_v53, %v13732_v61 }
 0x35a   : > { %v1871_v49 = vpop.permute.xlu1 %1870  ;;  %v1869_v24 = vpop.permute.xlu0 %1868  ;;  %v2885_v35 = vadd.f32 %v13774_v3, %v14077_v53  ;;  %v2478_v61 = vsel %vm655_vm2, %v2446_v44, %v1773_v57  ;;  %v2880_v41 = vadd.f32 %v14077_v53, %v13780_v40  ;;  %v2895_v58 = vadd.f32 %v13860_v18, %v14077_v53 }
 0x35b   : > { %v3019_v7 = vmax.f32 %v2865_v26, 0.0  ;;  %v3018_v0 = vmax.f32 %v2860_v25, 0.0  ;;  %v2510_v4 = vsel %vm2485_vm9, %v2477_v13, %v1869_v24  ;;  %v3021_v56 = vmax.f32 %v2875_v27, 0.0 }
 0x35c   : > { %2085 = vrot.lane.b32.xlu1 %v2022_v37, %s20028_s30  ;;  %2083 = vrot.lane.b32.xlu0 %v2020_v42, %s20028_s30  ;;  %v3020_v43 = vmax.f32 %v2870_v19, 0.0  ;;  %v2511_v38 = vsel %vm2485_vm9, %v2478_v61, %v1871_v49  ;;  %v3023_v16 = vmax.f32 %v2885_v35, 0.0  ;;  %v3022_v14 = vmax.f32 %v2880_v41, 0.0  ;;  %s19995_s30 = smov 45  }
 0x35d   : > { %v2890_v57 = vadd.f32 %v14077_v53, %v13870_v31  ;;  %v2905_v18 = vadd.f32 %v13960_v1, %v14077_v53  ;;  %v2900_v31 = vadd.f32 %v14077_v53, %v13966_v62  ;;  %v2910_v39 = vadd.f32 %v14077_v53, %v14044_v6 }
 0x35e   : > { %v1973_v46 = vpop.permute.xlu1 %1972  ;;  %v1971_v34 = vpop.permute.xlu0 %1970 }
 0x35f   : > { %v2543_v52 = vsel %vm2518_vm10, %v2510_v4, %v1971_v34  ;;  %v2544_v17 = vsel %vm2518_vm10, %v2511_v38, %v1973_v46  ;;  %v3024_v59 = vmax.f32 %v2890_v57, 0.0  ;;  %v3027_v28 = vmax.f32 %v2905_v18, 0.0 }
 0x360   : > { %2183 = vrot.lane.b32.xlu1 %v1318_v50, %s20023_s18  ;;  %2181 = vrot.lane.b32.xlu0 %v1317_v48, %s20023_s18  ;;  %v3025_v48 = vmax.f32 %v2895_v58, 0.0  ;;  %v3026_v46 = vmax.f32 %v2900_v31, 0.0  ;;  %v2915_v34 = vadd.f32 %v14037_v21, %v14077_v53  ;;  %v3028_v62 = vmax.f32 %v2910_v39, 0.0 }
 0x362   : > { %v2074_v51 = vpop.permute.xlu1 %2073  ;;  %v2072_v47 = vpop.permute.xlu0 %2071  ;;  %v3029_v1 = vmax.f32 %v2915_v34, 0.0 }
 0x363   : > { %v2576_v5 = vsel %vm2551_vm11, %v2543_v52, %v2072_v47  ;;  %v2577_v3 = vsel %vm2551_vm11, %v2544_v17, %v2074_v51 }
 0x364   : > { %2285 = vrot.lane.b32.xlu1 %v2222_v30, %s20029_s2  ;;  %2283 = vrot.lane.b32.xlu0 %v2220_v15, %s20029_s2 }
 0x366   : > { %v2172_v42 = vpop.permute.xlu1 %2171  ;;  %v2170_v22 = vpop.permute.xlu0 %2169 }
 0x367   : > { %v2609_v55 = vsel %vm2584_vm12, %v2576_v5, %v2170_v22  ;;  %v2610_v40 = vsel %vm2584_vm12, %v2577_v3, %v2172_v42 }
 0x368   : > { %2386 = vrot.lane.b32.xlu1 %v2323_v11, %s20030_s0  ;;  %2384 = vrot.lane.b32.xlu0 %v2321_v32, %s20030_s0  ;;  %s12104_s0 = smov 18  }
 0x36a   : > { %v2274_v10 = vpop.permute.xlu1 %2273  ;;  %v2272_v37 = vpop.permute.xlu0 %2271 }
 0x36b   : > { %v2642_v54 = vsel %vm2617_vm13, %v2609_v55, %v2272_v37  ;;  %v2643_v60 = vsel %vm2617_vm13, %v2610_v40, %v2274_v10 }
 0x36c   : > { %3084 = vrot.lane.b32.xlu1 %v3019_v7, %s20023_s18  ;;  %3082 = vrot.lane.b32.xlu0 %v3018_v0, %s20023_s18 }
 0x36e   : > { %v1405_v63 = vpop.permute.xlu1 %1404  ;;  %v2373_v33 = vpop.permute.xlu0 %2372 }
 0x36f   : > { %v2674_v23 = vsel %vm566_vm0, %v2642_v54, %v2373_v33 }
 0x370   : > { %v10529_v36 = vpop.f32.mrb[12].mxu0  ;;  %3088 = vrot.lane.b32.xlu1 %v3021_v56, %s20023_s18  ;;  %3086 = vrot.lane.b32.xlu0 %v3020_v43, %s20023_s18 }
 0x371   : > { %v2919_v9 = vpop.f32.mrb[13].mxu0  ;;  %10545 = vmatprep.mubr.msk.f32.mxu0 %vm2692_vm14, %v2674_v23  ;;  %v2925_v15 = vadd.f32 %v10529_v36, %v14077_v53 }
 0x372   : > { %v2375_v49 = vpop.permute.xlu1 %2374  ;;  %v1598_v24 = vpop.permute.xlu0 %1597  ;;  %v2920_v29 = vadd.f32 %v14077_v53, %v2919_v9 }
 0x373   : > { %v2675_v50 = vsel %vm566_vm0, %v2643_v60, %v2375_v49  ;;  %v3031_v21 = vmax.f32 %v2925_v15, 0.0  ;;  %v2447_v2 = vsel %vm2420_vm8, %v1405_v63, %v1598_v24 }
 0x374   : > { %3092 = vrot.lane.b32.xlu1 %v3023_v16, %s20023_s18  ;;  %3090 = vrot.lane.b32.xlu0 %v3022_v14, %s20023_s18  ;;  %v3030_v6 = vmax.f32 %v2920_v29, 0.0 }
 0x375   : > { %10546 = vmatmul.mubr.msk.f32.gmra.mrb[24].mxu0 %vm2692_vm14, %v2675_v50 }
 0x376   : > { %v1600_v20 = vpop.permute.xlu1 %1599  ;;  %v1407_v45 = vpop.permute.xlu0 %1406 }
 0x377   : > { %v2448_v4 = vsel %vm2420_vm8, %v1407_v45, %v1600_v20 }
 0x378   : > { %3096 = vrot.lane.b32.xlu1 %v3025_v48, %s20023_s18  ;;  %3094 = vrot.lane.b32.xlu0 %v3024_v59, %s20023_s18 }
 0x37a   : > { %v1777_v8 = vpop.permute.xlu1 %1776  ;;  %v1775_v30 = vpop.permute.xlu0 %1774 }
 0x37b   : > { %v2479_v27 = vsel %vm655_vm2, %v2447_v2, %v1775_v30  ;;  %v2480_v37 = vsel %vm655_vm2, %v2448_v4, %v1777_v8 }
 0x37c   : > { %3100 = vrot.lane.b32.xlu1 %v3027_v28, %s20023_s18  ;;  %3098 = vrot.lane.b32.xlu0 %v3026_v46, %s20023_s18 }
 0x37e   : > { %v1875_v51 = vpop.permute.xlu1 %1874  ;;  %v1873_v47 = vpop.permute.xlu0 %1872 }
 0x37f   : > { %v2512_v13 = vsel %vm2485_vm9, %v2479_v27, %v1873_v47  ;;  %v2513_v44 = vsel %vm2485_vm9, %v2480_v37, %v1875_v51 }
 0x380   : > { %3104 = vrot.lane.b32.xlu1 %v3029_v1, %s20023_s18  ;;  %3102 = vrot.lane.b32.xlu0 %v3028_v62, %s20023_s18 }
 0x382   : > { %v1977_v11 = vpop.permute.xlu1 %1976  ;;  %v1975_v32 = vpop.permute.xlu0 %1974 }
 0x383   : > { %v2545_v19 = vsel %vm2518_vm10, %v2512_v13, %v1975_v32  ;;  %v2546_v61 = vsel %vm2518_vm10, %v2513_v44, %v1977_v11 }
 0x384   : > { %3108 = vrot.lane.b32.xlu1 %v3031_v21, %s20023_s18  ;;  %3106 = vrot.lane.b32.xlu0 %v3030_v6, %s20023_s18 }
 0x386   : > { %v2078_v26 = vpop.permute.xlu1 %2077  ;;  %v2076_v25 = vpop.permute.xlu0 %2075 }
 0x387   : > { %v2578_v10 = vsel %vm2551_vm11, %v2545_v19, %v2076_v25  ;;  %v2579_v43 = vsel %vm2551_vm11, %v2546_v61, %v2078_v26 }
 0x38a   : > { %v2176_v42 = vpop.permute.xlu1 %2175  ;;  %v2174_v22 = vpop.permute.xlu0 %2173 }
 0x38b   : > { %v2611_v52 = vsel %vm2584_vm12, %v2578_v10, %v2174_v22  ;;  %v2612_v38 = vsel %vm2584_vm12, %v2579_v43, %v2176_v42 }
 0x38e   : > { %v2278_v7 = vpop.permute.xlu1 %2277  ;;  %v2276_v0 = vpop.permute.xlu0 %2275 }
 0x38f   : > { %v2644_v5 = vsel %vm2617_vm13, %v2611_v52, %v2276_v0  ;;  %v2645_v33 = vsel %vm2617_vm13, %v2612_v38, %v2278_v7 }
 0x392   : > { %v1409_v56 = vpop.permute.xlu1 %1408  ;;  %v2377_v35 = vpop.permute.xlu0 %2376 }
 0x393   : > { %v2676_v55 = vsel %vm566_vm0, %v2644_v5, %v2377_v35 }
 0x394   : > { %v10532_v41 = vpop.f32.mrb[14].mxu0  ;;  %10548 = vmatprep.mubr.msk.f32.mxu0 %vm2692_vm14, %v2676_v55 }
 0x395   : > { %v2935_v54 = vadd.f32 %v10532_v41, %v14077_v53  ;;  %v2929_v63 = vpop.f32.mrb[15].mxu0 }
 0x396   : > { %v2930_v17 = vadd.f32 %v14077_v53, %v2929_v63  ;;  %v2379_v23 = vpop.permute.xlu1 %2378  ;;  %v1602_v3 = vpop.permute.xlu0 %1601 }
 0x397   : > { %v3033_v36 = vmax.f32 %v2935_v54, 0.0  ;;  %v2677_v16 = vsel %vm566_vm0, %v2645_v33, %v2379_v23  ;;  %v2449_v20 = vsel %vm2420_vm8, %v1409_v56, %v1602_v3 }
 0x398   : > { %v3032_v40 = vmax.f32 %v2930_v17, 0.0  ;;  %10549 = vmatmul.mubr.msk.f32.gmra.mrb[26].mxu0 %vm2692_vm14, %v2677_v16 }
 0x399   : > { %3112 = vrot.lane.b32.xlu1 %v3033_v36, %s20023_s18 }
 0x39a   : > { %3110 = vrot.lane.b32.xlu0 %v3032_v40, %s20023_s18  ;;  %v1604_v9 = vpop.permute.xlu1 %1603  ;;  %v1411_v14 = vpop.permute.xlu0 %1410 }
 0x39b   : > { %v2450_v8 = vsel %vm2420_vm8, %v1411_v14, %v1604_v9 }
 0x39e   : > { %v1781_v58 = vpop.permute.xlu1 %1780  ;;  %v1779_v57 = vpop.permute.xlu0 %1778 }
 0x39f   : > { %v2481_v45 = vsel %vm655_vm2, %v2449_v20, %v1779_v57  ;;  %v2482_v1 = vsel %vm655_vm2, %v2450_v8, %v1781_v58 }
 0x3a2   : > { %v1879_v60 = vpop.permute.xlu1 %1878  ;;  %v1877_v49 = vpop.permute.xlu0 %1876 }
 0x3a3   : > { %v2514_v28 = vsel %vm2485_vm9, %v2481_v45, %v1877_v49  ;;  %v2515_v15 = vsel %vm2485_vm9, %v2482_v1, %v1879_v60  ;;  %v14206_v45 = vld [vmem:[#allocation2] sm:$0xff] }
 0x3a6   : > { %v1981_v24 = vpop.permute.xlu1 %1980  ;;  %v1979_v50 = vpop.permute.xlu0 %1978 }
 0x3a7   : > { %v2547_v39 = vsel %vm2518_vm10, %v2514_v28, %v1979_v50  ;;  %v2548_v21 = vsel %vm2518_vm10, %v2515_v15, %v1981_v24  ;;  %v3313_v15 = vrot.slane %v14206_v45, 1 }
 0x3aa   : > { %v2082_v48 = vpop.permute.xlu1 %2081  ;;  %v2080_v59 = vpop.permute.xlu0 %2079 }
 0x3ab   : > { %v2580_v30 = vsel %vm2551_vm11, %v2547_v39, %v2080_v59  ;;  %v2581_v11 = vsel %vm2551_vm11, %v2548_v21, %v2082_v48 }
 0x3ae   : > { %v2180_v18 = vpop.permute.xlu1 %2179  ;;  %v2178_v31 = vpop.permute.xlu0 %2177 }
 0x3af   : > { %v2613_v62 = vsel %vm2584_vm12, %v2580_v30, %v2178_v31  ;;  %v2614_v26 = vsel %vm2584_vm12, %v2581_v11, %v2180_v18  ;;  %v14203_v18 = vld [vmem:[#allocation2 + $0x8] sm:$0xff]  ;;  %v3213_v31 = vld [vmem:[#allocation2 + $0x10] sm:$0x3] }
 0x3b0   : > { %v3314_v30 = vrot.slane %v14203_v18, 1  ;;  %v3316_v1 = vrot.slane %v3213_v31, 1  ;;  %v3492_v11 = vrot.slane %v3213_v31, 2 }
 0x3b2   : > { %v2282_v46 = vpop.permute.xlu1 %2281  ;;  %v2280_v34 = vpop.permute.xlu0 %2279  ;;  %v3317_v21 = vsel %vm1464_vm4, %v3314_v30, %v3316_v1  ;;  %v4538_v1 = vld [vmem:[%s19954_s4 + $0x40] sm:$0xff] }
 0x3b3   : > { %v2646_v29 = vsel %vm2617_vm13, %v2613_v62, %v2280_v34  ;;  %v2647_v22 = vsel %vm2617_vm13, %v2614_v26, %v2282_v46  ;;  %v3489_v26 = vrot.slane %v14206_v45, 2 }
 0x3b6   : > { %v1413_v51 = vpop.permute.xlu1 %1412  ;;  %v2381_v47 = vpop.permute.xlu0 %2380 }
 0x3b7   : > { %v2678_v6 = vsel %vm566_vm0, %v2646_v29, %v2381_v47 }
 0x3b8   : > { %v10535_v32 = vpop.f32.mrb[16].mxu0  ;;  %10551 = vmatprep.mubr.msk.f32.mxu0 %vm2692_vm14, %v2678_v6  ;;  %v3490_v6 = vrot.slane %v14203_v18, 2 }
 0x3b9   : > { %v2945_v25 = vadd.f32 %v10535_v32, %v14077_v53  ;;  %v2939_v42 = vpop.f32.mrb[17].mxu0  ;;  %v3315_v32 = vsel %vm1464_vm4, %v3313_v15, %v3314_v30 }
 0x3ba   : > { %v2940_v2 = vadd.f32 %v14077_v53, %v2939_v42  ;;  %v2383_v27 = vpop.permute.xlu1 %2382  ;;  %v1606_v13 = vpop.permute.xlu0 %1605 }
 0x3bb   : > { %v3035_v7 = vmax.f32 %v2945_v25, 0.0  ;;  %v2679_v0 = vsel %vm566_vm0, %v2647_v22, %v2383_v27  ;;  %v2451_v38 = vsel %vm2420_vm8, %v1413_v51, %v1606_v13  ;;  %v3493_v22 = vsel %vm1641_vm5, %v3490_v6, %v3492_v11 }
 0x3bc   : > { %v3034_v19 = vmax.f32 %v2940_v2, 0.0  ;;  %10552 = vmatmul.mubr.msk.f32.gmra.mrb[28].mxu0 %vm2692_vm14, %v2679_v0  ;;  %v3491_v2 = vsel %vm1641_vm5, %v3489_v26, %v3490_v6 }
 0x3bd   : > { %3116 = vrot.lane.b32.xlu1 %v3035_v7, %s20023_s18 }
 0x3be   : > { %3114 = vrot.lane.b32.xlu0 %v3034_v19, %s20023_s18  ;;  %v1608_v4 = vpop.permute.xlu1 %1607  ;;  %v1415_v10 = vpop.permute.xlu0 %1414 }
 0x3bf   : > { %v2452_v54 = vsel %vm2420_vm8, %v1415_v10, %v1608_v4  ;;  %vm4431_vm8 = vcmask 441344  }
 0x3c2   : > { %v1785_v37 = vpop.permute.xlu1 %1784  ;;  %v1783_v52 = vpop.permute.xlu0 %1782 }
 0x3c3   : > { %v2484_v63 = vsel %vm655_vm2, %v2452_v54, %v1785_v37  ;;  %v2483_v33 = vsel %vm655_vm2, %v2451_v38, %v1783_v52  ;;  %vm4267_vm2 = vcmask 72704  }
 0x3c6   : > { %v1883_v44 = vpop.permute.xlu1 %1882  ;;  %v1881_v5 = vpop.permute.xlu0 %1880 }
 0x3c7   : > { %v2517_v17 = vsel %vm2485_vm9, %v2484_v63, %v1883_v44  ;;  %v2516_v23 = vsel %vm2485_vm9, %v2483_v33, %v1881_v5  ;;  %vm4464_vm9 = vcmask 515072  }
 0x3ca   : > { %v1985_v56 = vpop.permute.xlu1 %1984  ;;  %v1983_v35 = vpop.permute.xlu0 %1982 }
 0x3cb   : > { %v2550_v16 = vsel %vm2518_vm10, %v2517_v17, %v1985_v56  ;;  %v2549_v40 = vsel %vm2518_vm10, %v2516_v23, %v1983_v35  ;;  %v4530_v23 = vld [vmem:[%s19954_s4] sm:$0xff]  ;;  %vm4497_vm10 = vcmask 588800  }
 0x3ce   : > { %v2086_v61 = vpop.permute.xlu1 %2085  ;;  %v2084_v55 = vpop.permute.xlu0 %2083 }
 0x3cf   : > { %v2583_v9 = vsel %vm2551_vm11, %v2550_v16, %v2086_v61  ;;  %v2582_v14 = vsel %vm2551_vm11, %v2549_v40, %v2084_v55  ;;  %vm4548_vm11 = vcmask 662528  }
 0x3d2   : > { %v2184_v43 = vpop.permute.xlu1 %2183  ;;  %v2182_v41 = vpop.permute.xlu0 %2181 }
 0x3d3   : > { %v2616_v58 = vsel %vm2584_vm12, %v2583_v9, %v2184_v43  ;;  %v2615_v57 = vsel %vm2584_vm12, %v2582_v14, %v2182_v41  ;;  %v4532_v14 = vld [vmem:[%s19954_s4 + $0x10] sm:$0xff]  ;;  %vm20007_vm12 = vcmask 261120  }
 0x3d6   : > { %v2286_v3 = vpop.permute.xlu1 %2285  ;;  %v2284_v36 = vpop.permute.xlu0 %2283 }
 0x3d7   : > { %v2649_v60 = vsel %vm2617_vm13, %v2616_v58, %v2286_v3  ;;  %v2648_v49 = vsel %vm2617_vm13, %v2615_v57, %v2284_v36  ;;  %v4531_v3 = vld [vmem:[%s19954_s4 + $0x8] sm:$0xff]  ;;  %v4533_v58 = vld [vmem:[%s19954_s4 + $0x18] sm:$0xff]  ;;  %vm5963_vm13 = vcmask 392192  }
 0x3d8   : > { %v10653_v16 = vpack.c.bf16 %v4531_v3, %v4530_v23  ;;  %v10657_v57 = vpack.c.bf16 %v4533_v58, %v4532_v14 }
 0x3da   : > { %v2387_v24 = vpop.permute.xlu1 %2386  ;;  %v2385_v50 = vpop.permute.xlu0 %2384  ;;  %10654 = vmatprep.subr.bf16.mxu1 %v10653_v16 }
 0x3db   : > { %v2681_v48 = vsel %vm566_vm0, %v2649_v60, %v2387_v24  ;;  %v2680_v59 = vsel %vm566_vm0, %v2648_v49, %v2385_v50  ;;  %10656 = vmatpush3.bf16.msra.mxu1 %v10653_v16  ;;  %v4534_v49 = vld [vmem:[%s19954_s4 + $0x20] sm:$0xff]  ;;  %v4535_v24 = vld [vmem:[%s19954_s4 + $0x28] sm:$0xff] }
 0x3dc   : > { %v10538_v20 = vpop.f32.mrb[18].mxu0  ;;  %10554 = vmatprep.mubr.msk.f32.mxu0 %vm2692_vm14, %v2680_v59  ;;  %10658 = vmatprep.subr.bf16.mxu1 %v10657_v57  ;;  %v10661_v50 = vpack.c.bf16 %v4535_v24, %v4534_v49 }
 0x3dd   : > { %v2955_v28 = vadd.f32 %v10538_v20, %v14077_v53  ;;  %v2949_v46 = vpop.f32.mrb[19].mxu0  ;;  %10555 = vmatmul.mubr.msk.f32.gmra.mrb[30].mxu0 %vm2692_vm14, %v2681_v48 }
 0x3de   : > { %v2950_v34 = vadd.f32 %v14077_v53, %v2949_v46  ;;  %v3085_v39 = vpop.permute.xlu1 %3084  ;;  %v3083_v8 = vpop.permute.xlu0 %3082  ;;  %v4536_v46 = vld [vmem:[%s19954_s4 + $0x30] sm:$0xff] }
 0x3df   : > { %v3037_v62 = vmax.f32 %v2955_v28, 0.0  ;;  %3180 = vst.msk [vmem:[#allocation2 + $0x21] sm:$0xff] %vm3178_vm15, %v3085_v39  ;;  %3179 = vst.msk [vmem:[#allocation2 + $0x19] sm:$0xff] %vm3178_vm15, %v3083_v8  ;;  %10660 = vmatpush3.bf16.msra.mxu1 %v10657_v57 }
 0x3e0   : > { %v3036_v29 = vmax.f32 %v2950_v34, 0.0  ;;  %10662 = vmatprep.subr.bf16.mxu1 %v10661_v50  ;;  %v4537_v34 = vld [vmem:[%s19954_s4 + $0x38] sm:$0xff] }
 0x3e1   : > { %3120 = vrot.lane.b32.xlu1 %v3037_v62, %s20023_s18  ;;  %v10665_v39 = vpack.c.bf16 %v4537_v34, %v4536_v46  ;;  %v4539_v62 = vld [vmem:[%s19954_s4 + $0x48] sm:$0xff] }
 0x3e2   : > { %3118 = vrot.lane.b32.xlu0 %v3036_v29, %s20023_s18  ;;  %v3089_v51 = vpop.permute.xlu1 %3088  ;;  %v3087_v47 = vpop.permute.xlu0 %3086  ;;  %v10669_v15 = vpack.c.bf16 %v4539_v62, %v4538_v1 }
 0x3e3   : > { %3182 = vst.msk [vmem:[#allocation2 + $0x39] sm:$0xff] %vm3178_vm15, %v3089_v51  ;;  %3181 = vst.msk [vmem:[#allocation2 + $0x31] sm:$0xff] %vm3178_vm15, %v3087_v47  ;;  %10664 = vmatpush3.bf16.msra.mxu1 %v10661_v50  ;;  %v4540_v47 = vld [vmem:[%s19954_s4 + $0x50] sm:$0x1] }
 0x3e4   : > { %10666 = vmatprep.subr.bf16.mxu1 %v10665_v39 }
 0x3e5   : > { %3395 = vrot.lane.b32.xlu1 %v3317_v21, %s20029_s2 }
 0x3e6   : > { %3393 = vrot.lane.b32.xlu0 %v3315_v32, %s20029_s2  ;;  %v3093_v25 = vpop.permute.xlu1 %3092  ;;  %v3091_v42 = vpop.permute.xlu0 %3090  ;;  %v14230_v27 = vld [vmem:[#allocation2 + $0x20] sm:$0xff]  ;;  %v14232_v13 = vld [vmem:[#allocation2 + $0x18] sm:$0xff]  ;;  %v3216_v52 = vld [vmem:[#allocation2 + $0x28] sm:$0x3] }
 0x3e7   : > { %3184 = vst.msk [vmem:[#allocation2 + $0x51] sm:$0xff] %vm3178_vm15, %v3093_v25  ;;  %3183 = vst.msk [vmem:[#allocation2 + $0x49] sm:$0xff] %vm3178_vm15, %v3091_v42  ;;  %v3318_v19 = vrot.slane %v14232_v13, 1  ;;  %v3319_v4 = vrot.slane %v14230_v27, 1  ;;  %v3494_v5 = vrot.slane %v14232_v13, 2  ;;  %v3495_v56 = vrot.slane %v14230_v27, 2  ;;  %10668 = vmatpush3.bf16.msra.mxu1 %v10665_v39 }
 0x3e8   : > { %v3321_v35 = vrot.slane %v3216_v52, 1  ;;  %v3497_v60 = vrot.slane %v3216_v52, 2  ;;  %10670 = vmatprep.subr.bf16.mxu1 %v10669_v15 }
 0x3e9   : > { %3571 = vrot.lane.b32.xlu1 %v3493_v22, %s12104_s0  ;;  %v3320_v44 = vsel %vm1464_vm4, %v3318_v19, %v3319_v4  ;;  %v3496_v43 = vsel %vm1641_vm5, %v3494_v5, %v3495_v56 }
 0x3ea   : > { %3569 = vrot.lane.b32.xlu0 %v3491_v2, %s12104_s0  ;;  %v3097_v7 = vpop.permute.xlu1 %3096  ;;  %v3095_v0 = vpop.permute.xlu0 %3094  ;;  %v3322_v41 = vsel %vm1464_vm4, %v3319_v4, %v3321_v35  ;;  %v14283_v31 = vld [vmem:[#allocation2 + $0x30] sm:$0xff]  ;;  %v3498_v20 = vsel %vm1641_vm5, %v3495_v56, %v3497_v60  ;;  %v14289_v28 = vld [vmem:[#allocation2 + $0x38] sm:$0xff]  ;;  %v3219_v51 = vld [vmem:[#allocation2 + $0x40] sm:$0x3] }
 0x3eb   : > { %3186 = vst.msk [vmem:[#allocation2 + $0x69] sm:$0xff] %vm3178_vm15, %v3097_v7  ;;  %3185 = vst.msk [vmem:[#allocation2 + $0x61] sm:$0xff] %vm3178_vm15, %v3095_v0  ;;  %v3323_v8 = vrot.slane %v14283_v31, 1  ;;  %v3324_v30 = vrot.slane %v14289_v28, 1  ;;  %10672 = vmatpush3.bf16.msra.mxu1 %v10669_v15  ;;  %v3499_v21 = vrot.slane %v14283_v31, 2  ;;  %v3500_v6 = vrot.slane %v14289_v28, 2 }
 0x3ec   : > { %10577 = vmatprep.subr.msk.mxu1 %vm4645_vm1, %v4540_v47  ;;  %v3326_v11 = vrot.slane %v3219_v51, 1  ;;  %v3502_v25 = vrot.slane %v3219_v51, 2 }
 0x3ed   : > { %3669 = vrot.lane.b32.xlu1 %v14230_v27, %s19993_s23  ;;  %v3325_v29 = vsel %vm1464_vm4, %v3323_v8, %v3324_v30  ;;  %v3501_v32 = vsel %vm1641_vm5, %v3499_v21, %v3500_v6 }
 0x3ee   : > { %3667 = vrot.lane.b32.xlu0 %v14232_v13, %s19993_s23  ;;  %v3101_v10 = vpop.permute.xlu1 %3100  ;;  %v3099_v37 = vpop.permute.xlu0 %3098  ;;  %s19998_s23 = smov 54   ;;  %v3327_v26 = vsel %vm1464_vm4, %v3324_v30, %v3326_v11  ;;  %v3503_v22 = vsel %vm1641_vm5, %v3500_v6, %v3502_v25  ;;  %v14329_v7 = vld [vmem:[#allocation2 + $0x50] sm:$0xff]  ;;  %v3222_v0 = vld [vmem:[#allocation2 + $0x58] sm:$0x3]  ;;  %v14332_v19 = vld [vmem:[#allocation2 + $0x48] sm:$0xff] }
 0x3ef   : > { %3188 = vst.msk [vmem:[#allocation2 + $0x81] sm:$0xff] %vm3178_vm15, %v3101_v10  ;;  %3187 = vst.msk [vmem:[#allocation2 + $0x79] sm:$0xff] %vm3178_vm15, %v3099_v37  ;;  %10578 = vmatpush3.msk.msra.mxu1 %vm4645_vm1, %v4540_v47  ;;  %v3329_v4 = vrot.slane %v14329_v7, 1  ;;  %v3331_v10 = vrot.slane %v3222_v0, 1  ;;  %v3328_v37 = vrot.slane %v14332_v19, 1  ;;  %v3504_v5 = vrot.slane %v14332_v19, 2 }
 0x3f0   : > { %v3505_v56 = vrot.slane %v14329_v7, 2  ;;  %vm6062_vm1 = vcmask 785408  }
 0x3f1   : > { %3397 = vrot.lane.b32.xlu1 %v3320_v44, %s20029_s2  ;;  %v14341_v52 = vsel %vm1464_vm4, %v3329_v4, %v3331_v10 }
 0x3f2   : > { %3769 = vrot.lane.b32.xlu0 %v3320_v44, %s19991_s29  ;;  %v3105_v61 = vpop.permute.xlu1 %3104  ;;  %v3103_v55 = vpop.permute.xlu0 %3102  ;;  %v3330_v44 = vsel %vm1464_vm4, %v3328_v37, %v3329_v4  ;;  %v14371_v3 = vld [vmem:[#allocation2 + $0x68] sm:$0xff]  ;;  %v14374_v16 = vld [vmem:[#allocation2 + $0x60] sm:$0xff] }
 0x3f3   : > { %3190 = vst.msk [vmem:[#allocation2 + $0x99] sm:$0xff] %vm3178_vm15, %v3105_v61  ;;  %3189 = vst.msk [vmem:[#allocation2 + $0x91] sm:$0xff] %vm3178_vm15, %v3103_v55  ;;  %v3333_v14 = vrot.slane %v14374_v16, 1  ;;  %v3509_v60 = vrot.slane %v14374_v16, 2  ;;  %v3510_v49 = vrot.slane %v14371_v3, 2 }
 0x3f5   : > { %3870 = vrot.lane.b32.xlu1 %v3496_v43, %s19995_s30  ;;  %s20000_s30 = smov 63  }
 0x3f6   : > { %3771 = vrot.lane.b32.xlu0 %v3322_v41, %s19991_s29  ;;  %v3109_v38 = vpop.permute.xlu1 %3108  ;;  %v3107_v54 = vpop.permute.xlu0 %3106  ;;  %s12110_s29 = smov 72   ;;  %v14429_v11 = vld [vmem:[#allocation2 + $0x80] sm:$0xff]  ;;  %v14433_v25 = vld [vmem:[#allocation2 + $0x78] sm:$0xff] }
 0x3f7   : > { %3192 = vst.msk [vmem:[#allocation2 + $0xb1] sm:$0xff] %vm3178_vm15, %v3109_v38  ;;  %3191 = vst.msk [vmem:[#allocation2 + $0xa9] sm:$0xff] %vm3178_vm15, %v3107_v54 }
 0x400   : > { %v10541_v63 = vpop.f32.mrb[20].mxu0 }
 0x401   : > { %v2965_v33 = vadd.f32 %v10541_v63, %v14077_v53  ;;  %v2959_v17 = vpop.f32.mrb[21].mxu0 }
 0x402   : > { %v2960_v36 = vadd.f32 %v14077_v53, %v2959_v17 }
 0x403   : > { %v3039_v40 = vmax.f32 %v2965_v33, 0.0 }
 0x404   : > { %v3038_v9 = vmax.f32 %v2960_v36, 0.0  ;;  %v3225_v36 = vld [vmem:[#allocation2 + $0x70] sm:$0x3] }
 0x405   : > { %3124 = vrot.lane.b32.xlu1 %v3039_v40, %s20023_s18  ;;  %v3334_v40 = vrot.slane %v14371_v3, 1 }
 0x406   : > { %3122 = vrot.lane.b32.xlu0 %v3038_v9, %s20023_s18  ;;  %v3336_v9 = vrot.slane %v3225_v36, 1 }
 0x407   : > { %v3335_v57 = vsel %vm1464_vm4, %v3333_v14, %v3334_v40 }
 0x408   : > { %v14383_v58 = vsel %vm1464_vm4, %v3334_v40, %v3336_v9 }
 0x409   : > { %3573 = vrot.lane.b32.xlu1 %v3496_v43, %s12104_s0  ;;  %v3506_v43 = vsel %vm1641_vm5, %v3504_v5, %v3505_v56 }
 0x40a   : > { %3399 = vrot.lane.b32.xlu0 %v3322_v41, %s20029_s2  ;;  %v3507_v41 = vrot.slane %v3222_v0, 2 }
 0x40b   : > { %v3113_v48 = vpop.permute.xlu1 %3112 }
 0x40c   : > { %3194 = vst.msk [vmem:[#allocation2 + $0xc9] sm:$0xff] %vm3178_vm15, %v3113_v48  ;;  %v3111_v59 = vpop.permute.xlu0 %3110  ;;  %v3508_v63 = vsel %vm1641_vm5, %v3505_v56, %v3507_v41 }
 0x40d   : > { %3193 = vst.msk [vmem:[#allocation2 + $0xc1] sm:$0xff] %vm3178_vm15, %v3111_v59  ;;  %3968 = vrot.lane.b32.xlu1 %v14283_v31, %s19998_s23  ;;  %v14396_v59 = vsel %vm1641_vm5, %v3509_v60, %v3510_v49  ;;  %s20038_s23 = smov 96  }
 0x40e   : > { %3872 = vrot.lane.b32.xlu0 %v3498_v20, %s20032_s26 }
 0x411   : > { %3671 = vrot.lane.b32.xlu1 %v14283_v31, %s20033_s22 }
 0x412   : > { %3575 = vrot.lane.b32.xlu0 %v3498_v20, %s12104_s0  ;;  %v3512_v20 = vrot.slane %v3225_v36, 2 }
 0x414   : > { %v14403_v39 = vsel %vm1641_vm5, %v3510_v49, %v3512_v20 }
 0x415   : > { %4070 = vrot.lane.b32.xlu1 %v3325_v29, %s20000_s30 }
 0x416   : > { %3970 = vrot.lane.b32.xlu0 %v14289_v28, %s20034_s19 }
 0x419   : > { %3773 = vrot.lane.b32.xlu1 %v3325_v29, %s20035_s20 }
 0x41a   : > { %3673 = vrot.lane.b32.xlu0 %v14289_v28, %s20033_s22 }
 0x41d   : > { %4171 = vrot.lane.b32.xlu1 %v3501_v32, %s12110_s29 }
 0x41e   : > { %4072 = vrot.lane.b32.xlu0 %v3327_v26, %s20000_s30 }
 0x421   : > { %3874 = vrot.lane.b32.xlu1 %v3501_v32, %s20032_s26 }
 0x422   : > { %3775 = vrot.lane.b32.xlu0 %v3327_v26, %s20035_s20 }
 0x424   : > { %v10544_v42 = vpop.f32.mrb[22].mxu0 }
 0x425   : > { %v2969_v2 = vpop.f32.mrb[23].mxu0  ;;  %3876 = vrot.lane.b32.xlu1 %v3503_v22, %s20032_s26  ;;  %v2975_v54 = vadd.f32 %v10544_v42, %v14077_v53  ;;  %v3339_v42 = vrot.slane %v14429_v11, 1 }
 0x426   : > { %4173 = vrot.lane.b32.xlu0 %v3503_v22, %s12110_s29  ;;  %v2970_v35 = vadd.f32 %v14077_v53, %v2969_v2  ;;  %v3338_v2 = vrot.slane %v14433_v25, 1 }
 0x427   : > { %v3041_v33 = vmax.f32 %v2975_v54, 0.0 }
 0x428   : > { %v3040_v38 = vmax.f32 %v2970_v35, 0.0  ;;  %v14449_v37 = vsel %vm1464_vm4, %v3338_v2, %v3339_v42 }
 0x429   : > { %3974 = vrot.lane.b32.xlu1 %v14329_v7, %s20034_s19 }
 0x42a   : > { %3972 = vrot.lane.b32.xlu0 %v14332_v19, %s20034_s19 }
 0x42d   : > { %4076 = vrot.lane.b32.xlu1 %v14341_v52, %s20000_s30 }
 0x42e   : > { %4074 = vrot.lane.b32.xlu0 %v3330_v44, %s20000_s30 }
 0x42f   : > { %v3117_v61 = vpop.permute.xlu1 %3116 }
 0x430   : > { %3196 = vst.msk [vmem:[#allocation2 + $0xe1] sm:$0xff] %vm3178_vm15, %v3117_v61  ;;  %v3115_v55 = vpop.permute.xlu0 %3114 }
 0x431   : > { %3195 = vst.msk [vmem:[#allocation2 + $0xd9] sm:$0xff] %vm3178_vm15, %v3115_v55  ;;  %3401 = vrot.lane.b32.xlu1 %v3325_v29, %s20029_s2 }
 0x432   : > { %4175 = vrot.lane.b32.xlu0 %v3506_v43, %s12110_s29 }
 0x435   : > { %3126 = vrot.lane.b32.xlu1 %v3040_v38, %s20023_s18 }
 0x436   : > { %4177 = vrot.lane.b32.xlu0 %v3508_v63, %s12110_s29 }
 0x439   : > { %3403 = vrot.lane.b32.xlu1 %v3327_v26, %s20029_s2 }
 0x43a   : > { %3128 = vrot.lane.b32.xlu0 %v3041_v33, %s20023_s18 }
 0x43d   : > { %3579 = vrot.lane.b32.xlu1 %v3503_v22, %s12104_s0 }
 0x43e   : > { %3577 = vrot.lane.b32.xlu0 %v3501_v32, %s12104_s0  ;;  %v3228_v32 = vld [vmem:[#allocation2 + $0x88] sm:$0x3] }
 0x43f   : > { %v3341_v22 = vrot.slane %v3228_v32, 1  ;;  %v3517_v55 = vrot.slane %v3228_v32, 2 }
 0x441   : > { %3677 = vrot.lane.b32.xlu1 %v14329_v7, %s20033_s22  ;;  %v14444_v10 = vsel %vm1464_vm4, %v3339_v42, %v3341_v22 }
 0x442   : > { %3675 = vrot.lane.b32.xlu0 %v14332_v19, %s20033_s22 }
 0x445   : > { %3779 = vrot.lane.b32.xlu1 %v14341_v52, %s20035_s20 }
 0x446   : > { %3777 = vrot.lane.b32.xlu0 %v3330_v44, %s20035_s20 }
 0x448   : > { %v10547_v17 = vpop.f32.mrb[24].mxu0 }
 0x449   : > { %v2979_v23 = vpop.f32.mrb[25].mxu0  ;;  %3880 = vrot.lane.b32.xlu1 %v3508_v63, %s20032_s26  ;;  %v2985_v34 = vadd.f32 %v10547_v17, %v14077_v53 }
 0x44a   : > { %3878 = vrot.lane.b32.xlu0 %v3506_v43, %s20032_s26  ;;  %v2980_v24 = vadd.f32 %v14077_v53, %v2979_v23 }
 0x44b   : > { %v3043_v30 = vmax.f32 %v2985_v34, 0.0 }
 0x44c   : > { %v3042_v46 = vmax.f32 %v2980_v24, 0.0 }
 0x44d   : > { %3978 = vrot.lane.b32.xlu1 %v14371_v3, %s20034_s19 }
 0x44e   : > { %3976 = vrot.lane.b32.xlu0 %v14374_v16, %s20034_s19 }
 0x451   : > { %4080 = vrot.lane.b32.xlu1 %v14383_v58, %s20000_s30 }
 0x452   : > { %4078 = vrot.lane.b32.xlu0 %v3335_v57, %s20000_s30 }
 0x453   : > { %v3121_v50 = vpop.permute.xlu1 %3120 }
 0x454   : > { %3198 = vst.msk [vmem:[#allocation2 + $0xf9] sm:$0xff] %vm3178_vm15, %v3121_v50  ;;  %v3119_v48 = vpop.permute.xlu0 %3118 }
 0x455   : > { %3197 = vst.msk [vmem:[#allocation2 + $0xf1] sm:$0xff] %vm3178_vm15, %v3119_v48  ;;  %3405 = vrot.lane.b32.xlu1 %v3330_v44, %s20029_s2  ;;  %v3515_v44 = vrot.slane %v14429_v11, 2 }
 0x456   : > { %4179 = vrot.lane.b32.xlu0 %v14396_v59, %s12110_s29 }
 0x457   : > { %v14407_v8 = vpop.permute.xlu1 %3395 }
 0x458   : > { %v3394_v1 = vpop.permute.xlu0 %3393  ;;  %v4269_v50 = vsel %vm4267_vm2, %v14203_v18, %v14407_v8  ;;  %v14513_v18 = vld [vmem:[#allocation2 + $0x98] sm:$0xff]  ;;  %v3231_v8 = vld [vmem:[#allocation2 + $0xa0] sm:$0x3] }
 0x459   : > { %3130 = vrot.lane.b32.xlu1 %v3042_v46, %s20023_s18  ;;  %v4268_v40 = vsel %vm4267_vm2, %v14206_v45, %v3394_v1  ;;  %v3346_v32 = vrot.slane %v3231_v8, 1 }
 0x45a   : > { %4181 = vrot.lane.b32.xlu0 %v14403_v39, %s12110_s29 }
 0x45b   : > { %v14412_v62 = vpop.permute.xlu1 %3571 }
 0x45c   : > { %v3570_v15 = vpop.permute.xlu0 %3569  ;;  %v4301_v1 = vsel %vm2692_vm14, %v4269_v50, %v14412_v62  ;;  %v3344_v62 = vrot.slane %v14513_v18, 1 }
 0x45d   : > { %3407 = vrot.lane.b32.xlu1 %v14341_v52, %s20029_s2  ;;  %v3514_v52 = vrot.slane %v14433_v25, 2  ;;  %v4300_v14 = vsel %vm2692_vm14, %v4268_v40, %v3570_v15  ;;  %v14517_v15 = vld [vmem:[#allocation2 + $0x90] sm:$0xff] }
 0x45e   : > { %3132 = vrot.lane.b32.xlu0 %v3043_v30, %s20023_s18  ;;  %v3343_v42 = vrot.slane %v14517_v15, 1 }
 0x45f   : > { %v14420_v29 = vpop.permute.xlu1 %3669  ;;  %v14460_v61 = vsel %vm1641_vm5, %v3514_v52, %v3515_v44 }
 0x460   : > { %v3668_v51 = vpop.permute.xlu0 %3667 }
 0x461   : > { %3583 = vrot.lane.b32.xlu1 %v3508_v63, %s12104_s0  ;;  %v14471_v63 = vsel %vm1641_vm5, %v3515_v44, %v3517_v55  ;;  %v4333_v45 = vsel %vm4332_vm3, %v4300_v14, %v3668_v51  ;;  %v14533_v44 = vsel %vm1464_vm4, %v3344_v62, %v3346_v32  ;;  %v14549_v55 = vld [vmem:[%s20031_s3] ss:$0 sm:$0xff]  ;;  %v14611_v32 = vld [vmem:[#allocation2 + $0xb0] sm:$0xff]  ;;  %s554_s3 = sand.u32 1, %s12083_s25  }
 0x462   : > { %3581 = vrot.lane.b32.xlu0 %v3506_v43, %s12104_s0 }
 0x463   : > { %v14425_v6 = vpop.permute.xlu1 %3397 }
 0x464   : > { %v3770_v26 = vpop.permute.xlu0 %3769  ;;  %v4270_v40 = vsel %vm4267_vm2, %v14232_v13, %v14425_v6 }
 0x465   : > { %3681 = vrot.lane.b32.xlu1 %v14371_v3, %s20033_s22  ;;  %v4366_v60 = vsel %vm4365_vm6, %v4333_v45, %v3770_v26 }
 0x466   : > { %3679 = vrot.lane.b32.xlu0 %v14374_v16, %s20033_s22 }
 0x467   : > { %v3871_v0 = vpop.permute.xlu1 %3870 }
 0x468   : > { %v14441_v4 = vpop.permute.xlu0 %3771  ;;  %v4399_v24 = vsel %vm4398_vm7, %v4366_v60, %v3871_v0 }
 0x469   : > { %3783 = vrot.lane.b32.xlu1 %v14383_v58, %s20035_s20 }
 0x46a   : > { %3781 = vrot.lane.b32.xlu0 %v3335_v57, %s20035_s20 }
 0x46b   : > { %v10550_v47 = vpop.f32.mrb[26].mxu0 }
 0x46c   : > { %v2989_v21 = vpop.f32.mrb[27].mxu0  ;;  %v2995_v38 = vadd.f32 %v10550_v47, %v14077_v53  ;;  %v4334_v47 = vsel %vm4332_vm3, %v4301_v1, %v14420_v29 }
 0x46d   : > { %3884 = vrot.lane.b32.xlu1 %v14403_v39, %s20032_s26  ;;  %v2990_v5 = vadd.f32 %v14077_v53, %v2989_v21  ;;  %v4367_v26 = vsel %vm4365_vm6, %v4334_v47, %v14441_v4 }
 0x46e   : > { %3882 = vrot.lane.b32.xlu0 %v14396_v59, %s20032_s26  ;;  %v3045_v17 = vmax.f32 %v2995_v38, 0.0 }
 0x46f   : > { %v3044_v43 = vmax.f32 %v2990_v5, 0.0  ;;  %v14539_v5 = vsel %vm1464_vm4, %v3343_v42, %v3344_v62  ;;  %v14615_v42 = vld [vmem:[#allocation2 + $0xa8] sm:$0xff] }
 0x471   : > { %3982 = vrot.lane.b32.xlu1 %v14429_v11, %s20034_s19 }
 0x472   : > { %3980 = vrot.lane.b32.xlu0 %v14433_v25, %s20034_s19 }
 0x475   : > { %4084 = vrot.lane.b32.xlu1 %v14444_v10, %s20000_s30 }
 0x476   : > { %4082 = vrot.lane.b32.xlu0 %v14449_v37, %s20000_s30 }
 0x477   : > { %v3125_v56 = vpop.permute.xlu1 %3124 }
 0x478   : > { %3200 = vst.msk [vmem:[#allocation2 + $0x111] sm:$0xff] %vm3178_vm15, %v3125_v56  ;;  %v3123_v35 = vpop.permute.xlu0 %3122  ;;  %v3519_v56 = vrot.slane %v14517_v15, 2 }
 0x479   : > { %3199 = vst.msk [vmem:[#allocation2 + $0x109] sm:$0xff] %vm3178_vm15, %v3123_v35  ;;  %3409 = vrot.lane.b32.xlu1 %v3335_v57, %s20029_s2  ;;  %v3520_v35 = vrot.slane %v14513_v18, 2 }
 0x47a   : > { %4183 = vrot.lane.b32.xlu0 %v14460_v61, %s12110_s29 }
 0x47b   : > { %v14464_v41 = vpop.permute.xlu1 %3573 }
 0x47c   : > { %v14467_v54 = vpop.permute.xlu0 %3399 }
 0x47d   : > { %3134 = vrot.lane.b32.xlu1 %v3044_v43, %s20023_s18  ;;  %v4271_v6 = vsel %vm4267_vm2, %v14230_v27, %v14467_v54 }
 0x47e   : > { %4185 = vrot.lane.b32.xlu0 %v14471_v63, %s12110_s29 }
 0x47f   : > { %v3969_v33 = vpop.permute.xlu1 %3968 }
 0x480   : > { %v3873_v23 = vpop.permute.xlu0 %3872  ;;  %v4432_v48 = vsel %vm4431_vm8, %v4399_v24, %v3969_v33 }
 0x481   : > { %3411 = vrot.lane.b32.xlu1 %v14383_v58, %s20029_s2  ;;  %v4400_v22 = vsel %vm4398_vm7, %v4367_v26, %v3873_v23  ;;  %v3522_v23 = vrot.slane %v3231_v8, 2  ;;  %v3234_v26 = vld [vmem:[#allocation2 + $0xb8] sm:$0x3] }
 0x482   : > { %3136 = vrot.lane.b32.xlu0 %v3045_v17, %s20023_s18  ;;  %v14555_v17 = vsel %vm1641_vm5, %v3519_v56, %v3520_v35 }
 0x483   : > { %v14478_v53 = vpop.permute.xlu1 %3671  ;;  %v14570_v13 = vsel %vm1641_vm5, %v3520_v35, %v3522_v23 }
 0x484   : > { %v14480_v36 = vpop.permute.xlu0 %3575 }
 0x485   : > { %3587 = vrot.lane.b32.xlu1 %v14403_v39, %s12104_s0 }
 0x486   : > { %3585 = vrot.lane.b32.xlu0 %v14396_v59, %s12104_s0 }
 0x487   : > { %v4071_v9 = vpop.permute.xlu1 %4070 }
 0x488   : > { %v3971_v58 = vpop.permute.xlu0 %3970  ;;  %v4465_v59 = vsel %vm4464_vm9, %v4432_v48, %v4071_v9  ;;  %v4302_v9 = vsel %vm2692_vm14, %v4270_v40, %v14464_v41 }
 0x489   : > { %3685 = vrot.lane.b32.xlu1 %v14429_v11, %s20033_s22  ;;  %v4433_v2 = vsel %vm4431_vm8, %v4400_v22, %v3971_v58  ;;  %v4335_v45 = vsel %vm4332_vm3, %v4302_v9, %v14478_v53  ;;  %v4303_v53 = vsel %vm2692_vm14, %v4271_v6, %v14480_v36 }
 0x48a   : > { %3683 = vrot.lane.b32.xlu0 %v14433_v25, %s20033_s22 }
 0x48b   : > { %v3774_v57 = vpop.permute.xlu1 %3773 }
 0x48c   : > { %v14495_v49 = vpop.permute.xlu0 %3673  ;;  %v4368_v24 = vsel %vm4365_vm6, %v4335_v45, %v3774_v57 }
 0x48d   : > { %3787 = vrot.lane.b32.xlu1 %v14444_v10, %s20035_s20  ;;  %v4336_v48 = vsel %vm4332_vm3, %v4303_v53, %v14495_v49 }
 0x48e   : > { %3785 = vrot.lane.b32.xlu0 %v14449_v37, %s20035_s20 }
 0x48f   : > { %v4172_v20 = vpop.permute.xlu1 %4171  ;;  %v10553_v46 = vpop.f32.mrb[28].mxu0 }
 0x490   : > { %v4073_v34 = vpop.permute.xlu0 %4072  ;;  %v2999_v39 = vpop.f32.mrb[29].mxu0  ;;  %v4498_v30 = vsel %vm4497_vm10, %v4465_v59, %v4172_v20 }
 0x491   : > { %3888 = vrot.lane.b32.xlu1 %v14471_v63, %s20032_s26  ;;  %10579 = vmatprep.mubr.msk.f32.mxu1 %vm4548_vm11, %v4498_v30  ;;  %v4466_v0 = vsel %vm4464_vm9, %v4433_v2, %v4073_v34  ;;  %v3000_v43 = vadd.f32 %v14549_v55, %v2999_v39 }
 0x492   : > { %3886 = vrot.lane.b32.xlu0 %v14460_v61, %s20032_s26 }
 0x493   : > { %v3875_v51 = vpop.permute.xlu1 %3874  ;;  %v3046_v14 = vmax.f32 %v3000_v43, 0.0 }
 0x494   : > { %v3776_v21 = vpop.permute.xlu0 %3775  ;;  %v4401_v41 = vsel %vm4398_vm7, %v4368_v24, %v3875_v51 }
 0x495   : > { %3986 = vrot.lane.b32.xlu1 %v14513_v18, %s20034_s19  ;;  %v4369_v27 = vsel %vm4365_vm6, %v4336_v48, %v3776_v21 }
 0x496   : > { %3984 = vrot.lane.b32.xlu0 %v14517_v15, %s20034_s19 }
 0x497   : > { %v3877_v29 = vpop.permute.xlu1 %3876 }
 0x498   : > { %v4174_v52 = vpop.permute.xlu0 %4173  ;;  %v4402_v34 = vsel %vm4398_vm7, %v4369_v27, %v3877_v29  ;;  %v3349_v29 = vrot.slane %v14611_v32, 1 }
 0x499   : > { %v4499_v4 = vsel %vm4497_vm10, %v4466_v0, %v4174_v52  ;;  %4088 = vrot.lane.b32.xlu1 %v14533_v44, %s20000_s30  ;;  %v3351_v0 = vrot.slane %v3234_v26, 1  ;;  %v3348_v52 = vrot.slane %v14615_v42, 1 }
 0x49a   : > { %4086 = vrot.lane.b32.xlu0 %v14539_v5, %s20000_s30  ;;  %10580 = vmatmul.mubr.msk.f32.vlgmr.msra.gmra.mrb[0].mxu1 %vm4548_vm11, %v4499_v4 }
 0x49b   : > { %v3975_v38 = vpop.permute.xlu1 %3974  ;;  %v14624_v35 = vsel %vm1464_vm4, %v3349_v29, %v3351_v0  ;;  %v14629_v43 = vsel %vm1464_vm4, %v3348_v52, %v3349_v29 }
 0x49c   : > { %v3973_v33 = vpop.permute.xlu0 %3972  ;;  %v4435_v36 = vsel %vm4431_vm8, %v4402_v34, %v3975_v38  ;;  %v3524_v38 = vrot.slane %v14615_v42, 2 }
 0x49d   : > { %3413 = vrot.lane.b32.xlu1 %v14449_v37, %s20029_s2  ;;  %v3005_v37 = vadd.f32 %v14549_v55, %v10553_v46  ;;  %v4434_v50 = vsel %vm4431_vm8, %v4401_v41, %v3973_v33  ;;  %v3525_v33 = vrot.slane %v14611_v32, 2 }
 0x49e   : > { %4187 = vrot.lane.b32.xlu0 %v14555_v17, %s12110_s29 }
 0x49f   : > { %v4077_v58 = vpop.permute.xlu1 %4076  ;;  %v3047_v59 = vmax.f32 %v3005_v37, 0.0 }
 0x4a0   : > { %v4075_v60 = vpop.permute.xlu0 %4074  ;;  %v4468_v39 = vsel %vm4464_vm9, %v4435_v36, %v4077_v58  ;;  %v3527_v58 = vrot.slane %v3234_v26, 2 }
 0x4a1   : > { %3138 = vrot.lane.b32.xlu1 %v3046_v14, %s20023_s18  ;;  %v4467_v20 = vsel %vm4464_vm9, %v4434_v50, %v4075_v60  ;;  %v14639_v14 = vsel %vm1641_vm5, %v3524_v38, %v3525_v33 }
 0x4a2   : > { %4189 = vrot.lane.b32.xlu0 %v14570_v13, %s12110_s29  ;;  %v14651_v50 = vsel %vm1641_vm5, %v3525_v33, %v3527_v58 }
 0x4a3   : > { %v3402_v57 = vpop.permute.xlu1 %3401 }
 0x4a4   : > { %v4176_v46 = vpop.permute.xlu0 %4175  ;;  %v4272_v45 = vsel %vm4267_vm2, %v14283_v31, %v3402_v57 }
 0x4a5   : > { %v4500_v54 = vsel %vm4497_vm10, %v4467_v20, %v4176_v46  ;;  %3415 = vrot.lane.b32.xlu1 %v14444_v10, %s20029_s2 }
 0x4a6   : > { %3140 = vrot.lane.b32.xlu0 %v3047_v59, %s20023_s18  ;;  %10582 = vmatprep.mubr.msk.f32.mxu1 %vm4548_vm11, %v4500_v54 }
 0x4a7   : > { %v3127_v49 = vpop.permute.xlu1 %3126 }
 0x4a8   : > { %3201 = vst.msk [vmem:[#allocation2 + $0x121] sm:$0xff] %vm3178_vm15, %v3127_v49  ;;  %v4178_v30 = vpop.permute.xlu0 %4177 }
 0x4a9   : > { %v4501_v1 = vsel %vm4497_vm10, %v4468_v39, %v4178_v30  ;;  %3591 = vrot.lane.b32.xlu1 %v14471_v63, %s12104_s0 }
 0x4aa   : > { %3589 = vrot.lane.b32.xlu0 %v14460_v61, %s12104_s0  ;;  %10583 = vmatmul.mubr.msk.f32.gmra.mrb[2].mxu1 %vm4548_vm11, %v4501_v1 }
 0x4ab   : > { %v3404_v10 = vpop.permute.xlu1 %3403 }
 0x4ac   : > { %v3129_v8 = vpop.permute.xlu0 %3128  ;;  %v4273_v31 = vsel %vm4267_vm2, %v14289_v28, %v3404_v10 }
 0x4ad   : > { %3202 = vst.msk [vmem:[#allocation2 + $0x129] sm:$0xff] %vm3178_vm15, %v3129_v8  ;;  %3689 = vrot.lane.b32.xlu1 %v14513_v18, %s20033_s22 }
 0x4ae   : > { %3687 = vrot.lane.b32.xlu0 %v14517_v15, %s20033_s22 }
 0x4af   : > { %v3580_v51 = vpop.permute.xlu1 %3579 }
 0x4b0   : > { %v3578_v47 = vpop.permute.xlu0 %3577  ;;  %v10556_v21 = vpop.f32.mrb[30].mxu0 }
 0x4b1   : > { %3791 = vrot.lane.b32.xlu1 %v14533_v44, %s20035_s20  ;;  %v3009_v63 = vpop.f32.mrb[31].mxu0  ;;  %v4304_v37 = vsel %vm2692_vm14, %v4272_v45, %v3578_v47  ;;  %v3015_v6 = vadd.f32 %v14549_v55, %v10556_v21  ;;  %v14689_v21 = vld [vmem:[#allocation2 + $0xc8] sm:$0xff] }
 0x4b2   : > { %3789 = vrot.lane.b32.xlu0 %v14539_v5, %s20035_s20  ;;  %v3010_v23 = vadd.f32 %v14549_v55, %v3009_v63  ;;  %v4305_v55 = vsel %vm2692_vm14, %v4273_v31, %v3580_v51  ;;  %v3237_v63 = vld [vmem:[#allocation2 + $0xd0] sm:$0x3]  ;;  %v3530_v33 = vrot.slane %v14689_v21, 2 }
 0x4b3   : > { %v3678_v61 = vpop.permute.xlu1 %3677  ;;  %v3049_v20 = vmax.f32 %v3015_v6, 0.0  ;;  %v3532_v58 = vrot.slane %v3237_v63, 2 }
 0x4b4   : > { %v3676_v62 = vpop.permute.xlu0 %3675  ;;  %v3048_v60 = vmax.f32 %v3010_v23, 0.0  ;;  %v4338_v46 = vsel %vm4332_vm3, %v4305_v55, %v3678_v61  ;;  %v14693_v61 = vld [vmem:[#allocation2 + $0xc0] sm:$0xff] }
 0x4b5   : > { %3892 = vrot.lane.b32.xlu1 %v14570_v13, %s20032_s26  ;;  %v4337_v41 = vsel %vm4332_vm3, %v4304_v37, %v3676_v62  ;;  %v3353_v29 = vrot.slane %v14693_v61, 1  ;;  %v3529_v38 = vrot.slane %v14693_v61, 2 }
 0x4b6   : > { %3890 = vrot.lane.b32.xlu0 %v14555_v17, %s20032_s26 }
 0x4b7   : > { %v3780_v22 = vpop.permute.xlu1 %3779 }
 0x4b8   : > { %v3778_v2 = vpop.permute.xlu0 %3777  ;;  %v4371_v34 = vsel %vm4365_vm6, %v4338_v46, %v3780_v22  ;;  %v3354_v22 = vrot.slane %v14689_v21, 1 }
 0x4b9   : > { %3990 = vrot.lane.b32.xlu1 %v14611_v32, %s20034_s19 }
 0x4ba   : > { %3988 = vrot.lane.b32.xlu0 %v14615_v42, %s20034_s19 }
 0x4bb   : > { %v3881_v4 = vpop.permute.xlu1 %3880 }
 0x4bc   : > { %v3879_v56 = vpop.permute.xlu0 %3878  ;;  %v4404_v36 = vsel %vm4398_vm7, %v4371_v34, %v3881_v4 }
 0x4bd   : > { %4092 = vrot.lane.b32.xlu1 %v14624_v35, %s20000_s30 }
 0x4be   : > { %4090 = vrot.lane.b32.xlu0 %v14629_v43, %s20000_s30 }
 0x4bf   : > { %v3979_v40 = vpop.permute.xlu1 %3978 }
 0x4c0   : > { %v3977_v9 = vpop.permute.xlu0 %3976  ;;  %v4437_v49 = vsel %vm4431_vm8, %v4404_v36, %v3979_v40 }
 0x4c1   : > { %3417 = vrot.lane.b32.xlu1 %v14539_v5, %s20029_s2  ;;  %v4370_v5 = vsel %vm4365_vm6, %v4337_v41, %v3778_v2  ;;  %v3356_v2 = vrot.slane %v3237_v63, 1 }
 0x4c2   : > { %4191 = vrot.lane.b32.xlu0 %v14639_v14, %s12110_s29  ;;  %v4403_v57 = vsel %vm4398_vm7, %v4370_v5, %v3879_v56  ;;  %v14707_v56 = vsel %vm1464_vm4, %v3353_v29, %v3354_v22 }
 0x4c3   : > { %v4081_v24 = vpop.permute.xlu1 %4080  ;;  %v4436_v48 = vsel %vm4431_vm8, %v4403_v57, %v3977_v9  ;;  %v14702_v4 = vsel %vm1464_vm4, %v3354_v22, %v3356_v2  ;;  %v14716_v9 = vsel %vm1641_vm5, %v3529_v38, %v3530_v33 }
 0x4c4   : > { %v4079_v53 = vpop.permute.xlu0 %4078  ;;  %v4470_v30 = vsel %vm4464_vm9, %v4437_v49, %v4081_v24 }
 0x4c5   : > { %3142 = vrot.lane.b32.xlu1 %v3048_v60, %s20023_s18  ;;  %v4469_v27 = vsel %vm4464_vm9, %v4436_v48, %v4079_v53 }
 0x4c6   : > { %4193 = vrot.lane.b32.xlu0 %v14651_v50, %s12110_s29 }
 0x4c7   : > { %v3406_v59 = vpop.permute.xlu1 %3405 }
 0x4c8   : > { %v4180_v54 = vpop.permute.xlu0 %4179  ;;  %v4274_v45 = vsel %vm4267_vm2, %v14332_v19, %v3406_v59 }
 0x4c9   : > { %v4502_v28 = vsel %vm4497_vm10, %v4469_v27, %v4180_v54  ;;  %3419 = vrot.lane.b32.xlu1 %v14533_v44, %s20029_s2 }
 0x4ca   : > { %3144 = vrot.lane.b32.xlu0 %v3049_v20, %s20023_s18  ;;  %10585 = vmatprep.mubr.msk.f32.mxu1 %vm4548_vm11, %v4502_v28  ;;  %s12113_s18 = smov 16  }
 0x4cb   : > { %v3131_v39 = vpop.permute.xlu1 %3130 }
 0x4cc   : > { %3203 = vst.msk [vmem:[#allocation2 + $0x139] sm:$0xff] %vm3178_vm15, %v3131_v39  ;;  %v4182_v1 = vpop.permute.xlu0 %4181  ;;  %v14763_v39 = vld [vmem:[#allocation2 + $0xe0] sm:$0xff] }
 0x4cd   : > { %v4503_v10 = vsel %vm4497_vm10, %v4470_v30, %v4182_v1  ;;  %3595 = vrot.lane.b32.xlu1 %v14570_v13, %s12104_s0  ;;  %v3240_v30 = vld [vmem:[#allocation2 + $0xe8] sm:$0x3]  ;;  %v14767_v1 = vld [vmem:[#allocation2 + $0xd8] sm:$0xff]  ;;  %v3535_v22 = vrot.slane %v14763_v39, 2 }
 0x4ce   : > { %3593 = vrot.lane.b32.xlu0 %v14555_v17, %s12104_s0  ;;  %10586 = vmatmul.mubr.msk.f32.gmra.mrb[4].mxu1 %vm4548_vm11, %v4503_v10 }
 0x4cf   : > { %v3408_v44 = vpop.permute.xlu1 %3407 }
 0x4d0   : > { %v3133_v8 = vpop.permute.xlu0 %3132  ;;  %v4275_v19 = vsel %vm4267_vm2, %v14329_v7, %v3408_v44 }
 0x4d1   : > { %3204 = vst.msk [vmem:[#allocation2 + $0x141] sm:$0xff] %vm3178_vm15, %v3133_v8  ;;  %3693 = vrot.lane.b32.xlu1 %v14611_v32, %s20033_s22  ;;  %v3359_v8 = vrot.slane %v14763_v39, 1 }
 0x4d2   : > { %3691 = vrot.lane.b32.xlu0 %v14615_v42, %s20033_s22 }
 0x4d3   : > { %v3584_v51 = vpop.permute.xlu1 %3583 }
 0x4d4   : > { %v3582_v47 = vpop.permute.xlu0 %3581  ;;  %v4307_v5 = vsel %vm2692_vm14, %v4275_v19, %v3584_v51  ;;  %v3361_v51 = vrot.slane %v3240_v30, 1 }
 0x4d5   : > { %3795 = vrot.lane.b32.xlu1 %v14624_v35, %s20035_s20  ;;  %v4306_v37 = vsel %vm2692_vm14, %v4274_v45, %v3582_v47  ;;  %v3358_v47 = vrot.slane %v14767_v1, 1 }
 0x4d6   : > { %3793 = vrot.lane.b32.xlu0 %v14629_v43, %s20035_s20  ;;  %v14776_v63 = vsel %vm1464_vm4, %v3359_v8, %v3361_v51 }
 0x4d7   : > { %v3682_v17 = vpop.permute.xlu1 %3681 }
 0x4d8   : > { %v3680_v13 = vpop.permute.xlu0 %3679  ;;  %v4340_v55 = vsel %vm4332_vm3, %v4307_v5, %v3682_v17 }
 0x4d9   : > { %3896 = vrot.lane.b32.xlu1 %v14651_v50, %s20032_s26  ;;  %v4339_v24 = vsel %vm4332_vm3, %v4306_v37, %v3680_v13 }
 0x4da   : > { %3894 = vrot.lane.b32.xlu0 %v14639_v14, %s20032_s26 }
 0x4db   : > { %v3784_v62 = vpop.permute.xlu1 %3783 }
 0x4dc   : > { %v3782_v26 = vpop.permute.xlu0 %3781  ;;  %v4373_v59 = vsel %vm4365_vm6, %v4340_v55, %v3784_v62  ;;  %v14781_v62 = vsel %vm1464_vm4, %v3358_v47, %v3359_v8 }
 0x4dd   : > { %3994 = vrot.lane.b32.xlu1 %v14689_v21, %s20034_s19  ;;  %v4372_v41 = vsel %vm4365_vm6, %v4339_v24, %v3782_v26  ;;  %v3534_v26 = vrot.slane %v14767_v1, 2 }
 0x4de   : > { %3992 = vrot.lane.b32.xlu0 %v14693_v61, %s20034_s19 }
 0x4df   : > { %v3885_v0 = vpop.permute.xlu1 %3884 }
 0x4e0   : > { %v3883_v52 = vpop.permute.xlu0 %3882  ;;  %v4406_v7 = vsel %vm4398_vm7, %v4373_v59, %v3885_v0  ;;  %v14790_v0 = vsel %vm1641_vm5, %v3534_v26, %v3535_v22 }
 0x4e1   : > { %4096 = vrot.lane.b32.xlu1 %v14702_v4, %s20000_s30  ;;  %v4405_v53 = vsel %vm4398_vm7, %v4372_v41, %v3883_v52  ;;  %v3537_v52 = vrot.slane %v3240_v30, 2 }
 0x4e2   : > { %4094 = vrot.lane.b32.xlu0 %v14707_v56, %s20000_s30 }
 0x4e3   : > { %v3983_v23 = vpop.permute.xlu1 %3982 }
 0x4e4   : > { %v3981_v40 = vpop.permute.xlu0 %3980  ;;  %v4439_v46 = vsel %vm4431_vm8, %v4406_v7, %v3983_v23  ;;  %v14797_v23 = vsel %vm1641_vm5, %v3535_v22, %v3537_v52  ;;  %v14837_v7 = vld [vmem:[#allocation2 + $0xf8] sm:$0xff] }
 0x4e5   : > { %3421 = vrot.lane.b32.xlu1 %v14629_v43, %s20029_s2  ;;  %v14728_v43 = vsel %vm1641_vm5, %v3530_v33, %v3532_v58  ;;  %v4438_v31 = vsel %vm4431_vm8, %v4405_v53, %v3981_v40  ;;  %v3540_v8 = vrot.slane %v14837_v7, 2 }
 0x4e6   : > { %4195 = vrot.lane.b32.xlu0 %v14716_v9, %s12110_s29 }
 0x4e7   : > { %v4085_v60 = vpop.permute.xlu1 %4084 }
 0x4e8   : > { %v4083_v6 = vpop.permute.xlu0 %4082  ;;  %v4472_v54 = vsel %vm4464_vm9, %v4439_v46, %v4085_v60  ;;  %v3243_v46 = vld [vmem:[#allocation2 + $0x100] sm:$0x3] }
 0x4e9   : > { %3423 = vrot.lane.b32.xlu1 %v14624_v35, %s20029_s2  ;;  %v4471_v35 = vsel %vm4464_vm9, %v4438_v31, %v4083_v6 }
 0x4ea   : > { %4197 = vrot.lane.b32.xlu0 %v14728_v43, %s12110_s29 }
 0x4eb   : > { %v3410_v57 = vpop.permute.xlu1 %3409 }
 0x4ec   : > { %v4184_v48 = vpop.permute.xlu0 %4183  ;;  %v4276_v40 = vsel %vm4267_vm2, %v14374_v16, %v3410_v57 }
 0x4ed   : > { %v4504_v20 = vsel %vm4497_vm10, %v4471_v35, %v4184_v48  ;;  %3599 = vrot.lane.b32.xlu1 %v14651_v50, %s12104_s0 }
 0x4ee   : > { %3597 = vrot.lane.b32.xlu0 %v14639_v14, %s12104_s0  ;;  %10588 = vmatprep.mubr.msk.f32.mxu1 %vm4548_vm11, %v4504_v20 }
 0x4ef   : > { %v3135_v27 = vpop.permute.xlu1 %3134 }
 0x4f0   : > { %3205 = vst.msk [vmem:[#allocation2 + $0x151] sm:$0xff] %vm3178_vm15, %v3135_v27  ;;  %v4186_v34 = vpop.permute.xlu0 %4185  ;;  %v14841_v27 = vld [vmem:[#allocation2 + $0xf0] sm:$0xff] }
 0x4f1   : > { %v4505_v28 = vsel %vm4497_vm10, %v4472_v54, %v4186_v34  ;;  %3697 = vrot.lane.b32.xlu1 %v14689_v21, %s20033_s22 }
 0x4f2   : > { %3695 = vrot.lane.b32.xlu0 %v14693_v61, %s20033_s22  ;;  %10589 = vmatmul.mubr.msk.f32.gmra.mrb[6].mxu1 %vm4548_vm11, %v4505_v28  ;;  %v3364_v28 = vrot.slane %v14837_v7, 1 }
 0x4f3   : > { %v3412_v14 = vpop.permute.xlu1 %3411 }
 0x4f4   : > { %v3137_v50 = vpop.permute.xlu0 %3136 }
 0x4f5   : > { %3206 = vst.msk [vmem:[#allocation2 + $0x159] sm:$0xff] %vm3178_vm15, %v3137_v50  ;;  %3799 = vrot.lane.b32.xlu1 %v14702_v4, %s20035_s20  ;;  %v3363_v50 = vrot.slane %v14841_v27, 1 }
 0x4f6   : > { %3797 = vrot.lane.b32.xlu0 %v14707_v56, %s20035_s20 }
 0x4f7   : > { %v3588_v36 = vpop.permute.xlu1 %3587 }
 0x4f8   : > { %v3586_v49 = vpop.permute.xlu0 %3585 }
 0x4f9   : > { %3900 = vrot.lane.b32.xlu1 %v14728_v43, %s20032_s26 }
 0x4fa   : > { %3898 = vrot.lane.b32.xlu0 %v14716_v9, %s20032_s26 }
 0x4fb   : > { %v3686_v10 = vpop.permute.xlu1 %3685 }
 0x4fc   : > { %v3684_v44 = vpop.permute.xlu0 %3683 }
 0x4fd   : > { %3998 = vrot.lane.b32.xlu1 %v14763_v39, %s20034_s19 }
 0x4fe   : > { %3996 = vrot.lane.b32.xlu0 %v14767_v1, %s20034_s19 }
 0x4ff   : > { %v3788_v17 = vpop.permute.xlu1 %3787 }
 0x500   : > { %v3786_v13 = vpop.permute.xlu0 %3785 }
 0x501   : > { %4100 = vrot.lane.b32.xlu1 %v14776_v63, %s20000_s30 }
 0x502   : > { %4098 = vrot.lane.b32.xlu0 %v14781_v62, %s20000_s30 }
 0x503   : > { %v3889_v2 = vpop.permute.xlu1 %3888 }
 0x504   : > { %v3887_v29 = vpop.permute.xlu0 %3886 }
 0x505   : > { %3425 = vrot.lane.b32.xlu1 %v14707_v56, %s20029_s2  ;;  %v4308_v56 = vsel %vm2692_vm14, %v4276_v40, %v3586_v49 }
 0x506   : > { %4199 = vrot.lane.b32.xlu0 %v14790_v0, %s12110_s29  ;;  %v4341_v45 = vsel %vm4332_vm3, %v4308_v56, %v3684_v44  ;;  %v3539_v44 = vrot.slane %v14841_v27, 2 }
 0x507   : > { %v3987_v38 = vpop.permute.xlu1 %3986  ;;  %v4374_v60 = vsel %vm4365_vm6, %v4341_v45, %v3786_v13  ;;  %v3542_v13 = vrot.slane %v3243_v46, 2 }
 0x508   : > { %v3985_v33 = vpop.permute.xlu0 %3984  ;;  %v4407_v24 = vsel %vm4398_vm7, %v4374_v60, %v3887_v29 }
 0x509   : > { %3427 = vrot.lane.b32.xlu1 %v14702_v4, %s20029_s2  ;;  %v4277_v4 = vsel %vm4267_vm2, %v14371_v3, %v3412_v14  ;;  %v4440_v6 = vsel %vm4431_vm8, %v4407_v24, %v3985_v33  ;;  %v3366_v14 = vrot.slane %v3243_v46, 1 }
 0x50a   : > { %4201 = vrot.lane.b32.xlu0 %v14797_v23, %s12110_s29  ;;  %v4309_v16 = vsel %vm2692_vm14, %v4277_v4, %v3588_v36 }
 0x50b   : > { %v4089_v58 = vpop.permute.xlu1 %4088  ;;  %v4342_v19 = vsel %vm4332_vm3, %v4309_v16, %v3686_v10  ;;  %v14850_v30 = vsel %vm1464_vm4, %v3364_v28, %v3366_v14  ;;  %v14855_v10 = vsel %vm1464_vm4, %v3363_v50, %v3364_v28 }
 0x50c   : > { %v4087_v37 = vpop.permute.xlu0 %4086 }
 0x50d   : > { %3603 = vrot.lane.b32.xlu1 %v14728_v43, %s12104_s0  ;;  %v4473_v53 = vsel %vm4464_vm9, %v4440_v6, %v4087_v37  ;;  %v4375_v43 = vsel %vm4365_vm6, %v4342_v19, %v3788_v17  ;;  %v14864_v17 = vsel %vm1641_vm5, %v3539_v44, %v3540_v8 }
 0x50e   : > { %3601 = vrot.lane.b32.xlu0 %v14716_v9, %s12104_s0  ;;  %v4408_v3 = vsel %vm4398_vm7, %v4375_v43, %v3889_v2  ;;  %v14871_v2 = vsel %vm1641_vm5, %v3540_v8, %v3542_v13  ;;  %v14909_v43 = vld [vmem:[#allocation2 + $0x110] sm:$0xff] }
 0x50f   : > { %v3414_v41 = vpop.permute.xlu1 %3413  ;;  %v4441_v9 = vsel %vm4431_vm8, %v4408_v3, %v3987_v38  ;;  %v14914_v3 = vld [vmem:[#allocation2 + $0x108] sm:$0xff]  ;;  %v3545_v28 = vrot.slane %v14909_v43, 2 }
 0x510   : > { %v4188_v5 = vpop.permute.xlu0 %4187  ;;  %v4474_v55 = vsel %vm4464_vm9, %v4441_v9, %v4089_v58  ;;  %v4278_v52 = vsel %vm4267_vm2, %v14433_v25, %v3414_v41 }
 0x511   : > { %v4506_v31 = vsel %vm4497_vm10, %v4473_v53, %v4188_v5  ;;  %3701 = vrot.lane.b32.xlu1 %v14763_v39, %s20033_s22 }
 0x512   : > { %3699 = vrot.lane.b32.xlu0 %v14767_v1, %s20033_s22  ;;  %10591 = vmatprep.mubr.msk.f32.mxu1 %vm4548_vm11, %v4506_v31  ;;  %v3246_v31 = vld [vmem:[#allocation2 + $0x118] sm:$0x3] }
 0x513   : > { %v3139_v57 = vpop.permute.xlu1 %3138 }
 0x514   : > { %3207 = vst.msk [vmem:[#allocation2 + $0x169] sm:$0xff] %vm3178_vm15, %v3139_v57  ;;  %v4190_v35 = vpop.permute.xlu0 %4189 }
 0x515   : > { %v4507_v48 = vsel %vm4497_vm10, %v4474_v55, %v4190_v35  ;;  %3803 = vrot.lane.b32.xlu1 %v14776_v63, %s20035_s20  ;;  %v3369_v55 = vrot.slane %v14909_v43, 1  ;;  %v3371_v35 = vrot.slane %v3246_v31, 1 }
 0x516   : > { %3801 = vrot.lane.b32.xlu0 %v14781_v62, %s20035_s20  ;;  %10592 = vmatmul.mubr.msk.f32.gmra.mrb[8].mxu1 %vm4548_vm11, %v4507_v48  ;;  %v3368_v48 = vrot.slane %v14914_v3, 1 }
 0x517   : > { %v3416_v59 = vpop.permute.xlu1 %3415  ;;  %v14924_v46 = vsel %vm1464_vm4, %v3369_v55, %v3371_v35 }
 0x518   : > { %v3141_v20 = vpop.permute.xlu0 %3140 }
 0x519   : > { %3208 = vst.msk [vmem:[#allocation2 + $0x171] sm:$0xff] %vm3178_vm15, %v3141_v20  ;;  %3904 = vrot.lane.b32.xlu1 %v14797_v23, %s20032_s26 }
 0x51a   : > { %3902 = vrot.lane.b32.xlu0 %v14790_v0, %s20032_s26 }
 0x51b   : > { %v3592_v54 = vpop.permute.xlu1 %3591 }
 0x51c   : > { %v3590_v34 = vpop.permute.xlu0 %3589 }
 0x51d   : > { %4002 = vrot.lane.b32.xlu1 %v14837_v7, %s20034_s19  ;;  %v4310_v38 = vsel %vm2692_vm14, %v4278_v52, %v3590_v34  ;;  %v3544_v34 = vrot.slane %v14914_v3, 2 }
 0x51e   : > { %4000 = vrot.lane.b32.xlu0 %v14841_v27, %s20034_s19 }
 0x51f   : > { %v3690_v36 = vpop.permute.xlu1 %3689 }
 0x520   : > { %v3688_v49 = vpop.permute.xlu0 %3687 }
 0x521   : > { %4104 = vrot.lane.b32.xlu1 %v14850_v30, %s20000_s30  ;;  %v4343_v33 = vsel %vm4332_vm3, %v4310_v38, %v3688_v49  ;;  %v3547_v49 = vrot.slane %v3246_v31, 2 }
 0x522   : > { %4102 = vrot.lane.b32.xlu0 %v14855_v10, %s20000_s30 }
 0x523   : > { %v3792_v51 = vpop.permute.xlu1 %3791 }
 0x524   : > { %v3790_v47 = vpop.permute.xlu0 %3789 }
 0x525   : > { %3429 = vrot.lane.b32.xlu1 %v14781_v62, %s20029_s2  ;;  %v4376_v56 = vsel %vm4365_vm6, %v4343_v33, %v3790_v47 }
 0x526   : > { %4203 = vrot.lane.b32.xlu0 %v14864_v17, %s12110_s29 }
 0x527   : > { %v3893_v26 = vpop.permute.xlu1 %3892 }
 0x528   : > { %v3891_v22 = vpop.permute.xlu0 %3890 }
 0x529   : > { %3431 = vrot.lane.b32.xlu1 %v14776_v63, %s20029_s2  ;;  %v4409_v58 = vsel %vm4398_vm7, %v4376_v56, %v3891_v22 }
 0x52a   : > { %4205 = vrot.lane.b32.xlu0 %v14871_v2, %s12110_s29 }
 0x52b   : > { %v3991_v29 = vpop.permute.xlu1 %3990 }
 0x52c   : > { %v3989_v62 = vpop.permute.xlu0 %3988 }
 0x52d   : > { %3607 = vrot.lane.b32.xlu1 %v14797_v23, %s12104_s0  ;;  %v4279_v23 = vsel %vm4267_vm2, %v14429_v11, %v3416_v59 }
 0x52e   : > { %3605 = vrot.lane.b32.xlu0 %v14790_v0, %s12104_s0  ;;  %v4311_v25 = vsel %vm2692_vm14, %v4279_v23, %v3592_v54  ;;  %v4442_v0 = vsel %vm4431_vm8, %v4409_v58, %v3989_v62  ;;  %v14929_v54 = vsel %vm1464_vm4, %v3368_v48, %v3369_v55 }
 0x52f   : > { %v4093_v63 = vpop.permute.xlu1 %4092  ;;  %v4344_v37 = vsel %vm4332_vm3, %v4311_v25, %v3690_v36  ;;  %v14938_v36 = vsel %vm1641_vm5, %v3544_v34, %v3545_v28 }
 0x530   : > { %v4091_v40 = vpop.permute.xlu0 %4090  ;;  %v4377_v24 = vsel %vm4365_vm6, %v4344_v37, %v3792_v51  ;;  %v14945_v51 = vsel %vm1641_vm5, %v3545_v28, %v3547_v49 }
 0x531   : > { %3705 = vrot.lane.b32.xlu1 %v14837_v7, %s20033_s22  ;;  %v4475_v60 = vsel %vm4464_vm9, %v4442_v0, %v4091_v40  ;;  %v4410_v11 = vsel %vm4398_vm7, %v4377_v24, %v3893_v26  ;;  %v3249_v0 = vld [vmem:[#allocation2 + $0x130] sm:$0x3] }
 0x532   : > { %3703 = vrot.lane.b32.xlu0 %v14841_v27, %s20033_s22  ;;  %v4443_v6 = vsel %vm4431_vm8, %v4410_v11, %v3991_v29 }
 0x533   : > { %v3418_v45 = vpop.permute.xlu1 %3417  ;;  %v4476_v19 = vsel %vm4464_vm9, %v4443_v6, %v4093_v63  ;;  %v3376_v6 = vrot.slane %v3249_v0, 1 }
 0x534   : > { %v4192_v4 = vpop.permute.xlu0 %4191 }
 0x535   : > { %v4508_v16 = vsel %vm4497_vm10, %v4475_v60, %v4192_v4  ;;  %3807 = vrot.lane.b32.xlu1 %v14850_v30, %s20035_s20 }
 0x536   : > { %3805 = vrot.lane.b32.xlu0 %v14855_v10, %s20035_s20  ;;  %10594 = vmatprep.mubr.msk.f32.mxu1 %vm4548_vm11, %v4508_v16  ;;  %v14983_v16 = vld [vmem:[#allocation2 + $0x120] sm:$0xff] }
 0x537   : > { %v3143_v41 = vpop.permute.xlu1 %3142  ;;  %v3549_v35 = vrot.slane %v14983_v16, 2 }
 0x538   : > { %3209 = vst.msk [vmem:[#allocation2 + $0x181] sm:$0xff] %vm3178_vm15, %v3143_v41  ;;  %v4194_v53 = vpop.permute.xlu0 %4193 }
 0x539   : > { %v4509_v5 = vsel %vm4497_vm10, %v4476_v19, %v4194_v53  ;;  %3908 = vrot.lane.b32.xlu1 %v14871_v2, %s20032_s26  ;;  %v3373_v53 = vrot.slane %v14983_v16, 1 }
 0x53a   : > { %3906 = vrot.lane.b32.xlu0 %v14864_v17, %s20032_s26  ;;  %10595 = vmatmul.mubr.msk.f32.gmra.mrb[10].mxu1 %vm4548_vm11, %v4509_v5 }
 0x53b   : > { %v3420_v9 = vpop.permute.xlu1 %3419 }
 0x53c   : > { %v3145_v57 = vpop.permute.xlu0 %3144 }
 0x53d   : > { %3210 = vst.msk [vmem:[#allocation2 + $0x189] sm:$0xff] %vm3178_vm15, %v3145_v57  ;;  %4006 = vrot.lane.b32.xlu1 %v14909_v43, %s20034_s19  ;;  %vm6029_vm15 = vcmask 654336  }
 0x53e   : > { %4004 = vrot.lane.b32.xlu0 %v14914_v3, %s20034_s19 }
 0x53f   : > { %v3596_v59 = vpop.permute.xlu1 %3595 }
 0x540   : > { %v3594_v20 = vpop.permute.xlu0 %3593 }
 0x541   : > { %4108 = vrot.lane.b32.xlu1 %v14924_v46, %s20000_s30 }
 0x542   : > { %4106 = vrot.lane.b32.xlu0 %v14929_v54, %s20000_s30 }
 0x543   : > { %v3694_v14 = vpop.permute.xlu1 %3693 }
 0x544   : > { %v3692_v50 = vpop.permute.xlu0 %3691 }
 0x545   : > { %3433 = vrot.lane.b32.xlu1 %v14855_v10, %s20029_s2 }
 0x546   : > { %4207 = vrot.lane.b32.xlu0 %v14938_v36, %s12110_s29 }
 0x547   : > { %v3796_v44 = vpop.permute.xlu1 %3795 }
 0x548   : > { %v3794_v8 = vpop.permute.xlu0 %3793 }
 0x549   : > { %3435 = vrot.lane.b32.xlu1 %v14850_v30, %s20029_s2  ;;  %v4280_v30 = vsel %vm4267_vm2, %v14517_v15, %v3418_v45 }
 0x54a   : > { %4209 = vrot.lane.b32.xlu0 %v14945_v51, %s12110_s29  ;;  %v4312_v22 = vsel %vm2692_vm14, %v4280_v30, %v3594_v20  ;;  %v3552_v20 = vrot.slane %v3249_v0, 2 }
 0x54b   : > { %v3897_v47 = vpop.permute.xlu1 %3896  ;;  %v4345_v62 = vsel %vm4332_vm3, %v4312_v22, %v3692_v50 }
 0x54c   : > { %v3895_v10 = vpop.permute.xlu0 %3894  ;;  %v4378_v52 = vsel %vm4365_vm6, %v4345_v62, %v3794_v8 }
 0x54d   : > { %3611 = vrot.lane.b32.xlu1 %v14871_v2, %s12104_s0  ;;  %v4411_v38 = vsel %vm4398_vm7, %v4378_v52, %v3895_v10 }
 0x54e   : > { %3609 = vrot.lane.b32.xlu0 %v14864_v17, %s12104_s0  ;;  %v4281_v17 = vsel %vm4267_vm2, %v14513_v18, %v3420_v9  ;;  %v3248_v18 = vld [vmem:[#allocation2 + $0x128] sm:$0xff] }
 0x54f   : > { %v3995_v13 = vpop.permute.xlu1 %3994  ;;  %v4313_v15 = vsel %vm2692_vm14, %v4281_v17, %v3596_v59  ;;  %v3374_v11 = vrot.slane %v3248_v18, 1  ;;  %v3550_v57 = vrot.slane %v3248_v18, 2 }
 0x550   : > { %v3993_v26 = vpop.permute.xlu0 %3992  ;;  %v4346_v40 = vsel %vm4332_vm3, %v4313_v15, %v3694_v14 }
 0x551   : > { %3709 = vrot.lane.b32.xlu1 %v14909_v43, %s20033_s22  ;;  %v4444_v63 = vsel %vm4431_vm8, %v4411_v38, %v3993_v26  ;;  %v4379_v58 = vsel %vm4365_vm6, %v4346_v40, %v3796_v44  ;;  %v14992_v31 = vsel %vm1464_vm4, %v3374_v11, %v3376_v6  ;;  %v14997_v9 = vsel %vm1464_vm4, %v3373_v53, %v3374_v11 }
 0x552   : > { %3707 = vrot.lane.b32.xlu0 %v14914_v3, %s20033_s22  ;;  %v4412_v45 = vsel %vm4398_vm7, %v4379_v58, %v3897_v47  ;;  %v15005_v59 = vsel %vm1641_vm5, %v3549_v35, %v3550_v57  ;;  %v15012_v14 = vsel %vm1641_vm5, %v3550_v57, %v3552_v20  ;;  %v3252_v58 = vld [vmem:[#allocation2 + $0x148] sm:$0x3] }
 0x553   : > { %v4097_v29 = vpop.permute.xlu1 %4096  ;;  %v4445_v37 = vsel %vm4431_vm8, %v4412_v45, %v3995_v13 }
 0x554   : > { %v4095_v2 = vpop.permute.xlu0 %4094  ;;  %v4478_v4 = vsel %vm4464_vm9, %v4445_v37, %v4097_v29 }
 0x555   : > { %3811 = vrot.lane.b32.xlu1 %v14924_v46, %s20035_s20  ;;  %v4477_v56 = vsel %vm4464_vm9, %v4444_v63, %v4095_v2 }
 0x556   : > { %3809 = vrot.lane.b32.xlu0 %v14929_v54, %s20035_s20 }
 0x557   : > { %v3422_v33 = vpop.permute.xlu1 %3421 }
 0x558   : > { %v4196_v23 = vpop.permute.xlu0 %4195  ;;  %v4282_v22 = vsel %vm4267_vm2, %v14615_v42, %v3422_v33 }
 0x559   : > { %v4510_v25 = vsel %vm4497_vm10, %v4477_v56, %v4196_v23  ;;  %3912 = vrot.lane.b32.xlu1 %v14945_v51, %s20032_s26  ;;  %v3251_v23 = vld [vmem:[#allocation2 + $0x140] sm:$0xff] }
 0x55a   : > { %3910 = vrot.lane.b32.xlu0 %v14938_v36, %s20032_s26  ;;  %10597 = vmatprep.mubr.msk.f32.mxu1 %vm4548_vm11, %v4510_v25 }
 0x55b   : > { %v3424_v60 = vpop.permute.xlu1 %3423 }
 0x55c   : > { %v4198_v24 = vpop.permute.xlu0 %4197  ;;  %v4283_v42 = vsel %vm4267_vm2, %v14611_v32, %v3424_v60  ;;  %v3250_v60 = vld [vmem:[#allocation2 + $0x138] sm:$0xff] }
 0x55d   : > { %v4511_v41 = vsel %vm4497_vm10, %v4478_v4, %v4198_v24  ;;  %4010 = vrot.lane.b32.xlu1 %v3248_v18, %s20034_s19  ;;  %v3379_v4 = vrot.slane %v3251_v23, 1  ;;  %v3381_v24 = vrot.slane %v3252_v58, 1  ;;  %v3378_v57 = vrot.slane %v3250_v60, 1 }
 0x55e   : > { %4008 = vrot.lane.b32.xlu0 %v14983_v16, %s20034_s19  ;;  %10598 = vmatmul.mubr.msk.f32.gmra.mrb[12].mxu1 %vm4548_vm11, %v4511_v41 }
 0x55f   : > { %v3600_v19 = vpop.permute.xlu1 %3599 }
 0x560   : > { %v3598_v5 = vpop.permute.xlu0 %3597  ;;  %v4315_v17 = vsel %vm2692_vm14, %v4283_v42, %v3600_v19 }
 0x561   : > { %4112 = vrot.lane.b32.xlu1 %v14992_v31, %s20000_s30 }
 0x562   : > { %4110 = vrot.lane.b32.xlu0 %v14997_v9, %s20000_s30 }
 0x563   : > { %v3698_v55 = vpop.permute.xlu1 %3697 }
 0x564   : > { %v3696_v48 = vpop.permute.xlu0 %3695  ;;  %v4348_v63 = vsel %vm4332_vm3, %v4315_v17, %v3698_v55 }
 0x565   : > { %3437 = vrot.lane.b32.xlu1 %v14929_v54, %s20029_s2  ;;  %v15019_v54 = vld [vmem:[%s19955_s5] ss:$0 sm:$0xff] }
 0x566   : > { %4211 = vrot.lane.b32.xlu0 %v15005_v59, %s12110_s29 }
 0x567   : > { %v3800_v34 = vpop.permute.xlu1 %3799 }
 0x568   : > { %v3798_v28 = vpop.permute.xlu0 %3797  ;;  %v4381_v56 = vsel %vm4365_vm6, %v4348_v63, %v3800_v34  ;;  %v15072_v34 = vsel %vm1464_vm4, %v3378_v57, %v3379_v4 }
 0x569   : > { %3439 = vrot.lane.b32.xlu1 %v14924_v46, %s20029_s2 }
 0x56a   : > { %4213 = vrot.lane.b32.xlu0 %v15012_v14, %s12110_s29 }
 0x56b   : > { %v3901_v50 = vpop.permute.xlu1 %3900 }
 0x56c   : > { %v3899_v49 = vpop.permute.xlu0 %3898  ;;  %v4414_v25 = vsel %vm4398_vm7, %v4381_v56, %v3901_v50 }
 0x56d   : > { %v10581_v44 = vpop.f32.mrb[0].mxu1  ;;  %3615 = vrot.lane.b32.xlu1 %v14945_v51, %s12104_s0  ;;  %v4314_v51 = vsel %vm2692_vm14, %v4282_v22, %v3598_v5 }
 0x56e   : > { %v4721_v8 = vadd.f32 %v10581_v44, %v15019_v54  ;;  %v4715_v46 = vpop.f32.mrb[1].mxu1  ;;  %3613 = vrot.lane.b32.xlu0 %v14938_v36, %s12104_s0  ;;  %v4347_v29 = vsel %vm4332_vm3, %v4314_v51, %v3696_v48  ;;  %v15067_v48 = vsel %vm1464_vm4, %v3379_v4, %v3381_v24  ;;  %v3253_v4 = vld [vmem:[#allocation2 + $0x150] sm:$0xff] }
 0x56f   : > { %v4716_v47 = vadd.f32 %v15019_v54, %v4715_v46  ;;  %v3999_v10 = vpop.permute.xlu1 %3998  ;;  %v4380_v2 = vsel %vm4365_vm6, %v4347_v29, %v3798_v28  ;;  %v3555_v28 = vrot.slane %v3251_v23, 2  ;;  %v3557_v46 = vrot.slane %v3252_v58, 2 }
 0x570   : > { %v4875_v13 = vmax.f32 %v4721_v8, 0.0  ;;  %v3997_v26 = vpop.permute.xlu0 %3996  ;;  %v4413_v52 = vsel %vm4398_vm7, %v4380_v2, %v3899_v49  ;;  %v3554_v49 = vrot.slane %v3250_v60, 2 }
 0x571   : > { %v4874_v30 = vmax.f32 %v4716_v47, 0.0  ;;  %3713 = vrot.lane.b32.xlu1 %v3248_v18, %s20033_s22  ;;  %v4446_v38 = vsel %vm4431_vm8, %v4413_v52, %v3997_v26  ;;  %v4447_v18 = vsel %vm4431_vm8, %v4414_v25, %v3999_v10  ;;  %v3255_v25 = vld [vmem:[#allocation2 + $0x160] sm:$0x3] }
 0x572   : > { %4907 = vst.msk [vmem:[#allocation2 + $0x21] sm:$0xff] %vm566_vm0, %v4875_v13  ;;  %3711 = vrot.lane.b32.xlu0 %v14983_v16, %s20033_s22  ;;  %v15081_v8 = vsel %vm1641_vm5, %v3554_v49, %v3555_v28  ;;  %v15088_v13 = vsel %vm1641_vm5, %v3555_v28, %v3557_v46 }
 0x573   : > { %4906 = vst.msk [vmem:[#allocation2 + $0x19] sm:$0xff] %vm566_vm0, %v4874_v30  ;;  %v4101_v36 = vpop.permute.xlu1 %4100 }
 0x574   : > { %v4099_v62 = vpop.permute.xlu0 %4098  ;;  %v4480_v45 = vsel %vm4464_vm9, %v4447_v18, %v4101_v36 }
 0x575   : > { %3815 = vrot.lane.b32.xlu1 %v14992_v31, %s20035_s20  ;;  %v4479_v33 = vsel %vm4464_vm9, %v4446_v38, %v4099_v62 }
 0x576   : > { %3813 = vrot.lane.b32.xlu0 %v14997_v9, %s20035_s20 }
 0x577   : > { %v15046_v15 = vpop.permute.xlu1 %3425 }
 0x578   : > { %v4200_v40 = vpop.permute.xlu0 %4199  ;;  %v4284_v2 = vsel %vm4267_vm2, %v14693_v61, %v15046_v15 }
 0x579   : > { %v4512_v32 = vsel %vm4497_vm10, %v4479_v33, %v4200_v40  ;;  %3916 = vrot.lane.b32.xlu1 %v15012_v14, %s20032_s26 }
 0x57a   : > { %3914 = vrot.lane.b32.xlu0 %v15005_v59, %s20032_s26  ;;  %10600 = vmatprep.mubr.msk.f32.mxu1 %vm4548_vm11, %v4512_v32 }
 0x57b   : > { %v3428_v0 = vpop.permute.xlu1 %3427 }
 0x57c   : > { %v4202_v37 = vpop.permute.xlu0 %4201 }
 0x57d   : > { %v4513_v11 = vsel %vm4497_vm10, %v4480_v45, %v4202_v37  ;;  %v10584_v6 = vpop.f32.mrb[2].mxu1  ;;  %4014 = vrot.lane.b32.xlu1 %v3251_v23, %s20034_s19 }
 0x57e   : > { %v4731_v41 = vadd.f32 %v10584_v6, %v15019_v54  ;;  %v4725_v19 = vpop.f32.mrb[3].mxu1  ;;  %4012 = vrot.lane.b32.xlu0 %v3250_v60, %s20034_s19  ;;  %10601 = vmatmul.mubr.msk.f32.gmra.mrb[14].mxu1 %vm4548_vm11, %v4513_v11  ;;  %v3386_v11 = vrot.slane %v3255_v25, 1 }
 0x57f   : > { %v4726_v53 = vadd.f32 %v15019_v54, %v4725_v19  ;;  %v3604_v5 = vpop.permute.xlu1 %3603  ;;  %v3383_v19 = vrot.slane %v3253_v4, 1 }
 0x580   : > { %v4877_v55 = vmax.f32 %v4731_v41, 0.0  ;;  %v3602_v35 = vpop.permute.xlu0 %3601 }
 0x581   : > { %v4876_v20 = vmax.f32 %v4726_v53, 0.0  ;;  %4116 = vrot.lane.b32.xlu1 %v15067_v48, %s20000_s30 }
 0x582   : > { %4909 = vst.msk [vmem:[#allocation2 + $0x39] sm:$0xff] %vm566_vm0, %v4877_v55  ;;  %4114 = vrot.lane.b32.xlu0 %v15072_v34, %s20000_s30 }
 0x583   : > { %4908 = vst.msk [vmem:[#allocation2 + $0x31] sm:$0xff] %vm566_vm0, %v4876_v20  ;;  %v3702_v50 = vpop.permute.xlu1 %3701 }
 0x584   : > { %v3700_v44 = vpop.permute.xlu0 %3699 }
 0x585   : > { %3441 = vrot.lane.b32.xlu1 %v14997_v9, %s20029_s2 }
 0x586   : > { %4215 = vrot.lane.b32.xlu0 %v15081_v8, %s12110_s29 }
 0x587   : > { %v3804_v47 = vpop.permute.xlu1 %3803 }
 0x588   : > { %v3802_v10 = vpop.permute.xlu0 %3801 }
 0x589   : > { %3443 = vrot.lane.b32.xlu1 %v14992_v31, %s20029_s2 }
 0x58a   : > { %4217 = vrot.lane.b32.xlu0 %v15088_v13, %s12110_s29  ;;  %v15092_v26 = vld [vmem:[#allocation2 + $0x30] sm:$0xff]  ;;  %v15094_v9 = vld [vmem:[#allocation2 + $0x38] sm:$0xff] }
 0x58b   : > { %v3905_v30 = vpop.permute.xlu1 %3904  ;;  %v5226_v22 = vrot.slane %v15092_v26, 2  ;;  %v5227_v51 = vrot.slane %v15094_v9, 2 }
 0x58c   : > { %v3903_v36 = vpop.permute.xlu0 %3902 }
 0x58d   : > { %3619 = vrot.lane.b32.xlu1 %v15012_v14, %s12104_s0  ;;  %v15103_v31 = vsel %vm1641_vm5, %v5226_v22, %v5227_v51  ;;  %v4316_v14 = vsel %vm2692_vm14, %v4284_v2, %v3602_v35  ;;  %v3562_v22 = vrot.slane %v3255_v25, 2 }
 0x58e   : > { %10223 = vmatprep.mubr.msk.f32.mxu0 %vm566_vm0, %v15103_v31  ;;  %3617 = vrot.lane.b32.xlu0 %v15005_v59, %s12104_s0  ;;  %v4349_v52 = vsel %vm4332_vm3, %v4316_v14, %v3700_v44  ;;  %v4285_v59 = vsel %vm4267_vm2, %v14689_v21, %v3428_v0  ;;  %v3254_v21 = vld [vmem:[#allocation2 + $0x158] sm:$0xff]  ;;  %v3559_v44 = vrot.slane %v3253_v4, 2 }
 0x58f   : > { %v4003_v29 = vpop.permute.xlu1 %4002  ;;  %v4382_v38 = vsel %vm4365_vm6, %v4349_v52, %v3802_v10  ;;  %v4317_v61 = vsel %vm2692_vm14, %v4285_v59, %v3604_v5  ;;  %v3384_v24 = vrot.slane %v3254_v21, 1  ;;  %v3560_v35 = vrot.slane %v3254_v21, 2 }
 0x590   : > { %v4001_v62 = vpop.permute.xlu0 %4000  ;;  %v4415_v63 = vsel %vm4398_vm7, %v4382_v38, %v3903_v36  ;;  %v4350_v40 = vsel %vm4332_vm3, %v4317_v61, %v3702_v50 }
 0x591   : > { %3717 = vrot.lane.b32.xlu1 %v3251_v23, %s20033_s22  ;;  %v4448_v15 = vsel %vm4431_vm8, %v4415_v63, %v4001_v62  ;;  %v4383_v23 = vsel %vm4365_vm6, %v4350_v40, %v3804_v47  ;;  %v15143_v5 = vsel %vm1464_vm4, %v3384_v24, %v3386_v11  ;;  %v15148_v55 = vsel %vm1464_vm4, %v3383_v19, %v3384_v24 }
 0x592   : > { %3715 = vrot.lane.b32.xlu0 %v3250_v60, %s20033_s22  ;;  %v4416_v18 = vsel %vm4398_vm7, %v4383_v23, %v3905_v30  ;;  %v15157_v30 = vsel %vm1641_vm5, %v3559_v44, %v3560_v35  ;;  %v15166_v62 = vsel %vm1641_vm5, %v3560_v35, %v3562_v22 }
 0x593   : > { %v4105_v42 = vpop.permute.xlu1 %4104  ;;  %v4449_v0 = vsel %vm4431_vm8, %v4416_v18, %v4003_v29 }
 0x594   : > { %v4103_v17 = vpop.permute.xlu0 %4102  ;;  %v4482_v37 = vsel %vm4464_vm9, %v4449_v0, %v4105_v42 }
 0x595   : > { %3819 = vrot.lane.b32.xlu1 %v15067_v48, %s20035_s20  ;;  %v4481_v56 = vsel %vm4464_vm9, %v4448_v15, %v4103_v17 }
 0x596   : > { %3817 = vrot.lane.b32.xlu0 %v15072_v34, %s20035_s20 }
 0x597   : > { %v3430_v33 = vpop.permute.xlu1 %3429 }
 0x598   : > { %v4204_v32 = vpop.permute.xlu0 %4203 }
 0x599   : > { %v4514_v58 = vsel %vm4497_vm10, %v4481_v56, %v4204_v32  ;;  %3920 = vrot.lane.b32.xlu1 %v15088_v13, %s20032_s26 }
 0x59a   : > { %3918 = vrot.lane.b32.xlu0 %v15081_v8, %s20032_s26  ;;  %10603 = vmatprep.mubr.msk.f32.mxu1 %vm4548_vm11, %v4514_v58  ;;  %v3258_v58 = vld [vmem:[#allocation2 + $0x178] sm:$0x3] }
 0x59b   : > { %v3432_v45 = vpop.permute.xlu1 %3431  ;;  %v3567_v44 = vrot.slane %v3258_v58, 2 }
 0x59c   : > { %v4206_v60 = vpop.permute.xlu0 %4205 }
 0x59d   : > { %v4515_v6 = vsel %vm4497_vm10, %v4482_v37, %v4206_v60  ;;  %4018 = vrot.lane.b32.xlu1 %v3254_v21, %s20034_s19  ;;  %v3256_v37 = vld [vmem:[#allocation2 + $0x168] sm:$0xff] }
 0x59e   : > { %4016 = vrot.lane.b32.xlu0 %v3253_v4, %s20034_s19  ;;  %10604 = vmatmul.mubr.msk.f32.gmra.mrb[16].mxu1 %vm4548_vm11, %v4515_v6  ;;  %v3388_v6 = vrot.slane %v3256_v37, 1 }
 0x59f   : > { %v3608_v41 = vpop.permute.xlu1 %3607 }
 0x5a0   : > { %v3606_v53 = vpop.permute.xlu0 %3605 }
 0x5a1   : > { %v10587_v57 = vpop.f32.mrb[4].mxu1  ;;  %4120 = vrot.lane.b32.xlu1 %v15143_v5, %s20000_s30 }
 0x5a2   : > { %v4741_v20 = vadd.f32 %v10587_v57, %v15019_v54  ;;  %v4735_v28 = vpop.f32.mrb[5].mxu1  ;;  %4118 = vrot.lane.b32.xlu0 %v15148_v55, %s20000_s30 }
 0x5a3   : > { %v4736_v50 = vadd.f32 %v15019_v54, %v4735_v28  ;;  %v3706_v49 = vpop.permute.xlu1 %3705 }
 0x5a4   : > { %v4879_v46 = vmax.f32 %v4741_v20, 0.0  ;;  %v3704_v47 = vpop.permute.xlu0 %3703  ;;  %v3564_v20 = vrot.slane %v3256_v37, 2 }
 0x5a5   : > { %v4878_v10 = vmax.f32 %v4736_v50, 0.0  ;;  %3445 = vrot.lane.b32.xlu1 %v15072_v34, %s20029_s2 }
 0x5a6   : > { %4911 = vst.msk [vmem:[#allocation2 + $0x51] sm:$0xff] %vm566_vm0, %v4879_v46  ;;  %4219 = vrot.lane.b32.xlu0 %v15157_v30, %s12110_s29 }
 0x5a7   : > { %4910 = vst.msk [vmem:[#allocation2 + $0x49] sm:$0xff] %vm566_vm0, %v4878_v10  ;;  %v3808_v36 = vpop.permute.xlu1 %3807 }
 0x5a8   : > { %v3806_v29 = vpop.permute.xlu0 %3805 }
 0x5a9   : > { %3447 = vrot.lane.b32.xlu1 %v15067_v48, %s20029_s2  ;;  %v4286_v48 = vsel %vm4267_vm2, %v14767_v1, %v3430_v33 }
 0x5aa   : > { %4221 = vrot.lane.b32.xlu0 %v15166_v62, %s12110_s29  ;;  %v4318_v52 = vsel %vm2692_vm14, %v4286_v48, %v3606_v53 }
 0x5ab   : > { %v3909_v34 = vpop.permute.xlu1 %3908  ;;  %v4351_v38 = vsel %vm4332_vm3, %v4318_v52, %v3704_v47 }
 0x5ac   : > { %v3907_v2 = vpop.permute.xlu0 %3906 }
 0x5ad   : > { %3623 = vrot.lane.b32.xlu1 %v15088_v13, %s12104_s0  ;;  %v4384_v13 = vsel %vm4365_vm6, %v4351_v38, %v3806_v29 }
 0x5ae   : > { %3621 = vrot.lane.b32.xlu0 %v15081_v8, %s12104_s0  ;;  %v4287_v8 = vsel %vm4267_vm2, %v14763_v39, %v3432_v45  ;;  %v4417_v63 = vsel %vm4398_vm7, %v4384_v13, %v3907_v2  ;;  %v3257_v39 = vld [vmem:[#allocation2 + $0x170] sm:$0xff] }
 0x5af   : > { %v4007_v14 = vpop.permute.xlu1 %4006  ;;  %v4319_v1 = vsel %vm2692_vm14, %v4287_v8, %v3608_v41  ;;  %v3389_v60 = vrot.slane %v3257_v39, 1  ;;  %v3565_v57 = vrot.slane %v3257_v39, 2 }
 0x5b0   : > { %v4005_v42 = vpop.permute.xlu0 %4004  ;;  %v4352_v33 = vsel %vm4332_vm3, %v4319_v1, %v3706_v49 }
 0x5b1   : > { %3721 = vrot.lane.b32.xlu1 %v3254_v21, %s20033_s22  ;;  %v4450_v61 = vsel %vm4431_vm8, %v4417_v63, %v4005_v42  ;;  %v4385_v32 = vsel %vm4365_vm6, %v4352_v33, %v3808_v36  ;;  %v15212_v53 = vsel %vm1464_vm4, %v3388_v6, %v3389_v60  ;;  %v15219_v49 = vsel %vm1641_vm5, %v3564_v20, %v3565_v57 }
 0x5b2   : > { %3719 = vrot.lane.b32.xlu0 %v3253_v4, %s20033_s22  ;;  %v4418_v21 = vsel %vm4398_vm7, %v4385_v32, %v3909_v34  ;;  %v3391_v4 = vrot.slane %v3258_v58, 1 }
 0x5b3   : > { %v4109_v17 = vpop.permute.xlu1 %4108  ;;  %v4451_v25 = vsel %vm4431_vm8, %v4418_v21, %v4007_v14 }
 0x5b4   : > { %v4107_v59 = vpop.permute.xlu0 %4106  ;;  %v4484_v0 = vsel %vm4464_vm9, %v4451_v25, %v4109_v17  ;;  %v15207_v19 = vsel %vm1464_vm4, %v3389_v60, %v3391_v4  ;;  %v3259_v25 = vld [vmem:[#allocation2 + $0x180] sm:$0xff] }
 0x5b5   : > { %3823 = vrot.lane.b32.xlu1 %v15143_v5, %s20035_s20  ;;  %v4483_v40 = vsel %vm4464_vm9, %v4450_v61, %v4107_v59  ;;  %v3764_v60 = vrot.slane %v3259_v25, 1 }
 0x5b6   : > { %3821 = vrot.lane.b32.xlu0 %v15148_v55, %s20035_s20 }
 0x5b7   : > { %v3434_v15 = vpop.permute.xlu1 %3433 }
 0x5b8   : > { %v4208_v56 = vpop.permute.xlu0 %4207  ;;  %v4288_v48 = vsel %vm4267_vm2, %v14841_v27, %v3434_v15 }
 0x5b9   : > { %v4516_v23 = vsel %vm4497_vm10, %v4483_v40, %v4208_v56  ;;  %3924 = vrot.lane.b32.xlu1 %v15166_v62, %s20032_s26  ;;  %v3260_v40 = vld [vmem:[#allocation2 + $0x188] sm:$0xff]  ;;  %v3261_v56 = vld [vmem:[#allocation2 + $0x190] sm:$0x3] }
 0x5ba   : > { %3922 = vrot.lane.b32.xlu0 %v15157_v30, %s20032_s26  ;;  %10606 = vmatprep.mubr.msk.f32.mxu1 %vm4548_vm11, %v4516_v23  ;;  %v3866_v6 = vrot.slane %v3260_v40, 2 }
 0x5bb   : > { %v3436_v18 = vpop.permute.xlu1 %3435 }
 0x5bc   : > { %v4210_v45 = vpop.permute.xlu0 %4209 }
 0x5bd   : > { %v4517_v24 = vsel %vm4497_vm10, %v4484_v0, %v4210_v45  ;;  %4022 = vrot.lane.b32.xlu1 %v3257_v39, %s20034_s19  ;;  %v3767_v0 = vrot.slane %v3261_v56, 1 }
 0x5be   : > { %4020 = vrot.lane.b32.xlu0 %v3256_v37, %s20034_s19  ;;  %10607 = vmatmul.mubr.msk.f32.gmra.mrb[18].mxu1 %vm4548_vm11, %v4517_v24 }
 0x5bf   : > { %v3612_v11 = vpop.permute.xlu1 %3611 }
 0x5c0   : > { %v3610_v41 = vpop.permute.xlu0 %3609 }
 0x5c1   : > { %4124 = vrot.lane.b32.xlu1 %v15207_v19, %s20000_s30  ;;  %v4320_v52 = vsel %vm2692_vm14, %v4288_v48, %v3610_v41  ;;  %v6130_v48 = vld [vmem:[%s19956_s6 + $0x10] sm:$0xff] }
 0x5c2   : > { %4122 = vrot.lane.b32.xlu0 %v15212_v53, %s20000_s30 }
 0x5c3   : > { %v3710_v35 = vpop.permute.xlu1 %3709 }
 0x5c4   : > { %v3708_v28 = vpop.permute.xlu0 %3707 }
 0x5c5   : > { %v10590_v50 = vpop.f32.mrb[6].mxu1  ;;  %3449 = vrot.lane.b32.xlu1 %v15148_v55, %s20029_s2  ;;  %v15228_v55 = vsel %vm1641_vm5, %v3565_v57, %v3567_v44  ;;  %v4353_v38 = vsel %vm4332_vm3, %v4320_v52, %v3708_v28  ;;  %v3865_v57 = vrot.slane %v3259_v25, 2  ;;  %v3868_v28 = vrot.slane %v3261_v56, 2  ;;  %v6131_v52 = vld [vmem:[%s19956_s6 + $0x18] sm:$0xff] }
 0x5c6   : > { %v4751_v46 = vadd.f32 %v10590_v50, %v15019_v54  ;;  %v4745_v47 = vpop.f32.mrb[7].mxu1  ;;  %4223 = vrot.lane.b32.xlu0 %v15219_v49, %s12110_s29 }
 0x5c7   : > { %v4746_v10 = vadd.f32 %v15019_v54, %v4745_v47  ;;  %v3812_v22 = vpop.permute.xlu1 %3811  ;;  %v15285_v20 = vsel %vm1641_vm5, %v3865_v57, %v3866_v6  ;;  %v3869_v47 = vsel %vm1641_vm5, %v3866_v6, %v3868_v28  ;;  %v15377_v57 = vld [vmem:[#allocation2] sm:$0xff]  ;;  %v4940_v28 = vld [vmem:[#allocation2 + $0x10] sm:$0x3] }
 0x5c8   : > { %v4881_v36 = vmax.f32 %v4751_v46, 0.0  ;;  %v3810_v29 = vpop.permute.xlu0 %3809 }
 0x5c9   : > { %v4880_v34 = vmax.f32 %v4746_v10, 0.0  ;;  %3451 = vrot.lane.b32.xlu1 %v15143_v5, %s20029_s2  ;;  %v12111_v10 = vmov 0.0|0.0  }
 0x5ca   : > { %4913 = vst.msk [vmem:[#allocation2 + $0x69] sm:$0xff] %vm566_vm0, %v4881_v36  ;;  %4225 = vrot.lane.b32.xlu0 %v15228_v55, %s12110_s29  ;;  %10673 = vmatprep.subr.bf16.mxu0 %v12111_v10 }
 0x5cb   : > { %4912 = vst.msk [vmem:[#allocation2 + $0x61] sm:$0xff] %vm566_vm0, %v4880_v34  ;;  %v3913_v2 = vpop.permute.xlu1 %3912  ;;  %10700 = vmatprep.subr.bf16.mxu1 %v12111_v10 }
 0x5cc   : > { %v3911_v14 = vpop.permute.xlu0 %3910 }
 0x5cd   : > { %3627 = vrot.lane.b32.xlu1 %v15166_v62, %s12104_s0  ;;  %v4386_v62 = vsel %vm4365_vm6, %v4353_v38, %v3810_v29 }
 0x5ce   : > { %3625 = vrot.lane.b32.xlu0 %v15157_v30, %s12104_s0  ;;  %v4289_v30 = vsel %vm4267_vm2, %v14837_v7, %v3436_v18  ;;  %v4419_v13 = vsel %vm4398_vm7, %v4386_v62, %v3911_v14  ;;  %v3765_v18 = vrot.slane %v3260_v40, 1  ;;  %v6133_v62 = vld [vmem:[%s19956_s6 + $0x28] sm:$0xff] }
 0x5cf   : > { %v4011_v42 = vpop.permute.xlu1 %4010  ;;  %v4321_v27 = vsel %vm2692_vm14, %v4289_v30, %v3612_v11 }
 0x5d0   : > { %v4009_v5 = vpop.permute.xlu0 %4008  ;;  %v4354_v1 = vsel %vm4332_vm3, %v4321_v27, %v3710_v35  ;;  %v3768_v24 = vsel %vm1464_vm4, %v3765_v18, %v3767_v0  ;;  %v3766_v11 = vsel %vm1464_vm4, %v3764_v60, %v3765_v18 }
 0x5d1   : > { %3725 = vrot.lane.b32.xlu1 %v3257_v39, %s20033_s22  ;;  %v4452_v8 = vsel %vm4431_vm8, %v4419_v13, %v4009_v5  ;;  %v4387_v33 = vsel %vm4365_vm6, %v4354_v1, %v3812_v22  ;;  %v6129_v22 = vld [vmem:[%s19956_s6 + $0x8] sm:$0xff] }
 0x5d2   : > { %3723 = vrot.lane.b32.xlu0 %v3256_v37, %s20033_s22  ;;  %v4420_v32 = vsel %vm4398_vm7, %v4387_v33, %v3913_v2  ;;  %v15342_v33 = vld [vmem:[#allocation2 + $0x198] sm:$0xff] }
 0x5d3   : > { %v4113_v17 = vpop.permute.xlu1 %4112  ;;  %v4453_v23 = vsel %vm4431_vm8, %v4420_v32, %v4011_v42 }
 0x5d4   : > { %v4111_v59 = vpop.permute.xlu0 %4110  ;;  %v4486_v58 = vsel %vm4464_vm9, %v4453_v23, %v4113_v17  ;;  %v10677_v17 = vpack.c.bf16 %v6131_v52, %v6130_v48  ;;  %v5040_v48 = vrot.slane %v15377_v57, 1 }
 0x5d5   : > { %3827 = vrot.lane.b32.xlu1 %v15207_v19, %s20035_s20  ;;  %v4485_v61 = vsel %vm4464_vm9, %v4452_v8, %v4111_v59  ;;  %v6132_v59 = vld [vmem:[%s19956_s6 + $0x20] sm:$0xff] }
 0x5d6   : > { %3825 = vrot.lane.b32.xlu0 %v15212_v53, %s20035_s20  ;;  %v10680_v30 = vpack.c.bf16 %v6133_v62, %v6132_v59  ;;  %v15409_v59 = vld [vmem:[#allocation2 + $0x18] sm:$0xff]  ;;  %v15411_v62 = vld [vmem:[#allocation2 + $0x20] sm:$0xff] }
 0x5d7   : > { %v15254_v63 = vpop.permute.xlu1 %3437 }
 0x5d8   : > { %v4212_v15 = vpop.permute.xlu0 %4211 }
 0x5d9   : > { %v4518_v7 = vsel %vm4497_vm10, %v4485_v61, %v4212_v15  ;;  %3928 = vrot.lane.b32.xlu1 %v15228_v55, %s20032_s26  ;;  %v15334_v15 = vld [vmem:[#allocation2 + $0x1a0] sm:$0xff] }
 0x5da   : > { %3926 = vrot.lane.b32.xlu0 %v15219_v49, %s20032_s26  ;;  %10609 = vmatprep.mubr.msk.f32.mxu1 %vm4548_vm11, %v4518_v7  ;;  %v3264_v7 = vld [vmem:[#allocation2 + $0x1a8] sm:$0x3] }
 0x5db   : > { %v15267_v39 = vpop.permute.xlu1 %3439  ;;  %v4068_v60 = vrot.slane %v3264_v7, 1 }
 0x5dc   : > { %v4214_v21 = vpop.permute.xlu0 %4213 }
 0x5dd   : > { %v4519_v45 = vsel %vm4497_vm10, %v4486_v58, %v4214_v21  ;;  %4026 = vrot.lane.b32.xlu1 %v3260_v40, %s20034_s19 }
 0x5de   : > { %4024 = vrot.lane.b32.xlu0 %v3259_v25, %s20034_s19  ;;  %10610 = vmatmul.mubr.msk.f32.gmra.mrb[20].mxu1 %vm4548_vm11, %v4519_v45 }
 0x5df   : > { %v15274_v37 = vpop.permute.xlu1 %3615 }
 0x5e0   : > { %v3614_v4 = vpop.permute.xlu0 %3613 }
 0x5e1   : > { %4128 = vrot.lane.b32.xlu1 %v3768_v24, %s20000_s30 }
 0x5e2   : > { %4126 = vrot.lane.b32.xlu0 %v3766_v11, %s20000_s30  ;;  %s20006_s30 = smov 64  }
 0x5e3   : > { %v15280_v41 = vpop.permute.xlu1 %3713 }
 0x5e4   : > { %v3712_v35 = vpop.permute.xlu0 %3711 }
 0x5e5   : > { %3453 = vrot.lane.b32.xlu1 %v15212_v53, %s20029_s2  ;;  %v6128_v53 = vld [vmem:[%s19956_s6] sm:$0xff] }
 0x5e6   : > { %4227 = vrot.lane.b32.xlu0 %v15285_v20, %s12110_s29  ;;  %v10674_v34 = vpack.c.bf16 %v6129_v22, %v6128_v53  ;;  %v4166_v53 = vrot.slane %v15342_v33, 2 }
 0x5e7   : > { %v15289_v50 = vpop.permute.xlu1 %3815 }
 0x5e8   : > { %v3814_v44 = vpop.permute.xlu0 %3813  ;;  %10675 = vmatpush1.bf16.msra.mxu0 %v10674_v34  ;;  %v5216_v34 = vrot.slane %v15377_v57, 2 }
 0x5e9   : > { %v10593_v46 = vpop.f32.mrb[8].mxu1  ;;  %3455 = vrot.lane.b32.xlu1 %v15207_v19, %s20029_s2  ;;  %10676 = vmatprep.subr.bf16.mxu0 %v12111_v10 }
 0x5ea   : > { %v4761_v36 = vadd.f32 %v10593_v46, %v15019_v54  ;;  %v4755_v29 = vpop.f32.mrb[9].mxu1  ;;  %4229 = vrot.lane.b32.xlu0 %v3869_v47, %s12110_s29 }
 0x5eb   : > { %v4756_v19 = vadd.f32 %v15019_v54, %v4755_v29  ;;  %v3917_v2 = vpop.permute.xlu1 %3916  ;;  %v4169_v29 = vrot.slane %v3264_v7, 2 }
 0x5ec   : > { %v4883_v14 = vmax.f32 %v4761_v36, 0.0  ;;  %v3915_v42 = vpop.permute.xlu0 %3914  ;;  %10678 = vmatpush1.bf16.msra.mxu0 %v10677_v17  ;;  %v5043_v17 = vrot.slane %v4940_v28, 1 }
 0x5ed   : > { %v4882_v5 = vmax.f32 %v4756_v19, 0.0  ;;  %3631 = vrot.lane.b32.xlu1 %v15228_v55, %s12104_s0  ;;  %10679 = vmatprep.subr.bf16.mxu0 %v12111_v10 }
 0x5ee   : > { %4915 = vst.msk [vmem:[#allocation2 + $0x81] sm:$0xff] %vm566_vm0, %v4883_v14  ;;  %3629 = vrot.lane.b32.xlu0 %v15219_v49, %s12104_s0  ;;  %v4290_v49 = vsel %vm4267_vm2, %v14914_v3, %v15254_v63  ;;  %v4291_v3 = vsel %vm4267_vm2, %v14909_v43, %v15267_v39  ;;  %v6135_v43 = vld [vmem:[%s19956_s6 + $0x38] sm:$0xff]  ;;  %v6138_v14 = vld [vmem:[%s19956_s6 + $0x50] sm:$0xff]  ;;  %s20004_s0 = smov 80  }
 0x5ef   : > { %4914 = vst.msk [vmem:[#allocation2 + $0x79] sm:$0xff] %vm566_vm0, %v4882_v5  ;;  %v4015_v38 = vpop.permute.xlu1 %4014  ;;  %v4322_v13 = vsel %vm2692_vm14, %v4290_v49, %v3614_v4  ;;  %v4323_v56 = vsel %vm2692_vm14, %v4291_v3, %v15274_v37  ;;  %v4065_v37 = vrot.slane %v15342_v33, 1  ;;  %v6136_v4 = vld [vmem:[%s19956_s6 + $0x40] sm:$0xff]  ;;  %v4943_v49 = vld [vmem:[#allocation2 + $0x28] sm:$0x3] }
 0x5f0   : > { %v4013_v55 = vpop.permute.xlu0 %4012  ;;  %v4355_v8 = vsel %vm4332_vm3, %v4322_v13, %v3712_v35  ;;  %10681 = vmatpush1.bf16.msra.mxu0 %v10680_v30  ;;  %v4356_v39 = vsel %vm4332_vm3, %v4323_v56, %v15280_v41  ;;  %v15379_v35 = vld [vmem:[#allocation2 + $0x8] sm:$0xff]  ;;  %v5046_v56 = vrot.slane %v15411_v62, 1 }
 0x5f1   : > { %3729 = vrot.lane.b32.xlu1 %v3260_v40, %s20033_s22  ;;  %v4388_v61 = vsel %vm4365_vm6, %v4355_v8, %v3814_v44  ;;  %10682 = vmatprep.subr.bf16.mxu0 %v12111_v10  ;;  %v6134_v40 = vld [vmem:[%s19956_s6 + $0x30] sm:$0xff]  ;;  %v4389_v0 = vsel %vm4365_vm6, %v4356_v39, %v15289_v50  ;;  %v5217_v19 = vrot.slane %v15379_v35, 2  ;;  %v5041_v52 = vrot.slane %v15379_v35, 1  ;;  %v6140_v8 = vld [vmem:[%s19956_s6 + $0x60] sm:$0xff] }
 0x5f2   : > { %3727 = vrot.lane.b32.xlu0 %v3259_v25, %s20033_s22  ;;  %v4421_v63 = vsel %vm4398_vm7, %v4388_v61, %v3915_v42  ;;  %v4066_v25 = vrot.slane %v15334_v15, 1  ;;  %v10683_v18 = vpack.c.bf16 %v6135_v43, %v6134_v40  ;;  %v6139_v42 = vld [vmem:[%s19956_s6 + $0x58] sm:$0xff]  ;;  %v5045_v40 = vrot.slane %v15409_v59, 1  ;;  %s12118_s22 = smov 112  }
 0x5f3   : > { %v4117_v27 = vpop.permute.xlu1 %4116  ;;  %v4454_v32 = vsel %vm4431_vm8, %v4421_v63, %v4013_v55  ;;  %v5218_v13 = vsel %vm1641_vm5, %v5216_v34, %v5217_v19  ;;  %v5042_v3 = vsel %vm1464_vm4, %v5040_v48, %v5041_v52  ;;  %v5044_v63 = vsel %vm1464_vm4, %v5041_v52, %v5043_v17 }
 0x5f4   : > { %v4115_v1 = vpop.permute.xlu0 %4114  ;;  %10684 = vmatpush1.bf16.msra.mxu0 %v10683_v18  ;;  %v4069_v22 = vsel %vm1464_vm4, %v4066_v25, %v4068_v60  ;;  %v4067_v36 = vsel %vm1464_vm4, %v4065_v37, %v4066_v25  ;;  %v10869_v39 = vpack.i.bf16 %v5044_v63, %v5042_v3  ;;  %v5221_v60 = vrot.slane %v15409_v59, 2 }
 0x5f5   : > { %3831 = vrot.lane.b32.xlu1 %v3768_v24, %s20035_s20  ;;  %v4487_v58 = vsel %vm4464_vm9, %v4454_v32, %v4115_v1  ;;  %v6137_v24 = vld [vmem:[%s19956_s6 + $0x48] sm:$0xff]  ;;  %10685 = vmatprep.subr.bf16.mxu0 %v12111_v10  ;;  %v5048_v32 = vrot.slane %v4943_v49, 1  ;;  %v5051_v34 = vrot.slane %v15094_v9, 1  ;;  %v10894_v52 = vpack.i.bf16 %v15094_v9, %v15092_v26 }
 0x5f6   : > { %3829 = vrot.lane.b32.xlu0 %v3766_v11, %s20035_s20  ;;  %v4422_v11 = vsel %vm4398_vm7, %v4389_v0, %v3917_v2  ;;  %v10686_v50 = vpack.c.bf16 %v6137_v24, %v6136_v4  ;;  %v5219_v2 = vrot.slane %v4940_v28, 2  ;;  %v6141_v1 = vld [vmem:[%s19956_s6 + $0x68] sm:$0xff]  ;;  %v5222_v4 = vrot.slane %v15411_v62, 2  ;;  %s20037_s20 = smov 80  }
 0x5f7   : > { %v15350_v23 = vpop.permute.xlu1 %3441  ;;  %v4455_v6 = vsel %vm4431_vm8, %v4422_v11, %v4015_v38  ;;  %v10689_v38 = vpack.c.bf16 %v6139_v42, %v6138_v14  ;;  %v5049_v37 = vsel %vm1464_vm4, %v5046_v56, %v5048_v32  ;;  %v5224_v24 = vrot.slane %v4943_v49, 2  ;;  %v4946_v11 = vld [vmem:[#allocation2 + $0x40] sm:$0x3]  ;;  %v6145_v28 = vld [vmem:[%s19956_s6 + $0x88] sm:$0xff] }
 0x5f8   : > { %v4216_v21 = vpop.permute.xlu0 %4215  ;;  %v4488_v44 = vsel %vm4464_vm9, %v4455_v6, %v4117_v27  ;;  %10687 = vmatpush1.bf16.msra.mxu0 %v10686_v50  ;;  %v5220_v27 = vsel %vm1641_vm5, %v5217_v19, %v5219_v2  ;;  %v6144_v6 = vld [vmem:[%s19956_s6 + $0x80] sm:$0xff]  ;;  %v5053_v19 = vrot.slane %v4946_v11, 1 }
 0x5f9   : > { %v4520_v45 = vsel %vm4497_vm10, %v4487_v58, %v4216_v21  ;;  %3932 = vrot.lane.b32.xlu1 %v3869_v47, %s20032_s26  ;;  %v4167_v47 = vrot.slane %v15334_v15, 2  ;;  %10688 = vmatprep.subr.bf16.mxu0 %v12111_v10  ;;  %v10874_v43 = vpack.i.bf16 %v5220_v27, %v5218_v13  ;;  %v6142_v58 = vld [vmem:[%s19956_s6 + $0x70] sm:$0xff]  ;;  %v6143_v21 = vld [vmem:[%s19956_s6 + $0x78] sm:$0xff] }
 0x5fa   : > { %3930 = vrot.lane.b32.xlu0 %v15285_v20, %s20032_s26  ;;  %10612 = vmatprep.mubr.msk.f32.mxu1 %vm4548_vm11, %v4520_v45  ;;  %v10695_v18 = vpack.c.bf16 %v6143_v21, %v6142_v58  ;;  %v5047_v45 = vsel %vm1464_vm4, %v5045_v40, %v5046_v56  ;;  %s20002_s26 = smov 96   ;;  %v5054_v27 = vsel %vm1464_vm4, %v5051_v34, %v5053_v19  ;;  %v15488_v40 = vld [vmem:[#allocation2 + $0x50] sm:$0xff]  ;;  %v11975_v56 = vld [vmem:[#allocation2 + $0x128] sm:$0xff] }
 0x5fb   : > { %v15375_v41 = vpop.permute.xlu1 %3443  ;;  %v4170_v30 = vsel %vm1641_vm5, %v4167_v47, %v4169_v29  ;;  %v5050_v29 = vrot.slane %v15092_v26, 1  ;;  %v5229_v26 = vrot.slane %v4946_v11, 2  ;;  %v5056_v9 = vrot.slane %v15488_v40, 1  ;;  %v4952_v19 = vld [vmem:[#allocation2 + $0x70] sm:$0x3] }
 0x5fc   : > { %v4218_v46 = vpop.permute.xlu0 %4217  ;;  %10690 = vmatpush1.bf16.msra.mxu0 %v10689_v38 }
 0x5fd   : > { %v4521_v20 = vsel %vm4497_vm10, %v4488_v44, %v4218_v46  ;;  %4030 = vrot.lane.b32.xlu1 %v15334_v15, %s20034_s19  ;;  %v4168_v15 = vsel %vm1641_vm5, %v4166_v53, %v4167_v47  ;;  %10691 = vmatprep.subr.bf16.mxu0 %v12111_v10  ;;  %v10884_v44 = vpack.i.bf16 %v5049_v37, %v5047_v45 }
 0x5fe   : > { %4028 = vrot.lane.b32.xlu0 %v15342_v33, %s20034_s19  ;;  %10613 = vmatmul.mubr.msk.f32.gmra.mrb[22].mxu1 %vm4548_vm11, %v4521_v20  ;;  %s20036_s19 = smov 63   ;;  %v10692_v33 = vpack.c.bf16 %v6141_v1, %v6140_v8  ;;  %v10698_v46 = vpack.c.bf16 %v6145_v28, %v6144_v6  ;;  %v10879_v20 = vpack.i.bf16 %v15411_v62, %v15409_v59 }
 0x5ff   : > { %v15401_v5 = vpop.permute.xlu1 %3619  ;;  %v5223_v53 = vsel %vm1641_vm5, %v5221_v60, %v5222_v4  ;;  %v5052_v13 = vsel %vm1464_vm4, %v5050_v29, %v5051_v34  ;;  %v15541_v29 = vld [vmem:[#allocation2 + $0x60] sm:$0xff]  ;;  %v15543_v34 = vld [vmem:[#allocation2 + $0x68] sm:$0xff] }
 0x600   : > { %v15405_v55 = vpop.permute.xlu0 %3617  ;;  %10693 = vmatpush1.bf16.msra.mxu0 %v10692_v33  ;;  %v10899_v63 = vpack.i.bf16 %v5054_v27, %v5052_v13  ;;  %v4949_v33 = vld [vmem:[#allocation2 + $0x58] sm:$0x3] }
 0x601   : > { %4132 = vrot.lane.b32.xlu1 %v4069_v22, %s20036_s19  ;;  %10694 = vmatprep.subr.bf16.mxu0 %v12111_v10  ;;  %v5058_v21 = vrot.slane %v4949_v33, 1 }
 0x602   : > { %4130 = vrot.lane.b32.xlu0 %v4067_v36, %s20036_s19  ;;  %v5225_v36 = vsel %vm1641_vm5, %v5222_v4, %v5224_v24  ;;  %s555_s19 = scalar_lea.vmem [#allocation3], %s554_s3 }
 0x603   : > { %v15423_v61 = vpop.permute.xlu1 %3717  ;;  %v10889_v49 = vpack.i.bf16 %v5225_v36, %v5223_v53  ;;  %v5059_v6 = vsel %vm1464_vm4, %v5056_v9, %v5058_v21  ;;  %v5234_v36 = vrot.slane %v4949_v33, 2  ;;  %v15579_v21 = vld [vmem:[%s19955_s5] ss:$0 sm:$0xff]  ;;  %s10079_s2 = sshll.u32 %s555_s19, 4  ;;  %s19910_s2 = int_to_ptr.vmem [resolvable:$true] %s10079_s2 }
 0x604   : > { %v15428_v7 = vpop.permute.xlu0 %3715  ;;  %10696 = vmatpush1.bf16.msra.mxu0 %v10695_v18 }
 0x605   : > { %4233 = vrot.lane.b32.xlu1 %v4170_v30, %s12110_s29  ;;  %10697 = vmatprep.subr.bf16.mxu0 %v12111_v10 }
 0x606   : > { %4231 = vrot.lane.b32.xlu0 %v4168_v15, %s12110_s29  ;;  %s12112_s29 = smov 32  }
 0x607   : > { %v15441_v25 = vpop.permute.xlu1 %3819 }
 0x608   : > { %v3818_v0 = vpop.permute.xlu0 %3817  ;;  %10699 = vmatpush1.bf16.msra.mxu0 %v10698_v46 }
 0x609   : > { %10875 = vrot.lane.b32.xlu1 %v10874_v43, %s12112_s29 }
 0x60a   : > { %10870 = vrot.lane.b32.xlu0 %v10869_v39, %s12113_s18 }
 0x60b   : > { %v15456_v50 = vpop.permute.xlu1 %3920 }
 0x60c   : > { %v3919_v47 = vpop.permute.xlu0 %3918 }
 0x60d   : > { %v10596_v22 = vpop.f32.mrb[10].mxu1  ;;  %10885 = vrot.lane.b32.xlu1 %v10884_v44, %s20006_s30 }
 0x60e   : > { %v4771_v2 = vadd.f32 %v10596_v22, %v15019_v54  ;;  %v4765_v14 = vpop.f32.mrb[11].mxu1  ;;  %10880 = vrot.lane.b32.xlu0 %v10879_v20, %s12115_s21  ;;  %v5232_v22 = vrot.slane %v15488_v40, 2 }
 0x60f   : > { %v4766_v42 = vadd.f32 %v15019_v54, %v4765_v14  ;;  %v4019_v48 = vpop.permute.xlu1 %4018  ;;  %v4292_v54 = vsel %vm4267_vm2, %v14983_v16, %v15350_v23  ;;  %v15486_v23 = vld [vmem:[#allocation2 + $0x48] sm:$0xff] }
 0x610   : > { %v4885_v17 = vmax.f32 %v4771_v2, 0.0  ;;  %v4017_v38 = vpop.permute.xlu0 %4016  ;;  %v4324_v8 = vsel %vm2692_vm14, %v4292_v54, %v15405_v55  ;;  %v4293_v55 = vsel %vm4267_vm2, %v11975_v56, %v15375_v41  ;;  %v5055_v45 = vrot.slane %v15486_v23, 1 }
 0x611   : > { %v4884_v30 = vmax.f32 %v4766_v42, 0.0  ;;  %10895 = vrot.lane.b32.xlu1 %v10894_v52, %s20002_s26  ;;  %v4357_v15 = vsel %vm4332_vm3, %v4324_v8, %v15428_v7  ;;  %v15497_v7 = vsel %vm1641_vm5, %v5227_v51, %v5229_v26  ;;  %v4325_v43 = vsel %vm2692_vm14, %v4293_v55, %v15401_v5  ;;  %v15570_v55 = vld [vmem:[#allocation2 + $0x78] sm:$0xff] }
 0x612   : > { %4917 = vst.msk [vmem:[#allocation2 + $0x99] sm:$0xff] %vm566_vm0, %v4885_v17  ;;  %10890 = vrot.lane.b32.xlu0 %v10889_v49, %s20004_s0  ;;  %v4390_v16 = vsel %vm4365_vm6, %v4357_v15, %v3818_v0  ;;  %v4358_v41 = vsel %vm4332_vm3, %v4325_v43, %v15423_v61  ;;  %v10924_v61 = vpack.i.bf16 %v15497_v7, %v15103_v31  ;;  %v5231_v53 = vrot.slane %v15486_v23, 2  ;;  %v11976_v43 = vld [vmem:[#allocation2 + $0x138] sm:$0xff] }
 0x613   : > { %4916 = vst.msk [vmem:[#allocation2 + $0x91] sm:$0xff] %vm566_vm0, %v4884_v30  ;;  %v4121_v1 = vpop.permute.xlu1 %4120  ;;  %v4423_v32 = vsel %vm4398_vm7, %v4390_v16, %v3919_v47  ;;  %v4391_v51 = vsel %vm4365_vm6, %v4358_v41, %v15441_v25  ;;  %v5057_v11 = vsel %vm1464_vm4, %v5055_v45, %v5056_v9  ;;  %v10929_v46 = vpack.i.bf16 %v15488_v40, %v15486_v23  ;;  %v15567_v16 = vld [vmem:[#allocation2 + $0x88] sm:$0x3] }
 0x614   : > { %v4119_v3 = vpop.permute.xlu0 %4118  ;;  %v4456_v39 = vsel %vm4431_vm8, %v4423_v32, %v4017_v38  ;;  %v4424_v37 = vsel %vm4398_vm7, %v4391_v51, %v15456_v50  ;;  %v10934_v50 = vpack.i.bf16 %v5059_v6, %v5057_v11  ;;  %v15548_v42 = vsel %vm1641_vm5, %v5231_v53, %v5232_v22  ;;  %v15572_v32 = vld [vmem:[#allocation2 + $0x80] sm:$0xff] }
 0x615   : > { %10905 = vrot.lane.b32.xlu1 %v10884_v44, %s12113_s18  ;;  %v4489_v18 = vsel %vm4464_vm9, %v4456_v39, %v4119_v3  ;;  %v4457_v60 = vsel %vm4431_vm8, %v4424_v37, %v4019_v48  ;;  %v15552_v48 = vsel %vm1641_vm5, %v5232_v22, %v5234_v36  ;;  %v5061_v17 = vrot.slane %v15543_v34, 1 }
 0x616   : > { %10900 = vrot.lane.b32.xlu0 %v10899_v63, %s12118_s22  ;;  %v4490_v25 = vsel %vm4464_vm9, %v4457_v60, %v4121_v1  ;;  %v5063_v38 = vrot.slane %v4952_v19, 1  ;;  %v10964_v30 = vpack.i.bf16 %v15543_v34, %v15541_v29  ;;  %v10959_v27 = vpack.i.bf16 %v15552_v48, %v15548_v42 }
 0x617   : > { %v15502_v58 = vpop.permute.xlu1 %3445  ;;  %v5236_v8 = vrot.slane %v15541_v29, 2  ;;  %v5237_v1 = vrot.slane %v15543_v34, 2  ;;  %v5239_v3 = vrot.slane %v4952_v19, 2 }
 0x618   : > { %v4220_v0 = vpop.permute.xlu0 %4219  ;;  %v5064_v26 = vsel %vm1464_vm4, %v5061_v17, %v5063_v38  ;;  %v4294_v39 = vsel %vm4267_vm2, %v11976_v43, %v15502_v58 }
 0x619   : > { %v4522_v5 = vsel %vm4497_vm10, %v4489_v18, %v4220_v0  ;;  %10915 = vrot.lane.b32.xlu1 %v10894_v52, %s12115_s21  ;;  %v5060_v52 = vrot.slane %v15541_v29, 1  ;;  %v15584_v0 = vsel %vm1641_vm5, %v5236_v8, %v5237_v1  ;;  %v15589_v58 = vsel %vm1641_vm5, %v5237_v1, %v5239_v3  ;;  %v4958_v43 = vld [vmem:[#allocation2 + $0xa0] sm:$0x3] }
 0x61a   : > { %10910 = vrot.lane.b32.xlu0 %v10889_v49, %s12112_s29  ;;  %10615 = vmatprep.mubr.msk.f32.mxu1 %vm4548_vm11, %v4522_v5  ;;  %v5068_v5 = vrot.slane %v15567_v16, 1  ;;  %v10994_v22 = vpack.i.bf16 %v15589_v58, %v15584_v0  ;;  %v5241_v1 = vrot.slane %v15570_v55, 2  ;;  %v5244_v3 = vrot.slane %v15567_v16, 2 }
 0x61b   : > { %v15520_v4 = vpop.permute.xlu1 %3447  ;;  %v5062_v54 = vsel %vm1464_vm4, %v5060_v52, %v5061_v17 }
 0x61c   : > { %v4222_v24 = vpop.permute.xlu0 %4221  ;;  %v10969_v33 = vpack.i.bf16 %v5064_v26, %v5062_v54 }
 0x61d   : > { %v4523_v28 = vsel %vm4497_vm10, %v4490_v25, %v4222_v24  ;;  %10925 = vrot.lane.b32.xlu1 %v10924_v61, %s20004_s0  ;;  %v5065_v25 = vrot.slane %v15570_v55, 1  ;;  %v5066_v24 = vrot.slane %v15572_v32, 1 }
 0x61e   : > { %10920 = vrot.lane.b32.xlu0 %v10899_v63, %s20006_s30  ;;  %10616 = vmatmul.mubr.msk.f32.gmra.mrb[24].mxu1 %vm4548_vm11, %v4523_v28  ;;  %v11978_v28 = vld [vmem:[#allocation2 + $0x140] sm:$0xff] }
 0x61f   : > { %v15529_v31 = vpop.permute.xlu1 %3623  ;;  %v5069_v52 = vsel %vm1464_vm4, %v5066_v24, %v5068_v5 }
 0x620   : > { %v3622_v44 = vpop.permute.xlu0 %3621 }
 0x621   : > { %10935 = vrot.lane.b32.xlu1 %v10934_v50, %s12118_s22  ;;  %v4326_v45 = vsel %vm2692_vm14, %v4294_v39, %v3622_v44 }
 0x622   : > { %10930 = vrot.lane.b32.xlu0 %v10929_v46, %s20002_s26 }
 0x623   : > { %v15535_v47 = vpop.permute.xlu1 %3721 }
 0x624   : > { %v3720_v20 = vpop.permute.xlu0 %3719 }
 0x625   : > { %10945 = vrot.lane.b32.xlu1 %v10924_v61, %s12112_s29  ;;  %v4359_v37 = vsel %vm4332_vm3, %v4326_v45, %v3720_v20  ;;  %v5073_v45 = vrot.slane %v4958_v43, 1 }
 0x626   : > { %10940 = vrot.lane.b32.xlu0 %v10899_v63, %s12113_s18 }
 0x627   : > { %v15545_v2 = vpop.permute.xlu1 %3823 }
 0x628   : > { %v3822_v14 = vpop.permute.xlu0 %3821 }
 0x629   : > { %10955 = vrot.lane.b32.xlu1 %v10934_v50, %s20006_s30  ;;  %v4392_v11 = vsel %vm4365_vm6, %v4359_v37, %v3822_v14  ;;  %v5067_v14 = vsel %vm1464_vm4, %v5065_v25, %v5066_v24 }
 0x62a   : > { %10950 = vrot.lane.b32.xlu0 %v10929_v46, %s12115_s21 }
 0x62b   : > { %v3925_v49 = vpop.permute.xlu1 %3924 }
 0x62c   : > { %v3923_v13 = vpop.permute.xlu0 %3922 }
 0x62d   : > { %10965 = vrot.lane.b32.xlu1 %v10964_v30, %s20002_s26  ;;  %v4425_v44 = vsel %vm4398_vm7, %v4392_v11, %v3923_v13  ;;  %v11004_v13 = vpack.i.bf16 %v5069_v52, %v5067_v14 }
 0x62e   : > { %10960 = vrot.lane.b32.xlu0 %v10959_v27, %s20004_s0 }
 0x62f   : > { %v4023_v15 = vpop.permute.xlu1 %4022 }
 0x630   : > { %v4021_v63 = vpop.permute.xlu0 %4020 }
 0x631   : > { %10975 = vrot.lane.b32.xlu1 %v10934_v50, %s12113_s18  ;;  %v10599_v56 = vpop.f32.mrb[12].mxu1  ;;  %v4295_v50 = vsel %vm4267_vm2, %v11978_v28, %v15520_v4  ;;  %v4458_v20 = vsel %vm4431_vm8, %v4425_v44, %v4021_v63  ;;  %v15639_v63 = vld [vmem:[#allocation2 + $0x90] sm:$0xff]  ;;  %v5249_v28 = vrot.slane %v4958_v43, 2 }
 0x632   : > { %v4781_v41 = vadd.f32 %v15579_v21, %v10599_v56  ;;  %v4775_v18 = vpop.f32.mrb[13].mxu1  ;;  %10970 = vrot.lane.b32.xlu0 %v10969_v33, %s12118_s22  ;;  %v4327_v46 = vsel %vm2692_vm14, %v4295_v50, %v15529_v31  ;;  %v4957_v56 = vld [vmem:[#allocation2 + $0x98] sm:$0xff]  ;;  %v5246_v25 = vrot.slane %v15639_v63, 2 }
 0x633   : > { %v4776_v9 = vadd.f32 %v15579_v21, %v4775_v18  ;;  %v4125_v51 = vpop.permute.xlu1 %4124  ;;  %v4360_v4 = vsel %vm4332_vm3, %v4327_v46, %v15535_v47  ;;  %v5071_v16 = vrot.slane %v4957_v56, 1  ;;  %v5247_v24 = vrot.slane %v4957_v56, 2 }
 0x634   : > { %v4887_v61 = vmax.f32 %v4781_v41, 0.0  ;;  %v4123_v60 = vpop.permute.xlu0 %4122  ;;  %v4393_v31 = vsel %vm4365_vm6, %v4360_v4, %v15545_v2  ;;  %v10999_v2 = vpack.i.bf16 %v15572_v32, %v15570_v55 }
 0x635   : > { %v4886_v6 = vmax.f32 %v4776_v9, 0.0  ;;  %10985 = vrot.lane.b32.xlu1 %v10964_v30, %s12115_s21  ;;  %v4491_v36 = vsel %vm4464_vm9, %v4458_v20, %v4123_v60  ;;  %v4426_v38 = vsel %vm4398_vm7, %v4393_v31, %v3925_v49  ;;  %v11034_v9 = vpack.i.bf16 %v4957_v56, %v15639_v63 }
 0x636   : > { %4919 = vst.msk [vmem:[#allocation2 + $0xb1] sm:$0xff] %vm566_vm0, %v4887_v61  ;;  %10980 = vrot.lane.b32.xlu0 %v10959_v27, %s12112_s29  ;;  %v4459_v47 = vsel %vm4431_vm8, %v4426_v38, %v4023_v15  ;;  %v5242_v15 = vrot.slane %v15572_v32, 2  ;;  %v5070_v32 = vrot.slane %v15639_v63, 1  ;;  %v5074_v61 = vsel %vm1464_vm4, %v5071_v16, %v5073_v45 }
 0x637   : > { %4918 = vst.msk [vmem:[#allocation2 + $0xa9] sm:$0xff] %vm566_vm0, %v4886_v6  ;;  %v15606_v53 = vpop.permute.xlu1 %3449  ;;  %v4492_v27 = vsel %vm4464_vm9, %v4459_v47, %v4125_v51 }
 0x638   : > { %v4224_v19 = vpop.permute.xlu0 %4223  ;;  %v15644_v18 = vsel %vm1641_vm5, %v5241_v1, %v5242_v15  ;;  %v15648_v55 = vsel %vm1641_vm5, %v5242_v15, %v5244_v3  ;;  %v5072_v37 = vsel %vm1464_vm4, %v5070_v32, %v5071_v16 }
 0x639   : > { %v4524_v17 = vsel %vm4497_vm10, %v4491_v36, %v4224_v19  ;;  %10995 = vrot.lane.b32.xlu1 %v10994_v22, %s20004_s0  ;;  %v11029_v5 = vpack.i.bf16 %v15648_v55, %v15644_v18  ;;  %v11039_v6 = vpack.i.bf16 %v5074_v61, %v5072_v37  ;;  %v15672_v36 = vsel %vm1641_vm5, %v5247_v24, %v5249_v28 }
 0x63a   : > { %10990 = vrot.lane.b32.xlu0 %v10969_v33, %s20006_s30  ;;  %10618 = vmatprep.mubr.msk.f32.mxu1 %vm4548_vm11, %v4524_v17  ;;  %v11979_v17 = vld [vmem:[#allocation2 + $0x150] sm:$0xff] }
 0x63b   : > { %v15623_v30 = vpop.permute.xlu1 %3451  ;;  %v4296_v38 = vsel %vm4267_vm2, %v11979_v17, %v15606_v53 }
 0x63c   : > { %v4226_v54 = vpop.permute.xlu0 %4225 }
 0x63d   : > { %v4525_v26 = vsel %vm4497_vm10, %v4492_v27, %v4226_v54  ;;  %11005 = vrot.lane.b32.xlu1 %v11004_v13, %s12118_s22  ;;  %v15665_v46 = vld [vmem:[#allocation2 + $0xb8] sm:$0x3] }
 0x63e   : > { %11000 = vrot.lane.b32.xlu0 %v10999_v2, %s20002_s26  ;;  %10619 = vmatmul.mubr.msk.f32.gmra.mrb[26].mxu1 %vm4548_vm11, %v4525_v26  ;;  %v15661_v50 = vld [vmem:[#allocation2 + $0xa8] sm:$0xff]  ;;  %v15663_v44 = vld [vmem:[#allocation2 + $0xb0] sm:$0xff]  ;;  %v5078_v52 = vrot.slane %v15665_v46, 1 }
 0x63f   : > { %v15632_v49 = vpop.permute.xlu1 %3627  ;;  %v5075_v19 = vrot.slane %v15661_v50, 1  ;;  %v5076_v14 = vrot.slane %v15663_v44, 1 }
 0x640   : > { %v3626_v8 = vpop.permute.xlu0 %3625 }
 0x641   : > { %11015 = vrot.lane.b32.xlu1 %v10994_v22, %s12112_s29  ;;  %v15669_v22 = vsel %vm1641_vm5, %v5246_v25, %v5247_v24  ;;  %v4328_v27 = vsel %vm2692_vm14, %v4296_v38, %v3626_v8  ;;  %v5077_v56 = vsel %vm1464_vm4, %v5075_v19, %v5076_v14  ;;  %v5079_v53 = vsel %vm1464_vm4, %v5076_v14, %v5078_v52  ;;  %v11980_v8 = vld [vmem:[#allocation2 + $0x158] sm:$0xff] }
 0x642   : > { %11010 = vrot.lane.b32.xlu0 %v10969_v33, %s12113_s18  ;;  %v11064_v26 = vpack.i.bf16 %v15672_v36, %v15669_v22  ;;  %v4297_v16 = vsel %vm4267_vm2, %v11980_v8, %v15623_v30  ;;  %v11069_v25 = vpack.i.bf16 %v15663_v44, %v15661_v50  ;;  %v5251_v14 = vrot.slane %v15661_v50, 2 }
 0x643   : > { %v15641_v39 = vpop.permute.xlu1 %3725 }
 0x644   : > { %v3724_v41 = vpop.permute.xlu0 %3723 }
 0x645   : > { %11025 = vrot.lane.b32.xlu1 %v11004_v13, %s20006_s30  ;;  %v4361_v1 = vsel %vm4332_vm3, %v4328_v27, %v3724_v41  ;;  %v4329_v41 = vsel %vm2692_vm14, %v4297_v16, %v15632_v49 }
 0x646   : > { %11020 = vrot.lane.b32.xlu0 %v10999_v2, %s12115_s21  ;;  %v4362_v37 = vsel %vm4332_vm3, %v4329_v41, %v15641_v39 }
 0x647   : > { %v3828_v33 = vpop.permute.xlu1 %3827 }
 0x648   : > { %v3826_v51 = vpop.permute.xlu0 %3825  ;;  %v4395_v24 = vsel %vm4365_vm6, %v4362_v37, %v3828_v33  ;;  %v5252_v33 = vrot.slane %v15663_v44, 2 }
 0x649   : > { %11035 = vrot.lane.b32.xlu1 %v11034_v9, %s20002_s26  ;;  %v4394_v43 = vsel %vm4365_vm6, %v4361_v1, %v3826_v51 }
 0x64a   : > { %11030 = vrot.lane.b32.xlu0 %v11029_v5, %s20004_s0 }
 0x64b   : > { %v3929_v60 = vpop.permute.xlu1 %3928 }
 0x64c   : > { %v3927_v11 = vpop.permute.xlu0 %3926 }
 0x64d   : > { %11045 = vrot.lane.b32.xlu1 %v11004_v13, %s12113_s18  ;;  %v4427_v45 = vsel %vm4398_vm7, %v4394_v43, %v3927_v11  ;;  %v4428_v11 = vsel %vm4398_vm7, %v4395_v24, %v3929_v60  ;;  %v5254_v60 = vrot.slane %v15665_v46, 2 }
 0x64e   : > { %11040 = vrot.lane.b32.xlu0 %v11039_v6, %s12118_s22 }
 0x64f   : > { %v4027_v20 = vpop.permute.xlu1 %4026  ;;  %v15727_v50 = vsel %vm1641_vm5, %v5252_v33, %v5254_v60 }
 0x650   : > { %v4025_v4 = vpop.permute.xlu0 %4024  ;;  %v4461_v39 = vsel %vm4431_vm8, %v4428_v11, %v4027_v20 }
 0x651   : > { %11055 = vrot.lane.b32.xlu1 %v11034_v9, %s12115_s21  ;;  %v10602_v31 = vpop.f32.mrb[14].mxu1  ;;  %v4460_v9 = vsel %vm4431_vm8, %v4427_v45, %v4025_v4 }
 0x652   : > { %v4791_v47 = vadd.f32 %v15579_v21, %v10602_v31  ;;  %v4785_v13 = vpop.f32.mrb[15].mxu1  ;;  %11050 = vrot.lane.b32.xlu0 %v11029_v5, %s12112_s29  ;;  %v11074_v5 = vpack.i.bf16 %v5079_v53, %v5077_v56 }
 0x653   : > { %v4786_v54 = vadd.f32 %v15579_v21, %v4785_v13  ;;  %v4129_v2 = vpop.permute.xlu1 %4128  ;;  %v15723_v13 = vsel %vm1641_vm5, %v5251_v14, %v5252_v33 }
 0x654   : > { %v4889_v15 = vmax.f32 %v4791_v47, 0.0  ;;  %v4127_v3 = vpop.permute.xlu0 %4126  ;;  %v4494_v4 = vsel %vm4464_vm9, %v4461_v39, %v4129_v2  ;;  %v11982_v39 = vld [vmem:[#allocation2 + $0x170] sm:$0xff] }
 0x655   : > { %v4888_v32 = vmax.f32 %v4786_v54, 0.0  ;;  %11065 = vrot.lane.b32.xlu1 %v11064_v26, %s20004_s0  ;;  %v4493_v30 = vsel %vm4464_vm9, %v4460_v9, %v4127_v3 }
 0x656   : > { %4921 = vst.msk [vmem:[#allocation2 + $0xc9] sm:$0xff] %vm566_vm0, %v4889_v15  ;;  %11060 = vrot.lane.b32.xlu0 %v11039_v6, %s20006_s30 }
 0x657   : > { %4920 = vst.msk [vmem:[#allocation2 + $0xc1] sm:$0xff] %vm566_vm0, %v4888_v32  ;;  %v15700_v51 = vpop.permute.xlu1 %3453 }
 0x658   : > { %v4228_v61 = vpop.permute.xlu0 %4227 }
 0x659   : > { %v4526_v49 = vsel %vm4497_vm10, %v4493_v30, %v4228_v61  ;;  %11075 = vrot.lane.b32.xlu1 %v11074_v5, %s12118_s22 }
 0x65a   : > { %11070 = vrot.lane.b32.xlu0 %v11069_v25, %s20002_s26  ;;  %10621 = vmatprep.mubr.msk.f32.mxu1 %vm4548_vm11, %v4526_v49 }
 0x65b   : > { %v3456_v28 = vpop.permute.xlu1 %3455 }
 0x65c   : > { %v4230_v19 = vpop.permute.xlu0 %4229 }
 0x65d   : > { %v4527_v52 = vsel %vm4497_vm10, %v4494_v4, %v4230_v19  ;;  %11085 = vrot.lane.b32.xlu1 %v11064_v26, %s12112_s29  ;;  %v4964_v17 = vld [vmem:[#allocation2 + $0xd0] sm:$0x3]  ;;  %v11099_v26 = vpack.i.bf16 %v15727_v50, %v15723_v13  ;;  %v4299_v4 = vsel %vm4267_vm2, %v11982_v39, %v3456_v28 }
 0x65e   : > { %11080 = vrot.lane.b32.xlu0 %v11039_v6, %s12113_s18  ;;  %10622 = vmatmul.mubr.msk.f32.gmra.mrb[28].mxu1 %vm4548_vm11, %v4527_v52  ;;  %v4962_v31 = vld [vmem:[#allocation2 + $0xc0] sm:$0xff]  ;;  %v4963_v20 = vld [vmem:[#allocation2 + $0xc8] sm:$0xff]  ;;  %v5083_v46 = vrot.slane %v4964_v17, 1  ;;  %v5259_v8 = vrot.slane %v4964_v17, 2 }
 0x65f   : > { %v3632_v38 = vpop.permute.xlu1 %3631  ;;  %v5080_v44 = vrot.slane %v4962_v31, 1  ;;  %v5081_v27 = vrot.slane %v4963_v20, 1  ;;  %v11104_v54 = vpack.i.bf16 %v4963_v20, %v4962_v31  ;;  %v5256_v43 = vrot.slane %v4962_v31, 2 }
 0x660   : > { %v3630_v47 = vpop.permute.xlu0 %3629  ;;  %v5257_v32 = vrot.slane %v4963_v20, 2  ;;  %v4331_v52 = vsel %vm2692_vm14, %v4299_v4, %v3632_v38 }
 0x661   : > { %11095 = vrot.lane.b32.xlu1 %v11074_v5, %s20006_s30  ;;  %v5082_v1 = vsel %vm1464_vm4, %v5080_v44, %v5081_v27  ;;  %v5084_v15 = vsel %vm1464_vm4, %v5081_v27, %v5083_v46 }
 0x662   : > { %11090 = vrot.lane.b32.xlu0 %v11069_v25, %s12115_s21  ;;  %v15736_v53 = vpack.i.bf16 %v5084_v15, %v5082_v1  ;;  %v15742_v41 = vsel %vm1641_vm5, %v5256_v43, %v5257_v32  ;;  %v15745_v9 = vsel %vm1641_vm5, %v5257_v32, %v5259_v8  ;;  %v11981_v25 = vld [vmem:[#allocation2 + $0x168] sm:$0xff] }
 0x663   : > { %v3730_v6 = vpop.permute.xlu1 %3729  ;;  %v15751_v30 = vpack.i.bf16 %v15745_v9, %v15742_v41  ;;  %v4298_v24 = vsel %vm4267_vm2, %v11981_v25, %v15700_v51  ;;  %vm6095_vm2 = vcmask 916480  }
 0x664   : > { %v3728_v2 = vpop.permute.xlu0 %3727  ;;  %v4330_v19 = vsel %vm2692_vm14, %v4298_v24, %v3630_v47  ;;  %v4364_v20 = vsel %vm4332_vm3, %v4331_v52, %v3730_v6  ;;  %vm5996_vm14 = vcmask 523264  }
 0x665   : > { %11105 = vrot.lane.b32.xlu1 %v11104_v54, %s20002_s26  ;;  %v4363_v60 = vsel %vm4332_vm3, %v4330_v19, %v3728_v2 }
 0x666   : > { %11100 = vrot.lane.b32.xlu0 %v11099_v26, %s20004_s0 }
 0x667   : > { %v3832_v3 = vpop.permute.xlu1 %3831 }
 0x668   : > { %v3830_v56 = vpop.permute.xlu0 %3829  ;;  %v4397_v27 = vsel %vm4365_vm6, %v4364_v20, %v3832_v3 }
 0x669   : > { %11115 = vrot.lane.b32.xlu1 %v11074_v5, %s12113_s18  ;;  %v4396_v17 = vsel %vm4365_vm6, %v4363_v60, %v3830_v56 }
 0x66a   : > { %11110 = vrot.lane.b32.xlu0 %v15736_v53, %s12118_s22 }
 0x66b   : > { %v3933_v16 = vpop.permute.xlu1 %3932 }
 0x66c   : > { %v3931_v45 = vpop.permute.xlu0 %3930  ;;  %v4430_v47 = vsel %vm4398_vm7, %v4397_v27, %v3933_v16 }
 0x66d   : > { %11125 = vrot.lane.b32.xlu1 %v11104_v54, %s12115_s21  ;;  %v4429_v28 = vsel %vm4398_vm7, %v4396_v17, %v3931_v45 }
 0x66e   : > { %11120 = vrot.lane.b32.xlu0 %v11099_v26, %s12112_s29 }
 0x66f   : > { %v4031_v37 = vpop.permute.xlu1 %4030 }
 0x670   : > { %v4029_v5 = vpop.permute.xlu0 %4028  ;;  %v4463_v54 = vsel %vm4431_vm8, %v4430_v47, %v4031_v37 }
 0x671   : > { %11135 = vrot.lane.b32.xlu1 %v15751_v30, %s20004_s0  ;;  %v10605_v61 = vpop.f32.mrb[16].mxu1  ;;  %v4462_v46 = vsel %vm4431_vm8, %v4429_v28, %v4029_v5 }
 0x672   : > { %v4801_v49 = vadd.f32 %v15579_v21, %v10605_v61  ;;  %v4795_v11 = vpop.f32.mrb[17].mxu1  ;;  %11130 = vrot.lane.b32.xlu0 %v15736_v53, %s20006_s30 }
 0x673   : > { %v4796_v14 = vadd.f32 %v15579_v21, %v4795_v11  ;;  %v4133_v33 = vpop.permute.xlu1 %4132 }
 0x674   : > { %v4891_v31 = vmax.f32 %v4801_v49, 0.0  ;;  %v4131_v51 = vpop.permute.xlu0 %4130  ;;  %v4496_v26 = vsel %vm4464_vm9, %v4463_v54, %v4133_v33 }
 0x675   : > { %v4890_v44 = vmax.f32 %v4796_v14, 0.0  ;;  %v4495_v6 = vsel %vm4464_vm9, %v4462_v46, %v4131_v51 }
 0x676   : > { %4923 = vst.msk [vmem:[#allocation2 + $0xe1] sm:$0xff] %vm566_vm0, %v4891_v31 }
 0x677   : > { %4922 = vst.msk [vmem:[#allocation2 + $0xd9] sm:$0xff] %vm566_vm0, %v4890_v44  ;;  %v4234_v38 = vpop.permute.xlu1 %4233 }
 0x678   : > { %v4232_v2 = vpop.permute.xlu0 %4231  ;;  %v4529_v15 = vsel %vm4497_vm10, %v4496_v26, %v4234_v38 }
 0x679   : > { %v4528_v1 = vsel %vm4497_vm10, %v4495_v6, %v4232_v2 }
 0x67a   : > { %10624 = vmatprep.mubr.msk.f32.mxu1 %vm4548_vm11, %v4528_v1 }
 0x67b   : > { %v10876_v3 = vpop.permute.xlu1 %10875  ;;  %10625 = vmatmul.mubr.msk.f32.gmra.mrb[30].mxu1 %vm4548_vm11, %v4529_v15 }
 0x67c   : > { %v10877_v56 = vunpack.i.l.bf16 %v10876_v3  ;;  %v10871_v43 = vpop.permute.xlu0 %10870  ;;  %v10878_v11 = vunpack.i.h.bf16 %v10876_v3 }
 0x67d   : > { %v10873_v32 = vunpack.i.h.bf16 %v10871_v43  ;;  %v10872_v8 = vunpack.i.l.bf16 %v10871_v43  ;;  %v4967_v16 = vld [vmem:[#allocation2 + $0xe8] sm:$0x3] }
 0x67e   : > { %v4965_v45 = vld [vmem:[#allocation2 + $0xd8] sm:$0xff]  ;;  %v4966_v37 = vld [vmem:[#allocation2 + $0xe0] sm:$0xff]  ;;  %v5088_v49 = vrot.slane %v4967_v16, 1 }
 0x67f   : > { %v5898_v5 = vsel %vm566_vm0, %v15377_v57, %v10872_v8  ;;  %v10886_v61 = vpop.permute.xlu1 %10885  ;;  %v11139_v25 = vpack.i.bf16 %v4966_v37, %v4965_v45  ;;  %v5085_v24 = vrot.slane %v4965_v45, 1  ;;  %v5899_v19 = vsel %vm566_vm0, %v15379_v35, %v10873_v32 }
 0x680   : > { %v10881_v39 = vpop.permute.xlu0 %10880  ;;  %v5931_v4 = vsel %vm20007_vm12, %v5898_v5, %v10877_v56  ;;  %v5086_v33 = vrot.slane %v4966_v37, 1  ;;  %v10887_v52 = vunpack.i.l.bf16 %v10886_v61  ;;  %v5264_v57 = vrot.slane %v4967_v16, 2 }
 0x681   : > { %v10882_v14 = vunpack.i.l.bf16 %v10881_v39  ;;  %11140 = vrot.lane.b32.xlu0 %v11139_v25, %s20002_s26  ;;  %v10883_v60 = vunpack.i.h.bf16 %v10881_v39  ;;  %v5932_v44 = vsel %vm20007_vm12, %v5899_v19, %v10878_v11  ;;  %v5261_v28 = vrot.slane %v4965_v45, 2 }
 0x682   : > { %v5087_v20 = vsel %vm1464_vm4, %v5085_v24, %v5086_v33  ;;  %v5089_v17 = vsel %vm1464_vm4, %v5086_v33, %v5088_v49  ;;  %v5262_v47 = vrot.slane %v4966_v37, 2  ;;  %v10888_v1 = vunpack.i.h.bf16 %v10886_v61 }
 0x683   : > { %v5964_v31 = vsel %vm5963_vm13, %v5931_v4, %v10882_v14  ;;  %v10896_v51 = vpop.permute.xlu1 %10895  ;;  %v15790_v27 = vpack.i.bf16 %v5089_v17, %v5087_v20  ;;  %v5965_v54 = vsel %vm5963_vm13, %v5932_v44, %v10883_v60 }
 0x684   : > { %v10891_v35 = vpop.permute.xlu0 %10890  ;;  %v5997_v38 = vsel %vm5996_vm14, %v5964_v31, %v10887_v52  ;;  %v10897_v15 = vunpack.i.l.bf16 %v10896_v51  ;;  %v15800_v56 = vsel %vm1641_vm5, %v5261_v28, %v5262_v47  ;;  %v5998_v16 = vsel %vm5996_vm14, %v5965_v54, %v10888_v1 }
 0x685   : > { %v10892_v46 = vunpack.i.l.bf16 %v10891_v35  ;;  %11150 = vrot.lane.b32.xlu0 %v15736_v53, %s12113_s18  ;;  %11145 = vrot.lane.b32.xlu1 %v15790_v27, %s12118_s22  ;;  %v10893_v6 = vunpack.i.h.bf16 %v10891_v35  ;;  %v15803_v53 = vsel %vm1641_vm5, %v5262_v47, %v5264_v57  ;;  %v10898_v49 = vunpack.i.h.bf16 %v10896_v51 }
 0x686   : > { %v15813_v61 = vpack.i.bf16 %v15803_v53, %v15800_v56 }
 0x687   : > { %v6030_v2 = vsel %vm6029_vm15, %v5997_v38, %v10892_v46  ;;  %v10906_v26 = vpop.permute.xlu1 %10905  ;;  %v6031_v24 = vsel %vm6029_vm15, %v5998_v16, %v10893_v6 }
 0x688   : > { %v10901_v3 = vpop.permute.xlu0 %10900  ;;  %v10907_v32 = vunpack.i.l.bf16 %v10906_v26  ;;  %v6063_v8 = vsel %vm6062_vm1, %v6030_v2, %v10897_v15  ;;  %v6064_v19 = vsel %vm6062_vm1, %v6031_v24, %v10898_v49 }
 0x689   : > { %v10902_v43 = vunpack.i.l.bf16 %v10901_v3  ;;  %11160 = vrot.lane.b32.xlu0 %v11139_v25, %s12115_s21  ;;  %11155 = vrot.lane.b32.xlu1 %v15751_v30, %s12112_s29  ;;  %v10903_v45 = vunpack.i.h.bf16 %v10901_v3  ;;  %v10908_v25 = vunpack.i.h.bf16 %v10906_v26 }
 0x68a   : > { %v5900_v4 = vsel %vm566_vm0, %v15409_v59, %v10907_v32 }
 0x68b   : > { %v10916_v37 = vpop.permute.xlu1 %10915  ;;  %v6096_v5 = vsel %vm6095_vm2, %v6063_v8, %v10902_v43  ;;  %v6097_v52 = vsel %vm6095_vm2, %v6064_v19, %v10903_v45  ;;  %v5901_v57 = vsel %vm566_vm0, %v15411_v62, %v10908_v25 }
 0x68c   : > { %v10911_v11 = vpop.permute.xlu0 %10910  ;;  %6282 = vmatmul.mubr.f32.vlgmr.msra.gmra.mrb[32].mxu0 %v6096_v5  ;;  %v10917_v60 = vunpack.i.l.bf16 %v10916_v37  ;;  %v10918_v17 = vunpack.i.h.bf16 %v10916_v37 }
 0x68d   : > { %v10913_v39 = vunpack.i.h.bf16 %v10911_v11  ;;  %v10912_v30 = vunpack.i.l.bf16 %v10911_v11  ;;  %11170 = vrot.lane.b32.xlu0 %v15813_v61, %s20004_s0  ;;  %10224 = vmatprep.mubr.msk.f32.mxu0 %vm566_vm0, %v15497_v7 }
 0x68e   : > { %11165 = vrot.lane.b32.xlu1 %v15790_v27, %s20006_s30 }
 0x68f   : > { %v5933_v14 = vsel %vm20007_vm12, %v5900_v4, %v10912_v30  ;;  %v10926_v33 = vpop.permute.xlu1 %10925  ;;  %v5934_v7 = vsel %vm20007_vm12, %v5901_v57, %v10913_v39  ;;  %v11983_v39 = vld [vmem:[#allocation2 + $0x30] sm:$0xff] }
 0x690   : > { %v10921_v31 = vpop.permute.xlu0 %10920  ;;  %6287 = vmatmul.mubr.f32.gmra.mrb[34].mxu0 %v6097_v52  ;;  %v5966_v44 = vsel %vm5963_vm13, %v5933_v14, %v10917_v60  ;;  %v10927_v38 = vunpack.i.l.bf16 %v10926_v33  ;;  %v5967_v54 = vsel %vm5963_vm13, %v5934_v7, %v10918_v17  ;;  %v10928_v3 = vunpack.i.h.bf16 %v10926_v33  ;;  %v11984_v60 = vld [vmem:[#allocation2 + $0x38] sm:$0xff] }
 0x691   : > { %v10923_v51 = vunpack.i.h.bf16 %v10921_v31  ;;  %v10922_v59 = vunpack.i.l.bf16 %v10921_v31  ;;  %v10608_v20 = vpop.f32.mrb[18].mxu1  ;;  %10225 = vmatprep.mubr.msk.f32.mxu0 %vm566_vm0, %v15548_v42 }
 0x692   : > { %v4811_v35 = vadd.f32 %v15579_v21, %v10608_v20  ;;  %v4805_v28 = vpop.f32.mrb[19].mxu1 }
 0x693   : > { %v5999_v47 = vsel %vm5996_vm14, %v5966_v44, %v10922_v59  ;;  %v4806_v62 = vadd.f32 %v15579_v21, %v4805_v28  ;;  %v10936_v46 = vpop.permute.xlu1 %10935  ;;  %v6000_v26 = vsel %vm5996_vm14, %v5967_v54, %v10923_v51 }
 0x694   : > { %v4893_v6 = vmax.f32 %v4811_v35, 0.0  ;;  %v10931_v2 = vpop.permute.xlu0 %10930  ;;  %v10937_v43 = vunpack.i.l.bf16 %v10936_v46  ;;  %v6032_v32 = vsel %vm6029_vm15, %v5999_v47, %v10927_v38  ;;  %v6033_v5 = vsel %vm6029_vm15, %v6000_v26, %v10928_v3 }
 0x695   : > { %v4892_v1 = vmax.f32 %v4806_v62, 0.0  ;;  %v10933_v42 = vunpack.i.h.bf16 %v10931_v2  ;;  %v10932_v15 = vunpack.i.l.bf16 %v10931_v2  ;;  %v10938_v25 = vunpack.i.h.bf16 %v10936_v46 }
 0x696   : > { %4925 = vst.msk [vmem:[#allocation2 + $0xf9] sm:$0xff] %vm566_vm0, %v4893_v6 }
 0x697   : > { %4924 = vst.msk [vmem:[#allocation2 + $0xf1] sm:$0xff] %vm566_vm0, %v4892_v1  ;;  %v10946_v8 = vpop.permute.xlu1 %10945  ;;  %v6065_v16 = vsel %vm6062_vm1, %v6032_v32, %v10932_v15  ;;  %v6066_v49 = vsel %vm6062_vm1, %v6033_v5, %v10933_v42 }
 0x698   : > { %v10941_v45 = vpop.permute.xlu0 %10940  ;;  %v6098_v37 = vsel %vm6095_vm2, %v6065_v16, %v10937_v43  ;;  %v10947_v19 = vunpack.i.l.bf16 %v10946_v8  ;;  %v6099_v33 = vsel %vm6095_vm2, %v6066_v49, %v10938_v25  ;;  %v10948_v47 = vunpack.i.h.bf16 %v10946_v8 }
 0x699   : > { %v10942_v24 = vunpack.i.l.bf16 %v10941_v45  ;;  %6292 = vmatmul.mubr.f32.gmra.mrb[36].mxu0 %v6098_v37  ;;  %v10943_v11 = vunpack.i.h.bf16 %v10941_v45 }
 0x69a   : > { %10226 = vmatprep.mubr.msk.f32.mxu0 %vm566_vm0, %v15552_v48 }
 0x69b   : > { %v5902_v30 = vsel %vm566_vm0, %v11983_v39, %v10942_v24  ;;  %v10956_v4 = vpop.permute.xlu1 %10955  ;;  %v5903_v31 = vsel %vm566_vm0, %v11984_v60, %v10943_v11 }
 0x69c   : > { %v10951_v14 = vpop.permute.xlu0 %10950  ;;  %v5935_v7 = vsel %vm20007_vm12, %v5902_v30, %v10947_v19  ;;  %v10957_v62 = vunpack.i.l.bf16 %v10956_v4  ;;  %v10958_v54 = vunpack.i.h.bf16 %v10956_v4 }
 0x69d   : > { %v10952_v52 = vunpack.i.l.bf16 %v10951_v14  ;;  %6297 = vmatmul.mubr.f32.gmra.mrb[38].mxu0 %v6099_v33  ;;  %v4970_v57 = vld [vmem:[#allocation2 + $0x100] sm:$0x3]  ;;  %v10953_v20 = vunpack.i.h.bf16 %v10951_v14 }
 0x69e   : > { %10227 = vmatprep.mubr.msk.f32.mxu0 %vm566_vm0, %v15584_v0  ;;  %v15853_v48 = vld [vmem:[#allocation2 + $0xf0] sm:$0xff]  ;;  %v4969_v51 = vld [vmem:[#allocation2 + $0xf8] sm:$0xff]  ;;  %v5093_v59 = vrot.slane %v4970_v57, 1  ;;  %v5936_v0 = vsel %vm20007_vm12, %v5903_v31, %v10948_v47  ;;  %v5269_v5 = vrot.slane %v4970_v57, 2 }
 0x69f   : > { %v5968_v17 = vsel %vm5963_vm13, %v5935_v7, %v10952_v52  ;;  %v10966_v44 = vpop.permute.xlu1 %10965  ;;  %v11174_v35 = vpack.i.bf16 %v4969_v51, %v15853_v48  ;;  %v5090_v28 = vrot.slane %v15853_v48, 1  ;;  %v5091_v38 = vrot.slane %v4969_v51, 1 }
 0x6a0   : > { %v10961_v46 = vpop.permute.xlu0 %10960  ;;  %v6001_v1 = vsel %vm5996_vm14, %v5968_v17, %v10957_v62  ;;  %v5969_v42 = vsel %vm5963_vm13, %v5936_v0, %v10953_v20  ;;  %v10967_v8 = vunpack.i.l.bf16 %v10966_v44  ;;  %v5266_v45 = vrot.slane %v15853_v48, 2 }
 0x6a1   : > { %v10962_v6 = vunpack.i.l.bf16 %v10961_v46  ;;  %11175 = vrot.lane.b32.xlu1 %v11174_v35, %s20002_s26  ;;  %v5092_v2 = vsel %vm1464_vm4, %v5090_v28, %v5091_v38  ;;  %v5094_v26 = vsel %vm1464_vm4, %v5091_v38, %v5093_v59  ;;  %v10963_v15 = vunpack.i.h.bf16 %v10961_v46 }
 0x6a2   : > { %v15864_v43 = vpack.i.bf16 %v5094_v26, %v5092_v2  ;;  %v5267_v37 = vrot.slane %v4969_v51, 2  ;;  %v6002_v11 = vsel %vm5996_vm14, %v5969_v42, %v10958_v54  ;;  %v10968_v14 = vunpack.i.h.bf16 %v10966_v44 }
 0x6a3   : > { %v10976_v3 = vpop.permute.xlu1 %10975  ;;  %v6034_v32 = vsel %vm6029_vm15, %v6001_v1, %v10962_v6  ;;  %v6035_v19 = vsel %vm6029_vm15, %v6002_v11, %v10963_v15 }
 0x6a4   : > { %v10971_v16 = vpop.permute.xlu0 %10970  ;;  %11180 = vrot.lane.b32.xlu0 %v15864_v43, %s12118_s22  ;;  %v10977_v49 = vunpack.i.l.bf16 %v10976_v3  ;;  %v6067_v25 = vsel %vm6062_vm1, %v6034_v32, %v10967_v8  ;;  %v10978_v33 = vunpack.i.h.bf16 %v10976_v3  ;;  %v15877_v57 = vsel %vm1641_vm5, %v5266_v45, %v5267_v37 }
 0x6a5   : > { %v10972_v24 = vunpack.i.l.bf16 %v10971_v16  ;;  %11185 = vrot.lane.b32.xlu1 %v15790_v27, %s12113_s18  ;;  %v10973_v39 = vunpack.i.h.bf16 %v10971_v16  ;;  %v15880_v27 = vsel %vm1641_vm5, %v5267_v37, %v5269_v5  ;;  %v6068_v51 = vsel %vm6062_vm1, %v6035_v19, %v10968_v14 }
 0x6a6   : > { %v5904_v7 = vsel %vm566_vm0, %v15486_v23, %v10977_v49  ;;  %v5905_v44 = vsel %vm566_vm0, %v15488_v40, %v10978_v33 }
 0x6a7   : > { %v10986_v30 = vpop.permute.xlu1 %10985  ;;  %v6100_v4 = vsel %vm6095_vm2, %v6067_v25, %v10972_v24  ;;  %v6101_v17 = vsel %vm6095_vm2, %v6068_v51, %v10973_v39 }
 0x6a8   : > { %v10981_v52 = vpop.permute.xlu0 %10980  ;;  %6302 = vmatmul.mubr.f32.gmra.mrb[40].mxu0 %v6100_v4  ;;  %11190 = vrot.lane.b32.xlu0 %v15813_v61, %s12112_s29  ;;  %v15894_v61 = vpack.i.bf16 %v15880_v27, %v15877_v57  ;;  %v10988_v62 = vunpack.i.h.bf16 %v10986_v30 }
 0x6a9   : > { %v10983_v60 = vunpack.i.h.bf16 %v10981_v52  ;;  %v10982_v31 = vunpack.i.l.bf16 %v10981_v52  ;;  %11195 = vrot.lane.b32.xlu1 %v11174_v35, %s12115_s21  ;;  %10228 = vmatprep.mubr.msk.f32.mxu0 %vm566_vm0, %v15589_v58  ;;  %v10987_v35 = vunpack.i.l.bf16 %v10986_v30 }
 0x6ab   : > { %v5937_v59 = vsel %vm20007_vm12, %v5904_v7, %v10982_v31  ;;  %v10996_v20 = vpop.permute.xlu1 %10995  ;;  %v5938_v23 = vsel %vm20007_vm12, %v5905_v44, %v10983_v60 }
 0x6ac   : > { %v10991_v28 = vpop.permute.xlu0 %10990  ;;  %6307 = vmatmul.mubr.f32.gmra.mrb[42].mxu0 %v6101_v17  ;;  %11200 = vrot.lane.b32.xlu0 %v15864_v43, %s20006_s30  ;;  %v5970_v46 = vsel %vm5963_vm13, %v5937_v59, %v10987_v35  ;;  %v10997_v54 = vunpack.i.l.bf16 %v10996_v20  ;;  %v5971_v6 = vsel %vm5963_vm13, %v5938_v23, %v10988_v62  ;;  %v10998_v15 = vunpack.i.h.bf16 %v10996_v20 }
 0x6ad   : > { %v10993_v58 = vunpack.i.h.bf16 %v10991_v28  ;;  %v10992_v47 = vunpack.i.l.bf16 %v10991_v28  ;;  %11205 = vrot.lane.b32.xlu1 %v15894_v61, %s20004_s0  ;;  %10229 = vmatprep.mubr.msk.f32.mxu0 %vm566_vm0, %v15644_v18 }
 0x6af   : > { %v6003_v40 = vsel %vm5996_vm14, %v5970_v46, %v10992_v47  ;;  %v11006_v38 = vpop.permute.xlu1 %11005  ;;  %v6004_v2 = vsel %vm5996_vm14, %v5971_v6, %v10993_v58 }
 0x6b0   : > { %v11001_v0 = vpop.permute.xlu0 %11000  ;;  %v11007_v3 = vunpack.i.l.bf16 %v11006_v38  ;;  %v6036_v16 = vsel %vm6029_vm15, %v6003_v40, %v10997_v54  ;;  %v6037_v25 = vsel %vm6029_vm15, %v6004_v2, %v10998_v15  ;;  %v11008_v4 = vunpack.i.h.bf16 %v11006_v38 }
 0x6b1   : > { %v11003_v26 = vunpack.i.h.bf16 %v11001_v0  ;;  %v11002_v1 = vunpack.i.l.bf16 %v11001_v0  ;;  %v10611_v42 = vpop.f32.mrb[20].mxu1 }
 0x6b2   : > { %v4821_v32 = vadd.f32 %v15579_v21, %v10611_v42  ;;  %v4815_v8 = vpop.f32.mrb[21].mxu1 }
 0x6b3   : > { %v4816_v18 = vadd.f32 %v15579_v21, %v4815_v8  ;;  %v11016_v45 = vpop.permute.xlu1 %11015  ;;  %v6069_v37 = vsel %vm6062_vm1, %v6036_v16, %v11002_v1  ;;  %v6070_v30 = vsel %vm6062_vm1, %v6037_v25, %v11003_v26 }
 0x6b4   : > { %v4895_v5 = vmax.f32 %v4821_v32, 0.0  ;;  %v11011_v24 = vpop.permute.xlu0 %11010  ;;  %v6102_v49 = vsel %vm6095_vm2, %v6069_v37, %v11007_v3  ;;  %v11017_v33 = vunpack.i.l.bf16 %v11016_v45  ;;  %v6103_v60 = vsel %vm6095_vm2, %v6070_v30, %v11008_v4 }
 0x6b5   : > { %v4894_v11 = vmax.f32 %v4816_v18, 0.0  ;;  %v11012_v39 = vunpack.i.l.bf16 %v11011_v24  ;;  %6312 = vmatmul.mubr.f32.gmra.mrb[44].mxu0 %v6102_v49  ;;  %v11013_v19 = vunpack.i.h.bf16 %v11011_v24 }
 0x6b6   : > { %4927 = vst.msk [vmem:[#allocation2 + $0x111] sm:$0xff] %vm566_vm0, %v4895_v5  ;;  %10230 = vmatprep.mubr.msk.f32.mxu0 %vm566_vm0, %v15648_v55  ;;  %v11018_v55 = vunpack.i.h.bf16 %v11016_v45 }
 0x6b7   : > { %4926 = vst.msk [vmem:[#allocation2 + $0x109] sm:$0xff] %vm566_vm0, %v4894_v11  ;;  %v5906_v21 = vsel %vm566_vm0, %v15541_v29, %v11012_v39  ;;  %v11026_v14 = vpop.permute.xlu1 %11025  ;;  %v5907_v7 = vsel %vm566_vm0, %v15543_v34, %v11013_v19 }
 0x6b8   : > { %v11021_v52 = vpop.permute.xlu0 %11020  ;;  %v5939_v59 = vsel %vm20007_vm12, %v5906_v21, %v11017_v33  ;;  %v11027_v17 = vunpack.i.l.bf16 %v11026_v14  ;;  %v5940_v35 = vsel %vm20007_vm12, %v5907_v7, %v11018_v55  ;;  %v11028_v2 = vunpack.i.h.bf16 %v11026_v14  ;;  %v11985_v14 = vld [vmem:[#allocation2 + $0x78] sm:$0xff] }
 0x6b9   : > { %v11022_v31 = vunpack.i.l.bf16 %v11021_v52  ;;  %6317 = vmatmul.mubr.f32.gmra.mrb[46].mxu0 %v6103_v60  ;;  %v11023_v51 = vunpack.i.h.bf16 %v11021_v52 }
 0x6ba   : > { %10231 = vmatprep.mubr.msk.f32.mxu0 %vm566_vm0, %v15669_v22 }
 0x6bb   : > { %v5972_v20 = vsel %vm5963_vm13, %v5939_v59, %v11022_v31  ;;  %v11036_v29 = vpop.permute.xlu1 %11035  ;;  %v5973_v58 = vsel %vm5963_vm13, %v5940_v35, %v11023_v51  ;;  %v11986_v51 = vld [vmem:[#allocation2 + $0x80] sm:$0xff] }
 0x6bc   : > { %v11031_v44 = vpop.permute.xlu0 %11030  ;;  %v6005_v40 = vsel %vm5996_vm14, %v5972_v20, %v11027_v17  ;;  %v11037_v26 = vunpack.i.l.bf16 %v11036_v29  ;;  %v6006_v18 = vsel %vm5996_vm14, %v5973_v58, %v11028_v2  ;;  %v11038_v45 = vunpack.i.h.bf16 %v11036_v29 }
 0x6bd   : > { %v11032_v28 = vunpack.i.l.bf16 %v11031_v44  ;;  %v4973_v23 = vld [vmem:[#allocation2 + $0x118] sm:$0x3]  ;;  %v11033_v47 = vunpack.i.h.bf16 %v11031_v44 }
 0x6be   : > { %v4971_v34 = vld [vmem:[#allocation2 + $0x108] sm:$0xff]  ;;  %v4972_v62 = vld [vmem:[#allocation2 + $0x110] sm:$0xff]  ;;  %v5098_v46 = vrot.slane %v4973_v23, 1  ;;  %v5274_v4 = vrot.slane %v4973_v23, 2 }
 0x6bf   : > { %v11046_v38 = vpop.permute.xlu1 %11045  ;;  %v11209_v22 = vpack.i.bf16 %v4972_v62, %v4971_v34  ;;  %v5095_v54 = vrot.slane %v4971_v34, 1  ;;  %v5096_v6 = vrot.slane %v4972_v62, 1  ;;  %v6038_v0 = vsel %vm6029_vm15, %v6005_v40, %v11032_v28 }
 0x6c0   : > { %v11041_v1 = vpop.permute.xlu0 %11040  ;;  %v11047_v32 = vunpack.i.l.bf16 %v11046_v38  ;;  %v6071_v16 = vsel %vm6062_vm1, %v6038_v0, %v11037_v26  ;;  %v6039_v49 = vsel %vm6029_vm15, %v6006_v18, %v11033_v47  ;;  %v11048_v25 = vunpack.i.h.bf16 %v11046_v38  ;;  %v15985_v18 = vld [vmem:[%s19955_s5] ss:$0 sm:$0xff] }
 0x6c1   : > { %v11042_v42 = vunpack.i.l.bf16 %v11041_v1  ;;  %11210 = vrot.lane.b32.xlu0 %v11209_v22, %s20002_s26  ;;  %v5097_v15 = vsel %vm1464_vm4, %v5095_v54, %v5096_v6  ;;  %v5099_v3 = vsel %vm1464_vm4, %v5096_v6, %v5098_v46  ;;  %v11043_v37 = vunpack.i.h.bf16 %v11041_v1 }
 0x6c2   : > { %v15936_v8 = vpack.i.bf16 %v5099_v3, %v5097_v15  ;;  %v5271_v39 = vrot.slane %v4971_v34, 2  ;;  %v5272_v30 = vrot.slane %v4972_v62, 2  ;;  %v5908_v33 = vsel %vm566_vm0, %v11985_v14, %v11047_v32 }
 0x6c3   : > { %v11056_v5 = vpop.permute.xlu1 %11055  ;;  %v6104_v24 = vsel %vm6095_vm2, %v6071_v16, %v11042_v42  ;;  %v6072_v52 = vsel %vm6062_vm1, %v6039_v49, %v11038_v45  ;;  %v5909_v59 = vsel %vm566_vm0, %v11986_v51, %v11048_v25 }
 0x6c4   : > { %11215 = vrot.lane.b32.xlu1 %v15936_v8, %s12118_s22  ;;  %v11051_v11 = vpop.permute.xlu0 %11050  ;;  %6322 = vmatmul.mubr.f32.gmra.mrb[48].mxu0 %v6104_v24  ;;  %v6105_v7 = vsel %vm6095_vm2, %v6072_v52, %v11043_v37  ;;  %v11057_v55 = vunpack.i.l.bf16 %v11056_v5  ;;  %v15959_v20 = vsel %vm1641_vm5, %v5272_v30, %v5274_v4  ;;  %v11058_v35 = vunpack.i.h.bf16 %v11056_v5 }
 0x6c5   : > { %v11053_v19 = vunpack.i.h.bf16 %v11051_v11  ;;  %v11052_v21 = vunpack.i.l.bf16 %v11051_v11  ;;  %11220 = vrot.lane.b32.xlu0 %v15864_v43, %s12113_s18  ;;  %10232 = vmatprep.mubr.msk.f32.mxu0 %vm566_vm0, %v15672_v36  ;;  %v15956_v36 = vsel %vm1641_vm5, %v5271_v39, %v5272_v30 }
 0x6c6   : > { %v15969_v58 = vpack.i.bf16 %v15959_v20, %v15956_v36 }
 0x6c7   : > { %v5941_v60 = vsel %vm20007_vm12, %v5908_v33, %v11052_v21  ;;  %v11066_v31 = vpop.permute.xlu1 %11065  ;;  %v5942_v29 = vsel %vm20007_vm12, %v5909_v59, %v11053_v19  ;;  %v11988_v21 = vld [vmem:[#allocation2 + $0x98] sm:$0xff] }
 0x6c8   : > { %11225 = vrot.lane.b32.xlu1 %v15894_v61, %s12112_s29  ;;  %v11061_v43 = vpop.permute.xlu0 %11060  ;;  %6327 = vmatmul.mubr.f32.gmra.mrb[50].mxu0 %v6105_v7  ;;  %v5974_v61 = vsel %vm5963_vm13, %v5941_v60, %v11057_v55  ;;  %v11067_v47 = vunpack.i.l.bf16 %v11066_v31  ;;  %v5975_v34 = vsel %vm5963_vm13, %v5942_v29, %v11058_v35  ;;  %v11068_v38 = vunpack.i.h.bf16 %v11066_v31 }
 0x6c9   : > { %v11063_v17 = vunpack.i.h.bf16 %v11061_v43  ;;  %v11062_v44 = vunpack.i.l.bf16 %v11061_v43  ;;  %11230 = vrot.lane.b32.xlu0 %v11209_v22, %s12115_s21  ;;  %10233 = vmatprep.mubr.msk.f32.mxu0 %vm566_vm0, %v15723_v13 }
 0x6cb   : > { %v6007_v28 = vsel %vm5996_vm14, %v5974_v61, %v11062_v44  ;;  %v11076_v23 = vpop.permute.xlu1 %11075  ;;  %v6008_v46 = vsel %vm5996_vm14, %v5975_v34, %v11063_v17 }
 0x6cc   : > { %11235 = vrot.lane.b32.xlu1 %v15936_v8, %s20006_s30  ;;  %v11071_v62 = vpop.permute.xlu0 %11070  ;;  %v11077_v22 = vunpack.i.l.bf16 %v11076_v23  ;;  %v6040_v54 = vsel %vm6029_vm15, %v6007_v28, %v11067_v47  ;;  %v6041_v1 = vsel %vm6029_vm15, %v6008_v46, %v11068_v38  ;;  %v11078_v32 = vunpack.i.h.bf16 %v11076_v23 }
 0x6cd   : > { %v11073_v13 = vunpack.i.h.bf16 %v11071_v62  ;;  %v11072_v40 = vunpack.i.l.bf16 %v11071_v62  ;;  %11240 = vrot.lane.b32.xlu0 %v15969_v58, %s20004_s0 }
 0x6cf   : > { %v11086_v6 = vpop.permute.xlu1 %11085  ;;  %v6073_v0 = vsel %vm6062_vm1, %v6040_v54, %v11072_v40  ;;  %v6074_v3 = vsel %vm6062_vm1, %v6041_v1, %v11073_v13 }
 0x6d0   : > { %v11081_v2 = vpop.permute.xlu0 %11080  ;;  %v6106_v26 = vsel %vm6095_vm2, %v6073_v0, %v11077_v22  ;;  %v11087_v25 = vunpack.i.l.bf16 %v11086_v6  ;;  %v6107_v30 = vsel %vm6095_vm2, %v6074_v3, %v11078_v32 }
 0x6d1   : > { %v11082_v42 = vunpack.i.l.bf16 %v11081_v2  ;;  %v10614_v15 = vpop.f32.mrb[22].mxu1  ;;  %6332 = vmatmul.mubr.f32.gmra.mrb[52].mxu0 %v6106_v26  ;;  %v11083_v16 = vunpack.i.h.bf16 %v11081_v2 }
 0x6d2   : > { %v4831_v45 = vadd.f32 %v15985_v18, %v10614_v15  ;;  %v4825_v37 = vpop.f32.mrb[23].mxu1  ;;  %10234 = vmatprep.mubr.msk.f32.mxu0 %vm566_vm0, %v15727_v50 }
 0x6d3   : > { %v5910_v5 = vsel %vm566_vm0, %v15639_v63, %v11082_v42  ;;  %v4826_v24 = vadd.f32 %v15985_v18, %v4825_v37  ;;  %v11096_v49 = vpop.permute.xlu1 %11095  ;;  %v5911_v14 = vsel %vm566_vm0, %v11988_v21, %v11083_v16  ;;  %v11088_v63 = vunpack.i.h.bf16 %v11086_v6 }
 0x6d4   : > { %v4897_v11 = vmax.f32 %v4831_v45, 0.0  ;;  %v11091_v39 = vpop.permute.xlu0 %11090  ;;  %v5943_v33 = vsel %vm20007_vm12, %v5910_v5, %v11087_v25  ;;  %v11097_v60 = vunpack.i.l.bf16 %v11096_v49  ;;  %v11098_v17 = vunpack.i.h.bf16 %v11096_v49 }
 0x6d5   : > { %v4896_v4 = vmax.f32 %v4826_v24, 0.0  ;;  %v11092_v19 = vunpack.i.l.bf16 %v11091_v39  ;;  %6337 = vmatmul.mubr.f32.gmra.mrb[54].mxu0 %v6107_v30  ;;  %v11093_v50 = vunpack.i.h.bf16 %v11091_v39  ;;  %v5944_v7 = vsel %vm20007_vm12, %v5911_v14, %v11088_v63 }
 0x6d6   : > { %4929 = vst.msk [vmem:[#allocation2 + $0x129] sm:$0xff] %vm566_vm0, %v4897_v11  ;;  %10235 = vmatprep.mubr.msk.f32.mxu0 %vm566_vm0, %v15742_v41  ;;  %v11989_v11 = vld [vmem:[#allocation2 + $0xa8] sm:$0xff] }
 0x6d7   : > { %4928 = vst.msk [vmem:[#allocation2 + $0x121] sm:$0xff] %vm566_vm0, %v4896_v4  ;;  %v5976_v52 = vsel %vm5963_vm13, %v5943_v33, %v11092_v19  ;;  %v11106_v51 = vpop.permute.xlu1 %11105  ;;  %v5977_v55 = vsel %vm5963_vm13, %v5944_v7, %v11093_v50  ;;  %v11990_v7 = vld [vmem:[#allocation2 + $0xb0] sm:$0xff] }
 0x6d8   : > { %v11101_v31 = vpop.permute.xlu0 %11100  ;;  %v6009_v29 = vsel %vm5996_vm14, %v5976_v52, %v11097_v60  ;;  %v11107_v41 = vunpack.i.l.bf16 %v11106_v51  ;;  %v6010_v23 = vsel %vm5996_vm14, %v5977_v55, %v11098_v17  ;;  %v11108_v0 = vunpack.i.h.bf16 %v11106_v51 }
 0x6d9   : > { %v11102_v59 = vunpack.i.l.bf16 %v11101_v31  ;;  %v11103_v43 = vunpack.i.h.bf16 %v11101_v31 }
 0x6db   : > { %v6042_v44 = vsel %vm6029_vm15, %v6009_v29, %v11102_v59  ;;  %v6043_v40 = vsel %vm6029_vm15, %v6010_v23, %v11103_v43 }
 0x6dc   : > { %v11111_v35 = vpop.permute.xlu0 %11110  ;;  %v6075_v34 = vsel %vm6062_vm1, %v6042_v44, %v11107_v41  ;;  %v6076_v42 = vsel %vm6062_vm1, %v6043_v40, %v11108_v0 }
 0x6dd   : > { %v11112_v61 = vunpack.i.l.bf16 %v11111_v35  ;;  %v4976_v28 = vld [vmem:[#allocation2 + $0x130] sm:$0x3]  ;;  %v11113_v47 = vunpack.i.h.bf16 %v11111_v35 }
 0x6de   : > { %v4974_v62 = vld [vmem:[#allocation2 + $0x120] sm:$0xff]  ;;  %v4975_v46 = vld [vmem:[#allocation2 + $0x128] sm:$0xff]  ;;  %v5103_v13 = vrot.slane %v4976_v28, 1  ;;  %v5279_v16 = vrot.slane %v4976_v28, 2 }
 0x6df   : > { %v6108_v38 = vsel %vm6095_vm2, %v6075_v34, %v11112_v61  ;;  %v11244_v22 = vpack.i.bf16 %v4975_v46, %v4974_v62  ;;  %v5100_v54 = vrot.slane %v4974_v62, 1  ;;  %v5101_v6 = vrot.slane %v4975_v46, 1 }
 0x6e0   : > { %6342 = vmatmul.mubr.f32.gmra.mrb[56].mxu0 %v6108_v38  ;;  %v6109_v15 = vsel %vm6095_vm2, %v6076_v42, %v11113_v47  ;;  %v5276_v3 = vrot.slane %v4974_v62, 2  ;;  %v5277_v32 = vrot.slane %v4975_v46, 2  ;;  %v11121_v5 = vpop.permute.xlu0 %11120 }
 0x6e1   : > { %11245 = vrot.lane.b32.xlu1 %v11244_v22, %s20002_s26  ;;  %10236 = vmatprep.mubr.msk.f32.mxu0 %vm566_vm0, %v15745_v9  ;;  %v5102_v2 = vsel %vm1464_vm4, %v5100_v54, %v5101_v6  ;;  %v5104_v26 = vsel %vm1464_vm4, %v5101_v6, %v5103_v13  ;;  %v11116_v9 = vpop.permute.xlu1 %11115  ;;  %v11123_v4 = vunpack.i.h.bf16 %v11121_v5 }
 0x6e2   : > { %v16014_v1 = vpack.i.bf16 %v5104_v26, %v5102_v2  ;;  %v16027_v45 = vsel %vm1641_vm5, %v5276_v3, %v5277_v32  ;;  %v16030_v37 = vsel %vm1641_vm5, %v5277_v32, %v5279_v16  ;;  %v11118_v25 = vunpack.i.h.bf16 %v11116_v9 }
 0x6e3   : > { %v16035_v24 = vpack.i.bf16 %v16030_v37, %v16027_v45 }
 0x6e4   : > { %11250 = vrot.lane.b32.xlu0 %v16014_v1, %s12118_s22  ;;  %6347 = vmatmul.mubr.f32.gmra.mrb[58].mxu0 %v6109_v15  ;;  %v11131_v49 = vpop.permute.xlu0 %11130  ;;  %v5913_v51 = vsel %vm566_vm0, %v11990_v7, %v11118_v25 }
 0x6e5   : > { %11255 = vrot.lane.b32.xlu1 %v15936_v8, %s12113_s18  ;;  %10237 = vmatprep.mubr.msk.f32.mxu0 %vm566_vm0, %v15800_v56  ;;  %v11117_v56 = vunpack.i.l.bf16 %v11116_v9  ;;  %v11126_v8 = vpop.permute.xlu1 %11125  ;;  %v11132_v21 = vunpack.i.l.bf16 %v11131_v49  ;;  %v5946_v43 = vsel %vm20007_vm12, %v5913_v51, %v11123_v4  ;;  %v11133_v29 = vunpack.i.h.bf16 %v11131_v49  ;;  %v11992_v51 = vld [vmem:[#allocation2 + $0xc8] sm:$0xff] }
 0x6e6   : > { %v11127_v33 = vunpack.i.l.bf16 %v11126_v8  ;;  %v11128_v41 = vunpack.i.h.bf16 %v11126_v8 }
 0x6e7   : > { %v5912_v39 = vsel %vm566_vm0, %v11989_v11, %v11117_v56 }
 0x6e8   : > { %11260 = vrot.lane.b32.xlu0 %v15969_v58, %s12112_s29  ;;  %v11122_v58 = vunpack.i.l.bf16 %v11121_v5  ;;  %v5979_v28 = vsel %vm5963_vm13, %v5946_v43, %v11128_v41 }
 0x6e9   : > { %11265 = vrot.lane.b32.xlu1 %v11244_v22, %s12115_s21  ;;  %v11136_v60 = vpop.permute.xlu1 %11135  ;;  %v6012_v34 = vsel %vm5996_vm14, %v5979_v28, %v11133_v29 }
 0x6ea   : > { %v5945_v19 = vsel %vm20007_vm12, %v5912_v39, %v11122_v58  ;;  %v11137_v35 = vunpack.i.l.bf16 %v11136_v60  ;;  %v11138_v13 = vunpack.i.h.bf16 %v11136_v60 }
 0x6eb   : > { %v5978_v59 = vsel %vm5963_vm13, %v5945_v19, %v11127_v33 }
 0x6ec   : > { %11270 = vrot.lane.b32.xlu0 %v16014_v1, %s20006_s30  ;;  %v6011_v17 = vsel %vm5996_vm14, %v5978_v59, %v11132_v21  ;;  %v6045_v22 = vsel %vm6029_vm15, %v6012_v34, %v11138_v13  ;;  %v11991_v21 = vld [vmem:[#allocation2 + $0xc0] sm:$0xff] }
 0x6ed   : > { %11275 = vrot.lane.b32.xlu1 %v16035_v24, %s20004_s0  ;;  %v6044_v47 = vsel %vm6029_vm15, %v6011_v17, %v11137_v35 }
 0x6f1   : > { %v10617_v30 = vpop.f32.mrb[24].mxu1 }
 0x6f2   : > { %v4841_v14 = vadd.f32 %v15985_v18, %v10617_v30  ;;  %v4835_v50 = vpop.f32.mrb[25].mxu1 }
 0x6f3   : > { %v4836_v63 = vadd.f32 %v15985_v18, %v4835_v50  ;;  %v11141_v52 = vpop.permute.xlu0 %11140 }
 0x6f4   : > { %v4899_v31 = vmax.f32 %v4841_v14, 0.0  ;;  %v11142_v44 = vunpack.i.l.bf16 %v11141_v52  ;;  %v11143_v62 = vunpack.i.h.bf16 %v11141_v52 }
 0x6f5   : > { %v4898_v55 = vmax.f32 %v4836_v63, 0.0 }
 0x6f6   : > { %4931 = vst.msk [vmem:[#allocation2 + $0x141] sm:$0xff] %vm566_vm0, %v4899_v31  ;;  %v6077_v46 = vsel %vm6062_vm1, %v6044_v47, %v11142_v44  ;;  %v6078_v6 = vsel %vm6062_vm1, %v6045_v22, %v11143_v62 }
 0x6f7   : > { %4930 = vst.msk [vmem:[#allocation2 + $0x139] sm:$0xff] %vm566_vm0, %v4898_v55  ;;  %v11146_v61 = vpop.permute.xlu1 %11145  ;;  %v11151_v58 = vpop.permute.xlu0 %11150 }
 0x6f8   : > { %v11147_v23 = vunpack.i.l.bf16 %v11146_v61  ;;  %v11148_v40 = vunpack.i.h.bf16 %v11146_v61  ;;  %v11153_v19 = vunpack.i.h.bf16 %v11151_v58 }
 0x6fa   : > { %v6110_v38 = vsel %vm6095_vm2, %v6077_v46, %v11147_v23  ;;  %v6111_v26 = vsel %vm6095_vm2, %v6078_v6, %v11148_v40  ;;  %v5915_v59 = vsel %vm566_vm0, %v11992_v51, %v11153_v19 }
 0x6fb   : > { %6352 = vmatmul.mubr.f32.gmra.mrb[60].mxu0 %v6110_v38  ;;  %v11161_v11 = vpop.permute.xlu0 %11160 }
 0x6fc   : > { %10238 = vmatprep.mubr.msk.f32.mxu0 %vm566_vm0, %v15803_v53  ;;  %v11163_v55 = vunpack.i.h.bf16 %v11161_v11 }
 0x6fd   : > { %v4979_v54 = vld [vmem:[#allocation2 + $0x148] sm:$0x3] }
 0x6fe   : > { %v4977_v0 = vld [vmem:[#allocation2 + $0x138] sm:$0xff]  ;;  %v4978_v2 = vld [vmem:[#allocation2 + $0x140] sm:$0xff]  ;;  %v5108_v3 = vrot.slane %v4979_v54, 1  ;;  %v5284_v8 = vrot.slane %v4979_v54, 2 }
 0x6ff   : > { %v11279_v42 = vpack.i.bf16 %v4978_v2, %v4977_v0  ;;  %v5105_v15 = vrot.slane %v4977_v0, 1  ;;  %6357 = vmatmul.mubr.f32.gmra.mrb[62].mxu0 %v6111_v26  ;;  %v5106_v32 = vrot.slane %v4978_v2, 1  ;;  %v5281_v5 = vrot.slane %v4977_v0, 2  ;;  %v11171_v52 = vpop.permute.xlu0 %11170 }
 0x700   : > { %10239 = vmatprep.mubr.msk.f32.mxu0 %vm566_vm0, %v15877_v57  ;;  %v5282_v56 = vrot.slane %v4978_v2, 2  ;;  %v11156_v57 = vpop.permute.xlu1 %11155  ;;  %v11172_v41 = vunpack.i.l.bf16 %v11171_v52  ;;  %v11173_v46 = vunpack.i.h.bf16 %v11171_v52 }
 0x701   : > { %11280 = vrot.lane.b32.xlu0 %v11279_v42, %s20002_s26  ;;  %v5107_v53 = vsel %vm1464_vm4, %v5105_v15, %v5106_v32  ;;  %v5109_v16 = vsel %vm1464_vm4, %v5106_v32, %v5108_v3  ;;  %v11157_v30 = vunpack.i.l.bf16 %v11156_v57  ;;  %v11158_v50 = vunpack.i.h.bf16 %v11156_v57 }
 0x702   : > { %v16066_v9 = vpack.i.bf16 %v5109_v16, %v5107_v53  ;;  %v16073_v49 = vsel %vm1641_vm5, %v5281_v5, %v5282_v56  ;;  %v16076_v25 = vsel %vm1641_vm5, %v5282_v56, %v5284_v8 }
 0x703   : > { %v16083_v39 = vpack.i.bf16 %v16076_v25, %v16073_v49  ;;  %v5948_v17 = vsel %vm20007_vm12, %v5915_v59, %v11158_v50 }
 0x704   : > { %11285 = vrot.lane.b32.xlu1 %v16066_v9, %s12118_s22  ;;  %v11166_v4 = vpop.permute.xlu1 %11165  ;;  %v5981_v62 = vsel %vm5963_vm13, %v5948_v17, %v11163_v55  ;;  %v11994_v55 = vld [vmem:[#allocation2 + $0xe0] sm:$0xff] }
 0x705   : > { %11290 = vrot.lane.b32.xlu0 %v16014_v1, %s12113_s18  ;;  %v11152_v1 = vunpack.i.l.bf16 %v11151_v58  ;;  %v11167_v63 = vunpack.i.l.bf16 %v11166_v4  ;;  %v11168_v61 = vunpack.i.h.bf16 %v11166_v4 }
 0x707   : > { %v5914_v14 = vsel %vm566_vm0, %v11991_v21, %v11152_v1  ;;  %v6014_v38 = vsel %vm5996_vm14, %v5981_v62, %v11168_v61 }
 0x708   : > { %11295 = vrot.lane.b32.xlu1 %v16035_v24, %s12112_s29  ;;  %v11162_v24 = vunpack.i.l.bf16 %v11161_v11  ;;  %v5947_v33 = vsel %vm20007_vm12, %v5914_v14, %v11157_v30  ;;  %v6047_v2 = vsel %vm6029_vm15, %v6014_v38, %v11173_v46 }
 0x709   : > { %11300 = vrot.lane.b32.xlu0 %v11279_v42, %s12115_s21 }
 0x70a   : > { %v5980_v44 = vsel %vm5963_vm13, %v5947_v33, %v11162_v24 }
 0x70b   : > { %v6013_v28 = vsel %vm5996_vm14, %v5980_v44, %v11167_v63  ;;  %v11993_v63 = vld [vmem:[#allocation2 + $0xd8] sm:$0xff] }
 0x70c   : > { %11305 = vrot.lane.b32.xlu1 %v16066_v9, %s20006_s30  ;;  %v6046_v40 = vsel %vm6029_vm15, %v6013_v28, %v11172_v41 }
 0x70d   : > { %11310 = vrot.lane.b32.xlu0 %v16083_v39, %s20004_s0 }
 0x711   : > { %v10620_v60 = vpop.f32.mrb[26].mxu1 }
 0x712   : > { %v4851_v31 = vadd.f32 %v15985_v18, %v10620_v60  ;;  %v4845_v7 = vpop.f32.mrb[27].mxu1 }
 0x713   : > { %v4846_v43 = vadd.f32 %v15985_v18, %v4845_v7  ;;  %v11176_v29 = vpop.permute.xlu1 %11175 }
 0x714   : > { %v4901_v35 = vmax.f32 %v4851_v31, 0.0  ;;  %v11177_v47 = vunpack.i.l.bf16 %v11176_v29  ;;  %v11178_v22 = vunpack.i.h.bf16 %v11176_v29 }
 0x715   : > { %v4900_v23 = vmax.f32 %v4846_v43, 0.0 }
 0x716   : > { %4933 = vst.msk [vmem:[#allocation2 + $0x159] sm:$0xff] %vm566_vm0, %v4901_v35  ;;  %v11181_v34 = vpop.permute.xlu0 %11180  ;;  %v6079_v54 = vsel %vm6062_vm1, %v6046_v40, %v11177_v47  ;;  %v6080_v26 = vsel %vm6062_vm1, %v6047_v2, %v11178_v22 }
 0x717   : > { %4932 = vst.msk [vmem:[#allocation2 + $0x151] sm:$0xff] %vm566_vm0, %v4900_v23  ;;  %v11182_v13 = vunpack.i.l.bf16 %v11181_v34  ;;  %v11183_v6 = vunpack.i.h.bf16 %v11181_v34  ;;  %v11186_v58 = vpop.permute.xlu1 %11185 }
 0x718   : > { %v11187_v14 = vunpack.i.l.bf16 %v11186_v58  ;;  %v11188_v33 = vunpack.i.h.bf16 %v11186_v58 }
 0x719   : > { %v6112_v0 = vsel %vm6095_vm2, %v6079_v54, %v11182_v13  ;;  %v6113_v15 = vsel %vm6095_vm2, %v6080_v26, %v11183_v6 }
 0x71a   : > { %6362 = vmatmul.mubr.f32.gmra.mrb[64].mxu0 %v6112_v0  ;;  %v5916_v52 = vsel %vm566_vm0, %v11993_v63, %v11187_v14  ;;  %v5917_v43 = vsel %vm566_vm0, %v11994_v55, %v11188_v33 }
 0x71b   : > { %10240 = vmatprep.mubr.msk.f32.mxu0 %vm566_vm0, %v15880_v27  ;;  %v11196_v21 = vpop.permute.xlu1 %11195 }
 0x71c   : > { %v11197_v31 = vunpack.i.l.bf16 %v11196_v21  ;;  %v11198_v29 = vunpack.i.h.bf16 %v11196_v21 }
 0x71d   : > { %v4982_v42 = vld [vmem:[#allocation2 + $0x160] sm:$0x3] }
 0x71e   : > { %v4980_v3 = vld [vmem:[#allocation2 + $0x150] sm:$0xff]  ;;  %v4981_v32 = vld [vmem:[#allocation2 + $0x158] sm:$0xff]  ;;  %6367 = vmatmul.mubr.f32.gmra.mrb[66].mxu0 %v6113_v15  ;;  %v5113_v5 = vrot.slane %v4982_v42, 1  ;;  %v5289_v30 = vrot.slane %v4982_v42, 2 }
 0x71f   : > { %v11314_v53 = vpack.i.bf16 %v4981_v32, %v4980_v3  ;;  %v5110_v16 = vrot.slane %v4980_v3, 1  ;;  %10241 = vmatprep.mubr.msk.f32.mxu0 %vm566_vm0, %v15956_v36  ;;  %v5111_v56 = vrot.slane %v4981_v32, 1  ;;  %v5286_v11 = vrot.slane %v4980_v3, 2  ;;  %v11191_v36 = vpop.permute.xlu0 %11190  ;;  %v11206_v51 = vpop.permute.xlu1 %11205 }
 0x720   : > { %v5287_v1 = vrot.slane %v4981_v32, 2  ;;  %v11192_v50 = vunpack.i.l.bf16 %v11191_v36  ;;  %v11193_v60 = vunpack.i.h.bf16 %v11191_v36  ;;  %v11207_v61 = vunpack.i.l.bf16 %v11206_v51 }
 0x721   : > { %11315 = vrot.lane.b32.xlu1 %v11314_v53, %s20002_s26  ;;  %v5112_v27 = vsel %vm1464_vm4, %v5110_v16, %v5111_v56  ;;  %v5114_v8 = vsel %vm1464_vm4, %v5111_v56, %v5113_v5  ;;  %v11208_v22 = vunpack.i.h.bf16 %v11206_v51 }
 0x722   : > { %v16114_v57 = vpack.i.bf16 %v5114_v8, %v5112_v27  ;;  %v16121_v4 = vsel %vm1641_vm5, %v5286_v11, %v5287_v1  ;;  %v16124_v19 = vsel %vm1641_vm5, %v5287_v1, %v5289_v30  ;;  %v5950_v41 = vsel %vm20007_vm12, %v5917_v43, %v11193_v60 }
 0x723   : > { %v11201_v24 = vpop.permute.xlu0 %11200  ;;  %v5983_v38 = vsel %vm5963_vm13, %v5950_v41, %v11198_v29 }
 0x724   : > { %11320 = vrot.lane.b32.xlu0 %v16114_v57, %s12118_s22  ;;  %v11202_v7 = vunpack.i.l.bf16 %v11201_v24  ;;  %v11203_v47 = vunpack.i.h.bf16 %v11201_v24 }
 0x725   : > { %11325 = vrot.lane.b32.xlu1 %v16066_v9, %s12113_s18  ;;  %v16131_v9 = vpack.i.bf16 %v16124_v19, %v16121_v4 }
 0x726   : > { %v6016_v0 = vsel %vm5996_vm14, %v5983_v38, %v11203_v47 }
 0x727   : > { %v6049_v3 = vsel %vm6029_vm15, %v6016_v0, %v11208_v22 }
 0x728   : > { %11330 = vrot.lane.b32.xlu0 %v16083_v39, %s12112_s29  ;;  %v5949_v39 = vsel %vm20007_vm12, %v5916_v52, %v11192_v50 }
 0x729   : > { %11335 = vrot.lane.b32.xlu1 %v11314_v53, %s12115_s21  ;;  %v5982_v35 = vsel %vm5963_vm13, %v5949_v39, %v11197_v31 }
 0x72a   : > { %v6015_v34 = vsel %vm5996_vm14, %v5982_v35, %v11202_v7 }
 0x72b   : > { %v6048_v6 = vsel %vm6029_vm15, %v6015_v34, %v11207_v61 }
 0x72c   : > { %11340 = vrot.lane.b32.xlu0 %v16114_v57, %s20006_s30 }
 0x72d   : > { %11345 = vrot.lane.b32.xlu1 %v16131_v9, %s20004_s0 }
 0x731   : > { %v10623_v59 = vpop.f32.mrb[28].mxu1 }
 0x732   : > { %v4861_v17 = vadd.f32 %v15985_v18, %v10623_v59  ;;  %v4855_v44 = vpop.f32.mrb[29].mxu1 }
 0x733   : > { %v4856_v28 = vadd.f32 %v15985_v18, %v4855_v44  ;;  %v11211_v23 = vpop.permute.xlu0 %11210 }
 0x734   : > { %v4903_v62 = vmax.f32 %v4861_v17, 0.0  ;;  %v11212_v46 = vunpack.i.l.bf16 %v11211_v23  ;;  %v11213_v2 = vunpack.i.h.bf16 %v11211_v23 }
 0x735   : > { %v4902_v13 = vmax.f32 %v4856_v28, 0.0  ;;  %v11995_v28 = vld [vmem:[#allocation2 + $0xf8] sm:$0xff] }
 0x736   : > { %4935 = vst.msk [vmem:[#allocation2 + $0x171] sm:$0xff] %vm566_vm0, %v4903_v62  ;;  %v11216_v40 = vpop.permute.xlu1 %11215  ;;  %v6081_v26 = vsel %vm6062_vm1, %v6048_v6, %v11212_v46  ;;  %v6082_v32 = vsel %vm6062_vm1, %v6049_v3, %v11213_v2  ;;  %v7691_v3 = vld [vmem:[%s19958_s8 + $0x8] sm:$0xff] }
 0x737   : > { %4934 = vst.msk [vmem:[#allocation2 + $0x169] sm:$0xff] %vm566_vm0, %v4902_v13  ;;  %v11217_v54 = vunpack.i.l.bf16 %v11216_v40  ;;  %v11218_v42 = vunpack.i.h.bf16 %v11216_v40  ;;  %v11221_v36 = vpop.permute.xlu0 %11220 }
 0x738   : > { %v11222_v52 = vunpack.i.l.bf16 %v11221_v36  ;;  %v11223_v7 = vunpack.i.h.bf16 %v11221_v36 }
 0x739   : > { %v6114_v15 = vsel %vm6095_vm2, %v6081_v26, %v11217_v54  ;;  %v6115_v53 = vsel %vm6095_vm2, %v6082_v32, %v11218_v42 }
 0x73a   : > { %6372 = vmatmul.mubr.f32.gmra.mrb[68].mxu0 %v6114_v15  ;;  %v5919_v23 = vsel %vm566_vm0, %v11995_v28, %v11223_v7  ;;  %v7690_v15 = vld [vmem:[%s19958_s8] sm:$0xff] }
 0x73b   : > { %10242 = vmatprep.mubr.msk.f32.mxu0 %vm566_vm0, %v15959_v20  ;;  %v11231_v63 = vpop.permute.xlu0 %11230  ;;  %v6506_v28 = vld [vmem:[#allocation2] sm:$0xff] }
 0x73c   : > { %v11232_v51 = vunpack.i.l.bf16 %v11231_v63  ;;  %v11233_v47 = vunpack.i.h.bf16 %v11231_v63 }
 0x73d   : > { %v4985_v16 = vld [vmem:[#allocation2 + $0x178] sm:$0x3] }
 0x73e   : > { %6377 = vmatmul.mubr.f32.gmra.mrb[70].mxu0 %v6115_v53  ;;  %v4983_v5 = vld [vmem:[#allocation2 + $0x168] sm:$0xff]  ;;  %v4984_v56 = vld [vmem:[#allocation2 + $0x170] sm:$0xff]  ;;  %v5118_v27 = vrot.slane %v4985_v16, 1  ;;  %v5294_v50 = vrot.slane %v4985_v16, 2  ;;  %v10701_v16 = vpack.c.bf16 %v7691_v3, %v7690_v15 }
 0x73f   : > { %10243 = vmatprep.mubr.msk.f32.mxu0 %vm566_vm0, %v16027_v45  ;;  %v11349_v8 = vpack.i.bf16 %v4984_v56, %v4983_v5  ;;  %v5115_v58 = vrot.slane %v4983_v5, 1  ;;  %v5116_v11 = vrot.slane %v4984_v56, 1  ;;  %v5291_v21 = vrot.slane %v4983_v5, 2  ;;  %v11226_v45 = vpop.permute.xlu1 %11225  ;;  %v11241_v44 = vpop.permute.xlu0 %11240 }
 0x740   : > { %v5292_v14 = vrot.slane %v4984_v56, 2  ;;  %v11227_v31 = vunpack.i.l.bf16 %v11226_v45  ;;  %v11228_v43 = vunpack.i.h.bf16 %v11226_v45  ;;  %v11243_v54 = vunpack.i.h.bf16 %v11241_v44  ;;  %10702 = vmatpush1.bf16.msra.mxu1 %v10701_v16 }
 0x741   : > { %11350 = vrot.lane.b32.xlu0 %v11349_v8, %s20002_s26  ;;  %v5117_v20 = vsel %vm1464_vm4, %v5115_v58, %v5116_v11  ;;  %v5119_v1 = vsel %vm1464_vm4, %v5116_v11, %v5118_v27  ;;  %10703 = vmatprep.subr.bf16.mxu1 %v12111_v10 }
 0x742   : > { %v16162_v30 = vpack.i.bf16 %v5119_v1, %v5117_v20  ;;  %v16169_v24 = vsel %vm1641_vm5, %v5291_v21, %v5292_v14  ;;  %v16172_v33 = vsel %vm1641_vm5, %v5292_v14, %v5294_v50  ;;  %v5952_v46 = vsel %vm20007_vm12, %v5919_v23, %v11228_v43  ;;  %v16216_v21 = vld [vmem:[%s19957_s7] ss:$0 sm:$0xff]  ;;  %v16221_v50 = vld [vmem:[#allocation2 + $0x198] sm:$0xff]  ;;  %v6507_v23 = vld [vmem:[#allocation2 + $0x8] sm:$0xff] }
 0x743   : > { %v16179_v60 = vpack.i.bf16 %v16172_v33, %v16169_v24  ;;  %v5985_v22 = vsel %vm5963_vm13, %v5952_v46, %v11233_v47  ;;  %v16218_v14 = vld [vmem:[#allocation2 + $0x1a0] sm:$0xff]  ;;  %v6785_v15 = vrot.slane %v6507_v23, 2 }
 0x744   : > { %11355 = vrot.lane.b32.xlu1 %v16162_v30, %s12118_s22  ;;  %v11419_v16 = vpack.i.bf16 %v16218_v14, %v16221_v50 }
 0x745   : > { %11360 = vrot.lane.b32.xlu0 %v16114_v57, %s12113_s18  ;;  %v11236_v57 = vpop.permute.xlu1 %11235 }
 0x746   : > { %v11237_v17 = vunpack.i.l.bf16 %v11236_v57  ;;  %v11238_v13 = vunpack.i.h.bf16 %v11236_v57 }
 0x748   : > { %11365 = vrot.lane.b32.xlu1 %v16131_v9, %s12112_s29  ;;  %v5918_v9 = vsel %vm566_vm0, %v15853_v48, %v11222_v52  ;;  %v11242_v48 = vunpack.i.l.bf16 %v11241_v44  ;;  %v6018_v2 = vsel %vm5996_vm14, %v5985_v22, %v11238_v13 }
 0x749   : > { %11370 = vrot.lane.b32.xlu0 %v11349_v8, %s12115_s21  ;;  %v5951_v29 = vsel %vm20007_vm12, %v5918_v9, %v11227_v31  ;;  %v6051_v8 = vsel %vm6029_vm15, %v6018_v2, %v11243_v54  ;;  %v4991_v31 = vld [vmem:[#allocation2 + $0x1a8] sm:$0x3]  ;;  %v5793_v9 = vrot.slane %v16218_v14, 1  ;;  %v6608_v54 = vrot.slane %v6506_v28, 1  ;;  %v7697_v2 = vld [vmem:[%s19958_s8 + $0x38] sm:$0xff] }
 0x74a   : > { %v5984_v34 = vsel %vm5963_vm13, %v5951_v29, %v11232_v51  ;;  %v7692_v51 = vld [vmem:[%s19958_s8 + $0x10] sm:$0xff]  ;;  %v5792_v29 = vrot.slane %v16221_v50, 1  ;;  %v5795_v44 = vrot.slane %v4991_v31, 1 }
 0x74b   : > { %v6017_v40 = vsel %vm5996_vm14, %v5984_v34, %v11237_v17 }
 0x74c   : > { %11375 = vrot.lane.b32.xlu1 %v16162_v30, %s20006_s30  ;;  %v6050_v0 = vsel %vm6029_vm15, %v6017_v40, %v11242_v48  ;;  %v5794_v13 = vsel %vm1464_vm4, %v5792_v29, %v5793_v9  ;;  %v5796_v22 = vsel %vm1464_vm4, %v5793_v9, %v5795_v44 }
 0x74d   : > { %11380 = vrot.lane.b32.xlu0 %v16179_v60, %s20004_s0  ;;  %s10354_s0 = sshll.u32 %s12232_s28, 4  ;;  %s12120_s28 = smov [#allocation3]  }
 0x74e   : > { %v10626_v39 = vpop.f32.mrb[30].mxu1 }
 0x74f   : > { %v4871_v59 = vadd.f32 %v15985_v18, %v10626_v39  ;;  %v4865_v55 = vpop.f32.mrb[31].mxu1 }
 0x750   : > { %v4866_v41 = vadd.f32 %v15985_v18, %v4865_v55 }
 0x751   : > { %v4905_v35 = vmax.f32 %v4871_v59, 0.0  ;;  %v7693_v59 = vld [vmem:[%s19958_s8 + $0x18] sm:$0xff] }
 0x752   : > { %v4904_v61 = vmax.f32 %v4866_v41, 0.0  ;;  %v7694_v41 = vld [vmem:[%s19958_s8 + $0x20] sm:$0xff]  ;;  %v10704_v47 = vpack.c.bf16 %v7693_v59, %v7692_v51  ;;  %v7700_v51 = vld [vmem:[%s19958_s8 + $0x50] sm:$0xff]  ;;  %v7701_v59 = vld [vmem:[%s19958_s8 + $0x58] sm:$0xff] }
 0x753   : > { %4937 = vst.msk [vmem:[#allocation2 + $0x189] sm:$0xff] %vm566_vm0, %v4905_v35  ;;  %v11246_v62 = vpop.permute.xlu1 %11245  ;;  %v7695_v35 = vld [vmem:[%s19958_s8 + $0x28] sm:$0xff] }
 0x754   : > { %4936 = vst.msk [vmem:[#allocation2 + $0x181] sm:$0xff] %vm566_vm0, %v4904_v61  ;;  %v11247_v18 = vunpack.i.l.bf16 %v11246_v62  ;;  %v11248_v26 = vunpack.i.h.bf16 %v11246_v62  ;;  %v6508_v62 = vld [vmem:[#allocation2 + $0x10] sm:$0x3]  ;;  %10705 = vmatpush1.bf16.msra.mxu1 %v10704_v47  ;;  %v10707_v40 = vpack.c.bf16 %v7695_v35, %v7694_v41 }
 0x755   : > { %v6787_v3 = vrot.slane %v6508_v62, 2  ;;  %10706 = vmatprep.subr.bf16.mxu1 %v12111_v10 }
 0x756   : > { %v11251_v38 = vpop.permute.xlu0 %11250  ;;  %v6083_v42 = vsel %vm6062_vm1, %v6050_v0, %v11247_v18  ;;  %v6084_v20 = vsel %vm6062_vm1, %v6051_v8, %v11248_v26  ;;  %v7696_v0 = vld [vmem:[%s19958_s8 + $0x30] sm:$0xff]  ;;  %v6611_v26 = vrot.slane %v6508_v62, 1  ;;  %v7699_v8 = vld [vmem:[%s19958_s8 + $0x48] sm:$0xff] }
 0x757   : > { %v11252_v6 = vunpack.i.l.bf16 %v11251_v38  ;;  %v11253_v32 = vunpack.i.h.bf16 %v11251_v38  ;;  %v16254_v18 = vpop.permute.xlu1 %11255 }
 0x758   : > { %10708 = vmatpush1.bf16.msra.mxu1 %v10707_v40 }
 0x759   : > { %v6116_v53 = vsel %vm6095_vm2, %v6083_v42, %v11252_v6  ;;  %v6117_v36 = vsel %vm6095_vm2, %v6084_v20, %v11253_v32  ;;  %v6609_v6 = vrot.slane %v6507_v23, 1  ;;  %v6784_v42 = vrot.slane %v6506_v28, 2  ;;  %10709 = vmatprep.subr.bf16.mxu1 %v12111_v10 }
 0x75a   : > { %6382 = vmatmul.mubr.f32.gmra.mrb[72].mxu0 %v6116_v53  ;;  %v4988_v5 = vld [vmem:[#allocation2 + $0x190] sm:$0x3]  ;;  %v16270_v32 = vpop.permute.xlu0 %11260  ;;  %v10710_v53 = vpack.c.bf16 %v7697_v2, %v7696_v0 }
 0x75b   : > { %10244 = vmatprep.mubr.msk.f32.mxu0 %vm566_vm0, %v16030_v37  ;;  %v4986_v56 = vld [vmem:[#allocation2 + $0x180] sm:$0xff]  ;;  %v4987_v27 = vld [vmem:[#allocation2 + $0x188] sm:$0xff]  ;;  %v5494_v58 = vrot.slane %v4988_v5, 1  ;;  %v5595_v43 = vrot.slane %v4988_v5, 2  ;;  %v11424_v5 = vpack.i.bf16 %v5796_v22, %v5794_v13  ;;  %v6786_v20 = vsel %vm1641_vm5, %v6784_v42, %v6785_v15 }
 0x75c   : > { %v11384_v11 = vpack.i.bf16 %v4987_v27, %v4986_v56  ;;  %v5491_v1 = vrot.slane %v4986_v56, 1  ;;  %v5492_v37 = vrot.slane %v4987_v27, 1  ;;  %v5593_v55 = vrot.slane %v4987_v27, 2  ;;  %v7698_v27 = vld [vmem:[%s19958_s8 + $0x40] sm:$0xff]  ;;  %10711 = vmatpush1.bf16.msra.mxu1 %v10710_v53  ;;  %v7703_v42 = vld [vmem:[%s19958_s8 + $0x68] sm:$0xff] }
 0x75d   : > { %10712 = vmatprep.subr.bf16.mxu1 %v12111_v10 }
 0x75e   : > { %11385 = vrot.lane.b32.xlu1 %v11384_v11, %s20002_s26  ;;  %6387 = vmatmul.mubr.f32.gmra.mrb[74].mxu0 %v6117_v36  ;;  %v5493_v63 = vsel %vm1464_vm4, %v5491_v1, %v5492_v37  ;;  %v5495_v52 = vsel %vm1464_vm4, %v5492_v37, %v5494_v58  ;;  %v16251_v46 = vsel %vm1641_vm5, %v5593_v55, %v5595_v43  ;;  %v11257_v58 = vunpack.i.l.bf16 %v16254_v18  ;;  %v16289_v37 = vpop.permute.xlu1 %11265  ;;  %s20444_s26 = smov 64  }
 0x75f   : > { %v6283_v45 = vpop.f32.mrb[32].mxu0  ;;  %10245 = vmatprep.mubr.msk.f32.mxu0 %vm566_vm0, %v16073_v49  ;;  %v11389_v7 = vpack.i.bf16 %v5495_v52, %v5493_v63  ;;  %v5592_v49 = vrot.slane %v4986_v56, 2  ;;  %v6610_v56 = vsel %vm1464_vm4, %v6608_v54, %v6609_v6  ;;  %v6788_v1 = vsel %vm1641_vm5, %v6785_v15, %v6787_v3 }
 0x760   : > { %v6284_v57 = vadd.f32 %v16216_v21, %v6283_v45  ;;  %v6285_v39 = vpop.f32.mrb[33].mxu0  ;;  %v11262_v36 = vunpack.i.l.bf16 %v16270_v32  ;;  %v11434_v9 = vpack.i.bf16 %v6788_v1, %v6786_v20  ;;  %v11263_v43 = vunpack.i.h.bf16 %v16270_v32 }
 0x761   : > { %11390 = vrot.lane.b32.xlu0 %v11389_v7, %s12118_s22  ;;  %v11258_v39 = vunpack.i.h.bf16 %v16254_v18  ;;  %v11267_v29 = vunpack.i.l.bf16 %v16289_v37  ;;  %v10716_v18 = vpack.c.bf16 %v7701_v59, %v7700_v51  ;;  %v11268_v15 = vunpack.i.h.bf16 %v16289_v37  ;;  %v7704_v37 = vld [vmem:[%s19958_s8 + $0x70] sm:$0xff] }
 0x762   : > { %v6442_v17 = vmax.f32 %v6284_v57, 0.0  ;;  %11395 = vrot.lane.b32.xlu1 %v16162_v30, %s12113_s18  ;;  %v16248_v30 = vsel %vm1641_vm5, %v5592_v49, %v5593_v55  ;;  %v10713_v57 = vpack.c.bf16 %v7699_v8, %v7698_v27  ;;  %v11996_v49 = vld [vmem:[#allocation2 + $0x108] sm:$0xff] }
 0x763   : > { %v6288_v61 = vpop.f32.mrb[34].mxu0  ;;  %v5920_v55 = vsel %vm566_vm0, %v11996_v49, %v11257_v58 }
 0x764   : > { %6474 = vst.msk [vmem:[#allocation2 + $0x19] sm:$0xff] %vm566_vm0, %v6442_v17  ;;  %v6289_v34 = vadd.f32 %v16216_v21, %v6288_v61  ;;  %v6290_v48 = vpop.f32.mrb[35].mxu0  ;;  %v11271_v17 = vpop.permute.xlu0 %11270  ;;  %v5953_v61 = vsel %vm20007_vm12, %v5920_v55, %v11262_v36  ;;  %10714 = vmatpush1.bf16.msra.mxu1 %v10713_v57 }
 0x765   : > { %11400 = vrot.lane.b32.xlu0 %v16179_v60, %s12112_s29  ;;  %v11414_v60 = vpack.i.bf16 %v16251_v46, %v16248_v30  ;;  %v11272_v54 = vunpack.i.l.bf16 %v11271_v17  ;;  %10715 = vmatprep.subr.bf16.mxu1 %v12111_v10 }
 0x766   : > { %v6443_v38 = vmax.f32 %v6289_v34, 0.0  ;;  %11405 = vrot.lane.b32.xlu1 %v11384_v11, %s12115_s21  ;;  %v6612_v11 = vsel %vm1464_vm4, %v6609_v6, %v6611_v26  ;;  %v11276_v6 = vpop.permute.xlu1 %11275  ;;  %v7702_v26 = vld [vmem:[%s19958_s8 + $0x60] sm:$0xff] }
 0x767   : > { %v11277_v8 = vunpack.i.l.bf16 %v11276_v6  ;;  %v10719_v20 = vpack.c.bf16 %v7703_v42, %v7702_v26 }
 0x768   : > { %6475 = vst.msk [vmem:[#allocation2 + $0x21] sm:$0xff] %vm566_vm0, %v6443_v38  ;;  %v11997_v38 = vld [vmem:[#allocation2 + $0x110] sm:$0xff]  ;;  %10717 = vmatpush1.bf16.msra.mxu1 %v10716_v18 }
 0x769   : > { %11410 = vrot.lane.b32.xlu0 %v11389_v7, %s20006_s30  ;;  %v11429_v7 = vpack.i.bf16 %v6612_v11, %v6610_v56  ;;  %v5921_v22 = vsel %vm566_vm0, %v11997_v38, %v11258_v39  ;;  %v11273_v56 = vunpack.i.h.bf16 %v11271_v17  ;;  %10718 = vmatprep.subr.bf16.mxu1 %v12111_v10 }
 0x76a   : > { %11415 = vrot.lane.b32.xlu1 %v11414_v60, %s20037_s20 }
 0x76b   : > { %v6509_v31 = vld [vmem:[#allocation2 + $0x18] sm:$0xff] }
 0x76c   : > { %v6293_v45 = vpop.f32.mrb[36].mxu0  ;;  %v6613_v23 = vrot.slane %v6509_v31, 1  ;;  %v6789_v53 = vrot.slane %v6509_v31, 2  ;;  %10720 = vmatpush1.bf16.msra.mxu1 %v10719_v20 }
 0x76d   : > { %v6294_v63 = vadd.f32 %v16216_v21, %v6293_v45  ;;  %v6295_v52 = vpop.f32.mrb[37].mxu0  ;;  %11420 = vrot.lane.b32.xlu0 %v11419_v16, %s20038_s23  ;;  %v5954_v16 = vsel %vm20007_vm12, %v5921_v22, %v11263_v43  ;;  %v7705_v45 = vld [vmem:[%s19958_s8 + $0x78] sm:$0xff]  ;;  %10721 = vmatprep.subr.bf16.mxu1 %v12111_v10  ;;  %v7706_v43 = vld [vmem:[%s19958_s8 + $0x80] sm:$0xff] }
 0x76e   : > { %11425 = vrot.lane.b32.xlu1 %v11424_v5, %s12118_s22  ;;  %v5986_v5 = vsel %vm5963_vm13, %v5953_v61, %v11267_v29  ;;  %v11278_v52 = vunpack.i.h.bf16 %v11276_v6  ;;  %v10722_v51 = vpack.c.bf16 %v7705_v45, %v7704_v37  ;;  %v7707_v29 = vld [vmem:[%s19958_s8 + $0x88] sm:$0xff] }
 0x76f   : > { %v6444_v44 = vmax.f32 %v6294_v63, 0.0  ;;  %v6510_v41 = vld [vmem:[#allocation2 + $0x20] sm:$0xff]  ;;  %v6511_v35 = vld [vmem:[#allocation2 + $0x28] sm:$0x3]  ;;  %v6019_v1 = vsel %vm5996_vm14, %v5986_v5, %v11272_v54  ;;  %v5987_v63 = vsel %vm5963_vm13, %v5954_v16, %v11268_v15 }
 0x770   : > { %v6298_v28 = vpop.f32.mrb[38].mxu0  ;;  %v6614_v47 = vrot.slane %v6510_v41, 1  ;;  %v6616_v34 = vrot.slane %v6511_v35, 1  ;;  %v6790_v13 = vrot.slane %v6510_v41, 2  ;;  %v6792_v40 = vrot.slane %v6511_v35, 2  ;;  %10723 = vmatpush1.bf16.msra.mxu1 %v10722_v51 }
 0x771   : > { %6476 = vst.msk [vmem:[#allocation2 + $0x31] sm:$0xff] %vm566_vm0, %v6444_v44  ;;  %v6299_v48 = vadd.f32 %v16216_v21, %v6298_v28  ;;  %v6300_v62 = vpop.f32.mrb[39].mxu0  ;;  %11430 = vrot.lane.b32.xlu0 %v11429_v7, %s12113_s18  ;;  %v11439_v27 = vpack.i.bf16 %v6510_v41, %v6509_v31  ;;  %v6020_v39 = vsel %vm5996_vm14, %v5987_v63, %v11273_v56 }
 0x772   : > { %11435 = vrot.lane.b32.xlu1 %v11434_v9, %s12112_s29  ;;  %v6615_v0 = vsel %vm1464_vm4, %v6613_v23, %v6614_v47  ;;  %v6617_v2 = vsel %vm1464_vm4, %v6614_v47, %v6616_v34  ;;  %v6791_v58 = vsel %vm1641_vm5, %v6789_v53, %v6790_v13  ;;  %v6793_v11 = vsel %vm1641_vm5, %v6790_v13, %v6792_v40 }
 0x773   : > { %v6445_v3 = vmax.f32 %v6299_v48, 0.0  ;;  %v11281_v60 = vpop.permute.xlu0 %11280  ;;  %v16320_v32 = vpack.i.bf16 %v6617_v2, %v6615_v0  ;;  %v11449_v57 = vpack.i.bf16 %v6793_v11, %v6791_v58  ;;  %v6052_v9 = vsel %vm6029_vm15, %v6019_v1, %v11277_v8  ;;  %10724 = vmatprep.subr.bf16.mxu1 %v12111_v10 }
 0x774   : > { %v11282_v36 = vunpack.i.l.bf16 %v11281_v60  ;;  %v11283_v59 = vunpack.i.h.bf16 %v11281_v60  ;;  %v6053_v28 = vsel %vm6029_vm15, %v6020_v39, %v11278_v52  ;;  %v10725_v13 = vpack.c.bf16 %v7707_v29, %v7706_v43 }
 0x775   : > { %6477 = vst.msk [vmem:[#allocation2 + $0x39] sm:$0xff] %vm566_vm0, %v6445_v3  ;;  %11440 = vrot.lane.b32.xlu0 %v11439_v27, %s12115_s21 }
 0x776   : > { %11445 = vrot.lane.b32.xlu1 %v16320_v32, %s20006_s30  ;;  %v11286_v31 = vpop.permute.xlu1 %11285  ;;  %v6085_v49 = vsel %vm6062_vm1, %v6052_v9, %v11282_v36  ;;  %v6086_v18 = vsel %vm6062_vm1, %v6053_v28, %v11283_v59  ;;  %10726 = vmatpush1.bf16.msra.mxu1 %v10725_v13 }
 0x777   : > { %v11287_v7 = vunpack.i.l.bf16 %v11286_v31  ;;  %v11288_v17 = vunpack.i.h.bf16 %v11286_v31  ;;  %v11291_v16 = vpop.permute.xlu0 %11290 }
 0x778   : > { %v6512_v55 = vld [vmem:[#allocation2 + $0x30] sm:$0xff]  ;;  %v11292_v20 = vunpack.i.l.bf16 %v11291_v16  ;;  %v11293_v9 = vunpack.i.h.bf16 %v11291_v16 }
 0x779   : > { %11450 = vrot.lane.b32.xlu0 %v11449_v57, %s20037_s20  ;;  %v6118_v44 = vsel %vm6095_vm2, %v6085_v49, %v11287_v7  ;;  %v6794_v48 = vrot.slane %v6512_v55, 2  ;;  %v6119_v54 = vsel %vm6095_vm2, %v6086_v18, %v11288_v17  ;;  %v6618_v2 = vrot.slane %v6512_v55, 1 }
 0x77a   : > { %6392 = vmatmul.mubr.f32.gmra.mrb[76].mxu0 %v6118_v44  ;;  %v11296_v56 = vpop.permute.xlu1 %11295  ;;  %v11998_v44 = vld [vmem:[#allocation2 + $0x120] sm:$0xff] }
 0x77b   : > { %v6303_v41 = vpop.f32.mrb[40].mxu0  ;;  %10246 = vmatprep.mubr.msk.f32.mxu0 %vm566_vm0, %v16076_v25  ;;  %v11301_v1 = vpop.permute.xlu0 %11300  ;;  %v11297_v51 = vunpack.i.l.bf16 %v11296_v56  ;;  %v11298_v59 = vunpack.i.h.bf16 %v11296_v56 }
 0x77c   : > { %v6304_v35 = vadd.f32 %v16216_v21, %v6303_v41  ;;  %v6305_v61 = vpop.f32.mrb[41].mxu0  ;;  %v6513_v23 = vld [vmem:[#allocation2 + $0x38] sm:$0xff]  ;;  %v6514_v47 = vld [vmem:[#allocation2 + $0x40] sm:$0x3]  ;;  %v5922_v41 = vsel %vm566_vm0, %v11998_v44, %v11292_v20 }
 0x77d   : > { %v11454_v34 = vpack.i.bf16 %v6513_v23, %v6512_v55  ;;  %v6795_v62 = vrot.slane %v6513_v23, 2  ;;  %v6619_v38 = vrot.slane %v6513_v23, 1  ;;  %v6621_v22 = vrot.slane %v6514_v47, 1  ;;  %v11999_v61 = vld [vmem:[#allocation2 + $0x128] sm:$0xff] }
 0x77e   : > { %v6446_v40 = vmax.f32 %v6304_v35, 0.0  ;;  %6397 = vmatmul.mubr.f32.gmra.mrb[78].mxu0 %v6119_v54  ;;  %v6797_v42 = vrot.slane %v6514_v47, 2  ;;  %v11306_v49 = vpop.permute.xlu1 %11305  ;;  %v11302_v35 = vunpack.i.l.bf16 %v11301_v1  ;;  %v5923_v28 = vsel %vm566_vm0, %v11999_v61, %v11293_v9 }
 0x77f   : > { %v6308_v6 = vpop.f32.mrb[42].mxu0  ;;  %11455 = vrot.lane.b32.xlu1 %v11454_v34, %s20038_s23  ;;  %v6796_v0 = vsel %vm1641_vm5, %v6794_v48, %v6795_v62  ;;  %10247 = vmatprep.mubr.msk.f32.mxu0 %vm566_vm0, %v16121_v4  ;;  %v6620_v15 = vsel %vm1464_vm4, %v6618_v2, %v6619_v38  ;;  %v6622_v3 = vsel %vm1464_vm4, %v6619_v38, %v6621_v22  ;;  %v11303_v47 = vunpack.i.h.bf16 %v11301_v1  ;;  %v11311_v48 = vpop.permute.xlu0 %11310 }
 0x780   : > { %6478 = vst.msk [vmem:[#allocation2 + $0x49] sm:$0xff] %vm566_vm0, %v6446_v40  ;;  %v6310_v25 = vpop.f32.mrb[43].mxu0  ;;  %10256 = vmatprep.mubr.msk.f32.mxu1 %vm566_vm0, %v6796_v0  ;;  %v6309_v26 = vadd.f32 %v16216_v21, %v6308_v6  ;;  %v11459_v53 = vpack.i.bf16 %v6622_v3, %v6620_v15  ;;  %v16373_v5 = vsel %vm1641_vm5, %v6795_v62, %v6797_v42  ;;  %v11308_v13 = vunpack.i.h.bf16 %v11306_v49 }
 0x781   : > { %v11484_v27 = vpack.i.bf16 %v16373_v5, %v6796_v0  ;;  %v5955_v23 = vsel %vm20007_vm12, %v5922_v41, %v11297_v51  ;;  %v5956_v62 = vsel %vm20007_vm12, %v5923_v28, %v11298_v59  ;;  %v11312_v54 = vunpack.i.l.bf16 %v11311_v48 }
 0x782   : > { %v6447_v60 = vmax.f32 %v6309_v26, 0.0  ;;  %11460 = vrot.lane.b32.xlu0 %v11459_v53, %s12118_s22  ;;  %v5988_v22 = vsel %vm5963_vm13, %v5955_v23, %v11302_v35  ;;  %v5989_v6 = vsel %vm5963_vm13, %v5956_v62, %v11303_v47  ;;  %v11313_v15 = vunpack.i.h.bf16 %v11311_v48 }
 0x783   : > { %11465 = vrot.lane.b32.xlu1 %v16320_v32, %s12113_s18  ;;  %v6022_v42 = vsel %vm5996_vm14, %v5989_v6, %v11308_v13 }
 0x784   : > { %6479 = vst.msk [vmem:[#allocation2 + $0x51] sm:$0xff] %vm566_vm0, %v6447_v60 }
 0x786   : > { %11470 = vrot.lane.b32.xlu0 %v11449_v57, %s12112_s29 }
 0x787   : > { %11475 = vrot.lane.b32.xlu1 %v11454_v34, %s12115_s21  ;;  %v6515_v32 = vld [vmem:[#allocation2 + $0x48] sm:$0xff]  ;;  %v11307_v34 = vunpack.i.l.bf16 %v11306_v49  ;;  %v6055_v49 = vsel %vm6029_vm15, %v6022_v42, %v11313_v15 }
 0x788   : > { %v6313_v4 = vpop.f32.mrb[44].mxu0  ;;  %v6623_v63 = vrot.slane %v6515_v32, 1  ;;  %v6799_v2 = vrot.slane %v6515_v32, 2 }
 0x789   : > { %v6314_v8 = vadd.f32 %v16216_v21, %v6313_v4  ;;  %v6315_v58 = vpop.f32.mrb[45].mxu0  ;;  %v6021_v0 = vsel %vm5996_vm14, %v5988_v22, %v11307_v34 }
 0x78a   : > { %11480 = vrot.lane.b32.xlu0 %v11459_v53, %s20006_s30 }
 0x78b   : > { %v6448_v11 = vmax.f32 %v6314_v8, 0.0  ;;  %11485 = vrot.lane.b32.xlu1 %v11484_v27, %s20037_s20  ;;  %v6516_v37 = vld [vmem:[#allocation2 + $0x50] sm:$0xff]  ;;  %v6517_v45 = vld [vmem:[#allocation2 + $0x58] sm:$0x3] }
 0x78c   : > { %v6318_v36 = vpop.f32.mrb[46].mxu0  ;;  %v11489_v57 = vpack.i.bf16 %v6516_v37, %v6515_v32  ;;  %v6624_v39 = vrot.slane %v6516_v37, 1  ;;  %v6626_v7 = vrot.slane %v6517_v45, 1  ;;  %v6800_v18 = vrot.slane %v6516_v37, 2 }
 0x78d   : > { %6480 = vst.msk [vmem:[#allocation2 + $0x61] sm:$0xff] %vm566_vm0, %v6448_v11  ;;  %v6319_v52 = vadd.f32 %v16216_v21, %v6318_v36  ;;  %v6320_v31 = vpop.f32.mrb[47].mxu0  ;;  %v6802_v38 = vrot.slane %v6517_v45, 2 }
 0x78e   : > { %v6625_v43 = vsel %vm1464_vm4, %v6623_v63, %v6624_v39  ;;  %v6627_v29 = vsel %vm1464_vm4, %v6624_v39, %v6626_v7  ;;  %11490 = vrot.lane.b32.xlu0 %v11489_v57, %s20038_s23  ;;  %v16403_v56 = vsel %vm1641_vm5, %v6799_v2, %v6800_v18 }
 0x78f   : > { %v6449_v55 = vmax.f32 %v6319_v52, 0.0  ;;  %v16385_v17 = vpack.i.bf16 %v6627_v29, %v6625_v43 }
 0x791   : > { %6481 = vst.msk [vmem:[#allocation2 + $0x69] sm:$0xff] %vm566_vm0, %v6449_v55  ;;  %11495 = vrot.lane.b32.xlu1 %v16385_v17, %s12118_s22 }
 0x792   : > { %11500 = vrot.lane.b32.xlu0 %v11459_v53, %s12113_s18  ;;  %v16406_v53 = vsel %vm1641_vm5, %v6800_v18, %v6802_v38 }
 0x793   : > { %v11316_v40 = vpop.permute.xlu1 %11315  ;;  %v11519_v31 = vpack.i.bf16 %v16406_v53, %v16403_v56 }
 0x794   : > { %v11317_v25 = vunpack.i.l.bf16 %v11316_v40  ;;  %v6518_v26 = vld [vmem:[#allocation2 + $0x60] sm:$0xff]  ;;  %v11318_v1 = vunpack.i.h.bf16 %v11316_v40 }
 0x795   : > { %11505 = vrot.lane.b32.xlu1 %v11484_v27, %s12112_s29  ;;  %v6054_v27 = vsel %vm6029_vm15, %v6021_v0, %v11312_v54  ;;  %v6628_v32 = vrot.slane %v6518_v26, 1  ;;  %v6804_v35 = vrot.slane %v6518_v26, 2 }
 0x796   : > { %v11321_v60 = vpop.permute.xlu0 %11320  ;;  %11510 = vrot.lane.b32.xlu0 %v11489_v57, %s12115_s21  ;;  %v6087_v37 = vsel %vm6062_vm1, %v6054_v27, %v11317_v25  ;;  %v6088_v29 = vsel %vm6062_vm1, %v6055_v49, %v11318_v1 }
 0x797   : > { %v6323_v3 = vpop.f32.mrb[48].mxu0  ;;  %v11322_v11 = vunpack.i.l.bf16 %v11321_v60  ;;  %v11323_v63 = vunpack.i.h.bf16 %v11321_v60  ;;  %v11326_v61 = vpop.permute.xlu1 %11325 }
 0x798   : > { %v6324_v16 = vadd.f32 %v16216_v21, %v6323_v3  ;;  %v6325_v4 = vpop.f32.mrb[49].mxu0  ;;  %v6519_v8 = vld [vmem:[#allocation2 + $0x68] sm:$0xff]  ;;  %v6520_v58 = vld [vmem:[#allocation2 + $0x70] sm:$0x3] }
 0x799   : > { %v6629_v20 = vrot.slane %v6519_v8, 1  ;;  %11515 = vrot.lane.b32.xlu1 %v16385_v17, %s20006_s30  ;;  %v6631_v45 = vrot.slane %v6520_v58, 1  ;;  %v6120_v52 = vsel %vm6095_vm2, %v6087_v37, %v11322_v11  ;;  %v11524_v51 = vpack.i.bf16 %v6519_v8, %v6518_v26  ;;  %v12000_v11 = vld [vmem:[#allocation2 + $0x138] sm:$0xff] }
 0x79a   : > { %v6450_v36 = vmax.f32 %v6324_v16, 0.0  ;;  %6402 = vmatmul.mubr.f32.gmra.mrb[80].mxu0 %v6120_v52  ;;  %11520 = vrot.lane.b32.xlu0 %v11519_v31, %s20037_s20  ;;  %v6121_v44 = vsel %vm6095_vm2, %v6088_v29, %v11323_v63  ;;  %v6805_v41 = vrot.slane %v6519_v8, 2  ;;  %v11331_v62 = vpop.permute.xlu0 %11330  ;;  %v11327_v26 = vunpack.i.l.bf16 %v11326_v61  ;;  %v12001_v52 = vld [vmem:[#allocation2 + $0x140] sm:$0xff] }
 0x79b   : > { %v6328_v39 = vpop.f32.mrb[50].mxu0  ;;  %v6630_v57 = vsel %vm1464_vm4, %v6628_v32, %v6629_v20  ;;  %v6632_v59 = vsel %vm1464_vm4, %v6629_v20, %v6631_v45  ;;  %10248 = vmatprep.mubr.msk.f32.mxu0 %vm566_vm0, %v16124_v19  ;;  %v6807_v19 = vrot.slane %v6520_v58, 2  ;;  %v11336_v42 = vpop.permute.xlu1 %11335  ;;  %v11332_v60 = vunpack.i.l.bf16 %v11331_v62 }
 0x79c   : > { %6482 = vst.msk [vmem:[#allocation2 + $0x79] sm:$0xff] %vm566_vm0, %v6450_v36  ;;  %v6329_v7 = vadd.f32 %v16216_v21, %v6328_v39  ;;  %v6330_v9 = vpop.f32.mrb[51].mxu0  ;;  %v11529_v55 = vpack.i.bf16 %v6632_v59, %v6630_v57  ;;  %v16436_v34 = vsel %vm1641_vm5, %v6804_v35, %v6805_v41  ;;  %v11328_v58 = vunpack.i.h.bf16 %v11326_v61 }
 0x79d   : > { %11525 = vrot.lane.b32.xlu1 %v11524_v51, %s20038_s23  ;;  %v16439_v48 = vsel %vm1641_vm5, %v6805_v41, %v6807_v19  ;;  %v5924_v27 = vsel %vm566_vm0, %v12000_v11, %v11327_v26  ;;  %v11333_v32 = vunpack.i.h.bf16 %v11331_v62  ;;  %v11337_v20 = vunpack.i.l.bf16 %v11336_v42 }
 0x79e   : > { %v6451_v43 = vmax.f32 %v6329_v7, 0.0  ;;  %6407 = vmatmul.mubr.f32.gmra.mrb[82].mxu0 %v6121_v44  ;;  %11530 = vrot.lane.b32.xlu0 %v11529_v55, %s12118_s22  ;;  %v11554_v38 = vpack.i.bf16 %v16439_v48, %v16436_v34  ;;  %v11341_v8 = vpop.permute.xlu0 %11340  ;;  %v5957_v1 = vsel %vm20007_vm12, %v5924_v27, %v11332_v60  ;;  %v11338_v57 = vunpack.i.h.bf16 %v11336_v42 }
 0x79f   : > { %10249 = vmatprep.mubr.msk.f32.mxu0 %vm566_vm0, %v16169_v24  ;;  %v11342_v36 = vunpack.i.l.bf16 %v11341_v8  ;;  %v11346_v37 = vpop.permute.xlu1 %11345  ;;  %v5990_v7 = vsel %vm5963_vm13, %v5957_v1, %v11337_v20  ;;  %v11343_v59 = vunpack.i.h.bf16 %v11341_v8 }
 0x7a0   : > { %6483 = vst.msk [vmem:[#allocation2 + $0x81] sm:$0xff] %vm566_vm0, %v6451_v43  ;;  %v11347_v43 = vunpack.i.l.bf16 %v11346_v37 }
 0x7a1   : > { %11535 = vrot.lane.b32.xlu1 %v16385_v17, %s12113_s18  ;;  %v6023_v49 = vsel %vm5996_vm14, %v5990_v7, %v11342_v36 }
 0x7a2   : > { %11540 = vrot.lane.b32.xlu0 %v11519_v31, %s12112_s29  ;;  %v5925_v31 = vsel %vm566_vm0, %v12001_v52, %v11328_v58  ;;  %v6056_v26 = vsel %vm6029_vm15, %v6023_v49, %v11347_v43 }
 0x7a3   : > { %v6521_v24 = vld [vmem:[#allocation2 + $0x78] sm:$0xff]  ;;  %v5958_v39 = vsel %vm20007_vm12, %v5925_v31, %v11333_v32 }
 0x7a4   : > { %v6333_v28 = vpop.f32.mrb[52].mxu0  ;;  %v6633_v22 = vrot.slane %v6521_v24, 1  ;;  %v6809_v9 = vrot.slane %v6521_v24, 2 }
 0x7a5   : > { %v6334_v23 = vadd.f32 %v16216_v21, %v6333_v28  ;;  %v6335_v47 = vpop.f32.mrb[53].mxu0  ;;  %11545 = vrot.lane.b32.xlu1 %v11524_v51, %s12115_s21 }
 0x7a6   : > { %11550 = vrot.lane.b32.xlu0 %v11529_v55, %s20006_s30 }
 0x7a7   : > { %v6452_v13 = vmax.f32 %v6334_v23, 0.0  ;;  %v6522_v17 = vld [vmem:[#allocation2 + $0x80] sm:$0xff]  ;;  %v6523_v40 = vld [vmem:[#allocation2 + $0x88] sm:$0x3] }
 0x7a8   : > { %v6338_v18 = vpop.f32.mrb[54].mxu0  ;;  %v6634_v54 = vrot.slane %v6522_v17, 1  ;;  %v6636_v6 = vrot.slane %v6523_v40, 1  ;;  %v11559_v2 = vpack.i.bf16 %v6522_v17, %v6521_v24  ;;  %v6810_v45 = vrot.slane %v6522_v17, 2 }
 0x7a9   : > { %6484 = vst.msk [vmem:[#allocation2 + $0x91] sm:$0xff] %vm566_vm0, %v6452_v13  ;;  %v6339_v0 = vadd.f32 %v16216_v21, %v6338_v18  ;;  %v6340_v25 = vpop.f32.mrb[55].mxu0  ;;  %11555 = vrot.lane.b32.xlu1 %v11554_v38, %s20037_s20  ;;  %v6812_v63 = vrot.slane %v6523_v40, 2  ;;  %v5991_v13 = vsel %vm5963_vm13, %v5958_v39, %v11338_v57  ;;  %v11348_v40 = vunpack.i.h.bf16 %v11346_v37 }
 0x7aa   : > { %v6635_v15 = vsel %vm1464_vm4, %v6633_v22, %v6634_v54  ;;  %v6637_v3 = vsel %vm1464_vm4, %v6634_v54, %v6636_v6  ;;  %11560 = vrot.lane.b32.xlu0 %v11559_v2, %s20038_s23  ;;  %v6024_v6 = vsel %vm5996_vm14, %v5991_v13, %v11343_v59 }
 0x7ab   : > { %v6453_v16 = vmax.f32 %v6339_v0, 0.0  ;;  %v16450_v4 = vpack.i.bf16 %v6637_v3, %v6635_v15  ;;  %v16469_v35 = vsel %vm1641_vm5, %v6810_v45, %v6812_v63  ;;  %v6057_v27 = vsel %vm6029_vm15, %v6024_v6, %v11348_v40 }
 0x7ad   : > { %6485 = vst.msk [vmem:[#allocation2 + $0x99] sm:$0xff] %vm566_vm0, %v6453_v16  ;;  %11565 = vrot.lane.b32.xlu1 %v16450_v4, %s12118_s22 }
 0x7ae   : > { %11570 = vrot.lane.b32.xlu0 %v11529_v55, %s12113_s18  ;;  %v16466_v55 = vsel %vm1641_vm5, %v6809_v9, %v6810_v45 }
 0x7b0   : > { %v6524_v51 = vld [vmem:[#allocation2 + $0x90] sm:$0xff] }
 0x7b1   : > { %11575 = vrot.lane.b32.xlu1 %v11554_v38, %s12112_s29  ;;  %v6638_v47 = vrot.slane %v6524_v51, 1  ;;  %v11589_v38 = vpack.i.bf16 %v16469_v35, %v16466_v55  ;;  %v6814_v37 = vrot.slane %v6524_v51, 2 }
 0x7b2   : > { %11580 = vrot.lane.b32.xlu0 %v11559_v2, %s12115_s21 }
 0x7b3   : > { %v11351_v29 = vpop.permute.xlu0 %11350  ;;  %v6343_v44 = vpop.f32.mrb[56].mxu0 }
 0x7b4   : > { %v6344_v41 = vadd.f32 %v16216_v21, %v6343_v44  ;;  %v6345_v19 = vpop.f32.mrb[57].mxu0  ;;  %v6525_v61 = vld [vmem:[#allocation2 + $0x98] sm:$0xff]  ;;  %v6526_v28 = vld [vmem:[#allocation2 + $0xa0] sm:$0x3]  ;;  %v11352_v23 = vunpack.i.l.bf16 %v11351_v29  ;;  %v11353_v42 = vunpack.i.h.bf16 %v11351_v29 }
 0x7b5   : > { %v6639_v24 = vrot.slane %v6525_v61, 1  ;;  %v6641_v62 = vrot.slane %v6526_v28, 1  ;;  %11585 = vrot.lane.b32.xlu1 %v16450_v4, %s20006_s30  ;;  %v11594_v2 = vpack.i.bf16 %v6525_v61, %v6524_v51  ;;  %v6815_v20 = vrot.slane %v6525_v61, 2 }
 0x7b6   : > { %v6454_v17 = vmax.f32 %v6344_v41, 0.0  ;;  %v11356_v18 = vpop.permute.xlu1 %11355  ;;  %11590 = vrot.lane.b32.xlu0 %v11589_v38, %s20037_s20  ;;  %v6089_v60 = vsel %vm6062_vm1, %v6056_v26, %v11352_v23  ;;  %v6090_v32 = vsel %vm6062_vm1, %v6057_v27, %v11353_v42  ;;  %v6817_v1 = vrot.slane %v6526_v28, 2 }
 0x7b7   : > { %v6640_v22 = vsel %vm1464_vm4, %v6638_v47, %v6639_v24  ;;  %v6642_v54 = vsel %vm1464_vm4, %v6639_v24, %v6641_v62  ;;  %v11357_v0 = vunpack.i.l.bf16 %v11356_v18  ;;  %v6348_v25 = vpop.f32.mrb[58].mxu0  ;;  %v11358_v8 = vunpack.i.h.bf16 %v11356_v18  ;;  %v11361_v63 = vpop.permute.xlu0 %11360  ;;  %v12002_v47 = vld [vmem:[#allocation2 + $0x150] sm:$0xff] }
 0x7b8   : > { %6486 = vst.msk [vmem:[#allocation2 + $0xa9] sm:$0xff] %vm566_vm0, %v6454_v17  ;;  %v6349_v15 = vadd.f32 %v16216_v21, %v6348_v25  ;;  %v6350_v3 = vpop.f32.mrb[59].mxu0  ;;  %v11599_v16 = vpack.i.bf16 %v6642_v54, %v6640_v22  ;;  %v16503_v45 = vsel %vm1641_vm5, %v6815_v20, %v6817_v1  ;;  %v11362_v44 = vunpack.i.l.bf16 %v11361_v63  ;;  %v12003_v22 = vld [vmem:[#allocation2 + $0x158] sm:$0xff] }
 0x7b9   : > { %11595 = vrot.lane.b32.xlu1 %v11594_v2, %s20038_s23  ;;  %v6122_v58 = vsel %vm6095_vm2, %v6089_v60, %v11357_v0  ;;  %v6123_v36 = vsel %vm6095_vm2, %v6090_v32, %v11358_v8  ;;  %v11363_v19 = vunpack.i.h.bf16 %v11361_v63 }
 0x7ba   : > { %v6455_v11 = vmax.f32 %v6349_v15, 0.0  ;;  %6412 = vmatmul.mubr.f32.gmra.mrb[84].mxu0 %v6122_v58  ;;  %11600 = vrot.lane.b32.xlu0 %v11599_v16, %s12118_s22  ;;  %v11366_v57 = vpop.permute.xlu1 %11365  ;;  %v5926_v24 = vsel %vm566_vm0, %v12002_v47, %v11362_v44 }
 0x7bb   : > { %10250 = vmatprep.mubr.msk.f32.mxu0 %vm566_vm0, %v16172_v33  ;;  %v16500_v33 = vsel %vm1641_vm5, %v6814_v37, %v6815_v20  ;;  %v11371_v43 = vpop.permute.xlu0 %11370  ;;  %v11367_v41 = vunpack.i.l.bf16 %v11366_v57  ;;  %v11368_v62 = vunpack.i.h.bf16 %v11366_v57  ;;  %v5927_v54 = vsel %vm566_vm0, %v12003_v22, %v11363_v19 }
 0x7bc   : > { %6487 = vst.msk [vmem:[#allocation2 + $0xb1] sm:$0xff] %vm566_vm0, %v6455_v11  ;;  %v11372_v13 = vunpack.i.l.bf16 %v11371_v43  ;;  %v11373_v6 = vunpack.i.h.bf16 %v11371_v43 }
 0x7bd   : > { %11605 = vrot.lane.b32.xlu1 %v16450_v4, %s12113_s18  ;;  %v11624_v4 = vpack.i.bf16 %v16503_v45, %v16500_v33  ;;  %v5959_v17 = vsel %vm20007_vm12, %v5926_v24, %v11367_v41  ;;  %v5960_v3 = vsel %vm20007_vm12, %v5927_v54, %v11368_v62 }
 0x7be   : > { %6417 = vmatmul.mubr.f32.gmra.mrb[86].mxu0 %v6123_v36  ;;  %11610 = vrot.lane.b32.xlu0 %v11589_v38, %s12112_s29  ;;  %v11376_v61 = vpop.permute.xlu1 %11375  ;;  %v5992_v60 = vsel %vm5963_vm13, %v5959_v17, %v11372_v13  ;;  %v5993_v1 = vsel %vm5963_vm13, %v5960_v3, %v11373_v6  ;;  %v12005_v17 = vld [vmem:[#allocation2 + $0x170] sm:$0xff] }
 0x7bf   : > { %10251 = vmatprep.mubr.msk.f32.mxu0 %vm566_vm0, %v16248_v30  ;;  %v6527_v52 = vld [vmem:[#allocation2 + $0xa8] sm:$0xff]  ;;  %v11377_v40 = vunpack.i.l.bf16 %v11376_v61  ;;  %v11381_v18 = vpop.permute.xlu0 %11380 }
 0x7c0   : > { %v6643_v7 = vrot.slane %v6527_v52, 1  ;;  %v6819_v38 = vrot.slane %v6527_v52, 2  ;;  %v11382_v8 = vunpack.i.l.bf16 %v11381_v18 }
 0x7c1   : > { %11615 = vrot.lane.b32.xlu1 %v11594_v2, %s12115_s21  ;;  %v6025_v58 = vsel %vm5996_vm14, %v5992_v60, %v11377_v40 }
 0x7c2   : > { %11620 = vrot.lane.b32.xlu0 %v11599_v16, %s20006_s30 }
 0x7c3   : > { %v6528_v31 = vld [vmem:[#allocation2 + $0xb0] sm:$0xff]  ;;  %v6529_v39 = vld [vmem:[#allocation2 + $0xb8] sm:$0x3] }
 0x7c4   : > { %v11629_v30 = vpack.i.bf16 %v6528_v31, %v6527_v52  ;;  %v6644_v9 = vrot.slane %v6528_v31, 1  ;;  %v6646_v51 = vrot.slane %v6529_v39, 1  ;;  %v6820_v28 = vrot.slane %v6528_v31, 2 }
 0x7c5   : > { %11625 = vrot.lane.b32.xlu1 %v11624_v4, %s20037_s20  ;;  %v6822_v23 = vrot.slane %v6529_v39, 2  ;;  %v5893_v52 = vrot.slane %v16221_v50, 2  ;;  %v11383_v39 = vunpack.i.h.bf16 %v11381_v18 }
 0x7c6   : > { %v6645_v59 = vsel %vm1464_vm4, %v6643_v7, %v6644_v9  ;;  %v6647_v49 = vsel %vm1464_vm4, %v6644_v9, %v6646_v51  ;;  %11630 = vrot.lane.b32.xlu0 %v11629_v30, %s20038_s23  ;;  %v16524_v42 = vsel %vm1641_vm5, %v6819_v38, %v6820_v28  ;;  %v6058_v7 = vsel %vm6029_vm15, %v6025_v58, %v11382_v8 }
 0x7c7   : > { %v16512_v29 = vpack.i.bf16 %v6647_v49, %v6645_v59  ;;  %v16527_v15 = vsel %vm1641_vm5, %v6820_v28, %v6822_v23  ;;  %v12004_v23 = vld [vmem:[#allocation2 + $0x168] sm:$0xff] }
 0x7c8   : > { %v16537_v20 = vpack.i.bf16 %v16527_v15, %v16524_v42 }
 0x7c9   : > { %11635 = vrot.lane.b32.xlu1 %v16512_v29, %s12118_s22 }
 0x7ca   : > { %11640 = vrot.lane.b32.xlu0 %v11599_v16, %s12113_s18  ;;  %v11378_v16 = vunpack.i.h.bf16 %v11376_v61 }
 0x7cc   : > { %v6026_v31 = vsel %vm5996_vm14, %v5993_v1, %v11378_v16 }
 0x7cd   : > { %11645 = vrot.lane.b32.xlu1 %v11624_v4, %s12112_s29  ;;  %v5894_v4 = vrot.slane %v16218_v14, 2  ;;  %v6059_v28 = vsel %vm6029_vm15, %v6026_v31, %v11383_v39 }
 0x7ce   : > { %v6353_v0 = vpop.f32.mrb[60].mxu0  ;;  %11650 = vrot.lane.b32.xlu0 %v11629_v30, %s12115_s21 }
 0x7cf   : > { %v6354_v25 = vadd.f32 %v16216_v21, %v6353_v0  ;;  %v6355_v2 = vpop.f32.mrb[61].mxu0  ;;  %v5895_v13 = vsel %vm1641_vm5, %v5893_v52, %v5894_v4 }
 0x7d0   : > { %v11386_v26 = vpop.permute.xlu1 %11385 }
 0x7d1   : > { %v6456_v11 = vmax.f32 %v6354_v25, 0.0  ;;  %v11387_v27 = vunpack.i.l.bf16 %v11386_v26  ;;  %11655 = vrot.lane.b32.xlu1 %v16512_v29, %s20006_s30  ;;  %v11388_v9 = vunpack.i.h.bf16 %v11386_v26 }
 0x7d2   : > { %v6358_v32 = vpop.f32.mrb[62].mxu0  ;;  %11660 = vrot.lane.b32.xlu0 %v16537_v20, %s20037_s20 }
 0x7d3   : > { %6488 = vst.msk [vmem:[#allocation2 + $0xc1] sm:$0xff] %vm566_vm0, %v6456_v11  ;;  %v6359_v36 = vadd.f32 %v16216_v21, %v6358_v32  ;;  %v6360_v37 = vpop.f32.mrb[63].mxu0  ;;  %v11391_v63 = vpop.permute.xlu0 %11390  ;;  %v6091_v21 = vsel %vm6062_vm1, %v6058_v7, %v11387_v27  ;;  %v6092_v62 = vsel %vm6062_vm1, %v6059_v28, %v11388_v9  ;;  %v12006_v27 = vld [vmem:[#allocation2 + $0x1a8] sm:$0x3] }
 0x7d4   : > { %v11392_v57 = vunpack.i.l.bf16 %v11391_v63  ;;  %v11396_v30 = vpop.permute.xlu1 %11395  ;;  %v11393_v49 = vunpack.i.h.bf16 %v11391_v63  ;;  %v5896_v32 = vrot.slane %v12006_v27, 2 }
 0x7d5   : > { %v6457_v51 = vmax.f32 %v6359_v36, 0.0  ;;  %v11397_v59 = vunpack.i.l.bf16 %v11396_v30  ;;  %v11398_v43 = vunpack.i.h.bf16 %v11396_v30 }
 0x7d6   : > { %v6124_v50 = vsel %vm6095_vm2, %v6091_v21, %v11392_v57 }
 0x7d7   : > { %6489 = vst.msk [vmem:[#allocation2 + $0xc9] sm:$0xff] %vm566_vm0, %v6457_v51  ;;  %v11401_v44 = vpop.permute.xlu0 %11400  ;;  %6422 = vmatmul.mubr.f32.gmra.mrb[88].mxu0 %v6124_v50  ;;  %v5928_v47 = vsel %vm566_vm0, %v12004_v23, %v11397_v59  ;;  %v5929_v40 = vsel %vm566_vm0, %v12005_v17, %v11398_v43  ;;  %v5897_v43 = vsel %vm1641_vm5, %v5894_v4, %v5896_v32 }
 0x7d8   : > { %v11403_v41 = vunpack.i.h.bf16 %v11401_v44  ;;  %v11402_v19 = vunpack.i.l.bf16 %v11401_v44  ;;  %v11406_v61 = vpop.permute.xlu1 %11405  ;;  %10252 = vmatprep.mubr.msk.f32.mxu0 %vm566_vm0, %v16251_v46  ;;  %v6125_v46 = vsel %vm6095_vm2, %v6092_v62, %v11393_v49 }
 0x7d9   : > { %v11407_v24 = vunpack.i.l.bf16 %v11406_v61  ;;  %v11408_v38 = vunpack.i.h.bf16 %v11406_v61 }
 0x7da   : > { %v5961_v18 = vsel %vm20007_vm12, %v5928_v47, %v11402_v19  ;;  %v5962_v22 = vsel %vm20007_vm12, %v5929_v40, %v11403_v41  ;;  %v6530_v6 = vld [vmem:[#allocation2 + $0xc0] sm:$0xff] }
 0x7db   : > { %v11411_v54 = vpop.permute.xlu0 %11410  ;;  %6427 = vmatmul.mubr.f32.gmra.mrb[90].mxu0 %v6125_v46  ;;  %v5994_v26 = vsel %vm5963_vm13, %v5961_v18, %v11407_v24  ;;  %v5995_v60 = vsel %vm5963_vm13, %v5962_v22, %v11408_v38  ;;  %v6648_v11 = vrot.slane %v6530_v6, 1  ;;  %v6824_v4 = vrot.slane %v6530_v6, 2  ;;  %v12007_v38 = vld [vmem:[#allocation2] sm:$0xff] }
 0x7dc   : > { %v11413_v0 = vunpack.i.h.bf16 %v11411_v54  ;;  %v11412_v25 = vunpack.i.l.bf16 %v11411_v54  ;;  %v11416_v2 = vpop.permute.xlu1 %11415  ;;  %10253 = vmatprep.mubr.msk.f32.mxu0 %vm566_vm0, %v5895_v13  ;;  %v16608_v54 = vld [vmem:[%s19957_s7] ss:$0 sm:$0xff] }
 0x7dd   : > { %v11417_v3 = vunpack.i.l.bf16 %v11416_v2  ;;  %v11418_v1 = vunpack.i.h.bf16 %v11416_v2 }
 0x7de   : > { %v6027_v16 = vsel %vm5996_vm14, %v5994_v26, %v11412_v25  ;;  %v6531_v8 = vld [vmem:[#allocation2 + $0xc8] sm:$0xff]  ;;  %v6532_v58 = vld [vmem:[#allocation2 + $0xd0] sm:$0x3]  ;;  %v6028_v31 = vsel %vm5996_vm14, %v5995_v60, %v11413_v0 }
 0x7df   : > { %v11421_v36 = vpop.permute.xlu0 %11420  ;;  %v11664_v37 = vpack.i.bf16 %v6531_v8, %v6530_v6  ;;  %v6649_v63 = vrot.slane %v6531_v8, 1  ;;  %v6651_v52 = vrot.slane %v6532_v58, 1  ;;  %v6060_v59 = vsel %vm6029_vm15, %v6027_v16, %v11417_v3 }
 0x7e0   : > { %v11423_v39 = vunpack.i.h.bf16 %v11421_v36  ;;  %v11422_v57 = vunpack.i.l.bf16 %v11421_v36  ;;  %v11426_v30 = vpop.permute.xlu1 %11425  ;;  %v6061_v41 = vsel %vm6029_vm15, %v6028_v31, %v11418_v1  ;;  %v6825_v28 = vrot.slane %v6531_v8, 2  ;;  %v12009_v8 = vld [vmem:[#allocation2 + $0x8] sm:$0xff] }
 0x7e1   : > { %v11427_v7 = vunpack.i.l.bf16 %v11426_v30  ;;  %11665 = vrot.lane.b32.xlu1 %v11664_v37, %s20038_s23  ;;  %v6650_v9 = vsel %vm1464_vm4, %v6648_v11, %v6649_v63  ;;  %v6652_v51 = vsel %vm1464_vm4, %v6649_v63, %v6651_v52  ;;  %v11428_v50 = vunpack.i.h.bf16 %v11426_v30 }
 0x7e2   : > { %v16572_v21 = vpack.i.bf16 %v6652_v51, %v6650_v9  ;;  %v6093_v49 = vsel %vm6062_vm1, %v6060_v59, %v11422_v57  ;;  %v6094_v61 = vsel %vm6062_vm1, %v6061_v41, %v11423_v39  ;;  %v6827_v23 = vrot.slane %v6532_v58, 2 }
 0x7e3   : > { %v6126_v44 = vsel %vm6095_vm2, %v6093_v49, %v11427_v7  ;;  %v11431_v19 = vpop.permute.xlu0 %11430  ;;  %v6127_v47 = vsel %vm6095_vm2, %v6094_v61, %v11428_v50  ;;  %v16590_v24 = vsel %vm1641_vm5, %v6824_v4, %v6825_v28 }
 0x7e4   : > { %11670 = vrot.lane.b32.xlu0 %v16572_v21, %s12118_s22  ;;  %6432 = vmatmul.mubr.f32.gmra.mrb[92].mxu0 %v6126_v44  ;;  %v11436_v14 = vpop.permute.xlu1 %11435  ;;  %v16593_v62 = vsel %vm1641_vm5, %v6825_v28, %v6827_v23  ;;  %v11432_v13 = vunpack.i.l.bf16 %v11431_v19 }
 0x7e5   : > { %11675 = vrot.lane.b32.xlu1 %v16512_v29, %s12113_s18  ;;  %10254 = vmatprep.mubr.msk.f32.mxu0 %vm566_vm0, %v5897_v43  ;;  %v16598_v17 = vpack.i.bf16 %v16593_v62, %v16590_v24  ;;  %v11437_v40 = vunpack.i.l.bf16 %v11436_v14  ;;  %v11438_v2 = vunpack.i.h.bf16 %v11436_v14 }
 0x7e6   : > { %v7466_v46 = vsel %vm566_vm0, %v12007_v38, %v11432_v13 }
 0x7e7   : > { %v11441_v29 = vpop.permute.xlu0 %11440  ;;  %v7498_v26 = vsel %vm20007_vm12, %v7466_v46, %v11437_v40  ;;  %v12010_v40 = vld [vmem:[#allocation2 + $0x18] sm:$0xff] }
 0x7e8   : > { %11680 = vrot.lane.b32.xlu0 %v16537_v20, %s12112_s29  ;;  %6437 = vmatmul.mubr.f32.gmra.mrb[94].mxu0 %v6127_v47  ;;  %v11446_v18 = vpop.permute.xlu1 %11445  ;;  %v11433_v20 = vunpack.i.h.bf16 %v11431_v19  ;;  %v11442_v25 = vunpack.i.l.bf16 %v11441_v29  ;;  %v11443_v36 = vunpack.i.h.bf16 %v11441_v29 }
 0x7e9   : > { %11685 = vrot.lane.b32.xlu1 %v11664_v37, %s12115_s21  ;;  %v11447_v27 = vunpack.i.l.bf16 %v11446_v18  ;;  %v11448_v30 = vunpack.i.h.bf16 %v11446_v18 }
 0x7ea   : > { %v7467_v58 = vsel %vm566_vm0, %v12009_v8, %v11433_v20  ;;  %v7530_v37 = vsel %vm5963_vm13, %v7498_v26, %v11442_v25 }
 0x7eb   : > { %v11451_v3 = vpop.permute.xlu0 %11450  ;;  %v7499_v52 = vsel %vm20007_vm12, %v7467_v58, %v11438_v2  ;;  %v7562_v7 = vsel %vm5996_vm14, %v7530_v37, %v11447_v27 }
 0x7ec   : > { %11690 = vrot.lane.b32.xlu0 %v16572_v21, %s20006_s30  ;;  %v11452_v63 = vunpack.i.l.bf16 %v11451_v3  ;;  %v7531_v51 = vsel %vm5963_vm13, %v7499_v52, %v11443_v36  ;;  %v11453_v59 = vunpack.i.h.bf16 %v11451_v3 }
 0x7ed   : > { %11695 = vrot.lane.b32.xlu1 %v16598_v17, %s20037_s20  ;;  %v6363_v22 = vpop.f32.mrb[64].mxu0  ;;  %v7563_v23 = vsel %vm5996_vm14, %v7531_v51, %v11448_v30 }
 0x7ee   : > { %v6364_v6 = vadd.f32 %v16608_v54, %v6363_v22  ;;  %v6365_v0 = vpop.f32.mrb[65].mxu0  ;;  %v7594_v49 = vsel %vm6029_vm15, %v7562_v7, %v11452_v63  ;;  %v7595_v13 = vsel %vm6029_vm15, %v7563_v23, %v11453_v59 }
 0x7f0   : > { %v6458_v60 = vmax.f32 %v6364_v6, 0.0 }
 0x7f1   : > { %v11456_v16 = vpop.permute.xlu1 %11455  ;;  %v6368_v11 = vpop.f32.mrb[66].mxu0 }
 0x7f2   : > { %6490 = vst.msk [vmem:[#allocation2 + $0xd9] sm:$0xff] %vm566_vm0, %v6458_v60  ;;  %v6369_v32 = vadd.f32 %v16608_v54, %v6368_v11  ;;  %v6370_v1 = vpop.f32.mrb[67].mxu0  ;;  %v11457_v39 = vunpack.i.l.bf16 %v11456_v16  ;;  %v11458_v50 = vunpack.i.h.bf16 %v11456_v16  ;;  %v12011_v16 = vld [vmem:[#allocation2 + $0x20] sm:$0xff] }
 0x7f4   : > { %v6459_v31 = vmax.f32 %v6369_v32, 0.0  ;;  %v11461_v9 = vpop.permute.xlu0 %11460  ;;  %v7626_v41 = vsel %vm6062_vm1, %v7594_v49, %v11457_v39  ;;  %v7627_v38 = vsel %vm6062_vm1, %v7595_v13, %v11458_v50 }
 0x7f5   : > { %v11466_v57 = vpop.permute.xlu1 %11465  ;;  %v11462_v43 = vunpack.i.l.bf16 %v11461_v9  ;;  %v11463_v61 = vunpack.i.h.bf16 %v11461_v9 }
 0x7f6   : > { %6491 = vst.msk [vmem:[#allocation2 + $0xe1] sm:$0xff] %vm566_vm0, %v6459_v31  ;;  %v11467_v44 = vunpack.i.l.bf16 %v11466_v57  ;;  %v11468_v4 = vunpack.i.h.bf16 %v11466_v57 }
 0x7f7   : > { %v7658_v28 = vsel %vm6095_vm2, %v7626_v41, %v11462_v43  ;;  %v7659_v6 = vsel %vm6095_vm2, %v7627_v38, %v11463_v61 }
 0x7f8   : > { %v11471_v14 = vpop.permute.xlu0 %11470  ;;  %7844 = vmatmul.mubr.f32.vlgmr.msra.gmra.mrb[32].mxu1 %v7658_v28  ;;  %v7468_v18 = vsel %vm566_vm0, %v12010_v40, %v11467_v44  ;;  %v7469_v8 = vsel %vm566_vm0, %v12011_v16, %v11468_v4 }
 0x7f9   : > { %v11476_v19 = vpop.permute.xlu1 %11475  ;;  %v11472_v47 = vunpack.i.l.bf16 %v11471_v14  ;;  %10257 = vmatprep.mubr.msk.f32.mxu1 %vm566_vm0, %v16373_v5  ;;  %v6533_v29 = vld [vmem:[#allocation2 + $0xd8] sm:$0xff]  ;;  %v11473_v46 = vunpack.i.h.bf16 %v11471_v14 }
 0x7fa   : > { %v11477_v20 = vunpack.i.l.bf16 %v11476_v19  ;;  %v6653_v3 = vrot.slane %v6533_v29, 1  ;;  %v11478_v27 = vunpack.i.h.bf16 %v11476_v19  ;;  %v6829_v19 = vrot.slane %v6533_v29, 2 }
 0x7fb   : > { %v7500_v22 = vsel %vm20007_vm12, %v7468_v18, %v11472_v47  ;;  %v7501_v37 = vsel %vm20007_vm12, %v7469_v8, %v11473_v46  ;;  %v12012_v18 = vld [vmem:[#allocation2 + $0x30] sm:$0xff] }
 0x7fc   : > { %v11481_v26 = vpop.permute.xlu0 %11480  ;;  %7849 = vmatmul.mubr.f32.gmra.mrb[34].mxu1 %v7659_v6  ;;  %v7532_v32 = vsel %vm5963_vm13, %v7500_v22, %v11477_v20  ;;  %v7533_v51 = vsel %vm5963_vm13, %v7501_v37, %v11478_v27 }
 0x7fd   : > { %v11486_v0 = vpop.permute.xlu1 %11485  ;;  %v6534_v25 = vld [vmem:[#allocation2 + $0xe0] sm:$0xff]  ;;  %v6535_v2 = vld [vmem:[#allocation2 + $0xe8] sm:$0x3]  ;;  %v11482_v58 = vunpack.i.l.bf16 %v11481_v26  ;;  %10258 = vmatprep.mubr.msk.f32.mxu1 %vm566_vm0, %v16403_v56  ;;  %v11483_v63 = vunpack.i.h.bf16 %v11481_v26 }
 0x7fe   : > { %v11699_v5 = vpack.i.bf16 %v6534_v25, %v6533_v29  ;;  %v6654_v60 = vrot.slane %v6534_v25, 1  ;;  %v6656_v11 = vrot.slane %v6535_v2, 1  ;;  %v11487_v1 = vunpack.i.l.bf16 %v11486_v0 }
 0x7ff   : > { %v7564_v52 = vsel %vm5996_vm14, %v7532_v32, %v11482_v58  ;;  %v6830_v7 = vrot.slane %v6534_v25, 2  ;;  %v6832_v9 = vrot.slane %v6535_v2, 2  ;;  %v11488_v59 = vunpack.i.h.bf16 %v11486_v0 }
 0x800   : > { %11700 = vrot.lane.b32.xlu0 %v11699_v5, %s20038_s23  ;;  %v6655_v36 = vsel %vm1464_vm4, %v6653_v3, %v6654_v60  ;;  %v6657_v31 = vsel %vm1464_vm4, %v6654_v60, %v6656_v11  ;;  %v11491_v39 = vpop.permute.xlu0 %11490  ;;  %v7596_v43 = vsel %vm6029_vm15, %v7564_v52, %v11487_v1  ;;  %v7565_v50 = vsel %vm5996_vm14, %v7533_v51, %v11483_v63 }
 0x801   : > { %v16640_v57 = vpack.i.bf16 %v6657_v31, %v6655_v36  ;;  %v11492_v56 = vunpack.i.l.bf16 %v11491_v39  ;;  %v11493_v44 = vunpack.i.h.bf16 %v11491_v39  ;;  %v16652_v47 = vsel %vm1641_vm5, %v6829_v19, %v6830_v7 }
 0x802   : > { %v7597_v29 = vsel %vm6029_vm15, %v7565_v50, %v11488_v59 }
 0x803   : > { %v11496_v30 = vpop.permute.xlu1 %11495  ;;  %11705 = vrot.lane.b32.xlu1 %v16640_v57, %s12118_s22  ;;  %v7628_v41 = vsel %vm6062_vm1, %v7596_v43, %v11492_v56  ;;  %v7629_v38 = vsel %vm6062_vm1, %v7597_v29, %v11493_v44 }
 0x804   : > { %v11497_v49 = vunpack.i.l.bf16 %v11496_v30  ;;  %11710 = vrot.lane.b32.xlu0 %v16572_v21, %s12113_s18  ;;  %v11498_v61 = vunpack.i.h.bf16 %v11496_v30  ;;  %v11501_v28 = vpop.permute.xlu0 %11500  ;;  %v16655_v21 = vsel %vm1641_vm5, %v6830_v7, %v6832_v9 }
 0x805   : > { %v11502_v14 = vunpack.i.l.bf16 %v11501_v28  ;;  %v11503_v40 = vunpack.i.h.bf16 %v11501_v28  ;;  %v16669_v0 = vpack.i.bf16 %v16655_v21, %v16652_v47 }
 0x806   : > { %v7660_v23 = vsel %vm6095_vm2, %v7628_v41, %v11497_v49 }
 0x807   : > { %v11506_v4 = vpop.permute.xlu1 %11505  ;;  %7854 = vmatmul.mubr.f32.gmra.mrb[36].mxu1 %v7660_v23  ;;  %11715 = vrot.lane.b32.xlu1 %v16598_v17, %s12112_s29  ;;  %v7470_v20 = vsel %vm566_vm0, %v12012_v18, %v11502_v14  ;;  %v7661_v17 = vsel %vm6095_vm2, %v7629_v38, %v11498_v61  ;;  %v12014_v14 = vld [vmem:[#allocation2 + $0x48] sm:$0xff] }
 0x808   : > { %v11507_v13 = vunpack.i.l.bf16 %v11506_v4  ;;  %11720 = vrot.lane.b32.xlu0 %v11699_v5, %s12115_s21  ;;  %10259 = vmatprep.mubr.msk.f32.mxu1 %vm566_vm0, %v16406_v53  ;;  %v11508_v46 = vunpack.i.h.bf16 %v11506_v4  ;;  %v11511_v6 = vpop.permute.xlu0 %11510  ;;  %v12013_v5 = vld [vmem:[#allocation2 + $0x38] sm:$0xff] }
 0x809   : > { %v11512_v25 = vunpack.i.l.bf16 %v11511_v6  ;;  %v7471_v3 = vsel %vm566_vm0, %v12013_v5, %v11503_v40  ;;  %v11513_v60 = vunpack.i.h.bf16 %v11511_v6 }
 0x80a   : > { %v7502_v22 = vsel %vm20007_vm12, %v7470_v20, %v11507_v13  ;;  %v7503_v11 = vsel %vm20007_vm12, %v7471_v3, %v11508_v46  ;;  %v12015_v46 = vld [vmem:[#allocation2 + $0x50] sm:$0xff] }
 0x80b   : > { %v11516_v2 = vpop.permute.xlu1 %11515  ;;  %7859 = vmatmul.mubr.f32.gmra.mrb[38].mxu1 %v7661_v17  ;;  %11725 = vrot.lane.b32.xlu1 %v16640_v57, %s20006_s30  ;;  %v7534_v16 = vsel %vm5963_vm13, %v7502_v22, %v11512_v25  ;;  %v7535_v39 = vsel %vm5963_vm13, %v7503_v11, %v11513_v60 }
 0x80c   : > { %v11517_v26 = vunpack.i.l.bf16 %v11516_v2  ;;  %11730 = vrot.lane.b32.xlu0 %v16669_v0, %s20037_s20  ;;  %10260 = vmatprep.mubr.msk.f32.mxu1 %vm566_vm0, %v16436_v34  ;;  %v11518_v27 = vunpack.i.h.bf16 %v11516_v2  ;;  %v11521_v1 = vpop.permute.xlu0 %11520 }
 0x80d   : > { %v6373_v53 = vpop.f32.mrb[68].mxu0  ;;  %v11522_v36 = vunpack.i.l.bf16 %v11521_v1  ;;  %v11523_v56 = vunpack.i.h.bf16 %v11521_v1 }
 0x80e   : > { %v6374_v8 = vadd.f32 %v16608_v54, %v6373_v53  ;;  %v6375_v58 = vpop.f32.mrb[69].mxu0  ;;  %v7566_v32 = vsel %vm5996_vm14, %v7534_v16, %v11517_v26  ;;  %v7567_v9 = vsel %vm5996_vm14, %v7535_v39, %v11518_v27 }
 0x80f   : > { %v11526_v63 = vpop.permute.xlu1 %11525  ;;  %v7598_v7 = vsel %vm6029_vm15, %v7566_v32, %v11522_v36  ;;  %v7599_v23 = vsel %vm6029_vm15, %v7567_v9, %v11523_v56 }
 0x810   : > { %v6460_v37 = vmax.f32 %v6374_v8, 0.0  ;;  %v11527_v52 = vunpack.i.l.bf16 %v11526_v63  ;;  %v11528_v51 = vunpack.i.h.bf16 %v11526_v63  ;;  %v11531_v59 = vpop.permute.xlu0 %11530 }
 0x811   : > { %v6378_v31 = vpop.f32.mrb[70].mxu0  ;;  %v11532_v43 = vunpack.i.l.bf16 %v11531_v59  ;;  %v11533_v19 = vunpack.i.h.bf16 %v11531_v59 }
 0x812   : > { %6492 = vst.msk [vmem:[#allocation2 + $0xf1] sm:$0xff] %vm566_vm0, %v6460_v37  ;;  %v6379_v34 = vadd.f32 %v16608_v54, %v6378_v31  ;;  %v6380_v30 = vpop.f32.mrb[71].mxu0  ;;  %v7630_v49 = vsel %vm6062_vm1, %v7598_v7, %v11527_v52  ;;  %v7631_v29 = vsel %vm6062_vm1, %v7599_v23, %v11528_v51 }
 0x813   : > { %v11536_v44 = vpop.permute.xlu1 %11535  ;;  %v7662_v28 = vsel %vm6095_vm2, %v7630_v49, %v11532_v43  ;;  %v7663_v17 = vsel %vm6095_vm2, %v7631_v29, %v11533_v19 }
 0x814   : > { %v6461_v50 = vmax.f32 %v6379_v34, 0.0  ;;  %v11537_v41 = vunpack.i.l.bf16 %v11536_v44  ;;  %v11538_v61 = vunpack.i.h.bf16 %v11536_v44  ;;  %v11541_v13 = vpop.permute.xlu0 %11540  ;;  %7864 = vmatmul.mubr.f32.gmra.mrb[40].mxu1 %v7662_v28 }
 0x815   : > { %v11542_v40 = vunpack.i.l.bf16 %v11541_v13  ;;  %10261 = vmatprep.mubr.msk.f32.mxu1 %vm566_vm0, %v16439_v48  ;;  %v11543_v20 = vunpack.i.h.bf16 %v11541_v13 }
 0x816   : > { %6493 = vst.msk [vmem:[#allocation2 + $0xf9] sm:$0xff] %vm566_vm0, %v6461_v50  ;;  %v7472_v4 = vsel %vm566_vm0, %v12014_v14, %v11537_v41  ;;  %v7473_v22 = vsel %vm566_vm0, %v12015_v46, %v11538_v61 }
 0x817   : > { %v11546_v18 = vpop.permute.xlu1 %11545  ;;  %v7504_v6 = vsel %vm20007_vm12, %v7472_v4, %v11542_v40  ;;  %v7505_v3 = vsel %vm20007_vm12, %v7473_v22, %v11543_v20  ;;  %v12016_v4 = vld [vmem:[#allocation2 + $0x60] sm:$0xff] }
 0x818   : > { %v11547_v38 = vunpack.i.l.bf16 %v11546_v18  ;;  %v11548_v2 = vunpack.i.h.bf16 %v11546_v18  ;;  %v11551_v53 = vpop.permute.xlu0 %11550  ;;  %7869 = vmatmul.mubr.f32.gmra.mrb[42].mxu1 %v7663_v17  ;;  %v12017_v17 = vld [vmem:[#allocation2 + $0x68] sm:$0xff] }
 0x819   : > { %v16698_v25 = vld [vmem:[#allocation2 + $0xf0] sm:$0xff]  ;;  %v11552_v5 = vunpack.i.l.bf16 %v11551_v53  ;;  %10262 = vmatprep.mubr.msk.f32.mxu1 %vm566_vm0, %v16466_v55  ;;  %v11553_v11 = vunpack.i.h.bf16 %v11551_v53 }
 0x81a   : > { %v7536_v26 = vsel %vm5963_vm13, %v7504_v6, %v11547_v38  ;;  %v6658_v58 = vrot.slane %v16698_v25, 1  ;;  %v7537_v36 = vsel %vm5963_vm13, %v7505_v3, %v11548_v2  ;;  %v6834_v18 = vrot.slane %v16698_v25, 2 }
 0x81b   : > { %v11556_v48 = vpop.permute.xlu1 %11555  ;;  %v7568_v27 = vsel %vm5996_vm14, %v7536_v26, %v11552_v5  ;;  %v7569_v7 = vsel %vm5996_vm14, %v7537_v36, %v11553_v11 }
 0x81c   : > { %v11557_v60 = vunpack.i.l.bf16 %v11556_v48  ;;  %v11558_v55 = vunpack.i.h.bf16 %v11556_v48  ;;  %v11561_v37 = vpop.permute.xlu0 %11560 }
 0x81d   : > { %v16704_v16 = vld [vmem:[#allocation2 + $0xf8] sm:$0xff]  ;;  %v6538_v8 = vld [vmem:[#allocation2 + $0x100] sm:$0x3]  ;;  %v11562_v31 = vunpack.i.l.bf16 %v11561_v37  ;;  %v11563_v9 = vunpack.i.h.bf16 %v11561_v37 }
 0x81e   : > { %v11734_v32 = vpack.i.bf16 %v16704_v16, %v16698_v25  ;;  %v6659_v1 = vrot.slane %v16704_v16, 1  ;;  %v6661_v63 = vrot.slane %v6538_v8, 1  ;;  %v7600_v52 = vsel %vm6029_vm15, %v7568_v27, %v11557_v60 }
 0x81f   : > { %v11566_v39 = vpop.permute.xlu1 %11565  ;;  %v7632_v59 = vsel %vm6062_vm1, %v7600_v52, %v11562_v31  ;;  %v7601_v44 = vsel %vm6029_vm15, %v7569_v7, %v11558_v55  ;;  %v6835_v61 = vrot.slane %v16704_v16, 2  ;;  %v6837_v28 = vrot.slane %v6538_v8, 2 }
 0x820   : > { %11735 = vrot.lane.b32.xlu1 %v11734_v32, %s20038_s23  ;;  %v6660_v56 = vsel %vm1464_vm4, %v6658_v58, %v6659_v1  ;;  %v11567_v34 = vunpack.i.l.bf16 %v11566_v39  ;;  %v6662_v30 = vsel %vm1464_vm4, %v6659_v1, %v6661_v63  ;;  %v11568_v49 = vunpack.i.h.bf16 %v11566_v39  ;;  %v11571_v43 = vpop.permute.xlu0 %11570 }
 0x821   : > { %v16717_v51 = vpack.i.bf16 %v6662_v30, %v6660_v56  ;;  %v11572_v41 = vunpack.i.l.bf16 %v11571_v43  ;;  %v11573_v23 = vunpack.i.h.bf16 %v11571_v43  ;;  %v7633_v40 = vsel %vm6062_vm1, %v7601_v44, %v11563_v9 }
 0x822   : > { %v7664_v50 = vsel %vm6095_vm2, %v7632_v59, %v11567_v34  ;;  %v7665_v46 = vsel %vm6095_vm2, %v7633_v40, %v11568_v49  ;;  %v16740_v6 = vsel %vm1641_vm5, %v6835_v61, %v6837_v28 }
 0x823   : > { %11740 = vrot.lane.b32.xlu0 %v16717_v51, %s12118_s22  ;;  %v11576_v19 = vpop.permute.xlu1 %11575  ;;  %7874 = vmatmul.mubr.f32.gmra.mrb[44].mxu1 %v7664_v50  ;;  %v7474_v13 = vsel %vm566_vm0, %v12016_v4, %v11572_v41  ;;  %v7475_v2 = vsel %vm566_vm0, %v12017_v17, %v11573_v23 }
 0x824   : > { %v11577_v14 = vunpack.i.l.bf16 %v11576_v19  ;;  %11745 = vrot.lane.b32.xlu1 %v16640_v57, %s12113_s18  ;;  %10263 = vmatprep.mubr.msk.f32.mxu1 %vm566_vm0, %v16469_v35  ;;  %v11578_v29 = vunpack.i.h.bf16 %v11576_v19  ;;  %v11581_v38 = vpop.permute.xlu0 %11580  ;;  %v16737_v35 = vsel %vm1641_vm5, %v6834_v18, %v6835_v61  ;;  %v12018_v19 = vld [vmem:[#allocation2 + $0x78] sm:$0xff]  ;;  %v12019_v18 = vld [vmem:[#allocation2 + $0x80] sm:$0xff] }
 0x825   : > { %v11582_v22 = vunpack.i.l.bf16 %v11581_v38  ;;  %v11583_v26 = vunpack.i.h.bf16 %v11581_v38  ;;  %v16751_v8 = vpack.i.bf16 %v16740_v6, %v16737_v35 }
 0x826   : > { %v7506_v20 = vsel %vm20007_vm12, %v7474_v13, %v11577_v14 }
 0x827   : > { %11750 = vrot.lane.b32.xlu0 %v16669_v0, %s12112_s29  ;;  %v11586_v57 = vpop.permute.xlu1 %11585  ;;  %7879 = vmatmul.mubr.f32.gmra.mrb[46].mxu1 %v7665_v46  ;;  %v7507_v0 = vsel %vm20007_vm12, %v7475_v2, %v11578_v29  ;;  %v7538_v5 = vsel %vm5963_vm13, %v7506_v20, %v11582_v22 }
 0x828   : > { %v11587_v53 = vunpack.i.l.bf16 %v11586_v57  ;;  %11755 = vrot.lane.b32.xlu1 %v11734_v32, %s12115_s21  ;;  %10264 = vmatprep.mubr.msk.f32.mxu1 %vm566_vm0, %v16500_v33  ;;  %v11588_v48 = vunpack.i.h.bf16 %v11586_v57  ;;  %v11591_v60 = vpop.permute.xlu0 %11590  ;;  %v7539_v27 = vsel %vm5963_vm13, %v7507_v0, %v11583_v26 }
 0x829   : > { %v11592_v58 = vunpack.i.l.bf16 %v11591_v60  ;;  %v11593_v33 = vunpack.i.h.bf16 %v11591_v60 }
 0x82a   : > { %v7570_v3 = vsel %vm5996_vm14, %v7538_v5, %v11587_v53  ;;  %v7571_v36 = vsel %vm5996_vm14, %v7539_v27, %v11588_v48 }
 0x82b   : > { %11760 = vrot.lane.b32.xlu0 %v16717_v51, %s20006_s30  ;;  %v11596_v11 = vpop.permute.xlu1 %11595  ;;  %v7602_v63 = vsel %vm6029_vm15, %v7570_v3, %v11592_v58  ;;  %v7603_v59 = vsel %vm6029_vm15, %v7571_v36, %v11593_v33 }
 0x82c   : > { %v11597_v32 = vunpack.i.l.bf16 %v11596_v11  ;;  %11765 = vrot.lane.b32.xlu1 %v16751_v8, %s20037_s20  ;;  %v11598_v52 = vunpack.i.h.bf16 %v11596_v11  ;;  %v11601_v31 = vpop.permute.xlu0 %11600 }
 0x82d   : > { %v6383_v1 = vpop.f32.mrb[72].mxu0  ;;  %v11602_v56 = vunpack.i.l.bf16 %v11601_v31  ;;  %v11603_v49 = vunpack.i.h.bf16 %v11601_v31 }
 0x82e   : > { %v6384_v55 = vadd.f32 %v16608_v54, %v6383_v1  ;;  %v6385_v37 = vpop.f32.mrb[73].mxu0  ;;  %v7634_v39 = vsel %vm6062_vm1, %v7602_v63, %v11597_v32  ;;  %v7635_v23 = vsel %vm6062_vm1, %v7603_v59, %v11598_v52 }
 0x82f   : > { %v11606_v30 = vpop.permute.xlu1 %11605  ;;  %v7666_v50 = vsel %vm6095_vm2, %v7634_v39, %v11602_v56  ;;  %v7667_v22 = vsel %vm6095_vm2, %v7635_v23, %v11603_v49 }
 0x830   : > { %v6462_v34 = vmax.f32 %v6384_v55, 0.0  ;;  %v11607_v7 = vunpack.i.l.bf16 %v11606_v30  ;;  %v11608_v43 = vunpack.i.h.bf16 %v11606_v30  ;;  %v11611_v28 = vpop.permute.xlu0 %11610  ;;  %7884 = vmatmul.mubr.f32.gmra.mrb[48].mxu1 %v7666_v50 }
 0x831   : > { %v6388_v9 = vpop.f32.mrb[74].mxu0  ;;  %v11612_v14 = vunpack.i.l.bf16 %v11611_v28  ;;  %10265 = vmatprep.mubr.msk.f32.mxu1 %vm566_vm0, %v16503_v45  ;;  %v11613_v29 = vunpack.i.h.bf16 %v11611_v28 }
 0x832   : > { %6494 = vst.msk [vmem:[#allocation2 + $0x109] sm:$0xff] %vm566_vm0, %v6462_v34  ;;  %v6389_v44 = vadd.f32 %v16608_v54, %v6388_v9  ;;  %v6390_v41 = vpop.f32.mrb[75].mxu0  ;;  %v7476_v61 = vsel %vm566_vm0, %v12018_v19, %v11607_v7  ;;  %v7477_v20 = vsel %vm566_vm0, %v12019_v18, %v11608_v43 }
 0x833   : > { %v11616_v13 = vpop.permute.xlu1 %11615  ;;  %v7508_v38 = vsel %vm20007_vm12, %v7476_v61, %v11612_v14  ;;  %v7509_v26 = vsel %vm20007_vm12, %v7477_v20, %v11613_v29  ;;  %v12020_v29 = vld [vmem:[#allocation2 + $0x90] sm:$0xff] }
 0x834   : > { %v6463_v4 = vmax.f32 %v6389_v44, 0.0  ;;  %v11617_v40 = vunpack.i.l.bf16 %v11616_v13  ;;  %v11618_v46 = vunpack.i.h.bf16 %v11616_v13  ;;  %v11621_v17 = vpop.permute.xlu0 %11620  ;;  %7889 = vmatmul.mubr.f32.gmra.mrb[50].mxu1 %v7667_v22 }
 0x835   : > { %v11622_v2 = vunpack.i.l.bf16 %v11621_v17  ;;  %10266 = vmatprep.mubr.msk.f32.mxu1 %vm566_vm0, %v16524_v42  ;;  %v11623_v53 = vunpack.i.h.bf16 %v11621_v17 }
 0x836   : > { %6495 = vst.msk [vmem:[#allocation2 + $0x111] sm:$0xff] %vm566_vm0, %v6463_v4  ;;  %v7540_v57 = vsel %vm5963_vm13, %v7508_v38, %v11617_v40  ;;  %v7541_v5 = vsel %vm5963_vm13, %v7509_v26, %v11618_v46 }
 0x837   : > { %v11626_v45 = vpop.permute.xlu1 %11625  ;;  %v7572_v48 = vsel %vm5996_vm14, %v7540_v57, %v11622_v2  ;;  %v7573_v32 = vsel %vm5996_vm14, %v7541_v5, %v11623_v53 }
 0x838   : > { %v11627_v0 = vunpack.i.l.bf16 %v11626_v45  ;;  %v11628_v60 = vunpack.i.h.bf16 %v11626_v45  ;;  %v11631_v58 = vpop.permute.xlu0 %11630  ;;  %v12021_v45 = vld [vmem:[#allocation2 + $0x98] sm:$0xff] }
 0x839   : > { %v16780_v3 = vld [vmem:[#allocation2 + $0x108] sm:$0xff]  ;;  %v11632_v27 = vunpack.i.l.bf16 %v11631_v58  ;;  %v11633_v42 = vunpack.i.h.bf16 %v11631_v58 }
 0x83a   : > { %v7604_v11 = vsel %vm6029_vm15, %v7572_v48, %v11627_v0  ;;  %v6663_v37 = vrot.slane %v16780_v3, 1  ;;  %v7605_v30 = vsel %vm6029_vm15, %v7573_v32, %v11628_v60 }
 0x83b   : > { %v11636_v33 = vpop.permute.xlu1 %11635  ;;  %v7636_v63 = vsel %vm6062_vm1, %v7604_v11, %v11632_v27  ;;  %v7637_v49 = vsel %vm6062_vm1, %v7605_v30, %v11633_v42 }
 0x83c   : > { %v11637_v1 = vunpack.i.l.bf16 %v11636_v33  ;;  %v11638_v56 = vunpack.i.h.bf16 %v11636_v33  ;;  %v11641_v41 = vpop.permute.xlu0 %11640 }
 0x83d   : > { %v16784_v36 = vld [vmem:[#allocation2 + $0x110] sm:$0xff]  ;;  %v6541_v55 = vld [vmem:[#allocation2 + $0x118] sm:$0x3]  ;;  %v11643_v4 = vunpack.i.h.bf16 %v11641_v41 }
 0x83e   : > { %v11769_v52 = vpack.i.bf16 %v16784_v36, %v16780_v3  ;;  %v6664_v31 = vrot.slane %v16784_v36, 1  ;;  %v6666_v39 = vrot.slane %v6541_v55, 1  ;;  %v7668_v34 = vsel %vm6095_vm2, %v7636_v63, %v11637_v1 }
 0x83f   : > { %7894 = vmatmul.mubr.f32.gmra.mrb[52].mxu1 %v7668_v34  ;;  %v7669_v43 = vsel %vm6095_vm2, %v7637_v49, %v11638_v56  ;;  %v6840_v50 = vrot.slane %v16784_v36, 2  ;;  %v6842_v44 = vrot.slane %v6541_v55, 2  ;;  %v11646_v28 = vpop.permute.xlu1 %11645  ;;  %v7479_v26 = vsel %vm566_vm0, %v12021_v45, %v11643_v4  ;;  %v12022_v45 = vld [vmem:[#allocation2 + $0xa8] sm:$0xff] }
 0x840   : > { %11770 = vrot.lane.b32.xlu0 %v11769_v52, %s20038_s23  ;;  %v6665_v7 = vsel %vm1464_vm4, %v6663_v37, %v6664_v31  ;;  %v6667_v9 = vsel %vm1464_vm4, %v6664_v31, %v6666_v39  ;;  %10267 = vmatprep.mubr.msk.f32.mxu1 %vm566_vm0, %v16527_v15  ;;  %v6839_v15 = vrot.slane %v16780_v3, 2  ;;  %v11651_v23 = vpop.permute.xlu0 %11650  ;;  %v11648_v46 = vunpack.i.h.bf16 %v11646_v28 }
 0x841   : > { %v16798_v59 = vpack.i.bf16 %v6667_v9, %v6665_v7  ;;  %v16816_v61 = vsel %vm1641_vm5, %v6840_v50, %v6842_v44  ;;  %v11652_v18 = vunpack.i.l.bf16 %v11651_v23  ;;  %v11653_v0 = vunpack.i.h.bf16 %v11651_v23 }
 0x842   : > { %v16813_v19 = vsel %vm1641_vm5, %v6839_v15, %v6840_v50  ;;  %v7511_v27 = vsel %vm20007_vm12, %v7479_v26, %v11648_v46 }
 0x843   : > { %11775 = vrot.lane.b32.xlu1 %v16798_v59, %s12118_s22  ;;  %7899 = vmatmul.mubr.f32.gmra.mrb[54].mxu1 %v7669_v43  ;;  %v11656_v14 = vpop.permute.xlu1 %11655  ;;  %v7543_v37 = vsel %vm5963_vm13, %v7511_v27, %v11653_v0  ;;  %v12023_v27 = vld [vmem:[#allocation2 + $0xb0] sm:$0xff] }
 0x844   : > { %11780 = vrot.lane.b32.xlu0 %v16717_v51, %s12113_s18  ;;  %10268 = vmatprep.mubr.msk.f32.mxu1 %vm566_vm0, %v16590_v24  ;;  %v16821_v51 = vpack.i.bf16 %v16816_v61, %v16813_v19  ;;  %v11642_v24 = vunpack.i.l.bf16 %v11641_v41  ;;  %v11657_v57 = vunpack.i.l.bf16 %v11656_v14  ;;  %v11661_v17 = vpop.permute.xlu0 %11660  ;;  %v11658_v33 = vunpack.i.h.bf16 %v11656_v14 }
 0x845   : > { %v11662_v48 = vunpack.i.l.bf16 %v11661_v17  ;;  %v11663_v63 = vunpack.i.h.bf16 %v11661_v17 }
 0x846   : > { %v7478_v40 = vsel %vm566_vm0, %v12020_v29, %v11642_v24  ;;  %v7575_v39 = vsel %vm5996_vm14, %v7543_v37, %v11658_v33 }
 0x847   : > { %11785 = vrot.lane.b32.xlu1 %v16751_v8, %s12112_s29  ;;  %v11647_v8 = vunpack.i.l.bf16 %v11646_v28  ;;  %v7607_v9 = vsel %vm6029_vm15, %v7575_v39, %v11663_v63 }
 0x848   : > { %11790 = vrot.lane.b32.xlu0 %v11769_v52, %s12115_s21 }
 0x849   : > { %v7510_v22 = vsel %vm20007_vm12, %v7478_v40, %v11647_v8 }
 0x84a   : > { %v7542_v5 = vsel %vm5963_vm13, %v7510_v22, %v11652_v18 }
 0x84b   : > { %11795 = vrot.lane.b32.xlu1 %v16798_v59, %s20006_s30  ;;  %v7574_v32 = vsel %vm5996_vm14, %v7542_v5, %v11657_v57 }
 0x84c   : > { %11800 = vrot.lane.b32.xlu0 %v16821_v51, %s20037_s20  ;;  %v7606_v31 = vsel %vm6029_vm15, %v7574_v32, %v11662_v48 }
 0x84d   : > { %v6393_v13 = vpop.f32.mrb[76].mxu0 }
 0x84e   : > { %v6394_v20 = vadd.f32 %v16608_v54, %v6393_v13  ;;  %v6395_v38 = vpop.f32.mrb[77].mxu0 }
 0x850   : > { %v6464_v2 = vmax.f32 %v6394_v20, 0.0 }
 0x851   : > { %v6398_v53 = vpop.f32.mrb[78].mxu0 }
 0x852   : > { %6496 = vst.msk [vmem:[#allocation2 + $0x121] sm:$0xff] %vm566_vm0, %v6464_v2  ;;  %v6399_v60 = vadd.f32 %v16608_v54, %v6398_v53  ;;  %v6400_v58 = vpop.f32.mrb[79].mxu0 }
 0x853   : > { %v11666_v11 = vpop.permute.xlu1 %11665 }
 0x854   : > { %v11667_v42 = vunpack.i.l.bf16 %v11666_v11  ;;  %v6465_v1 = vmax.f32 %v6399_v60, 0.0  ;;  %v11668_v56 = vunpack.i.h.bf16 %v11666_v11 }
 0x856   : > { %v11671_v55 = vpop.permute.xlu0 %11670  ;;  %6497 = vst.msk [vmem:[#allocation2 + $0x129] sm:$0xff] %vm566_vm0, %v6465_v1  ;;  %v7638_v34 = vsel %vm6062_vm1, %v7606_v31, %v11667_v42  ;;  %v7639_v49 = vsel %vm6062_vm1, %v7607_v9, %v11668_v56 }
 0x857   : > { %v11672_v52 = vunpack.i.l.bf16 %v11671_v55  ;;  %v11673_v30 = vunpack.i.h.bf16 %v11671_v55  ;;  %v11676_v4 = vpop.permute.xlu1 %11675 }
 0x858   : > { %v11677_v46 = vunpack.i.l.bf16 %v11676_v4  ;;  %v11678_v17 = vunpack.i.h.bf16 %v11676_v4 }
 0x859   : > { %v7670_v7 = vsel %vm6095_vm2, %v7638_v34, %v11672_v52  ;;  %v16846_v43 = vld [vmem:[#allocation2 + $0x120] sm:$0xff]  ;;  %v7671_v50 = vsel %vm6095_vm2, %v7639_v49, %v11673_v30 }
 0x85a   : > { %7904 = vmatmul.mubr.f32.gmra.mrb[56].mxu1 %v7670_v7  ;;  %v6844_v29 = vrot.slane %v16846_v43, 2  ;;  %v11681_v40 = vpop.permute.xlu0 %11680  ;;  %v7481_v33 = vsel %vm566_vm0, %v12023_v27, %v11678_v17 }
 0x85b   : > { %10269 = vmatprep.mubr.msk.f32.mxu1 %vm566_vm0, %v16593_v62  ;;  %v6668_v62 = vrot.slane %v16846_v43, 1  ;;  %v11686_v38 = vpop.permute.xlu1 %11685  ;;  %v11683_v5 = vunpack.i.h.bf16 %v11681_v40 }
 0x85c   : > { %v11687_v26 = vunpack.i.l.bf16 %v11686_v38  ;;  %v11688_v1 = vunpack.i.h.bf16 %v11686_v38 }
 0x85d   : > { %v16849_v44 = vld [vmem:[#allocation2 + $0x128] sm:$0xff]  ;;  %v6544_v41 = vld [vmem:[#allocation2 + $0x130] sm:$0x3]  ;;  %v7513_v31 = vsel %vm20007_vm12, %v7481_v33, %v11683_v5  ;;  %v12024_v33 = vld [vmem:[#allocation2 + $0xc0] sm:$0xff] }
 0x85e   : > { %7909 = vmatmul.mubr.f32.gmra.mrb[58].mxu1 %v7671_v50  ;;  %v11804_v15 = vpack.i.bf16 %v16849_v44, %v16846_v43  ;;  %v6669_v28 = vrot.slane %v16849_v44, 1  ;;  %v6671_v23 = vrot.slane %v6544_v41, 1  ;;  %v6845_v13 = vrot.slane %v16849_v44, 2  ;;  %v11691_v57 = vpop.permute.xlu0 %11690 }
 0x85f   : > { %10270 = vmatprep.mubr.msk.f32.mxu1 %vm566_vm0, %v16652_v47  ;;  %v6847_v47 = vrot.slane %v6544_v41, 2  ;;  %v11692_v60 = vunpack.i.l.bf16 %v11691_v57  ;;  %v11696_v58 = vpop.permute.xlu1 %11695  ;;  %v11693_v39 = vunpack.i.h.bf16 %v11691_v57  ;;  %v7545_v9 = vsel %vm5963_vm13, %v7513_v31, %v11688_v1 }
 0x860   : > { %11805 = vrot.lane.b32.xlu1 %v11804_v15, %s20038_s23  ;;  %v6670_v24 = vsel %vm1464_vm4, %v6668_v62, %v6669_v28  ;;  %v6672_v8 = vsel %vm1464_vm4, %v6669_v28, %v6671_v23  ;;  %v16869_v18 = vsel %vm1641_vm5, %v6844_v29, %v6845_v13  ;;  %v11697_v37 = vunpack.i.l.bf16 %v11696_v58 }
 0x861   : > { %v16860_v14 = vpack.i.bf16 %v6672_v8, %v6670_v24  ;;  %v16872_v20 = vsel %vm1641_vm5, %v6845_v13, %v6847_v47  ;;  %v11698_v49 = vunpack.i.h.bf16 %v11696_v58 }
 0x862   : > { %v16879_v22 = vpack.i.bf16 %v16872_v20, %v16869_v18 }
 0x863   : > { %11810 = vrot.lane.b32.xlu0 %v16860_v14, %s12118_s22 }
 0x864   : > { %11815 = vrot.lane.b32.xlu1 %v16798_v59, %s12113_s18  ;;  %v11682_v59 = vunpack.i.l.bf16 %v11681_v40 }
 0x867   : > { %11820 = vrot.lane.b32.xlu0 %v16821_v51, %s12112_s29  ;;  %v7480_v51 = vsel %vm566_vm0, %v12022_v45, %v11677_v46 }
 0x868   : > { %11825 = vrot.lane.b32.xlu1 %v11804_v15, %s12115_s21  ;;  %v7512_v48 = vsel %vm20007_vm12, %v7480_v51, %v11682_v59  ;;  %v7577_v15 = vsel %vm5996_vm14, %v7545_v9, %v11693_v39 }
 0x869   : > { %v7544_v55 = vsel %vm5963_vm13, %v7512_v48, %v11687_v26  ;;  %v7609_v8 = vsel %vm6029_vm15, %v7577_v15, %v11698_v49 }
 0x86a   : > { %v7576_v56 = vsel %vm5996_vm14, %v7544_v55, %v11692_v60 }
 0x86b   : > { %11830 = vrot.lane.b32.xlu0 %v16860_v14, %s20006_s30  ;;  %v7608_v41 = vsel %vm6029_vm15, %v7576_v56, %v11697_v37  ;;  %v12025_v56 = vld [vmem:[#allocation2 + $0xc8] sm:$0xff] }
 0x86c   : > { %11835 = vrot.lane.b32.xlu1 %v16879_v22, %s20037_s20 }
 0x86d   : > { %v6403_v2 = vpop.f32.mrb[80].mxu0 }
 0x86e   : > { %v6404_v53 = vadd.f32 %v16608_v54, %v6403_v2  ;;  %v6405_v0 = vpop.f32.mrb[81].mxu0 }
 0x870   : > { %v6466_v11 = vmax.f32 %v6404_v53, 0.0 }
 0x871   : > { %v6408_v32 = vpop.f32.mrb[82].mxu0 }
 0x872   : > { %v11701_v42 = vpop.permute.xlu0 %11700  ;;  %6498 = vst.msk [vmem:[#allocation2 + $0x139] sm:$0xff] %vm566_vm0, %v6466_v11  ;;  %v6409_v63 = vadd.f32 %v16608_v54, %v6408_v32  ;;  %v6410_v52 = vpop.f32.mrb[83].mxu0 }
 0x873   : > { %v11702_v34 = vunpack.i.l.bf16 %v11701_v42  ;;  %v11703_v62 = vunpack.i.h.bf16 %v11701_v42 }
 0x874   : > { %v6467_v30 = vmax.f32 %v6409_v63, 0.0 }
 0x875   : > { %v11706_v7 = vpop.permute.xlu1 %11705  ;;  %v7640_v28 = vsel %vm6062_vm1, %v7608_v41, %v11702_v34  ;;  %v7641_v4 = vsel %vm6062_vm1, %v7609_v8, %v11703_v62 }
 0x876   : > { %6499 = vst.msk [vmem:[#allocation2 + $0x141] sm:$0xff] %vm566_vm0, %v6467_v30  ;;  %v11707_v50 = vunpack.i.l.bf16 %v11706_v7  ;;  %v11708_v23 = vunpack.i.h.bf16 %v11706_v7  ;;  %v11711_v2 = vpop.permute.xlu0 %11710 }
 0x877   : > { %v11712_v60 = vunpack.i.l.bf16 %v11711_v2  ;;  %v11713_v27 = vunpack.i.h.bf16 %v11711_v2 }
 0x878   : > { %v7672_v24 = vsel %vm6095_vm2, %v7640_v28, %v11707_v50  ;;  %v7673_v13 = vsel %vm6095_vm2, %v7641_v4, %v11708_v23 }
 0x879   : > { %7914 = vmatmul.mubr.f32.gmra.mrb[60].mxu1 %v7672_v24  ;;  %v16905_v47 = vld [vmem:[#allocation2 + $0x138] sm:$0xff]  ;;  %v11716_v26 = vpop.permute.xlu1 %11715  ;;  %v7482_v32 = vsel %vm566_vm0, %v12024_v33, %v11712_v60  ;;  %v7483_v34 = vsel %vm566_vm0, %v12025_v56, %v11713_v27 }
 0x87a   : > { %10271 = vmatprep.mubr.msk.f32.mxu1 %vm566_vm0, %v16655_v21  ;;  %v6673_v21 = vrot.slane %v16905_v47, 1  ;;  %v6849_v53 = vrot.slane %v16905_v47, 2  ;;  %v11721_v0 = vpop.permute.xlu0 %11720  ;;  %v11717_v58 = vunpack.i.l.bf16 %v11716_v26  ;;  %v11718_v37 = vunpack.i.h.bf16 %v11716_v26 }
 0x87b   : > { %v11722_v42 = vunpack.i.l.bf16 %v11721_v0  ;;  %v11723_v9 = vunpack.i.h.bf16 %v11721_v0 }
 0x87c   : > { %v7514_v63 = vsel %vm20007_vm12, %v7482_v32, %v11717_v58  ;;  %v7515_v62 = vsel %vm20007_vm12, %v7483_v34, %v11718_v37 }
 0x87d   : > { %7919 = vmatmul.mubr.f32.gmra.mrb[62].mxu1 %v7673_v13  ;;  %v16907_v29 = vld [vmem:[#allocation2 + $0x140] sm:$0xff]  ;;  %v6547_v40 = vld [vmem:[#allocation2 + $0x148] sm:$0x3]  ;;  %v11726_v11 = vpop.permute.xlu1 %11725  ;;  %v7546_v49 = vsel %vm5963_vm13, %v7514_v63, %v11722_v42  ;;  %v7547_v13 = vsel %vm5963_vm13, %v7515_v62, %v11723_v9 }
 0x87e   : > { %10272 = vmatprep.mubr.msk.f32.mxu1 %vm566_vm0, %v16737_v35  ;;  %v11839_v38 = vpack.i.bf16 %v16907_v29, %v16905_v47  ;;  %v6674_v46 = vrot.slane %v16907_v29, 1  ;;  %v6676_v59 = vrot.slane %v6547_v40, 1  ;;  %v6850_v35 = vrot.slane %v16907_v29, 2  ;;  %v11731_v31 = vpop.permute.xlu0 %11730 }
 0x87f   : > { %v6852_v51 = vrot.slane %v6547_v40, 2  ;;  %v11727_v52 = vunpack.i.l.bf16 %v11726_v11  ;;  %v11732_v50 = vunpack.i.l.bf16 %v11731_v31  ;;  %v11728_v28 = vunpack.i.h.bf16 %v11726_v11 }
 0x880   : > { %11840 = vrot.lane.b32.xlu0 %v11839_v38, %s20038_s23  ;;  %v6675_v57 = vsel %vm1464_vm4, %v6673_v21, %v6674_v46  ;;  %v6677_v17 = vsel %vm1464_vm4, %v6674_v46, %v6676_v59  ;;  %v16929_v5 = vsel %vm1641_vm5, %v6849_v53, %v6850_v35  ;;  %v11733_v40 = vunpack.i.h.bf16 %v11731_v31 }
 0x881   : > { %v16918_v45 = vpack.i.bf16 %v6677_v17, %v6675_v57  ;;  %v16932_v48 = vsel %vm1641_vm5, %v6850_v35, %v6852_v51  ;;  %v7578_v23 = vsel %vm5996_vm14, %v7546_v49, %v11727_v52  ;;  %v7579_v46 = vsel %vm5996_vm14, %v7547_v13, %v11728_v28 }
 0x882   : > { %v7610_v21 = vsel %vm6029_vm15, %v7578_v23, %v11732_v50  ;;  %v7611_v35 = vsel %vm6029_vm15, %v7579_v46, %v11733_v40  ;;  %v12028_v40 = vld [vmem:[#allocation2 + $0xe0] sm:$0xff] }
 0x883   : > { %11845 = vrot.lane.b32.xlu1 %v16918_v45, %s12118_s22 }
 0x884   : > { %11850 = vrot.lane.b32.xlu0 %v16860_v14, %s12113_s18  ;;  %v16937_v14 = vpack.i.bf16 %v16932_v48, %v16929_v5 }
 0x887   : > { %11855 = vrot.lane.b32.xlu1 %v16879_v22, %s12112_s29 }
 0x888   : > { %11860 = vrot.lane.b32.xlu0 %v11839_v38, %s12115_s21 }
 0x88b   : > { %11865 = vrot.lane.b32.xlu1 %v16918_v45, %s20006_s30 }
 0x88c   : > { %11870 = vrot.lane.b32.xlu0 %v16937_v14, %s20037_s20 }
 0x88d   : > { %v6413_v22 = vpop.f32.mrb[84].mxu0 }
 0x88e   : > { %v6414_v1 = vadd.f32 %v16608_v54, %v6413_v22  ;;  %v6415_v55 = vpop.f32.mrb[85].mxu0  ;;  %v16952_v54 = vld [vmem:[%s19957_s7] ss:$0 sm:$0xff] }
 0x890   : > { %v6468_v39 = vmax.f32 %v6414_v1, 0.0 }
 0x891   : > { %v6418_v30 = vpop.f32.mrb[86].mxu0 }
 0x892   : > { %v11736_v7 = vpop.permute.xlu1 %11735  ;;  %6500 = vst.msk [vmem:[#allocation2 + $0x151] sm:$0xff] %vm566_vm0, %v6468_v39  ;;  %v6419_v41 = vadd.f32 %v16952_v54, %v6418_v30  ;;  %v6420_v15 = vpop.f32.mrb[87].mxu0 }
 0x893   : > { %v11737_v24 = vunpack.i.l.bf16 %v11736_v7  ;;  %v11738_v59 = vunpack.i.h.bf16 %v11736_v7 }
 0x894   : > { %v6469_v8 = vmax.f32 %v6419_v41, 0.0 }
 0x895   : > { %v11741_v4 = vpop.permute.xlu0 %11740  ;;  %v7642_v57 = vsel %vm6062_vm1, %v7610_v21, %v11737_v24  ;;  %v7643_v51 = vsel %vm6062_vm1, %v7611_v35, %v11738_v59 }
 0x896   : > { %6501 = vst.msk [vmem:[#allocation2 + $0x159] sm:$0xff] %vm566_vm0, %v6469_v8  ;;  %v11742_v38 = vunpack.i.l.bf16 %v11741_v4  ;;  %v11743_v17 = vunpack.i.h.bf16 %v11741_v4  ;;  %v11746_v32 = vpop.permute.xlu1 %11745 }
 0x897   : > { %v11747_v39 = vunpack.i.l.bf16 %v11746_v32  ;;  %v11748_v49 = vunpack.i.h.bf16 %v11746_v32 }
 0x898   : > { %v7674_v2 = vsel %vm6095_vm2, %v7642_v57, %v11742_v38  ;;  %v7675_v53 = vsel %vm6095_vm2, %v7643_v51, %v11743_v17 }
 0x899   : > { %7924 = vmatmul.mubr.f32.gmra.mrb[64].mxu1 %v7674_v2  ;;  %v16967_v26 = vld [vmem:[#allocation2 + $0x150] sm:$0xff]  ;;  %v11751_v55 = vpop.permute.xlu0 %11750  ;;  %v7485_v38 = vsel %vm566_vm0, %v12028_v40, %v11748_v49 }
 0x89a   : > { %10273 = vmatprep.mubr.msk.f32.mxu1 %vm566_vm0, %v16740_v6  ;;  %v6678_v6 = vrot.slane %v16967_v26, 1  ;;  %v6854_v37 = vrot.slane %v16967_v26, 2  ;;  %v11756_v31 = vpop.permute.xlu1 %11755  ;;  %v11752_v56 = vunpack.i.l.bf16 %v11751_v55  ;;  %v11753_v62 = vunpack.i.h.bf16 %v11751_v55 }
 0x89b   : > { %v11757_v41 = vunpack.i.l.bf16 %v11756_v31  ;;  %v11758_v21 = vunpack.i.h.bf16 %v11756_v31 }
 0x89c   : > { %v7517_v2 = vsel %vm20007_vm12, %v7485_v38, %v11753_v62 }
 0x89d   : > { %7929 = vmatmul.mubr.f32.gmra.mrb[66].mxu1 %v7675_v53  ;;  %v16970_v0 = vld [vmem:[#allocation2 + $0x158] sm:$0xff]  ;;  %v6550_v60 = vld [vmem:[#allocation2 + $0x160] sm:$0x3]  ;;  %v11761_v30 = vpop.permute.xlu0 %11760 }
 0x89e   : > { %10274 = vmatprep.mubr.msk.f32.mxu1 %vm566_vm0, %v16813_v19  ;;  %v11874_v58 = vpack.i.bf16 %v16970_v0, %v16967_v26  ;;  %v6679_v11 = vrot.slane %v16970_v0, 1  ;;  %v6681_v27 = vrot.slane %v6550_v60, 1  ;;  %v6855_v1 = vrot.slane %v16970_v0, 2  ;;  %v11766_v24 = vpop.permute.xlu1 %11765 }
 0x89f   : > { %v6857_v19 = vrot.slane %v6550_v60, 2  ;;  %v11762_v23 = vunpack.i.l.bf16 %v11761_v30  ;;  %v11767_v59 = vunpack.i.l.bf16 %v11766_v24  ;;  %v11763_v35 = vunpack.i.h.bf16 %v11761_v30 }
 0x8a0   : > { %11875 = vrot.lane.b32.xlu1 %v11874_v58, %s20038_s23  ;;  %v6680_v22 = vsel %vm1464_vm4, %v6678_v6, %v6679_v11  ;;  %v6682_v33 = vsel %vm1464_vm4, %v6679_v11, %v6681_v27  ;;  %v16990_v63 = vsel %vm1641_vm5, %v6854_v37, %v6855_v1  ;;  %v11768_v6 = vunpack.i.h.bf16 %v11766_v24 }
 0x8a1   : > { %v16981_v42 = vpack.i.bf16 %v6682_v33, %v6680_v22  ;;  %v16993_v52 = vsel %vm1641_vm5, %v6855_v1, %v6857_v19 }
 0x8a3   : > { %11880 = vrot.lane.b32.xlu0 %v16981_v42, %s12118_s22 }
 0x8a4   : > { %11885 = vrot.lane.b32.xlu1 %v16918_v45, %s12113_s18  ;;  %v17000_v45 = vpack.i.bf16 %v16993_v52, %v16990_v63 }
 0x8a7   : > { %11890 = vrot.lane.b32.xlu0 %v16937_v14, %s12112_s29  ;;  %v12027_v14 = vld [vmem:[#allocation2 + $0xd8] sm:$0xff] }
 0x8a8   : > { %11895 = vrot.lane.b32.xlu1 %v11874_v58, %s12115_s21  ;;  %v7484_v50 = vsel %vm566_vm0, %v12027_v14, %v11747_v39  ;;  %v7549_v58 = vsel %vm5963_vm13, %v7517_v2, %v11758_v21 }
 0x8a9   : > { %v7516_v28 = vsel %vm20007_vm12, %v7484_v50, %v11752_v56  ;;  %v7581_v22 = vsel %vm5996_vm14, %v7549_v58, %v11763_v35 }
 0x8aa   : > { %v6423_v34 = vpop.f32.mrb[88].mxu0  ;;  %v7548_v46 = vsel %vm5963_vm13, %v7516_v28, %v11757_v41  ;;  %v7613_v56 = vsel %vm6029_vm15, %v7581_v22, %v11768_v6  ;;  %v17077_v22 = vld [vmem:[%s19959_s9] ss:$0 sm:$0xff] }
 0x8ab   : > { %v6424_v7 = vadd.f32 %v16952_v54, %v6423_v34  ;;  %v6425_v9 = vpop.f32.mrb[89].mxu0  ;;  %11900 = vrot.lane.b32.xlu0 %v16981_v42, %s20006_s30  ;;  %v7580_v51 = vsel %vm5996_vm14, %v7548_v46, %v11762_v23 }
 0x8ac   : > { %11905 = vrot.lane.b32.xlu1 %v17000_v45, %s20037_s20  ;;  %v7612_v27 = vsel %vm6029_vm15, %v7580_v51, %v11767_v59 }
 0x8ad   : > { %v6470_v15 = vmax.f32 %v6424_v7, 0.0 }
 0x8ae   : > { %v6428_v8 = vpop.f32.mrb[90].mxu0 }
 0x8af   : > { %6502 = vst.msk [vmem:[#allocation2 + $0x169] sm:$0xff] %vm566_vm0, %v6470_v15  ;;  %v6429_v4 = vadd.f32 %v16952_v54, %v6428_v8  ;;  %v6430_v13 = vpop.f32.mrb[91].mxu0 }
 0x8b1   : > { %v6471_v57 = vmax.f32 %v6429_v4, 0.0 }
 0x8b2   : > { %v11771_v17 = vpop.permute.xlu0 %11770 }
 0x8b3   : > { %v11772_v53 = vunpack.i.l.bf16 %v11771_v17  ;;  %6503 = vst.msk [vmem:[#allocation2 + $0x171] sm:$0xff] %vm566_vm0, %v6471_v57  ;;  %v11773_v33 = vunpack.i.h.bf16 %v11771_v17 }
 0x8b5   : > { %v11776_v60 = vpop.permute.xlu1 %11775  ;;  %v7644_v32 = vsel %vm6062_vm1, %v7612_v27, %v11772_v53  ;;  %v7645_v7 = vsel %vm6062_vm1, %v7613_v56, %v11773_v33 }
 0x8b6   : > { %v11777_v11 = vunpack.i.l.bf16 %v11776_v60  ;;  %v11778_v1 = vunpack.i.h.bf16 %v11776_v60  ;;  %v17022_v39 = vld [vmem:[#allocation2 + $0x168] sm:$0xff]  ;;  %v11781_v21 = vpop.permute.xlu0 %11780 }
 0x8b7   : > { %v6433_v19 = vpop.f32.mrb[92].mxu0  ;;  %v6683_v41 = vrot.slane %v17022_v39, 1 }
 0x8b8   : > { %v7676_v55 = vsel %vm6095_vm2, %v7644_v32, %v11777_v11  ;;  %v6434_v37 = vadd.f32 %v16952_v54, %v6433_v19  ;;  %v6435_v31 = vpop.f32.mrb[93].mxu0  ;;  %v7677_v50 = vsel %vm6095_vm2, %v7645_v7, %v11778_v1  ;;  %v11783_v32 = vunpack.i.h.bf16 %v11781_v21 }
 0x8b9   : > { %7934 = vmatmul.mubr.f32.gmra.mrb[68].mxu1 %v7676_v55  ;;  %v11786_v17 = vpop.permute.xlu1 %11785 }
 0x8ba   : > { %10275 = vmatprep.mubr.msk.f32.mxu1 %vm566_vm0, %v16816_v61  ;;  %v6472_v34 = vmax.f32 %v6434_v37, 0.0  ;;  %v17027_v30 = vld [vmem:[#allocation2 + $0x170] sm:$0xff]  ;;  %v6553_v9 = vld [vmem:[#allocation2 + $0x178] sm:$0x3]  ;;  %v11791_v58 = vpop.permute.xlu0 %11790  ;;  %v11787_v27 = vunpack.i.l.bf16 %v11786_v17  ;;  %v11788_v37 = vunpack.i.h.bf16 %v11786_v17 }
 0x8bb   : > { %v6438_v49 = vpop.f32.mrb[94].mxu0  ;;  %v11909_v14 = vpack.i.bf16 %v17027_v30, %v17022_v39  ;;  %v6684_v15 = vrot.slane %v17027_v30, 1  ;;  %v6686_v28 = vrot.slane %v6553_v9, 1  ;;  %v6860_v13 = vrot.slane %v17027_v30, 2 }
 0x8bc   : > { %6504 = vst.msk [vmem:[#allocation2 + $0x181] sm:$0xff] %vm566_vm0, %v6472_v34  ;;  %v6439_v61 = vadd.f32 %v16952_v54, %v6438_v49  ;;  %v6440_v62 = vpop.f32.mrb[95].mxu0  ;;  %v6862_v40 = vrot.slane %v6553_v9, 2  ;;  %v6859_v54 = vrot.slane %v17022_v39, 2  ;;  %v11792_v31 = vunpack.i.l.bf16 %v11791_v58 }
 0x8bd   : > { %7939 = vmatmul.mubr.f32.gmra.mrb[70].mxu1 %v7677_v50  ;;  %11910 = vrot.lane.b32.xlu0 %v11909_v14, %s20038_s23  ;;  %v6685_v23 = vsel %vm1464_vm4, %v6683_v41, %v6684_v15  ;;  %v6687_v8 = vsel %vm1464_vm4, %v6684_v15, %v6686_v28  ;;  %v11796_v19 = vpop.permute.xlu1 %11795  ;;  %v11793_v50 = vunpack.i.h.bf16 %v11791_v58  ;;  %v17092_v28 = vld [vmem:[#allocation2 + $0x198] sm:$0xff] }
 0x8be   : > { %10276 = vmatprep.mubr.msk.f32.mxu1 %vm566_vm0, %v16869_v18  ;;  %v6473_v24 = vmax.f32 %v6439_v61, 0.0  ;;  %v11914_v4 = vpack.i.bf16 %v6687_v8, %v6685_v23  ;;  %v17049_v18 = vsel %vm1641_vm5, %v6859_v54, %v6860_v13  ;;  %v17052_v38 = vsel %vm1641_vm5, %v6860_v13, %v6862_v40  ;;  %v11801_v9 = vpop.permute.xlu0 %11800  ;;  %v17094_v23 = vld [vmem:[#allocation2 + $0x1a0] sm:$0xff] }
 0x8bf   : > { %v11939_v59 = vpack.i.bf16 %v17052_v38, %v17049_v18  ;;  %v11797_v7 = vunpack.i.l.bf16 %v11796_v19  ;;  %v11798_v40 = vunpack.i.h.bf16 %v11796_v19  ;;  %v7360_v17 = vrot.slane %v17092_v28, 1 }
 0x8c0   : > { %6505 = vst.msk [vmem:[#allocation2 + $0x189] sm:$0xff] %vm566_vm0, %v6473_v24  ;;  %11915 = vrot.lane.b32.xlu1 %v11914_v4, %s12118_s22  ;;  %v11802_v24 = vunpack.i.l.bf16 %v11801_v9 }
 0x8c1   : > { %11920 = vrot.lane.b32.xlu0 %v16981_v42, %s12113_s18 }
 0x8c3   : > { %v17057_v46 = vld [vmem:[#allocation2 + $0x180] sm:$0xff] }
 0x8c4   : > { %11925 = vrot.lane.b32.xlu1 %v17000_v45, %s12112_s29  ;;  %v7059_v2 = vrot.slane %v17057_v46, 1  ;;  %v11782_v45 = vunpack.i.l.bf16 %v11781_v21 }
 0x8c5   : > { %11930 = vrot.lane.b32.xlu0 %v11909_v14, %s12115_s21  ;;  %v7487_v14 = vsel %vm566_vm0, %v16704_v16, %v11783_v32 }
 0x8c6   : > { %v7486_v1 = vsel %vm566_vm0, %v16698_v25, %v11782_v45  ;;  %v7519_v15 = vsel %vm20007_vm12, %v7487_v14, %v11788_v37  ;;  %v17106_v45 = vld [vmem:[#allocation2 + $0x1a8] sm:$0x3] }
 0x8c7   : > { %v17061_v42 = vld [vmem:[#allocation2 + $0x188] sm:$0xff]  ;;  %v17063_v57 = vld [vmem:[#allocation2 + $0x190] sm:$0x3]  ;;  %v7518_v56 = vsel %vm20007_vm12, %v7486_v1, %v11787_v27 }
 0x8c8   : > { %v7060_v35 = vrot.slane %v17061_v42, 1  ;;  %v7062_v51 = vrot.slane %v17063_v57, 1  ;;  %11935 = vrot.lane.b32.xlu1 %v11914_v4, %s20006_s30  ;;  %v11944_v6 = vpack.i.bf16 %v17061_v42, %v17057_v46  ;;  %v7550_v61 = vsel %vm5963_vm13, %v7518_v56, %v11792_v31 }
 0x8c9   : > { %11940 = vrot.lane.b32.xlu0 %v11939_v59, %s20037_s20  ;;  %v7161_v13 = vrot.slane %v17061_v42, 2  ;;  %v7582_v16 = vsel %vm5996_vm14, %v7550_v61, %v11797_v7 }
 0x8ca   : > { %v7061_v53 = vsel %vm1464_vm4, %v7059_v2, %v7060_v35  ;;  %v7063_v60 = vsel %vm1464_vm4, %v7060_v35, %v7062_v51  ;;  %v7361_v2 = vrot.slane %v17094_v23, 1  ;;  %v7551_v35 = vsel %vm5963_vm13, %v7519_v15, %v11793_v50 }
 0x8cb   : > { %v11949_v11 = vpack.i.bf16 %v7063_v60, %v7061_v53  ;;  %v7845_v33 = vpop.f32.mrb[32].mxu1  ;;  %v11803_v51 = vunpack.i.h.bf16 %v11801_v9  ;;  %v7614_v58 = vsel %vm6029_vm15, %v7582_v16, %v11802_v24 }
 0x8cc   : > { %11945 = vrot.lane.b32.xlu1 %v11944_v6, %s20038_s23  ;;  %v7847_v55 = vpop.f32.mrb[33].mxu1  ;;  %v7846_v34 = vadd.f32 %v17077_v22, %v7845_v33  ;;  %v7362_v19 = vsel %vm1464_vm4, %v7360_v17, %v7361_v2 }
 0x8cd   : > { %11950 = vrot.lane.b32.xlu0 %v11949_v11, %s12118_s22  ;;  %v7363_v55 = vrot.slane %v17106_v45, 1 }
 0x8ce   : > { %v8004_v8 = vmax.f32 %v7846_v34, 0.0 }
 0x8cf   : > { %v7850_v49 = vpop.f32.mrb[34].mxu1 }
 0x8d0   : > { %11955 = vrot.lane.b32.xlu1 %v11914_v4, %s12113_s18  ;;  %v7851_v25 = vadd.f32 %v17077_v22, %v7850_v49  ;;  %v7852_v41 = vpop.f32.mrb[35].mxu1  ;;  %s10067_s18 = scalar_lea.sflag [#allocation4], %s554_s3 }
 0x8d1   : > { %11960 = vrot.lane.b32.xlu0 %v11939_v59, %s12112_s29  ;;  %v7160_v59 = vrot.slane %v17057_v46, 2  ;;  %v7583_v46 = vsel %vm5996_vm14, %v7551_v35, %v11798_v40  ;;  %s19908_s29 = scalar_lea.hbm %s19967_s17, %s10354_s0 }
 0x8d2   : > { %v11806_v62 = vpop.permute.xlu1 %11805  ;;  %v8005_v4 = vmax.f32 %v7851_v25, 0.0  ;;  %v7615_v31 = vsel %vm6029_vm15, %v7583_v46, %v11803_v51 }
 0x8d3   : > { %v11807_v54 = vunpack.i.l.bf16 %v11806_v62  ;;  %v17109_v60 = vsel %vm1641_vm5, %v7160_v59, %v7161_v13 }
 0x8d4   : > { %11965 = vrot.lane.b32.xlu1 %v11944_v6, %s12115_s21  ;;  %v17100_v21 = vpack.c.bf16 %v8005_v4, %v8004_v8  ;;  %v7163_v6 = vrot.slane %v17063_v57, 2  ;;  %s12029_s21 = scalar_lea.vmem %s19910_s2, 16 }
 0x8d5   : > { %11970 = vrot.lane.b32.xlu0 %v11949_v11, %s20006_s30  ;;  %v11811_v42 = vpop.permute.xlu0 %11810  ;;  %v11808_v11 = vunpack.i.h.bf16 %v11806_v62  ;;  %v7646_v27 = vsel %vm6062_vm1, %v7614_v58, %v11807_v54  ;;  %p12030_p11 = scmp.ne.s32.totalorder %s19910_s2, %s12029_s21 }
 0x8d6   : > { %v11812_v53 = vunpack.i.l.bf16 %v11811_v42  ;;  %v11813_v33 = vunpack.i.h.bf16 %v11811_v42  ;;  %v17125_v37 = vsel %vm1641_vm5, %v7161_v13, %v7163_v6  ;;  %v11816_v15 = vpop.permute.xlu1 %11815 }
 0x8d7   : > { %v7647_v34 = vsel %vm6062_vm1, %v7615_v31, %v11808_v11  ;;  %v11817_v4 = vunpack.i.l.bf16 %v11816_v15  ;;  %v11818_v17 = vunpack.i.h.bf16 %v11816_v15  ;;  %p12031_p12 = pnand %p12030_p11, %p12249_p5 }
 0x8d8   : > { %7225 = vrot.lane.b32.xlu1 %v17109_v60, %s20037_s20  ;;  %v7678_v32 = vsel %vm6095_vm2, %v7646_v27, %v11812_v53  ;;  %v7679_v7 = vsel %vm6095_vm2, %v7647_v34, %v11813_v33 }
 0x8d9   : > { %7323 = vrot.lane.b32.xlu0 %v17092_v28, %s20038_s23  ;;  %7944 = vmatmul.mubr.f32.gmra.mrb[72].mxu1 %v7678_v32  ;;  %v11821_v61 = vpop.permute.xlu0 %11820  ;;  %v7489_v27 = vsel %vm566_vm0, %v16784_v36, %v11818_v17  ;;  %p12032_p13 = pneg %p12031_p12 }
 0x8da   : > { %v7855_v1 = vpop.f32.mrb[36].mxu1  ;;  %10277 = vmatprep.mubr.msk.f32.mxu1 %vm566_vm0, %v16872_v20  ;;  %v7364_v20 = vsel %vm1464_vm4, %v7361_v2, %v7363_v55  ;;  %v11826_v8 = vpop.permute.xlu1 %11825  ;;  %v11822_v40 = vunpack.i.l.bf16 %v11821_v61  ;;  %v7488_v2 = vsel %vm566_vm0, %v16780_v3, %v11817_v4  ;;  %v11823_v53 = vunpack.i.h.bf16 %v11821_v61 }
 0x8db   : > { %v7857_v57 = vpop.f32.mrb[37].mxu1  ;;  %v7856_v56 = vadd.f32 %v17077_v22, %v7855_v1  ;;  %v11827_v35 = vunpack.i.l.bf16 %v11826_v8  ;;  %v11828_v33 = vunpack.i.h.bf16 %v11826_v8 }
 0x8dc   : > { %7425 = vrot.lane.b32.xlu1 %v7362_v19, %s12118_s22  ;;  %v7520_v58 = vsel %vm20007_vm12, %v7488_v2, %v11822_v40  ;;  %v7521_v3 = vsel %vm20007_vm12, %v7489_v27, %v11823_v53 }
 0x8dd   : > { %7227 = vrot.lane.b32.xlu0 %v17125_v37, %s20037_s20  ;;  %7949 = vmatmul.mubr.f32.gmra.mrb[74].mxu1 %v7679_v7  ;;  %v8006_v50 = vmax.f32 %v7856_v56, 0.0  ;;  %v11831_v16 = vpop.permute.xlu0 %11830  ;;  %v7552_v32 = vsel %vm5963_vm13, %v7520_v58, %v11827_v35 }
 0x8de   : > { %v7860_v9 = vpop.f32.mrb[38].mxu1  ;;  %10278 = vmatprep.mubr.msk.f32.mxu1 %vm566_vm0, %v16929_v5  ;;  %v11832_v6 = vunpack.i.l.bf16 %v11831_v16  ;;  %v11836_v46 = vpop.permute.xlu1 %11835  ;;  %v11833_v55 = vunpack.i.h.bf16 %v11831_v16 }
 0x8df   : > { %v7861_v49 = vadd.f32 %v17077_v22, %v7860_v9  ;;  %v7862_v14 = vpop.f32.mrb[39].mxu1  ;;  %v11837_v1 = vunpack.i.l.bf16 %v11836_v46  ;;  %v7553_v9 = vsel %vm5963_vm13, %v7521_v3, %v11828_v33 }
 0x8e0   : > { %7325 = vrot.lane.b32.xlu1 %v17094_v23, %s20038_s23  ;;  %v7584_v57 = vsel %vm5996_vm14, %v7552_v32, %v11832_v6  ;;  %v7585_v14 = vsel %vm5996_vm14, %v7553_v9, %v11833_v55 }
 0x8e1   : > { %v8007_v25 = vmax.f32 %v7861_v49, 0.0  ;;  %7427 = vrot.lane.b32.xlu0 %v7364_v20, %s12118_s22  ;;  %v11838_v20 = vunpack.i.h.bf16 %v11836_v46  ;;  %v7616_v36 = vsel %vm6029_vm15, %v7584_v57, %v11837_v1  ;;  %s12033_s22 = sshll.u32 %s12120_s28, 4  ;;  %s12034_s22 = int_to_ptr.vmem [resolvable:$false] %s12033_s22 }
 0x8e2   : > { %s12035_s20 = scalar_lea.vmem %s12034_s22, 32  ;;  %p12036_p0 = scmp.lt.s32.totalorder %s19910_s2, %s12034_s22 }
 0x8e3   : > { %v17141_v41 = vpack.c.bf16 %v8007_v25, %v8006_v50  ;;  %p12037_p1 = scmp.lt.s32.totalorder %s12035_s20, %s12029_s21 }
 0x8e5   : > { %p12038_p2 = por %p12037_p1, %p12036_p0 }
 0x8e7   : > { %v7865_v62 = vpop.f32.mrb[40].mxu1  ;;  %p12039_p3 = pnand %p12038_p2, %p12032_p13 }
 0x8e8   : > { %v7867_v24 = vpop.f32.mrb[41].mxu1  ;;  %v7866_v13 = vadd.f32 %v17077_v22, %v7865_v62 }
 0x8ea   : > { %v8008_v51 = vmax.f32 %v7866_v13, 0.0  ;;  %v7617_v13 = vsel %vm6029_vm15, %v7585_v14, %v11838_v20 }
 0x8eb   : > { %v7870_v5 = vpop.f32.mrb[42].mxu1 }
 0x8ec   : > { %v7871_v54 = vadd.f32 %v17077_v22, %v7870_v5  ;;  %v7872_v59 = vpop.f32.mrb[43].mxu1 }
 0x8ee   : > { %v8009_v42 = vmax.f32 %v7871_v54, 0.0 }
 0x8f0   : > { %v17148_v11 = vpack.c.bf16 %v8009_v42, %v8008_v51 }
 0x8f2   : > { %v11841_v19 = vpop.permute.xlu0 %11840 }
 0x8f3   : > { %v11842_v31 = vunpack.i.l.bf16 %v11841_v19  ;;  %v11843_v50 = vunpack.i.h.bf16 %v11841_v19 }
 0x8f5   : > { %v11846_v34 = vpop.permute.xlu1 %11845  ;;  %v7648_v15 = vsel %vm6062_vm1, %v7616_v36, %v11842_v31  ;;  %v7649_v16 = vsel %vm6062_vm1, %v7617_v13, %v11843_v50 }
 0x8f6   : > { %v7875_v56 = vpop.f32.mrb[44].mxu1  ;;  %v11847_v49 = vunpack.i.l.bf16 %v11846_v34  ;;  %v11848_v61 = vunpack.i.h.bf16 %v11846_v34  ;;  %v11851_v17 = vpop.permute.xlu0 %11850 }
 0x8f7   : > { %v7877_v7 = vpop.f32.mrb[45].mxu1  ;;  %v7876_v25 = vadd.f32 %v17077_v22, %v7875_v56  ;;  %v11852_v46 = vunpack.i.l.bf16 %v11851_v17  ;;  %v11853_v3 = vunpack.i.h.bf16 %v11851_v17 }
 0x8f8   : > { %v7680_v62 = vsel %vm6095_vm2, %v7648_v15, %v11847_v49  ;;  %v7681_v54 = vsel %vm6095_vm2, %v7649_v16, %v11848_v61 }
 0x8f9   : > { %7954 = vmatmul.mubr.f32.gmra.mrb[76].mxu1 %v7680_v62  ;;  %v8010_v40 = vmax.f32 %v7876_v25, 0.0  ;;  %v11856_v51 = vpop.permute.xlu1 %11855  ;;  %v7491_v20 = vsel %vm566_vm0, %v16849_v44, %v11853_v3 }
 0x8fa   : > { %v7880_v24 = vpop.f32.mrb[46].mxu1  ;;  %10279 = vmatprep.mubr.msk.f32.mxu1 %vm566_vm0, %v16932_v48  ;;  %v11861_v53 = vpop.permute.xlu0 %11860  ;;  %v11857_v27 = vunpack.i.l.bf16 %v11856_v51  ;;  %v11858_v57 = vunpack.i.h.bf16 %v11856_v51 }
 0x8fb   : > { %v7881_v8 = vadd.f32 %v17077_v22, %v7880_v24  ;;  %v7882_v4 = vpop.f32.mrb[47].mxu1  ;;  %v11862_v55 = vunpack.i.l.bf16 %v11861_v53  ;;  %v11863_v49 = vunpack.i.h.bf16 %v11861_v53 }
 0x8fc   : > { %v7523_v25 = vsel %vm20007_vm12, %v7491_v20, %v11858_v57 }
 0x8fd   : > { %v8011_v5 = vmax.f32 %v7881_v8, 0.0  ;;  %7959 = vmatmul.mubr.f32.gmra.mrb[78].mxu1 %v7681_v54  ;;  %v11866_v1 = vpop.permute.xlu1 %11865  ;;  %v7555_v8 = vsel %vm5963_vm13, %v7523_v25, %v11863_v49 }
 0x8fe   : > { %10280 = vmatprep.mubr.msk.f32.mxu1 %vm566_vm0, %v16990_v63  ;;  %v7490_v63 = vsel %vm566_vm0, %v16846_v43, %v11852_v46  ;;  %v11867_v56 = vunpack.i.l.bf16 %v11866_v1  ;;  %v11871_v34 = vpop.permute.xlu0 %11870  ;;  %v11868_v15 = vunpack.i.h.bf16 %v11866_v1 }
 0x8ff   : > { %v17167_v59 = vpack.c.bf16 %v8011_v5, %v8010_v40  ;;  %v7522_v31 = vsel %vm20007_vm12, %v7490_v63, %v11857_v27  ;;  %v11872_v14 = vunpack.i.l.bf16 %v11871_v34  ;;  %v11873_v4 = vunpack.i.h.bf16 %v11871_v34 }
 0x900   : > { %v7554_v36 = vsel %vm5963_vm13, %v7522_v31, %v11862_v55  ;;  %v7587_v5 = vsel %vm5996_vm14, %v7555_v8, %v11868_v15 }
 0x901   : > { %v7586_v43 = vsel %vm5996_vm14, %v7554_v36, %v11867_v56  ;;  %v7619_v53 = vsel %vm6029_vm15, %v7587_v5, %v11873_v4 }
 0x902   : > { %v7618_v44 = vsel %vm6029_vm15, %v7586_v43, %v11872_v14 }
 0x903   : > { %v7885_v2 = vpop.f32.mrb[48].mxu1 }
 0x904   : > { %v7887_v35 = vpop.f32.mrb[49].mxu1  ;;  %v7886_v48 = vadd.f32 %v17077_v22, %v7885_v2 }
 0x906   : > { %v8012_v33 = vmax.f32 %v7886_v48, 0.0 }
 0x907   : > { %v7890_v42 = vpop.f32.mrb[50].mxu1 }
 0x908   : > { %v7891_v58 = vadd.f32 %v17077_v22, %v7890_v42  ;;  %v7892_v6 = vpop.f32.mrb[51].mxu1 }
 0x90a   : > { %v8013_v32 = vmax.f32 %v7891_v58, 0.0 }
 0x90c   : > { %v17173_v19 = vpack.c.bf16 %v8013_v32, %v8012_v33 }
 0x912   : > { %v11876_v7 = vpop.permute.xlu1 %11875  ;;  %v7895_v9 = vpop.f32.mrb[52].mxu1 }
 0x913   : > { %v7897_v50 = vpop.f32.mrb[53].mxu1  ;;  %v11877_v61 = vunpack.i.l.bf16 %v11876_v7  ;;  %v7896_v62 = vadd.f32 %v17077_v22, %v7895_v9  ;;  %v11878_v16 = vunpack.i.h.bf16 %v11876_v7 }
 0x915   : > { %v11881_v24 = vpop.permute.xlu0 %11880  ;;  %v7650_v2 = vsel %vm6062_vm1, %v7618_v44, %v11877_v61  ;;  %v8014_v48 = vmax.f32 %v7896_v62, 0.0  ;;  %v7651_v6 = vsel %vm6062_vm1, %v7619_v53, %v11878_v16 }
 0x916   : > { %v11882_v13 = vunpack.i.l.bf16 %v11881_v24  ;;  %v7900_v40 = vpop.f32.mrb[54].mxu1  ;;  %v11883_v35 = vunpack.i.h.bf16 %v11881_v24  ;;  %v11886_v27 = vpop.permute.xlu1 %11885 }
 0x917   : > { %v7901_v54 = vadd.f32 %v17077_v22, %v7900_v40  ;;  %v7902_v17 = vpop.f32.mrb[55].mxu1  ;;  %v11887_v1 = vunpack.i.l.bf16 %v11886_v27  ;;  %v11888_v55 = vunpack.i.h.bf16 %v11886_v27 }
 0x918   : > { %v7682_v51 = vsel %vm6095_vm2, %v7650_v2, %v11882_v13  ;;  %v7683_v46 = vsel %vm6095_vm2, %v7651_v6, %v11883_v35 }
 0x919   : > { %v8015_v42 = vmax.f32 %v7901_v54, 0.0  ;;  %7964 = vmatmul.mubr.f32.gmra.mrb[80].mxu1 %v7682_v51  ;;  %v11891_v33 = vpop.permute.xlu0 %11890 }
 0x91a   : > { %10281 = vmatprep.mubr.msk.f32.mxu1 %vm566_vm0, %v16993_v52  ;;  %v11896_v32 = vpop.permute.xlu1 %11895  ;;  %v11892_v3 = vunpack.i.l.bf16 %v11891_v33  ;;  %v7492_v52 = vsel %vm566_vm0, %v16905_v47, %v11887_v1  ;;  %v11893_v57 = vunpack.i.h.bf16 %v11891_v33 }
 0x91b   : > { %v17193_v58 = vpack.c.bf16 %v8015_v42, %v8014_v48  ;;  %v11897_v31 = vunpack.i.l.bf16 %v11896_v32  ;;  %v11898_v49 = vunpack.i.h.bf16 %v11896_v32 }
 0x91c   : > { %v7524_v56 = vsel %vm20007_vm12, %v7492_v52, %v11892_v3 }
 0x91d   : > { %7969 = vmatmul.mubr.f32.gmra.mrb[82].mxu1 %v7683_v46  ;;  %v11901_v63 = vpop.permute.xlu0 %11900  ;;  %v7556_v50 = vsel %vm5963_vm13, %v7524_v56, %v11897_v31 }
 0x91e   : > { %10282 = vmatprep.mubr.msk.f32.mxu1 %vm566_vm0, %v17049_v18  ;;  %v11902_v34 = vunpack.i.l.bf16 %v11901_v63  ;;  %v11906_v7 = vpop.permute.xlu1 %11905  ;;  %v7493_v18 = vsel %vm566_vm0, %v16907_v29, %v11888_v55  ;;  %v11903_v15 = vunpack.i.h.bf16 %v11901_v63 }
 0x91f   : > { %v7525_v14 = vsel %vm20007_vm12, %v7493_v18, %v11893_v57  ;;  %v11907_v25 = vunpack.i.l.bf16 %v11906_v7  ;;  %v11908_v29 = vunpack.i.h.bf16 %v11906_v7 }
 0x920   : > { %v7588_v43 = vsel %vm5996_vm14, %v7556_v50, %v11902_v34  ;;  %v7557_v4 = vsel %vm5963_vm13, %v7525_v14, %v11898_v49 }
 0x921   : > { %v7620_v54 = vsel %vm6029_vm15, %v7588_v43, %v11907_v25  ;;  %v7589_v17 = vsel %vm5996_vm14, %v7557_v4, %v11903_v15 }
 0x922   : > { %v7621_v1 = vsel %vm6029_vm15, %v7589_v17, %v11908_v29 }
 0x92d   : > { %v7905_v9 = vpop.f32.mrb[56].mxu1 }
 0x92e   : > { %v7907_v20 = vpop.f32.mrb[57].mxu1  ;;  %v7906_v47 = vadd.f32 %v17077_v22, %v7905_v9 }
 0x92f   : > { %v11911_v36 = vpop.permute.xlu0 %11910 }
 0x930   : > { %v11912_v61 = vunpack.i.l.bf16 %v11911_v36  ;;  %v8016_v44 = vmax.f32 %v7906_v47, 0.0  ;;  %v11913_v2 = vunpack.i.h.bf16 %v11911_v36 }
 0x931   : > { %v7910_v62 = vpop.f32.mrb[58].mxu1 }
 0x932   : > { %v7911_v24 = vadd.f32 %v17077_v22, %v7910_v62  ;;  %v7912_v8 = vpop.f32.mrb[59].mxu1  ;;  %v11916_v13 = vpop.permute.xlu1 %11915  ;;  %v7652_v51 = vsel %vm6062_vm1, %v7620_v54, %v11912_v61  ;;  %v7653_v55 = vsel %vm6062_vm1, %v7621_v1, %v11913_v2  ;;  %v7461_v62 = vrot.slane %v17092_v28, 2 }
 0x933   : > { %v11921_v40 = vpop.permute.xlu0 %11920  ;;  %v11917_v16 = vunpack.i.l.bf16 %v11916_v13  ;;  %v11918_v42 = vunpack.i.h.bf16 %v11916_v13  ;;  %v7464_v1 = vrot.slane %v17106_v45, 2 }
 0x934   : > { %v8017_v5 = vmax.f32 %v7911_v24, 0.0  ;;  %v11922_v35 = vunpack.i.l.bf16 %v11921_v40  ;;  %v11923_v6 = vunpack.i.h.bf16 %v11921_v40  ;;  %v7462_v24 = vrot.slane %v17094_v23, 2 }
 0x935   : > { %v7684_v53 = vsel %vm6095_vm2, %v7652_v51, %v11917_v16  ;;  %v7685_v57 = vsel %vm6095_vm2, %v7653_v55, %v11918_v42 }
 0x936   : > { %v17213_v48 = vpack.c.bf16 %v8017_v5, %v8016_v44  ;;  %v11926_v46 = vpop.permute.xlu1 %11925  ;;  %7974 = vmatmul.mubr.f32.gmra.mrb[84].mxu1 %v7684_v53  ;;  %v7494_v3 = vsel %vm566_vm0, %v16967_v26, %v11922_v35  ;;  %v7495_v31 = vsel %vm566_vm0, %v16970_v0, %v11923_v6  ;;  %v7463_v23 = vsel %vm1641_vm5, %v7461_v62, %v7462_v24 }
 0x937   : > { %v11931_v27 = vpop.permute.xlu0 %11930  ;;  %v11928_v33 = vunpack.i.h.bf16 %v11926_v46  ;;  %v11927_v32 = vunpack.i.l.bf16 %v11926_v46  ;;  %10283 = vmatprep.mubr.msk.f32.mxu1 %vm566_vm0, %v17052_v38 }
 0x938   : > { %v11932_v63 = vunpack.i.l.bf16 %v11931_v27  ;;  %v11933_v56 = vunpack.i.h.bf16 %v11931_v27 }
 0x939   : > { %v7526_v52 = vsel %vm20007_vm12, %v7494_v3, %v11927_v32  ;;  %v7527_v38 = vsel %vm20007_vm12, %v7495_v31, %v11928_v33 }
 0x93a   : > { %v11936_v34 = vpop.permute.xlu1 %11935  ;;  %7979 = vmatmul.mubr.f32.gmra.mrb[86].mxu1 %v7685_v57  ;;  %v7558_v26 = vsel %vm5963_vm13, %v7526_v52, %v11932_v63  ;;  %v7559_v36 = vsel %vm5963_vm13, %v7527_v38, %v11933_v56 }
 0x93b   : > { %v11941_v7 = vpop.permute.xlu0 %11940  ;;  %v11938_v9 = vunpack.i.h.bf16 %v11936_v34  ;;  %v11937_v20 = vunpack.i.l.bf16 %v11936_v34  ;;  %10284 = vmatprep.mubr.msk.f32.mxu1 %vm566_vm0, %v17109_v60 }
 0x93c   : > { %v11942_v18 = vunpack.i.l.bf16 %v11941_v7  ;;  %v11943_v14 = vunpack.i.h.bf16 %v11941_v7  ;;  %v7465_v7 = vsel %vm1641_vm5, %v7462_v24, %v7464_v1  ;;  %v8174_v1 = vld [vmem:[%s19961_s11 + $0x88] sm:$0xff] }
 0x93d   : > { %v7590_v49 = vsel %vm5996_vm14, %v7558_v26, %v11937_v20  ;;  %v7591_v25 = vsel %vm5996_vm14, %v7559_v36, %v11938_v9 }
 0x93e   : > { %v11946_v0 = vpop.permute.xlu1 %11945  ;;  %v7622_v61 = vsel %vm6029_vm15, %v7590_v49, %v11942_v18  ;;  %v7623_v40 = vsel %vm6029_vm15, %v7591_v25, %v11943_v14 }
 0x93f   : > { %v11951_v50 = vpop.permute.xlu0 %11950  ;;  %v11948_v47 = vunpack.i.h.bf16 %v11946_v0  ;;  %v11947_v15 = vunpack.i.l.bf16 %v11946_v0 }
 0x940   : > { %v11952_v43 = vunpack.i.l.bf16 %v11951_v50  ;;  %v11953_v8 = vunpack.i.h.bf16 %v11951_v50 }
 0x941   : > { %v7654_v60 = vsel %vm6062_vm1, %v7622_v61, %v11947_v15  ;;  %v7655_v5 = vsel %vm6062_vm1, %v7623_v40, %v11948_v47 }
 0x942   : > { %v11956_v4 = vpop.permute.xlu1 %11955  ;;  %v7686_v13 = vsel %vm6095_vm2, %v7654_v60, %v11952_v43  ;;  %v7687_v35 = vsel %vm6095_vm2, %v7655_v5, %v11953_v8 }
 0x943   : > { %v11961_v29 = vpop.permute.xlu0 %11960  ;;  %v11957_v44 = vunpack.i.l.bf16 %v11956_v4  ;;  %7984 = vmatmul.mubr.f32.gmra.mrb[88].mxu1 %v7686_v13  ;;  %v11958_v54 = vunpack.i.h.bf16 %v11956_v4 }
 0x944   : > { %v11962_v16 = vunpack.i.l.bf16 %v11961_v29  ;;  %10285 = vmatprep.mubr.msk.f32.mxu1 %vm566_vm0, %v17125_v37  ;;  %v11963_v6 = vunpack.i.h.bf16 %v11961_v29 }
 0x945   : > { %v7496_v28 = vsel %vm566_vm0, %v17022_v39, %v11957_v44  ;;  %v7497_v39 = vsel %vm566_vm0, %v17027_v30, %v11958_v54 }
 0x946   : > { %v11966_v17 = vpop.permute.xlu1 %11965  ;;  %v7528_v53 = vsel %vm20007_vm12, %v7496_v28, %v11962_v16  ;;  %v7529_v55 = vsel %vm20007_vm12, %v7497_v39, %v11963_v6 }
 0x947   : > { %v11971_v2 = vpop.permute.xlu0 %11970  ;;  %v11967_v51 = vunpack.i.l.bf16 %v11966_v17  ;;  %7989 = vmatmul.mubr.f32.gmra.mrb[90].mxu1 %v7687_v35  ;;  %v11968_v46 = vunpack.i.h.bf16 %v11966_v17 }
 0x948   : > { %v11972_v42 = vunpack.i.l.bf16 %v11971_v2  ;;  %10286 = vmatprep.mubr.msk.f32.mxu1 %vm566_vm0, %v7463_v23  ;;  %v11973_v52 = vunpack.i.h.bf16 %v11971_v2 }
 0x949   : > { %v7560_v37 = vsel %vm5963_vm13, %v7528_v53, %v11967_v51  ;;  %v7561_v30 = vsel %vm5963_vm13, %v7529_v55, %v11968_v46 }
 0x94a   : > { %v7226_v27 = vpop.permute.xlu1 %7225  ;;  %v7592_v33 = vsel %vm5996_vm14, %v7560_v37, %v11972_v42  ;;  %v7593_v20 = vsel %vm5996_vm14, %v7561_v30, %v11973_v52 }
 0x94b   : > { %v7324_v32 = vpop.permute.xlu0 %7323  ;;  %v7624_v3 = vsel %vm6029_vm15, %v7592_v33, %v7226_v27 }
 0x94c   : > { %v7915_v63 = vpop.f32.mrb[60].mxu1  ;;  %v7656_v31 = vsel %vm6062_vm1, %v7624_v3, %v7324_v32  ;;  %v8158_v32 = vld [vmem:[%s19961_s11 + $0x8] sm:$0xff]  ;;  %v8157_v3 = vld [vmem:[%s19961_s11] sm:$0xff] }
 0x94d   : > { %v7917_v57 = vpop.f32.mrb[61].mxu1  ;;  %v7916_v38 = vadd.f32 %v17077_v22, %v7915_v63  ;;  %v10759_v55 = vpack.c.bf16 %v8174_v1, %v8158_v32  ;;  %v8045_v32 = vld [vmem:[%s19960_s10 + $0x48] sm:$0xff]  ;;  %v8044_v1 = vld [vmem:[%s19960_s10 + $0x40] sm:$0xff] }
 0x94e   : > { %v7426_v56 = vpop.permute.xlu1 %7425 }
 0x94f   : > { %v7228_v34 = vpop.permute.xlu0 %7227  ;;  %v7688_v9 = vsel %vm6095_vm2, %v7656_v31, %v7426_v56  ;;  %v8018_v0 = vmax.f32 %v7916_v38, 0.0  ;;  %10760 = vmatprep.subr.bf16.mxu1 %v10759_v55  ;;  %v8049_v55 = vld [vmem:[%s19960_s10 + $0x68] sm:$0xff] }
 0x950   : > { %v7920_v45 = vpop.f32.mrb[62].mxu1  ;;  %7994 = vmatmul.mubr.f32.gmra.mrb[92].mxu1 %v7688_v9  ;;  %v7625_v49 = vsel %vm6029_vm15, %v7593_v20, %v7228_v34 }
 0x951   : > { %v7921_v26 = vadd.f32 %v17077_v22, %v7920_v45  ;;  %v7922_v18 = vpop.f32.mrb[63].mxu1  ;;  %10287 = vmatprep.mubr.msk.f32.mxu1 %vm566_vm0, %v7465_v7 }
 0x952   : > { %v7326_v36 = vpop.permute.xlu1 %7325 }
 0x953   : > { %v7428_v14 = vpop.permute.xlu0 %7427  ;;  %v8019_v50 = vmax.f32 %v7921_v26, 0.0  ;;  %v7657_v25 = vsel %vm6062_vm1, %v7625_v49, %v7326_v36 }
 0x954   : > { %v7689_v47 = vsel %vm6095_vm2, %v7657_v25, %v7428_v14 }
 0x955   : > { %v17266_v15 = vpack.c.bf16 %v8019_v50, %v8018_v0  ;;  %7999 = vmatmul.mubr.f32.gmra.mrb[94].mxu1 %v7689_v47 }
 0x956   : > { %8277 = vmatprep.mubr.f32.mxu1 %v12094_v12 }
 0x96c   : > { %v7925_v43 = vpop.f32.mrb[64].mxu1 }
 0x96d   : > { %v7927_v61 = vpop.f32.mrb[65].mxu1  ;;  %v7926_v62 = vadd.f32 %v17077_v22, %v7925_v43 }
 0x96f   : > { %v8020_v4 = vmax.f32 %v7926_v62, 0.0 }
 0x970   : > { %v7930_v60 = vpop.f32.mrb[66].mxu1 }
 0x971   : > { %v7931_v24 = vadd.f32 %v17077_v22, %v7930_v60  ;;  %v7932_v8 = vpop.f32.mrb[67].mxu1 }
 0x973   : > { %v8021_v29 = vmax.f32 %v7931_v24, 0.0 }
 0x975   : > { %v10727_v13 = vpack.c.bf16 %v8021_v29, %v8020_v4 }
 0x977   : > { %10728 = vmatprep.subr.bf16.mxu0 %v10727_v13 }
 0x978   : > { %10730 = vmatpush3.bf16.msra.mxu0 %v17100_v21  ;;  %v8037_v21 = vld [vmem:[%s19960_s10 + $0x8] sm:$0xff] }
 0x979   : > { %8116 = vmatprep.mubr.f32.mxu0 %v8037_v21 }
 0x98c   : > { %v7935_v40 = vpop.f32.mrb[68].mxu1 }
 0x98d   : > { %v7937_v44 = vpop.f32.mrb[69].mxu1  ;;  %v7936_v5 = vadd.f32 %v17077_v22, %v7935_v40 }
 0x98f   : > { %v8022_v54 = vmax.f32 %v7936_v5, 0.0 }
 0x990   : > { %v7940_v16 = vpop.f32.mrb[70].mxu1 }
 0x991   : > { %v7941_v28 = vadd.f32 %v17077_v22, %v7940_v16  ;;  %v7942_v23 = vpop.f32.mrb[71].mxu1 }
 0x993   : > { %v8023_v17 = vmax.f32 %v7941_v28, 0.0 }
 0x995   : > { %v10731_v2 = vpack.c.bf16 %v8023_v17, %v8022_v54 }
 0x997   : > { %10732 = vmatprep.subr.bf16.mxu0 %v10731_v2  ;;  %v8160_v2 = vld [vmem:[%s19961_s11 + $0x18] sm:$0xff] }
 0x998   : > { %10734 = vmatpush3.bf16.msra.mxu0 %v17141_v41 }
 0x9ac   : > { %v7945_v35 = vpop.f32.mrb[72].mxu1 }
 0x9ad   : > { %v7947_v51 = vpop.f32.mrb[73].mxu1  ;;  %v7946_v42 = vadd.f32 %v17077_v22, %v7945_v35  ;;  %v8176_v35 = vld [vmem:[%s19961_s11 + $0x98] sm:$0xff] }
 0x9af   : > { %v8024_v39 = vmax.f32 %v7946_v42, 0.0 }
 0x9b0   : > { %v7950_v53 = vpop.f32.mrb[74].mxu1 }
 0x9b1   : > { %v7951_v6 = vadd.f32 %v17077_v22, %v7950_v53  ;;  %v7952_v37 = vpop.f32.mrb[75].mxu1  ;;  %v8159_v53 = vld [vmem:[%s19961_s11 + $0x10] sm:$0xff] }
 0x9b3   : > { %v8025_v46 = vmax.f32 %v7951_v6, 0.0  ;;  %v8036_v6 = vld [vmem:[%s19960_s10] sm:$0xff] }
 0x9b5   : > { %v10735_v27 = vpack.c.bf16 %v8025_v46, %v8024_v39  ;;  %v8039_v39 = vld [vmem:[%s19960_s10 + $0x18] sm:$0xff]  ;;  %v8038_v46 = vld [vmem:[%s19960_s10 + $0x10] sm:$0xff] }
 0x9b7   : > { %10736 = vmatprep.subr.bf16.mxu0 %v10735_v27  ;;  %v8040_v27 = vld [vmem:[%s19960_s10 + $0x20] sm:$0xff] }
 0x9b8   : > { %10738 = vmatpush3.bf16.msra.mxu0 %v17148_v11  ;;  %v8173_v11 = vld [vmem:[%s19961_s11 + $0x80] sm:$0xff] }
 0x9b9   : > { %v10761_v57 = vpack.c.bf16 %v8173_v11, %v8157_v3  ;;  %v8047_v3 = vld [vmem:[%s19960_s10 + $0x58] sm:$0xff]  ;;  %v8048_v11 = vld [vmem:[%s19960_s10 + $0x60] sm:$0xff] }
 0x9bb   : > { %10762 = vmatpush1.bf16.msra.mxu1 %v10761_v57  ;;  %v8050_v57 = vld [vmem:[%s19960_s10 + $0x70] sm:$0xff] }
 0x9cc   : > { %v7955_v41 = vpop.f32.mrb[76].mxu1 }
 0x9cd   : > { %v7957_v33 = vpop.f32.mrb[77].mxu1  ;;  %v7956_v63 = vadd.f32 %v17077_v22, %v7955_v41  ;;  %v8043_v41 = vld [vmem:[%s19960_s10 + $0x38] sm:$0xff] }
 0x9ce   : > { %v8042_v33 = vld [vmem:[%s19960_s10 + $0x30] sm:$0xff] }
 0x9cf   : > { %v8026_v34 = vmax.f32 %v7956_v63, 0.0  ;;  %v8046_v63 = vld [vmem:[%s19960_s10 + $0x50] sm:$0xff] }
 0x9d0   : > { %v7960_v52 = vpop.f32.mrb[78].mxu1 }
 0x9d1   : > { %v7961_v31 = vadd.f32 %v17077_v22, %v7960_v52  ;;  %v7962_v56 = vpop.f32.mrb[79].mxu1  ;;  %v8051_v52 = vld [vmem:[%s19960_s10 + $0x78] sm:$0xff] }
 0x9d2   : > { %v8178_v56 = vld [vmem:[%s19961_s11 + $0xa8] sm:$0xff] }
 0x9d3   : > { %v8027_v30 = vmax.f32 %v7961_v31, 0.0  ;;  %v8162_v31 = vld [vmem:[%s19961_s11 + $0x28] sm:$0xff] }
 0x9d5   : > { %v10739_v7 = vpack.c.bf16 %v8027_v30, %v8026_v34  ;;  %v8164_v34 = vld [vmem:[%s19961_s11 + $0x38] sm:$0xff]  ;;  %v10767_v30 = vpack.c.bf16 %v8178_v56, %v8162_v31 }
 0x9d7   : > { %10740 = vmatprep.subr.bf16.mxu0 %v10739_v7  ;;  %v8180_v7 = vld [vmem:[%s19961_s11 + $0xb8] sm:$0xff]  ;;  %10768 = vmatprep.subr.bf16.mxu1 %v10767_v30 }
 0x9d8   : > { %10742 = vmatpush3.bf16.msra.mxu0 %v17167_v59 }
 0x9ec   : > { %v7965_v38 = vpop.f32.mrb[80].mxu1 }
 0x9ed   : > { %v7967_v9 = vpop.f32.mrb[81].mxu1  ;;  %v7966_v45 = vadd.f32 %v17077_v22, %v7965_v38  ;;  %v10771_v38 = vpack.c.bf16 %v8180_v7, %v8164_v34 }
 0x9ee   : > { %v8161_v9 = vld [vmem:[%s19961_s11 + $0x20] sm:$0xff] }
 0x9ef   : > { %v8028_v49 = vmax.f32 %v7966_v45, 0.0  ;;  %v8177_v45 = vld [vmem:[%s19961_s11 + $0xa0] sm:$0xff] }
 0x9f0   : > { %v7970_v20 = vpop.f32.mrb[82].mxu1 }
 0x9f1   : > { %v7971_v26 = vadd.f32 %v17077_v22, %v7970_v20  ;;  %v7972_v18 = vpop.f32.mrb[83].mxu1  ;;  %v8163_v20 = vld [vmem:[%s19961_s11 + $0x30] sm:$0xff] }
 0x9f2   : > { %v8166_v18 = vld [vmem:[%s19961_s11 + $0x48] sm:$0xff] }
 0x9f3   : > { %v8029_v36 = vmax.f32 %v7971_v26, 0.0  ;;  %v8179_v26 = vld [vmem:[%s19961_s11 + $0xb0] sm:$0xff] }
 0x9f5   : > { %v10743_v14 = vpack.c.bf16 %v8029_v36, %v8028_v49  ;;  %v8182_v36 = vld [vmem:[%s19961_s11 + $0xc8] sm:$0xff] }
 0x9f7   : > { %10744 = vmatprep.subr.bf16.mxu0 %v10743_v14  ;;  %v8168_v14 = vld [vmem:[%s19961_s11 + $0x58] sm:$0xff] }
 0x9f8   : > { %10746 = vmatpush3.bf16.msra.mxu0 %v17173_v19 }
 0xa09   : > { %v7975_v0 = vpop.f32.mrb[84].mxu1 }
 0xa0a   : > { %v7977_v50 = vpop.f32.mrb[85].mxu1  ;;  %v7976_v25 = vadd.f32 %v17077_v22, %v7975_v0  ;;  %v8184_v0 = vld [vmem:[%s19961_s11 + $0xd8] sm:$0xff] }
 0xa0c   : > { %v8030_v61 = vmax.f32 %v7976_v25, 0.0 }
 0xa0d   : > { %v7980_v47 = vpop.f32.mrb[86].mxu1 }
 0xa0e   : > { %v7981_v59 = vadd.f32 %v17077_v22, %v7980_v47  ;;  %v7982_v43 = vpop.f32.mrb[87].mxu1  ;;  %v10769_v47 = vpack.c.bf16 %v8177_v45, %v8161_v9 }
 0xa0f   : > { %v10775_v43 = vpack.c.bf16 %v8182_v36, %v8166_v18 }
 0xa10   : > { %v8031_v62 = vmax.f32 %v7981_v59, 0.0  ;;  %v10773_v59 = vpack.c.bf16 %v8179_v26, %v8163_v20 }
 0xa12   : > { %v10747_v60 = vpack.c.bf16 %v8031_v62, %v8030_v61  ;;  %v10779_v61 = vpack.c.bf16 %v8184_v0, %v8168_v14 }
 0xa14   : > { %10748 = vmatprep.subr.bf16.mxu0 %v10747_v60 }
 0xa15   : > { %10750 = vmatpush3.bf16.msra.mxu0 %v17193_v58 }
 0xa16   : > { %v7985_v24 = vpop.f32.mrb[88].mxu1 }
 0xa17   : > { %v7987_v8 = vpop.f32.mrb[89].mxu1  ;;  %v7986_v4 = vadd.f32 %v17077_v22, %v7985_v24 }
 0xa19   : > { %v8032_v40 = vmax.f32 %v7986_v4, 0.0 }
 0xa1a   : > { %v7990_v29 = vpop.f32.mrb[90].mxu1 }
 0xa1b   : > { %v7991_v19 = vadd.f32 %v17077_v22, %v7990_v29  ;;  %v7992_v13 = vpop.f32.mrb[91].mxu1 }
 0xa1d   : > { %v8033_v44 = vmax.f32 %v7991_v19, 0.0 }
 0xa1f   : > { %v10751_v5 = vpack.c.bf16 %v8033_v44, %v8032_v40 }
 0xa21   : > { %10752 = vmatprep.subr.bf16.mxu0 %v10751_v5 }
 0xa22   : > { %10754 = vmatpush3.bf16.msra.mxu0 %v17213_v48  ;;  %v10763_v48 = vpack.c.bf16 %v8176_v35, %v8160_v2 }
 0xa23   : > { %v7995_v16 = vpop.f32.mrb[92].mxu1 }
 0xa24   : > { %v7997_v28 = vpop.f32.mrb[93].mxu1  ;;  %v7996_v23 = vadd.f32 %v17077_v22, %v7995_v16 }
 0xa26   : > { %v8034_v51 = vmax.f32 %v7996_v23, 0.0 }
 0xa28   : > { %v8000_v54 = vpop.f32.mrb[94].mxu1 }
 0xa29   : > { %v8001_v58 = vadd.f32 %v17077_v22, %v8000_v54  ;;  %v8002_v17 = vpop.f32.mrb[95].mxu1  ;;  %v8175_v22 = vld [vmem:[%s19961_s11 + $0x90] sm:$0xff] }
 0xa2a   : > { %v10765_v37 = vpack.c.bf16 %v8175_v22, %v8159_v53  ;;  %v8167_v53 = vld [vmem:[%s19961_s11 + $0x50] sm:$0xff] }
 0xa2b   : > { %v8035_v42 = vmax.f32 %v8001_v58, 0.0  ;;  %v8183_v22 = vld [vmem:[%s19961_s11 + $0xd0] sm:$0xff] }
 0xa2d   : > { %v10755_v21 = vpack.c.bf16 %v8035_v42, %v8034_v51 }
 0xa2f   : > { %10756 = vmatprep.subr.bf16.mxu0 %v10755_v21  ;;  %v8165_v21 = vld [vmem:[%s19961_s11 + $0x40] sm:$0xff] }
 0xa30   : > { %10758 = vmatpush3.bf16.msra.mxu0 %v17266_v15  ;;  %v8041_v15 = vld [vmem:[%s19960_s10 + $0x28] sm:$0xff] }
 0xa31   : > { %10764 = vmatprep.subr.bf16.mxu0 %v10763_v48  ;;  %v8181_v48 = vld [vmem:[%s19961_s11 + $0xc0] sm:$0xff] }
 0xa33   : > { %8117 = vmatmul.mubr.f32.vlgmr.msra.gmra.mrb[96].mxu0 %v8036_v6  ;;  %v8170_v6 = vld [vmem:[%s19961_s11 + $0x68] sm:$0xff] }
 0xa34   : > { %8121 = vmatprep.mubr.f32.mxu0 %v8039_v39  ;;  %10766 = vmatpush1.bf16.msra.mxu0 %v10765_v37  ;;  %v8186_v37 = vld [vmem:[%s19961_s11 + $0xe8] sm:$0xff]  ;;  %v8172_v39 = vld [vmem:[%s19961_s11 + $0x78] sm:$0xff] }
 0xa35   : > { %10772 = vmatprep.subr.bf16.mxu0 %v10771_v38 }
 0xa37   : > { %8122 = vmatmul.mubr.f32.gmra.mrb[98].mxu0 %v8038_v46  ;;  %v8188_v46 = vld [vmem:[%s19961_s11 + $0xf8] sm:$0xff] }
 0xa38   : > { %8126 = vmatprep.mubr.f32.mxu0 %v8041_v15  ;;  %v10777_v15 = vpack.c.bf16 %v8181_v48, %v8165_v21 }
 0xa3b   : > { %8127 = vmatmul.mubr.f32.gmra.mrb[100].mxu0 %v8040_v27  ;;  %v10781_v27 = vpack.c.bf16 %v8183_v22, %v8167_v53 }
 0xa3c   : > { %8131 = vmatprep.mubr.f32.mxu0 %v8043_v41  ;;  %v10783_v41 = vpack.c.bf16 %v8186_v37, %v8170_v6 }
 0xa3f   : > { %8132 = vmatmul.mubr.f32.gmra.mrb[102].mxu0 %v8042_v33  ;;  %v10787_v33 = vpack.c.bf16 %v8188_v46, %v8172_v39 }
 0xa40   : > { %8136 = vmatprep.mubr.f32.mxu0 %v8045_v32  ;;  %v8169_v32 = vld [vmem:[%s19961_s11 + $0x60] sm:$0xff] }
 0xa43   : > { %8137 = vmatmul.mubr.f32.gmra.mrb[104].mxu0 %v8044_v1  ;;  %v8185_v1 = vld [vmem:[%s19961_s11 + $0xe0] sm:$0xff] }
 0xa44   : > { %8141 = vmatprep.mubr.f32.mxu0 %v8047_v3  ;;  %v8171_v3 = vld [vmem:[%s19961_s11 + $0x70] sm:$0xff] }
 0xa47   : > { %8142 = vmatmul.mubr.f32.gmra.mrb[106].mxu0 %v8046_v63  ;;  %v8187_v63 = vld [vmem:[%s19961_s11 + $0xf0] sm:$0xff] }
 0xa48   : > { %8146 = vmatprep.mubr.f32.mxu0 %v8049_v55  ;;  %v10785_v55 = vpack.c.bf16 %v8185_v1, %v8169_v32 }
 0xa4b   : > { %8147 = vmatmul.mubr.f32.gmra.mrb[108].mxu0 %v8048_v11  ;;  %v10789_v11 = vpack.c.bf16 %v8187_v63, %v8171_v3 }
 0xa4c   : > { %8151 = vmatprep.mubr.f32.mxu0 %v8051_v52  ;;  %v9117_v52 = vlaneseq }
 0xa4e   : > { %v17651_v34 = vand.u32 127, %v9117_v52 }
 0xa4f   : > { %8152 = vmatmul.mubr.f32.gmra.mrb[110].mxu0 %v8050_v57  ;;  %v17645_v57 = vshrl.u32 %v9117_v52, 7 }
 0xa50   : > { %8390 = vmatprep.mubr.f32.mxu0 %v12094_v12  ;;  %v17660_v9 = vadd.s32 256, %v17651_v34  ;;  %v17663_v45 = vadd.s32 128, %v17651_v34  ;;  %v17667_v26 = vadd.s32 384, %v17651_v34 }
 0xa51   : > { %v17648_v31 = vmul.u32 32, %v17645_v57  ;;  %v9119_v56 = vadd.s32 8, %v17645_v57  ;;  %v9120_v30 = vadd.s32 16, %v17645_v57  ;;  %v9121_v20 = vadd.s32 24, %v17645_v57 }
 0xa53   : > { %v17655_v7 = vadd.s32 32, %v17648_v31  ;;  %v17657_v38 = vmul.u32 32, %v9119_v56  ;;  %v17669_v18 = vmul.u32 32, %v9120_v30  ;;  %vm9153_vm5 = vcmp.ge.s32.totalorder %v17660_v9, %v17648_v31 }
 0xa54   : > { %vm9152_vm6 = vcmp.ge.s32.totalorder %v17663_v45, %v17648_v31  ;;  %v17685_v14 = vmul.u32 32, %v9121_v20  ;;  %vm9154_vm8 = vcmp.ge.s32.totalorder %v17667_v26, %v17648_v31 }
 0xa55   : > { %vm9287_vm4 = vcmp.lt.s32.totalorder %v17651_v34, %v17655_v7  ;;  %v17677_v36 = vadd.s32 32, %v17657_v38  ;;  %vm9289_vm3 = vcmp.lt.s32.totalorder %v17660_v9, %v17655_v7  ;;  %vm9288_vm7 = vcmp.lt.s32.totalorder %v17663_v45, %v17655_v7 }
 0xa56   : > { %vm9290_vm9 = vcmp.lt.s32.totalorder %v17667_v26, %v17655_v7  ;;  %v17694_v0 = vadd.s32 32, %v17669_v18  ;;  %vm9167_vm10 = vcmp.ge.s32.totalorder %v17651_v34, %v17657_v38  ;;  %vm9169_vm11 = vcmp.ge.s32.totalorder %v17660_v9, %v17657_v38 }
 0xa57   : > { %vm9303_vm14 = vcmp.lt.s32.totalorder %v17651_v34, %v17677_v36  ;;  %vm9305_vm15 = vcmp.lt.s32.totalorder %v17660_v9, %v17677_v36 }
 0xa58   : > { %vm9321_vm1 = vcmp.lt.s32.totalorder %v17660_v9, %v17694_v0 }
 0xb06   : > { %v10469_v49 = vpop.f32.mrb[96].mxu0 }
 0xb07   : > { %v10470_v50 = vpop.f32.mrb[97].mxu0 }
 0xb08   : > { %v17402_v25 = vadd.f32 %v10470_v50, %v10469_v49  ;;  %v9122_v49 = vadd.s32 32, %v17645_v57 }
 0xb0a   : > { %v10472_v62 = vpop.f32.mrb[98].mxu0  ;;  %10288 = vmatmul.mubr.msk.f32.vlgmr.msra.gmra.mrb[96].mxu1 %vm566_vm0, %v17402_v25  ;;  %10296 = vmatmul.mubr.msk.f32.vlgmr.msra.gmra.mrb[112].mxu0 %vm566_vm0, %v17402_v25  ;;  %v17700_v50 = vmul.u32 32, %v9122_v49  ;;  %v18111_v49 = vadd.s32 768, %v17651_v34 }
 0xb0b   : > { %v10473_v60 = vpop.f32.mrb[99].mxu0  ;;  %8283 = vmatprep.mubr.f32.mxu1 %v12094_v12  ;;  %8396 = vmatprep.mubr.f32.mxu0 %v12094_v12 }
 0xb0c   : > { %v17410_v24 = vadd.f32 %v10473_v60, %v10472_v62  ;;  %10770 = vmatpush1.bf16.msra.mxu1 %v10769_v47  ;;  %10774 = vmatpush1.bf16.msra.mxu0 %v10773_v59  ;;  %v17770_v60 = vadd.s32 32, %v17700_v50  ;;  %vm9218_vm2 = vcmp.ge.s32.totalorder %v17667_v26, %v17700_v50  ;;  %v18131_v62 = vadd.s32 896, %v17651_v34 }
 0xb0d   : > { %10776 = vmatprep.subr.bf16.mxu1 %v10775_v43  ;;  %10780 = vmatprep.subr.bf16.mxu0 %v10779_v61  ;;  %v17735_v43 = vadd.s32 32, %v17685_v14 }
 0xb0e   : > { %v10475_v8 = vpop.f32.mrb[100].mxu0  ;;  %10289 = vmatmul.mubr.msk.f32.gmra.mrb[98].mxu1 %vm566_vm0, %v17410_v24  ;;  %10297 = vmatmul.mubr.msk.f32.gmra.mrb[114].mxu0 %vm566_vm0, %v17410_v24  ;;  %vm9353_vm12 = vcmp.lt.s32.totalorder %v17660_v9, %v17770_v60 }
 0xb0f   : > { %v10476_v4 = vpop.f32.mrb[101].mxu0  ;;  %8289 = vmatprep.mubr.f32.mxu1 %v12094_v12  ;;  %8402 = vmatprep.mubr.f32.mxu0 %v12094_v12 }
 0xb10   : > { %v17418_v29 = vadd.f32 %v10476_v4, %v10475_v8 }
 0xb12   : > { %v10478_v19 = vpop.f32.mrb[102].mxu0  ;;  %10290 = vmatmul.mubr.msk.f32.gmra.mrb[100].mxu1 %vm566_vm0, %v17418_v29  ;;  %10298 = vmatmul.mubr.msk.f32.gmra.mrb[116].mxu0 %vm566_vm0, %v17418_v29 }
 0xb13   : > { %v10479_v13 = vpop.f32.mrb[103].mxu0  ;;  %8295 = vmatprep.mubr.f32.mxu1 %v12094_v12  ;;  %8408 = vmatprep.mubr.f32.mxu0 %v12094_v12 }
 0xb14   : > { %v17426_v40 = vadd.f32 %v10479_v13, %v10478_v19  ;;  %v9124_v19 = vadd.s32 48, %v17645_v57 }
 0xb16   : > { %v10481_v44 = vpop.f32.mrb[104].mxu0  ;;  %10291 = vmatmul.mubr.msk.f32.gmra.mrb[102].mxu1 %vm566_vm0, %v17426_v40  ;;  %10299 = vmatmul.mubr.msk.f32.gmra.mrb[118].mxu0 %vm566_vm0, %v17426_v40 }
 0xb17   : > { %v10482_v5 = vpop.f32.mrb[105].mxu0  ;;  %8301 = vmatprep.mubr.f32.mxu1 %v12094_v12  ;;  %8414 = vmatprep.mubr.f32.mxu0 %v12094_v12 }
 0xb18   : > { %v17434_v16 = vadd.f32 %v10482_v5, %v10481_v44 }
 0xb1a   : > { %v10484_v28 = vpop.f32.mrb[106].mxu0  ;;  %10292 = vmatmul.mubr.msk.f32.gmra.mrb[104].mxu1 %vm566_vm0, %v17434_v16  ;;  %10300 = vmatmul.mubr.msk.f32.gmra.mrb[120].mxu0 %vm566_vm0, %v17434_v16 }
 0xb1b   : > { %v10485_v23 = vpop.f32.mrb[107].mxu0  ;;  %8307 = vmatprep.mubr.f32.mxu1 %v12094_v12  ;;  %8420 = vmatprep.mubr.f32.mxu0 %v12094_v12 }
 0xb1c   : > { %v17442_v54 = vadd.f32 %v10485_v23, %v10484_v28 }
 0xb1e   : > { %v10487_v58 = vpop.f32.mrb[108].mxu0  ;;  %10293 = vmatmul.mubr.msk.f32.gmra.mrb[106].mxu1 %vm566_vm0, %v17442_v54  ;;  %10301 = vmatmul.mubr.msk.f32.gmra.mrb[122].mxu0 %vm566_vm0, %v17442_v54 }
 0xb1f   : > { %v10488_v17 = vpop.f32.mrb[109].mxu0  ;;  %8313 = vmatprep.mubr.f32.mxu1 %v12094_v12  ;;  %8426 = vmatprep.mubr.f32.mxu0 %v12094_v12 }
 0xb20   : > { %v17450_v2 = vadd.f32 %v10488_v17, %v10487_v58 }
 0xb22   : > { %v10490_v35 = vpop.f32.mrb[110].mxu0  ;;  %10294 = vmatmul.mubr.msk.f32.gmra.mrb[108].mxu1 %vm566_vm0, %v17450_v2  ;;  %10302 = vmatmul.mubr.msk.f32.gmra.mrb[124].mxu0 %vm566_vm0, %v17450_v2 }
 0xb23   : > { %v10491_v51 = vpop.f32.mrb[111].mxu0  ;;  %8319 = vmatprep.mubr.f32.mxu1 %v12094_v12  ;;  %8432 = vmatprep.mubr.f32.mxu0 %v12094_v12 }
 0xb24   : > { %v17458_v42 = vadd.f32 %v10491_v51, %v10490_v35  ;;  %v17866_v35 = vmul.u32 32, %v9124_v19  ;;  %v9125_v51 = vadd.s32 56, %v17645_v57 }
 0xb26   : > { %10295 = vmatmul.mubr.msk.f32.gmra.mrb[110].mxu1 %vm566_vm0, %v17458_v42  ;;  %10303 = vmatmul.mubr.msk.f32.gmra.mrb[126].mxu0 %vm566_vm0, %v17458_v42  ;;  %v17934_v52 = vmul.u32 32, %v9125_v51 }
 0xb27   : > { %8503 = vmatprep.mubr.f32.mxu1 %v12094_v12  ;;  %8616 = vmatprep.mubr.f32.mxu0 %v12094_v12 }
 0xb28   : > { %v17999_v44 = vadd.s32 32, %v17934_v52 }
 0xb2a   : > { %10304 = vmatmul.mubr.msk.f32.vlgmr.msra.gmra.mrb[112].mxu1 %vm566_vm0, %v17402_v25  ;;  %10312 = vmatmul.mubr.msk.f32.vlgmr.msra.gmra.mrb[128].mxu0 %vm566_vm0, %v17402_v25 }
 0xb2b   : > { %8509 = vmatprep.mubr.f32.mxu1 %v12094_v12  ;;  %8622 = vmatprep.mubr.f32.mxu0 %v12094_v12 }
 0xb2c   : > { %10778 = vmatpush1.bf16.msra.mxu1 %v10777_v15  ;;  %10782 = vmatpush1.bf16.msra.mxu0 %v10781_v27 }
 0xb2d   : > { %10784 = vmatprep.subr.bf16.mxu1 %v10783_v41  ;;  %10788 = vmatprep.subr.bf16.mxu0 %v10787_v33 }
 0xb2e   : > { %10305 = vmatmul.mubr.msk.f32.gmra.mrb[114].mxu1 %vm566_vm0, %v17410_v24  ;;  %10313 = vmatmul.mubr.msk.f32.gmra.mrb[130].mxu0 %vm566_vm0, %v17410_v24 }
 0xb2f   : > { %8515 = vmatprep.mubr.f32.mxu1 %v12094_v12  ;;  %8628 = vmatprep.mubr.f32.mxu0 %v12094_v12 }
 0xb32   : > { %10306 = vmatmul.mubr.msk.f32.gmra.mrb[116].mxu1 %vm566_vm0, %v17418_v29  ;;  %10314 = vmatmul.mubr.msk.f32.gmra.mrb[132].mxu0 %vm566_vm0, %v17418_v29 }
 0xb33   : > { %8521 = vmatprep.mubr.f32.mxu1 %v12094_v12  ;;  %8634 = vmatprep.mubr.f32.mxu0 %v12094_v12 }
 0xb36   : > { %10307 = vmatmul.mubr.msk.f32.gmra.mrb[118].mxu1 %vm566_vm0, %v17426_v40  ;;  %10315 = vmatmul.mubr.msk.f32.gmra.mrb[134].mxu0 %vm566_vm0, %v17426_v40 }
 0xb37   : > { %8527 = vmatprep.mubr.f32.mxu1 %v12094_v12  ;;  %8640 = vmatprep.mubr.f32.mxu0 %v12094_v12 }
 0xb3a   : > { %10308 = vmatmul.mubr.msk.f32.gmra.mrb[120].mxu1 %vm566_vm0, %v17434_v16  ;;  %10316 = vmatmul.mubr.msk.f32.gmra.mrb[136].mxu0 %vm566_vm0, %v17434_v16 }
 0xb3b   : > { %8533 = vmatprep.mubr.f32.mxu1 %v12094_v12  ;;  %8646 = vmatprep.mubr.f32.mxu0 %v12094_v12 }
 0xb3e   : > { %10309 = vmatmul.mubr.msk.f32.gmra.mrb[122].mxu1 %vm566_vm0, %v17442_v54  ;;  %10317 = vmatmul.mubr.msk.f32.gmra.mrb[138].mxu0 %vm566_vm0, %v17442_v54 }
 0xb3f   : > { %8539 = vmatprep.mubr.f32.mxu1 %v12094_v12  ;;  %8652 = vmatprep.mubr.f32.mxu0 %v12094_v12 }
 0xb42   : > { %10310 = vmatmul.mubr.msk.f32.gmra.mrb[124].mxu1 %vm566_vm0, %v17450_v2  ;;  %10318 = vmatmul.mubr.msk.f32.gmra.mrb[140].mxu0 %vm566_vm0, %v17450_v2 }
 0xb43   : > { %8545 = vmatprep.mubr.f32.mxu1 %v12094_v12  ;;  %8658 = vmatprep.mubr.f32.mxu0 %v12094_v12 }
 0xb46   : > { %10311 = vmatmul.mubr.msk.f32.gmra.mrb[126].mxu1 %vm566_vm0, %v17458_v42  ;;  %10319 = vmatmul.mubr.msk.f32.gmra.mrb[142].mxu0 %vm566_vm0, %v17458_v42 }
 0xb47   : > { %8729 = vmatprep.mubr.f32.mxu1 %v12094_v12  ;;  %8842 = vmatprep.mubr.f32.mxu0 %v12094_v12 }
 0xb4a   : > { %10320 = vmatmul.mubr.msk.f32.vlgmr.msra.gmra.mrb[128].mxu1 %vm566_vm0, %v17402_v25  ;;  %10328 = vmatmul.mubr.msk.f32.vlgmr.msra.gmra.mrb[144].mxu0 %vm566_vm0, %v17402_v25 }
 0xb4b   : > { %8735 = vmatprep.mubr.f32.mxu1 %v12094_v12  ;;  %8848 = vmatprep.mubr.f32.mxu0 %v12094_v12 }
 0xb4c   : > { %10786 = vmatpush1.bf16.msra.mxu1 %v10785_v55  ;;  %10790 = vmatpush1.bf16.msra.mxu0 %v10789_v11  ;;  %v17932_v11 = vadd.s32 32, %v17866_v35 }
 0xb4d   : > { %10791 = vmatprep.subr.bf16.mxu1 %v12111_v10 }
 0xb4e   : > { %10321 = vmatmul.mubr.msk.f32.gmra.mrb[130].mxu1 %vm566_vm0, %v17410_v24  ;;  %10329 = vmatmul.mubr.msk.f32.gmra.mrb[146].mxu0 %vm566_vm0, %v17410_v24 }
 0xb4f   : > { %8741 = vmatprep.mubr.f32.mxu1 %v12094_v12  ;;  %8854 = vmatprep.mubr.f32.mxu0 %v12094_v12 }
 0xb52   : > { %10322 = vmatmul.mubr.msk.f32.gmra.mrb[132].mxu1 %vm566_vm0, %v17418_v29  ;;  %10330 = vmatmul.mubr.msk.f32.gmra.mrb[148].mxu0 %vm566_vm0, %v17418_v29 }
 0xb53   : > { %8747 = vmatprep.mubr.f32.mxu1 %v12094_v12  ;;  %8860 = vmatprep.mubr.f32.mxu0 %v12094_v12 }
 0xb56   : > { %10323 = vmatmul.mubr.msk.f32.gmra.mrb[134].mxu1 %vm566_vm0, %v17426_v40  ;;  %10331 = vmatmul.mubr.msk.f32.gmra.mrb[150].mxu0 %vm566_vm0, %v17426_v40 }
 0xb57   : > { %8753 = vmatprep.mubr.f32.mxu1 %v12094_v12  ;;  %8866 = vmatprep.mubr.f32.mxu0 %v12094_v12 }
 0xb5a   : > { %10324 = vmatmul.mubr.msk.f32.gmra.mrb[136].mxu1 %vm566_vm0, %v17434_v16  ;;  %10332 = vmatmul.mubr.msk.f32.gmra.mrb[152].mxu0 %vm566_vm0, %v17434_v16 }
 0xb5b   : > { %8759 = vmatprep.mubr.f32.mxu1 %v12094_v12  ;;  %8872 = vmatprep.mubr.f32.mxu0 %v12094_v12 }
 0xb5e   : > { %10325 = vmatmul.mubr.msk.f32.gmra.mrb[138].mxu1 %vm566_vm0, %v17442_v54  ;;  %10333 = vmatmul.mubr.msk.f32.gmra.mrb[154].mxu0 %vm566_vm0, %v17442_v54 }
 0xb5f   : > { %8765 = vmatprep.mubr.f32.mxu1 %v12094_v12  ;;  %8878 = vmatprep.mubr.f32.mxu0 %v12094_v12 }
 0xb62   : > { %10326 = vmatmul.mubr.msk.f32.gmra.mrb[140].mxu1 %vm566_vm0, %v17450_v2  ;;  %10334 = vmatmul.mubr.msk.f32.gmra.mrb[156].mxu0 %vm566_vm0, %v17450_v2 }
 0xb63   : > { %8771 = vmatprep.mubr.f32.mxu1 %v12094_v12  ;;  %8884 = vmatprep.mubr.f32.mxu0 %v12094_v12 }
 0xb66   : > { %10327 = vmatmul.mubr.msk.f32.gmra.mrb[142].mxu1 %vm566_vm0, %v17458_v42  ;;  %10335 = vmatmul.mubr.msk.f32.gmra.mrb[158].mxu0 %vm566_vm0, %v17458_v42 }
 0xb67   : > { %8955 = vmatprep.mubr.f32.mxu1 %v12094_v12  ;;  %9068 = vmatprep.mubr.f32.mxu0 %v12094_v12 }
 0xb6a   : > { %10336 = vmatmul.mubr.msk.f32.vlgmr.msra.gmra.mrb[144].mxu1 %vm566_vm0, %v17402_v25  ;;  %10344 = vmatmul.mubr.msk.f32.vlgmr.msra.gmra.mrb[160].mxu0 %vm566_vm0, %v17402_v25  ;;  %v9123_v25 = vadd.s32 40, %v17645_v57 }
 0xb6b   : > { %8961 = vmatprep.mubr.f32.mxu1 %v12094_v12  ;;  %9074 = vmatprep.mubr.f32.mxu0 %v12094_v12 }
 0xb6e   : > { %10337 = vmatmul.mubr.msk.f32.gmra.mrb[146].mxu1 %vm566_vm0, %v17410_v24  ;;  %10345 = vmatmul.mubr.msk.f32.gmra.mrb[162].mxu0 %vm566_vm0, %v17410_v24  ;;  %v17772_v24 = vmul.u32 32, %v9123_v25 }
 0xb6f   : > { %8967 = vmatprep.mubr.f32.mxu1 %v12094_v12  ;;  %9080 = vmatprep.mubr.f32.mxu0 %v12094_v12 }
 0xb70   : > { %v17846_v28 = vadd.s32 32, %v17772_v24 }
 0xb72   : > { %10338 = vmatmul.mubr.msk.f32.gmra.mrb[148].mxu1 %vm566_vm0, %v17418_v29  ;;  %10346 = vmatmul.mubr.msk.f32.gmra.mrb[164].mxu0 %vm566_vm0, %v17418_v29 }
 0xb73   : > { %8973 = vmatprep.mubr.f32.mxu1 %v12094_v12  ;;  %9086 = vmatprep.mubr.f32.mxu0 %v12094_v12 }
 0xb76   : > { %10339 = vmatmul.mubr.msk.f32.gmra.mrb[150].mxu1 %vm566_vm0, %v17426_v40  ;;  %10347 = vmatmul.mubr.msk.f32.gmra.mrb[166].mxu0 %vm566_vm0, %v17426_v40 }
 0xb77   : > { %8979 = vmatprep.mubr.f32.mxu1 %v12094_v12  ;;  %9092 = vmatprep.mubr.f32.mxu0 %v12094_v12 }
 0xb7a   : > { %10340 = vmatmul.mubr.msk.f32.gmra.mrb[152].mxu1 %vm566_vm0, %v17434_v16  ;;  %10348 = vmatmul.mubr.msk.f32.gmra.mrb[168].mxu0 %vm566_vm0, %v17434_v16 }
 0xb7b   : > { %8985 = vmatprep.mubr.f32.mxu1 %v12094_v12  ;;  %9098 = vmatprep.mubr.f32.mxu0 %v12094_v12 }
 0xb7e   : > { %10341 = vmatmul.mubr.msk.f32.gmra.mrb[154].mxu1 %vm566_vm0, %v17442_v54  ;;  %10349 = vmatmul.mubr.msk.f32.gmra.mrb[170].mxu0 %vm566_vm0, %v17442_v54 }
 0xb7f   : > { %8991 = vmatprep.mubr.f32.mxu1 %v12094_v12  ;;  %9104 = vmatprep.mubr.f32.mxu0 %v12094_v12 }
 0xb82   : > { %10342 = vmatmul.mubr.msk.f32.gmra.mrb[156].mxu1 %vm566_vm0, %v17450_v2  ;;  %10350 = vmatmul.mubr.msk.f32.gmra.mrb[172].mxu0 %vm566_vm0, %v17450_v2 }
 0xb83   : > { %8997 = vmatprep.mubr.f32.mxu1 %v12094_v12  ;;  %9110 = vmatprep.mubr.f32.mxu0 %v12094_v12 }
 0xb86   : > { %10343 = vmatmul.mubr.msk.f32.gmra.mrb[158].mxu1 %vm566_vm0, %v17458_v42  ;;  %10351 = vmatmul.mubr.msk.f32.gmra.mrb[174].mxu0 %vm566_vm0, %v17458_v42  ;;  %vm9151_vm0 = vcmp.ge.s32.totalorder %v17651_v34, %v17648_v31 }
 0xb87   : > { %vm17706_vm13 = vmand %vm9151_vm0, %vm9287_vm4  ;;  %vm9304_vm4 = vcmp.lt.s32.totalorder %v17663_v45, %v17677_v36 }
 0xb88   : > { %vm17724_vm0 = vmand %vm9153_vm5, %vm9289_vm3  ;;  %vm9319_vm3 = vcmp.lt.s32.totalorder %v17651_v34, %v17694_v0 }
 0xb89   : > { %vm17743_vm5 = vmand %vm9152_vm6, %vm9288_vm7  ;;  %vm20054_vm7 = vcmp.lt.s32.totalorder %v17667_v26, %v17677_v36 }
 0xb8a   : > { %vm17761_vm6 = vmand %vm9154_vm8, %vm9290_vm9  ;;  %vm9352_vm9 = vcmp.lt.s32.totalorder %v17663_v45, %v17770_v60 }
 0xb8b   : > { %vm17780_vm8 = vmand %vm9167_vm10, %vm9303_vm14  ;;  %vm9351_vm14 = vcmp.lt.s32.totalorder %v17651_v34, %v17770_v60 }
 0xb8c   : > { %vm17797_vm10 = vmand %vm9169_vm11, %vm9305_vm15  ;;  %vm20051_vm11 = vcmp.ge.s32.totalorder %v17663_v45, %v17657_v38 }
 0xb8d   : > { %vm17815_vm15 = vmand %vm20051_vm11, %vm9304_vm4  ;;  %vm20055_vm4 = vcmp.ge.s32.totalorder %v17667_v26, %v17657_v38 }
 0xb8e   : > { %vm17833_vm11 = vmand %vm20055_vm4, %vm20054_vm7  ;;  %vm20058_vm7 = vcmp.ge.s32.totalorder %v17651_v34, %v17669_v18 }
 0xb8f   : > { %vm17858_vm4 = vmand %vm20058_vm7, %vm9319_vm3 }
 0xbdd   : > { %v8279_v8 = vpop.f32.mrb[96].mxu1  ;;  %v8392_v4 = vpop.f32.mrb[112].mxu0 }
 0xbde   : > { %v8281_v13 = vpop.f32.mrb[97].mxu1  ;;  %v8394_v40 = vpop.f32.mrb[113].mxu0  ;;  %v9543_v23 = vsel %vm17706_vm13, %v8279_v8, 0.0  ;;  %v9545_v54 = vsel %vm17724_vm0, %v8392_v4, 0.0  ;;  %vm9354_vm13 = vcmp.lt.s32.totalorder %v17667_v26, %v17770_v60  ;;  %vm20061_vm0 = vcmp.ge.s32.totalorder %v17660_v9, %v17669_v18 }
 0xbdf   : > { %v9544_v42 = vsel %vm17743_vm5, %v8281_v13, 0.0  ;;  %v9546_v21 = vsel %vm17761_vm6, %v8394_v40, 0.0  ;;  %vm17883_vm3 = vmand %vm20061_vm0, %vm9321_vm1  ;;  %vm20064_vm6 = vcmp.lt.s32.totalorder %v17663_v45, %v17694_v0  ;;  %vm20065_vm1 = vcmp.ge.s32.totalorder %v17663_v45, %v17669_v18 }
 0xbe1   : > { %v8285_v58 = vpop.f32.mrb[98].mxu1  ;;  %v8398_v17 = vpop.f32.mrb[114].mxu0 }
 0xbe2   : > { %v9559_v48 = vsel %vm17780_vm8, %v8285_v58, 0.0  ;;  %v9561_v53 = vsel %vm17797_vm10, %v8398_v17, 0.0  ;;  %v8287_v22 = vpop.f32.mrb[99].mxu1  ;;  %v8400_v6 = vpop.f32.mrb[115].mxu0  ;;  %vm17899_vm8 = vmand %vm20065_vm1, %vm20064_vm6  ;;  %vm20068_vm10 = vcmp.lt.s32.totalorder %v17667_v26, %v17694_v0  ;;  %vm20072_vm6 = vcmp.lt.s32.totalorder %v17651_v34, %v17735_v43 }
 0xbe3   : > { %v9671_v39 = vadd.f32 %v9559_v48, %v9543_v23  ;;  %v9697_v46 = vadd.f32 %v9561_v53, %v9545_v54  ;;  %v9560_v15 = vsel %vm17815_vm15, %v8287_v22, 0.0  ;;  %v9562_v27 = vsel %vm17833_vm11, %v8400_v6, 0.0 }
 0xbe4   : > { %v9684_v33 = vadd.f32 %v9560_v15, %v9544_v42  ;;  %v9710_v32 = vadd.f32 %v9562_v27, %v9546_v21  ;;  %vm20069_vm15 = vcmp.ge.s32.totalorder %v17667_v26, %v17669_v18  ;;  %vm20073_vm1 = vcmp.ge.s32.totalorder %v17651_v34, %v17685_v14 }
 0xbe5   : > { %vm17909_vm7 = vmand %vm20069_vm15, %vm20068_vm10  ;;  %v8291_v3 = vpop.f32.mrb[100].mxu1  ;;  %v8404_v63 = vpop.f32.mrb[116].mxu0  ;;  %vm9367_vm10 = vcmp.lt.s32.totalorder %v17651_v34, %v17846_v28 }
 0xbe6   : > { %vm17923_vm5 = vmand %vm20073_vm1, %vm20072_vm6  ;;  %v9575_v57 = vsel %vm17858_vm4, %v8291_v3, 0.0  ;;  %v9577_v56 = vsel %vm17883_vm3, %v8404_v63, 0.0  ;;  %v8293_v30 = vpop.f32.mrb[101].mxu1  ;;  %v8406_v20 = vpop.f32.mrb[117].mxu0  ;;  %vm20076_vm6 = vcmp.lt.s32.totalorder %v17660_v9, %v17735_v43  ;;  %vm20077_vm1 = vcmp.ge.s32.totalorder %v17660_v9, %v17685_v14 }
 0xbe7   : > { %vm17946_vm15 = vmand %vm20077_vm1, %vm20076_vm6  ;;  %v9672_v25 = vadd.f32 %v9671_v39, %v9575_v57  ;;  %v9698_v47 = vadd.f32 %v9697_v46, %v9577_v56  ;;  %v9576_v59 = vsel %vm17899_vm8, %v8293_v30, 0.0  ;;  %v9578_v61 = vsel %vm17909_vm7, %v8406_v20, 0.0 }
 0xbe8   : > { %vm20080_vm3 = vcmp.lt.s32.totalorder %v17663_v45, %v17735_v43  ;;  %vm20081_vm6 = vcmp.ge.s32.totalorder %v17663_v45, %v17685_v14  ;;  %v9685_v8 = vadd.f32 %v9684_v33, %v9576_v59  ;;  %v9711_v4 = vadd.f32 %v9710_v32, %v9578_v61 }
 0xbe9   : > { %vm17964_vm1 = vmand %vm20081_vm6, %vm20080_vm3  ;;  %vm20084_vm4 = vcmp.lt.s32.totalorder %v17667_v26, %v17735_v43  ;;  %vm20085_vm8 = vcmp.ge.s32.totalorder %v17667_v26, %v17685_v14  ;;  %vm9370_vm7 = vcmp.lt.s32.totalorder %v17667_v26, %v17846_v28  ;;  %v8297_v19 = vpop.f32.mrb[102].mxu1  ;;  %v8410_v13 = vpop.f32.mrb[118].mxu0  ;;  %vm20088_vm6 = vcmp.ge.s32.totalorder %v17651_v34, %v17700_v50 }
 0xbea   : > { %vm17974_vm11 = vmand %vm20085_vm8, %vm20084_vm4  ;;  %vm9383_vm4 = vcmp.lt.s32.totalorder %v17651_v34, %v17932_v11  ;;  %vm9249_vm8 = vcmp.ge.s32.totalorder %v17660_v9, %v17866_v35  ;;  %v9591_v5 = vsel %vm17923_vm5, %v8297_v19, 0.0  ;;  %v9593_v16 = vsel %vm17946_vm15, %v8410_v13, 0.0  ;;  %v8299_v23 = vpop.f32.mrb[103].mxu1  ;;  %v8412_v54 = vpop.f32.mrb[119].mxu0 }
 0xbeb   : > { %vm17988_vm0 = vmand %vm20088_vm6, %vm9351_vm14  ;;  %vm20091_vm14 = vcmp.ge.s32.totalorder %v17660_v9, %v17700_v50  ;;  %vm9385_vm3 = vcmp.lt.s32.totalorder %v17660_v9, %v17932_v11  ;;  %vm9384_vm5 = vcmp.lt.s32.totalorder %v17663_v45, %v17932_v11  ;;  %v9673_v17 = vadd.f32 %v9672_v25, %v9591_v5 }
 0xbec   : > { %vm18011_vm6 = vmand %vm20091_vm14, %vm9353_vm12  ;;  %v9699_v2 = vadd.f32 %v9698_v47, %v9593_v16  ;;  %v9592_v51 = vsel %vm17964_vm1, %v8299_v23, 0.0  ;;  %v9594_v42 = vsel %vm17974_vm11, %v8412_v54, 0.0  ;;  %vm20094_vm12 = vcmp.ge.s32.totalorder %v17663_v45, %v17700_v50 }
 0xbed   : > { %vm18029_vm15 = vmand %vm20094_vm12, %vm9352_vm9  ;;  %v9686_v48 = vadd.f32 %v9685_v8, %v9592_v51  ;;  %v9712_v53 = vadd.f32 %v9711_v4, %v9594_v42  ;;  %v8303_v6 = vpop.f32.mrb[104].mxu1  ;;  %v8416_v37 = vpop.f32.mrb[120].mxu0  ;;  %vm20099_vm14 = vcmp.ge.s32.totalorder %v17651_v34, %v17772_v24  ;;  %vm9401_vm9 = vcmp.lt.s32.totalorder %v17660_v9, %v17999_v44 }
 0xbee   : > { %vm18039_vm1 = vmand %vm9218_vm2, %vm9354_vm13  ;;  %vm9399_vm13 = vcmp.lt.s32.totalorder %v17651_v34, %v17999_v44  ;;  %v9607_v46 = vsel %vm17988_vm0, %v8303_v6, 0.0  ;;  %v9609_v15 = vsel %vm18011_vm6, %v8416_v37, 0.0  ;;  %v8305_v27 = vpop.f32.mrb[105].mxu1  ;;  %v8418_v41 = vpop.f32.mrb[121].mxu0  ;;  %vm9264_vm11 = vcmp.ge.s32.totalorder %v17663_v45, %v17934_v52 }
 0xbef   : > { %vm18053_vm12 = vmand %vm20099_vm14, %vm9367_vm10  ;;  %vm20102_vm10 = vcmp.lt.s32.totalorder %v17660_v9, %v17846_v28  ;;  %vm20103_vm14 = vcmp.ge.s32.totalorder %v17660_v9, %v17772_v24  ;;  %v18082_v32 = vadd.s32 512, %v17651_v34  ;;  %v9674_v1 = vadd.f32 %v9673_v17, %v9607_v46 }
 0xbf0   : > { %vm18075_vm2 = vmand %vm20103_vm14, %vm20102_vm10  ;;  %v9700_v3 = vadd.f32 %v9699_v2, %v9609_v15  ;;  %v9608_v63 = vsel %vm18029_vm15, %v8305_v27, 0.0  ;;  %v9610_v55 = vsel %vm18039_vm1, %v8418_v41, 0.0  ;;  %vm20106_vm0 = vcmp.lt.s32.totalorder %v17663_v45, %v17846_v28 }
 0xbf1   : > { %vm20107_vm6 = vcmp.ge.s32.totalorder %v17663_v45, %v17772_v24  ;;  %v9687_v56 = vadd.f32 %v9686_v48, %v9608_v63  ;;  %v9713_v30 = vadd.f32 %v9712_v53, %v9610_v55  ;;  %vm20110_vm15 = vcmp.ge.s32.totalorder %v17667_v26, %v17772_v24  ;;  %v8309_v25 = vpop.f32.mrb[106].mxu1  ;;  %v8422_v47 = vpop.f32.mrb[122].mxu0 }
 0xbf2   : > { %vm18094_vm10 = vmand %vm20107_vm6, %vm20106_vm0  ;;  %vm9400_vm1 = vcmp.lt.s32.totalorder %v17663_v45, %v17999_v44  ;;  %vm20113_vm0 = vcmp.ge.s32.totalorder %v17651_v34, %v17866_v35  ;;  %v18128_v61 = vadd.s32 640, %v17651_v34  ;;  %v9623_v8 = vsel %vm18053_vm12, %v8309_v25, 0.0  ;;  %v8311_v29 = vpop.f32.mrb[107].mxu1  ;;  %v8424_v19 = vpop.f32.mrb[123].mxu0 }
 0xbf3   : > { %vm18104_vm14 = vmand %vm20110_vm15, %vm9370_vm7  ;;  %vm9266_vm7 = vcmp.ge.s32.totalorder %v17667_v26, %v17934_v52  ;;  %vm9402_vm15 = vcmp.lt.s32.totalorder %v17667_v26, %v17999_v44  ;;  %v9625_v4 = vsel %vm18075_vm2, %v8422_v47, 0.0  ;;  %v9675_v40 = vadd.f32 %v9674_v1, %v9623_v8 }
 0xbf4   : > { %vm18119_vm6 = vmand %vm20113_vm0, %vm9383_vm4  ;;  %v9701_v5 = vadd.f32 %v9700_v3, %v9625_v4  ;;  %v9624_v16 = vsel %vm18094_vm10, %v8311_v29, 0.0  ;;  %v9626_v23 = vsel %vm18104_vm14, %v8424_v19, 0.0  ;;  %vm20121_vm2 = vcmp.lt.s32.totalorder %v17667_v26, %v17932_v11 }
 0xbf5   : > { %vm18143_vm4 = vmand %vm9249_vm8, %vm9385_vm3  ;;  %vm20118_vm3 = vcmp.ge.s32.totalorder %v17663_v45, %v17866_v35  ;;  %v9688_v58 = vadd.f32 %v9687_v56, %v9624_v16  ;;  %v9714_v17 = vadd.f32 %v9713_v30, %v9626_v23  ;;  %vm20122_vm10 = vcmp.ge.s32.totalorder %v17667_v26, %v17866_v35  ;;  %v8315_v51 = vpop.f32.mrb[108].mxu1  ;;  %v8428_v42 = vpop.f32.mrb[124].mxu0 }
 0xbf6   : > { %vm18161_vm8 = vmand %vm20118_vm3, %vm9384_vm5  ;;  %vm20125_vm3 = vcmp.ge.s32.totalorder %v17651_v34, %v17934_v52  ;;  %vm9294_vm5 = vcmp.lt.s32.totalorder %v18131_v62, %v17655_v7  ;;  %v9639_v48 = vsel %vm18119_vm6, %v8315_v51, 0.0  ;;  %v9641_v53 = vsel %vm18143_vm4, %v8428_v42, 0.0  ;;  %v8317_v22 = vpop.f32.mrb[109].mxu1  ;;  %v8430_v6 = vpop.f32.mrb[125].mxu0 }
 0xbf7   : > { %vm18171_vm0 = vmand %vm20122_vm10, %vm20121_vm2  ;;  %vm9156_vm2 = vcmp.ge.s32.totalorder %v18128_v61, %v17648_v31  ;;  %vm9292_vm10 = vcmp.lt.s32.totalorder %v18128_v61, %v17655_v7  ;;  %vm9171_vm14 = vcmp.ge.s32.totalorder %v18082_v32, %v17657_v38  ;;  %vm9307_vm6 = vcmp.lt.s32.totalorder %v18082_v32, %v17677_v36 }
 0xbf8   : > { %vm18185_vm12 = vmand %vm20125_vm3, %vm9399_vm13  ;;  %vm20128_vm13 = vcmp.ge.s32.totalorder %v17660_v9, %v17934_v52  ;;  %v9676_v39 = vadd.f32 %v9675_v40, %v9639_v48  ;;  %v9702_v46 = vadd.f32 %v9701_v5, %v9641_v53  ;;  %v9640_v15 = vsel %vm18161_vm8, %v8317_v22, 0.0 }
 0xbf9   : > { %vm18207_vm3 = vmand %vm20128_vm13, %vm9401_vm9  ;;  %v9642_v27 = vsel %vm18171_vm0, %v8430_v6, 0.0  ;;  %v9689_v41 = vadd.f32 %v9688_v58, %v9640_v15  ;;  %v8321_v45 = vpop.f32.mrb[110].mxu1  ;;  %v8434_v3 = vpop.f32.mrb[126].mxu0  ;;  %vm20136_vm8 = vcmp.ge.s32.totalorder %v18082_v32, %v17648_v31  ;;  %vm9187_vm0 = vcmp.ge.s32.totalorder %v18082_v32, %v17669_v18 }
 0xbfa   : > { %vm18225_vm9 = vmand %vm9264_vm11, %vm9400_vm1  ;;  %v9715_v33 = vadd.f32 %v9714_v17, %v9642_v27  ;;  %vm20135_vm1 = vcmp.lt.s32.totalorder %v18082_v32, %v17655_v7  ;;  %vm9310_vm11 = vcmp.lt.s32.totalorder %v18131_v62, %v17677_v36  ;;  %v9655_v63 = vsel %vm18185_vm12, %v8321_v45, 0.0  ;;  %v8323_v57 = vpop.f32.mrb[111].mxu1  ;;  %v8436_v56 = vpop.f32.mrb[127].mxu0 }
 0xbfb   : > { %vm18235_vm4 = vmand %vm9266_vm7, %vm9402_vm15  ;;  %vm9308_vm15 = vcmp.lt.s32.totalorder %v18128_v61, %v17677_v36  ;;  %v9657_v55 = vsel %vm18207_vm3, %v8434_v3, 0.0  ;;  %vm9323_vm12 = vcmp.lt.s32.totalorder %v18082_v32, %v17694_v0  ;;  %v18279_v20 = vadd.f32 %v9676_v39, %v9655_v63 }
 0xbfc   : > { %vm18249_vm13 = vmand %vm20136_vm8, %vm20135_vm1  ;;  %vm20139_vm1 = vcmp.lt.s32.totalorder %v18111_v49, %v17655_v7  ;;  %vm20140_vm8 = vcmp.ge.s32.totalorder %v18111_v49, %v17648_v31  ;;  %v18281_v25 = vadd.f32 %v9702_v46, %v9657_v55  ;;  %v9656_v47 = vsel %vm18225_vm9, %v8323_v57, 0.0 }
 0xbfd   : > { %vm18271_vm7 = vmand %vm20140_vm8, %vm20139_vm1  ;;  %v9658_v59 = vsel %vm18235_vm4, %v8436_v56, 0.0  ;;  %v18297_v4 = vadd.f32 %v9689_v41, %v9656_v47  ;;  %vm20145_vm9 = vcmp.ge.s32.totalorder %v18131_v62, %v17648_v31  ;;  %v8505_v13 = vpop.f32.mrb[112].mxu1  ;;  %v8618_v40 = vpop.f32.mrb[128].mxu0 }
 0xbfe   : > { %vm18293_vm3 = vmand %vm9156_vm2, %vm9292_vm10  ;;  %v18299_v29 = vadd.f32 %v9715_v33, %v9658_v59  ;;  %v8507_v16 = vpop.f32.mrb[113].mxu1  ;;  %v8620_v23 = vpop.f32.mrb[129].mxu0  ;;  %vm9356_vm2 = vcmp.lt.s32.totalorder %v18128_v61, %v17770_v60  ;;  %v9547_v21 = vsel %vm18249_vm13, %v8505_v13, 0.0  ;;  %v9549_v48 = vsel %vm18271_vm7, %v8618_v40, 0.0 }
 0xbff   : > { %vm18307_vm4 = vmand %vm20145_vm9, %vm9294_vm5  ;;  %vm9355_vm9 = vcmp.lt.s32.totalorder %v18082_v32, %v17770_v60  ;;  %vm9358_vm5 = vcmp.lt.s32.totalorder %v18131_v62, %v17770_v60  ;;  %vm20166_vm13 = vcmp.lt.s32.totalorder %v18128_v61, %v17694_v0  ;;  %vm20167_vm7 = vcmp.ge.s32.totalorder %v18128_v61, %v17669_v18 }
 0xc00   : > { %vm18321_vm1 = vmand %vm9171_vm14, %vm9307_vm6  ;;  %vm20150_vm14 = vcmp.lt.s32.totalorder %v18111_v49, %v17677_v36  ;;  %vm20151_vm6 = vcmp.ge.s32.totalorder %v18111_v49, %v17657_v38  ;;  %v9548_v9 = vsel %vm18293_vm3, %v8507_v16, 0.0  ;;  %v9550_v41 = vsel %vm18307_vm4, %v8620_v23, 0.0 }
 0xc01   : > { %vm18339_vm10 = vmand %vm20151_vm6, %vm20150_vm14  ;;  %vm20154_vm14 = vcmp.ge.s32.totalorder %v18128_v61, %v17657_v38  ;;  %v8511_v2 = vpop.f32.mrb[114].mxu1  ;;  %v8624_v51 = vpop.f32.mrb[130].mxu0  ;;  %vm20174_vm3 = vcmp.lt.s32.totalorder %v18082_v32, %v17735_v43  ;;  %vm20175_vm4 = vcmp.ge.s32.totalorder %v18082_v32, %v17685_v14 }
 0xc02   : > { %vm18357_vm6 = vmand %vm20154_vm14, %vm9308_vm15  ;;  %vm20157_vm15 = vcmp.ge.s32.totalorder %v18131_v62, %v17657_v38  ;;  %v9563_v53 = vsel %vm18321_vm1, %v8511_v2, 0.0  ;;  %v9565_v22 = vsel %vm18339_vm10, %v8624_v51, 0.0  ;;  %v8513_v6 = vpop.f32.mrb[115].mxu1  ;;  %v8626_v37 = vpop.f32.mrb[131].mxu0 }
 0xc03   : > { %vm18375_vm14 = vmand %vm20157_vm15, %vm9310_vm11  ;;  %vm9220_vm15 = vcmp.ge.s32.totalorder %v18128_v61, %v17700_v50  ;;  %v9723_v46 = vadd.f32 %v9563_v53, %v9547_v21  ;;  %v9749_v15 = vadd.f32 %v9565_v22, %v9549_v48  ;;  %v9564_v33 = vsel %vm18357_vm6, %v8513_v6, 0.0 }
 0xc04   : > { %vm18393_vm11 = vmand %vm9187_vm0, %vm9323_vm12  ;;  %vm20162_vm0 = vcmp.lt.s32.totalorder %v18111_v49, %v17694_v0  ;;  %vm20163_vm12 = vcmp.ge.s32.totalorder %v18111_v49, %v17669_v18  ;;  %v9566_v1 = vsel %vm18375_vm14, %v8626_v37, 0.0  ;;  %v9736_v3 = vadd.f32 %v9564_v33, %v9548_v9 }
 0xc05   : > { %vm18419_vm8 = vmand %vm20163_vm12, %vm20162_vm0  ;;  %vm9371_vm0 = vcmp.lt.s32.totalorder %v18082_v32, %v17846_v28  ;;  %vm20170_vm12 = vcmp.lt.s32.totalorder %v18131_v62, %v17694_v0  ;;  %v9762_v26 = vadd.f32 %v9566_v1, %v9550_v41  ;;  %v8517_v63 = vpop.f32.mrb[116].mxu1  ;;  %v8630_v55 = vpop.f32.mrb[132].mxu0  ;;  %vm20186_vm14 = vcmp.lt.s32.totalorder %v18131_v62, %v17735_v43 }
 0xc06   : > { %vm18429_vm10 = vmand %vm20167_vm7, %vm20166_vm13  ;;  %vm20171_vm13 = vcmp.ge.s32.totalorder %v18131_v62, %v17669_v18  ;;  %v9579_v56 = vsel %vm18393_vm11, %v8517_v63, 0.0  ;;  %v9581_v30 = vsel %vm18419_vm8, %v8630_v55, 0.0  ;;  %v8519_v47 = vpop.f32.mrb[117].mxu1  ;;  %v8632_v59 = vpop.f32.mrb[133].mxu0  ;;  %vm9372_vm11 = vcmp.lt.s32.totalorder %v18128_v61, %v17846_v28 }
 0xc07   : > { %vm18451_vm7 = vmand %vm20171_vm13, %vm20170_vm12  ;;  %vm20178_vm13 = vcmp.lt.s32.totalorder %v18111_v49, %v17735_v43  ;;  %v9724_v19 = vadd.f32 %v9723_v46, %v9579_v56  ;;  %v9750_v13 = vadd.f32 %v9749_v15, %v9581_v30  ;;  %vm20182_vm8 = vcmp.lt.s32.totalorder %v18128_v61, %v17735_v43 }
 0xc08   : > { %vm18461_vm6 = vmand %vm20175_vm4, %vm20174_vm3  ;;  %vm20179_vm3 = vcmp.ge.s32.totalorder %v18111_v49, %v17685_v14  ;;  %vm20183_vm12 = vcmp.ge.s32.totalorder %v18128_v61, %v17685_v14  ;;  %v9580_v5 = vsel %vm18429_vm10, %v8519_v47, 0.0  ;;  %v9582_v16 = vsel %vm18451_vm7, %v8632_v59, 0.0 }
 0xc09   : > { %vm18479_vm4 = vmand %vm20179_vm3, %vm20178_vm13  ;;  %vm9387_vm3 = vcmp.lt.s32.totalorder %v18082_v32, %v17932_v11  ;;  %v9737_v54 = vadd.f32 %v9736_v3, %v9580_v5  ;;  %v9763_v58 = vadd.f32 %v9762_v26, %v9582_v16  ;;  %v8523_v17 = vpop.f32.mrb[118].mxu1  ;;  %v8636_v2 = vpop.f32.mrb[134].mxu0  ;;  %vm20190_vm10 = vcmp.ge.s32.totalorder %v18082_v32, %v17700_v50 }
 0xc0a   : > { %vm18493_vm1 = vmand %vm20183_vm12, %vm20182_vm8  ;;  %vm20187_vm12 = vcmp.ge.s32.totalorder %v18131_v62, %v17685_v14  ;;  %v9595_v42 = vsel %vm18461_vm6, %v8523_v17, 0.0  ;;  %v9597_v21 = vsel %vm18479_vm4, %v8636_v2, 0.0  ;;  %v8525_v48 = vpop.f32.mrb[119].mxu1  ;;  %v8638_v53 = vpop.f32.mrb[135].mxu0  ;;  %vm9388_vm6 = vcmp.lt.s32.totalorder %v18128_v61, %v17932_v11 }
 0xc0b   : > { %vm18511_vm8 = vmand %vm20187_vm12, %vm20186_vm14  ;;  %vm9389_vm12 = vcmp.lt.s32.totalorder %v18111_v49, %v17932_v11  ;;  %vm9252_vm14 = vcmp.ge.s32.totalorder %v18128_v61, %v17866_v35  ;;  %v9725_v6 = vadd.f32 %v9724_v19, %v9595_v42  ;;  %v9751_v37 = vadd.f32 %v9750_v13, %v9597_v21 }
 0xc0c   : > { %vm18525_vm7 = vmand %vm20190_vm10, %vm9355_vm9  ;;  %vm20193_vm9 = vcmp.lt.s32.totalorder %v18111_v49, %v17770_v60  ;;  %vm20194_vm10 = vcmp.ge.s32.totalorder %v18111_v49, %v17700_v50  ;;  %v9596_v39 = vsel %vm18493_vm1, %v8525_v48, 0.0  ;;  %v9598_v46 = vsel %vm18511_vm8, %v8638_v53, 0.0 }
 0xc0d   : > { %vm18543_vm13 = vmand %vm20194_vm10, %vm20193_vm9  ;;  %v9738_v27 = vadd.f32 %v9737_v54, %v9596_v39  ;;  %v9764_v9 = vadd.f32 %v9763_v58, %v9598_v46  ;;  %vm20199_vm1 = vcmp.ge.s32.totalorder %v18131_v62, %v17700_v50  ;;  %v8529_v33 = vpop.f32.mrb[120].mxu1  ;;  %v8642_v1 = vpop.f32.mrb[136].mxu0  ;;  %vm9268_vm8 = vcmp.ge.s32.totalorder %v18128_v61, %v17934_v52 }
 0xc0e   : > { %vm18561_vm4 = vmand %vm9220_vm15, %vm9356_vm2  ;;  %vm20202_vm15 = vcmp.ge.s32.totalorder %v18082_v32, %v17772_v24  ;;  %vm9405_vm2 = vcmp.lt.s32.totalorder %v18111_v49, %v17999_v44  ;;  %v9611_v3 = vsel %vm18525_vm7, %v8529_v33, 0.0  ;;  %v9613_v26 = vsel %vm18543_vm13, %v8642_v1, 0.0  ;;  %v8531_v63 = vpop.f32.mrb[121].mxu1  ;;  %v8644_v55 = vpop.f32.mrb[137].mxu0 }
 0xc0f   : > { %vm18571_vm9 = vmand %vm20199_vm1, %vm9358_vm5  ;;  %vm9403_vm1 = vcmp.lt.s32.totalorder %v18082_v32, %v17999_v44  ;;  %v18614_v56 = vadd.s32 1024, %v17651_v34  ;;  %v9726_v30 = vadd.f32 %v9725_v6, %v9611_v3  ;;  %v9752_v47 = vadd.f32 %v9751_v37, %v9613_v26 }
 0xc10   : > { %vm18585_vm10 = vmand %vm20202_vm15, %vm9371_vm0  ;;  %vm20205_vm0 = vcmp.lt.s32.totalorder %v18111_v49, %v17846_v28  ;;  %vm20206_vm15 = vcmp.ge.s32.totalorder %v18111_v49, %v17772_v24  ;;  %v9612_v59 = vsel %vm18561_vm4, %v8531_v63, 0.0  ;;  %v9614_v8 = vsel %vm18571_vm9, %v8644_v55, 0.0 }
 0xc11   : > { %vm18607_vm5 = vmand %vm20206_vm15, %vm20205_vm0  ;;  %vm20209_vm13 = vcmp.ge.s32.totalorder %v18128_v61, %v17772_v24  ;;  %v9739_v13 = vadd.f32 %v9738_v27, %v9612_v59  ;;  %v9765_v40 = vadd.f32 %v9764_v9, %v9614_v8  ;;  %vm20212_vm0 = vcmp.lt.s32.totalorder %v18131_v62, %v17846_v28  ;;  %v8535_v23 = vpop.f32.mrb[122].mxu1  ;;  %v8648_v54 = vpop.f32.mrb[138].mxu0 }
 0xc12   : > { %vm18626_vm7 = vmand %vm20209_vm13, %vm9372_vm11  ;;  %vm20213_vm4 = vcmp.ge.s32.totalorder %v18131_v62, %v17772_v24  ;;  %vm9404_vm9 = vcmp.lt.s32.totalorder %v18128_v61, %v17999_v44  ;;  %v18643_v16 = vadd.s32 1280, %v17651_v34  ;;  %vm20216_vm11 = vcmp.ge.s32.totalorder %v18082_v32, %v17866_v35  ;;  %v8537_v21 = vpop.f32.mrb[123].mxu1  ;;  %v8650_v48 = vpop.f32.mrb[139].mxu0 }
 0xc13   : > { %vm18636_vm15 = vmand %vm20213_vm4, %vm20212_vm0  ;;  %vm9406_vm4 = vcmp.lt.s32.totalorder %v18131_v62, %v17999_v44  ;;  %v18660_v17 = vadd.s32 1152, %v17651_v34  ;;  %v18663_v2 = vadd.s32 1408, %v17651_v34  ;;  %v9627_v51 = vsel %vm18585_vm10, %v8535_v23, 0.0 }
 0xc14   : > { %vm18651_vm13 = vmand %vm20216_vm11, %vm9387_vm3  ;;  %v9629_v42 = vsel %vm18607_vm5, %v8648_v54, 0.0  ;;  %vm20219_vm3 = vcmp.ge.s32.totalorder %v18111_v49, %v17866_v35  ;;  %vm9295_vm10 = vcmp.lt.s32.totalorder %v18614_v56, %v17655_v7  ;;  %v9727_v22 = vadd.f32 %v9726_v30, %v9627_v51 }
 0xc15   : > { %vm18675_vm11 = vmand %vm20219_vm3, %vm9389_vm12  ;;  %v9753_v6 = vadd.f32 %v9752_v47, %v9629_v42  ;;  %v9628_v37 = vsel %vm18626_vm7, %v8537_v21, 0.0  ;;  %v9630_v39 = vsel %vm18636_vm15, %v8650_v48, 0.0  ;;  %vm20224_vm5 = vcmp.lt.s32.totalorder %v18131_v62, %v17932_v11  ;;  %v8541_v41 = vpop.f32.mrb[124].mxu1  ;;  %v8654_v33 = vpop.f32.mrb[140].mxu0 }
 0xc16   : > { %vm18693_vm12 = vmand %vm9252_vm14, %vm9388_vm6  ;;  %v9740_v15 = vadd.f32 %v9739_v13, %v9628_v37  ;;  %v9766_v27 = vadd.f32 %v9765_v40, %v9630_v39  ;;  %vm20225_vm7 = vcmp.ge.s32.totalorder %v18131_v62, %v17866_v35  ;;  %vm20228_vm6 = vcmp.ge.s32.totalorder %v18082_v32, %v17934_v52  ;;  %v8543_v3 = vpop.f32.mrb[125].mxu1  ;;  %v8656_v26 = vpop.f32.mrb[141].mxu0 }
 0xc17   : > { %vm18703_vm3 = vmand %vm20225_vm7, %vm20224_vm5  ;;  %vm9160_vm5 = vcmp.ge.s32.totalorder %v18660_v17, %v17648_v31  ;;  %vm9296_vm7 = vcmp.lt.s32.totalorder %v18660_v17, %v17655_v7  ;;  %vm9298_vm14 = vcmp.lt.s32.totalorder %v18663_v2, %v17655_v7  ;;  %v9643_v45 = vsel %vm18651_vm13, %v8541_v41, 0.0 }
 0xc18   : > { %vm18717_vm0 = vmand %vm20228_vm6, %vm9403_vm1  ;;  %v9645_v32 = vsel %vm18675_vm11, %v8654_v33, 0.0  ;;  %vm20231_vm1 = vcmp.ge.s32.totalorder %v18111_v49, %v17934_v52  ;;  %vm9175_vm15 = vcmp.ge.s32.totalorder %v18614_v56, %v17657_v38  ;;  %vm9311_vm13 = vcmp.lt.s32.totalorder %v18614_v56, %v17677_v36 }
 0xc19   : > { %vm18739_vm6 = vmand %vm20231_vm1, %vm9405_vm2  ;;  %v9728_v55 = vadd.f32 %v9727_v22, %v9643_v45  ;;  %v9754_v57 = vadd.f32 %v9753_v6, %v9645_v32  ;;  %v9644_v30 = vsel %vm18693_vm12, %v8543_v3, 0.0  ;;  %v9646_v47 = vsel %vm18703_vm3, %v8656_v26, 0.0  ;;  %v8547_v61 = vpop.f32.mrb[126].mxu1  ;;  %v8660_v13 = vpop.f32.mrb[142].mxu0 }
 0xc1a   : > { %vm18757_vm2 = vmand %vm9268_vm8, %vm9404_vm9  ;;  %v9741_v59 = vadd.f32 %v9740_v15, %v9644_v30  ;;  %v9767_v8 = vadd.f32 %v9766_v27, %v9646_v47  ;;  %vm20236_vm11 = vcmp.ge.s32.totalorder %v18131_v62, %v17934_v52  ;;  %vm20239_vm9 = vcmp.ge.s32.totalorder %v18614_v56, %v17648_v31  ;;  %v8549_v23 = vpop.f32.mrb[127].mxu1  ;;  %v8662_v54 = vpop.f32.mrb[143].mxu0 }
 0xc1b   : > { %vm18767_vm12 = vmand %vm20236_vm11, %vm9406_vm4  ;;  %vm9312_vm11 = vcmp.lt.s32.totalorder %v18660_v17, %v17677_v36  ;;  %vm9314_vm8 = vcmp.lt.s32.totalorder %v18663_v2, %v17677_v36  ;;  %v9659_v40 = vsel %vm18717_vm0, %v8547_v61, 0.0  ;;  %v9661_v5 = vsel %vm18739_vm6, %v8660_v13, 0.0 }
 0xc1c   : > { %vm18781_vm1 = vmand %vm20239_vm9, %vm9295_vm10  ;;  %vm20242_vm10 = vcmp.lt.s32.totalorder %v18643_v16, %v17655_v7  ;;  %vm20243_vm9 = vcmp.ge.s32.totalorder %v18643_v16, %v17648_v31  ;;  %vm9191_vm3 = vcmp.ge.s32.totalorder %v18614_v56, %v17669_v18  ;;  %vm9327_vm0 = vcmp.lt.s32.totalorder %v18614_v56, %v17694_v0 }
 0xc1d   : > { %vm18803_vm4 = vmand %vm20243_vm9, %vm20242_vm10  ;;  %v18811_v51 = vadd.f32 %v9728_v55, %v9659_v40  ;;  %v18813_v42 = vadd.f32 %v9754_v57, %v9661_v5  ;;  %v9660_v21 = vsel %vm18757_vm2, %v8549_v23, 0.0  ;;  %v9662_v48 = vsel %vm18767_vm12, %v8662_v54, 0.0  ;;  %v8731_v39 = vpop.f32.mrb[128].mxu1  ;;  %v8844_v46 = vpop.f32.mrb[144].mxu0 }
 0xc1e   : > { %vm18825_vm6 = vmand %vm9160_vm5, %vm9296_vm7  ;;  %v18829_v22 = vadd.f32 %v9741_v59, %v9660_v21  ;;  %v18831_v6 = vadd.f32 %v9767_v8, %v9662_v48  ;;  %vm20248_vm2 = vcmp.ge.s32.totalorder %v18663_v2, %v17648_v31  ;;  %v8733_v27 = vpop.f32.mrb[129].mxu1  ;;  %v8846_v9 = vpop.f32.mrb[145].mxu0  ;;  %vm9360_vm5 = vcmp.lt.s32.totalorder %v18660_v17, %v17770_v60 }
 0xc1f   : > { %vm18839_vm12 = vmand %vm20248_vm2, %vm9298_vm14  ;;  %vm9359_vm2 = vcmp.lt.s32.totalorder %v18614_v56, %v17770_v60  ;;  %v9551_v26 = vsel %vm18781_vm1, %v8731_v39, 0.0  ;;  %v9553_v63 = vsel %vm18803_vm4, %v8844_v46, 0.0  ;;  %vm9239_vm1 = vcmp.ge.s32.totalorder %v18614_v56, %v17772_v24 }
 0xc20   : > { %vm18853_vm10 = vmand %vm9175_vm15, %vm9311_vm13  ;;  %vm20253_vm15 = vcmp.lt.s32.totalorder %v18643_v16, %v17677_v36  ;;  %vm20254_vm13 = vcmp.ge.s32.totalorder %v18643_v16, %v17657_v38  ;;  %vm9375_vm4 = vcmp.lt.s32.totalorder %v18614_v56, %v17846_v28  ;;  %v9552_v61 = vsel %vm18825_vm6, %v8733_v27, 0.0 }
 0xc21   : > { %vm18871_vm7 = vmand %vm20254_vm13, %vm20253_vm15  ;;  %vm20257_vm15 = vcmp.ge.s32.totalorder %v18660_v17, %v17657_v38  ;;  %v8737_v45 = vpop.f32.mrb[130].mxu1  ;;  %v8850_v32 = vpop.f32.mrb[146].mxu0  ;;  %v9554_v13 = vsel %vm18839_vm12, %v8846_v9, 0.0  ;;  %vm20286_vm6 = vcmp.ge.s32.totalorder %v18660_v17, %v17685_v14  ;;  %v19063_v3 = vadd.s32 1792, %v17651_v34 }
 0xc22   : > { %vm18889_vm13 = vmand %vm20257_vm15, %vm9312_vm11  ;;  %vm20260_vm11 = vcmp.ge.s32.totalorder %v18663_v2, %v17657_v38  ;;  %v9567_v55 = vsel %vm18853_vm10, %v8737_v45, 0.0  ;;  %v9569_v57 = vsel %vm18871_vm7, %v8850_v32, 0.0  ;;  %v8739_v30 = vpop.f32.mrb[131].mxu1  ;;  %v8852_v47 = vpop.f32.mrb[147].mxu0  ;;  %vm20269_vm7 = vcmp.lt.s32.totalorder %v18660_v17, %v17694_v0 }
 0xc23   : > { %vm18907_vm15 = vmand %vm20260_vm11, %vm9314_vm8  ;;  %vm9224_vm11 = vcmp.ge.s32.totalorder %v18660_v17, %v17700_v50  ;;  %v9775_v59 = vadd.f32 %v9567_v55, %v9551_v26  ;;  %v9801_v8 = vadd.f32 %v9569_v57, %v9553_v63  ;;  %vm20270_vm10 = vcmp.ge.s32.totalorder %v18660_v17, %v17669_v18 }
 0xc24   : > { %vm18925_vm8 = vmand %vm9191_vm3, %vm9327_vm0  ;;  %vm20265_vm3 = vcmp.lt.s32.totalorder %v18643_v16, %v17694_v0  ;;  %vm20266_vm0 = vcmp.ge.s32.totalorder %v18643_v16, %v17669_v18  ;;  %v9568_v62 = vsel %vm18889_vm13, %v8739_v30, 0.0  ;;  %v9570_v40 = vsel %vm18907_vm15, %v8852_v47, 0.0 }
 0xc25   : > { %vm18951_vm9 = vmand %vm20266_vm0, %vm20265_vm3  ;;  %v9788_v23 = vadd.f32 %v9568_v62, %v9552_v61  ;;  %v9814_v54 = vadd.f32 %v9570_v40, %v9554_v13  ;;  %v8743_v58 = vpop.f32.mrb[132].mxu1  ;;  %v8856_v21 = vpop.f32.mrb[148].mxu0  ;;  %vm20277_vm13 = vcmp.lt.s32.totalorder %v18614_v56, %v17735_v43  ;;  %vm20278_vm15 = vcmp.ge.s32.totalorder %v18614_v56, %v17685_v14 }
 0xc26   : > { %vm18965_vm14 = vmand %vm20270_vm10, %vm20269_vm7  ;;  %vm20273_vm7 = vcmp.lt.s32.totalorder %v18663_v2, %v17694_v0  ;;  %vm20274_vm10 = vcmp.ge.s32.totalorder %v18663_v2, %v17669_v18  ;;  %v9583_v53 = vsel %vm18925_vm8, %v8743_v58, 0.0  ;;  %v9585_v37 = vsel %vm18951_vm9, %v8856_v21, 0.0  ;;  %v8745_v39 = vpop.f32.mrb[133].mxu1  ;;  %v8858_v46 = vpop.f32.mrb[149].mxu0 }
 0xc27   : > { %vm18987_vm3 = vmand %vm20274_vm10, %vm20273_vm7  ;;  %vm9391_vm8 = vcmp.lt.s32.totalorder %v18614_v56, %v17932_v11  ;;  %v9776_v27 = vadd.f32 %v9775_v59, %v9583_v53  ;;  %v9802_v9 = vadd.f32 %v9801_v8, %v9585_v37  ;;  %vm20285_vm9 = vcmp.lt.s32.totalorder %v18660_v17, %v17735_v43 }
 0xc28   : > { %vm19001_vm7 = vmand %vm20278_vm15, %vm20277_vm13  ;;  %vm20281_vm13 = vcmp.lt.s32.totalorder %v18643_v16, %v17735_v43  ;;  %vm20282_vm15 = vcmp.ge.s32.totalorder %v18643_v16, %v17685_v14  ;;  %v9584_v33 = vsel %vm18965_vm14, %v8745_v39, 0.0  ;;  %v9586_v1 = vsel %vm18987_vm3, %v8858_v46, 0.0 }
 0xc29   : > { %vm19019_vm12 = vmand %vm20282_vm15, %vm20281_vm13  ;;  %vm20289_vm10 = vcmp.lt.s32.totalorder %v18663_v2, %v17735_v43  ;;  %vm9256_vm13 = vcmp.ge.s32.totalorder %v18660_v17, %v17866_v35  ;;  %vm9392_vm15 = vcmp.lt.s32.totalorder %v18660_v17, %v17932_v11  ;;  %v19060_v32 = vadd.s32 1536, %v17651_v34  ;;  %v8749_v30 = vpop.f32.mrb[134].mxu1  ;;  %v8862_v47 = vpop.f32.mrb[150].mxu0 }
 0xc2a   : > { %vm19033_vm0 = vmand %vm20286_vm6, %vm20285_vm9  ;;  %vm20290_vm6 = vcmp.ge.s32.totalorder %v18663_v2, %v17685_v14  ;;  %v9678_v26 = vrot.slane %v18279_v20, 4  ;;  %v9704_v63 = vrot.slane %v18281_v25, 4  ;;  %v9789_v55 = vadd.f32 %v9788_v23, %v9584_v33  ;;  %v8751_v13 = vpop.f32.mrb[135].mxu1  ;;  %v8864_v62 = vpop.f32.mrb[151].mxu0 }
 0xc2b   : > { %vm19051_vm9 = vmand %vm20290_vm6, %vm20289_vm10  ;;  %v9815_v57 = vadd.f32 %v9814_v54, %v9586_v1  ;;  %vm20293_vm14 = vcmp.ge.s32.totalorder %v18614_v56, %v17700_v50  ;;  %v9691_v59 = vrot.slane %v18297_v4, 4  ;;  %v9717_v8 = vrot.slane %v18299_v29, 4 }
 0xc2c   : > { %vm19073_vm3 = vmand %vm20293_vm14, %vm9359_vm2  ;;  %v9599_v19 = vsel %vm19001_vm7, %v8749_v30, 0.0  ;;  %v9601_v61 = vsel %vm19019_vm12, %v8862_v47, 0.0  ;;  %vm20296_vm2 = vcmp.lt.s32.totalorder %v18643_v16, %v17770_v60  ;;  %vm20297_vm14 = vcmp.ge.s32.totalorder %v18643_v16, %v17700_v50 }
 0xc2d   : > { %vm19093_vm10 = vmand %vm20297_vm14, %vm20296_vm2  ;;  %vm9407_vm7 = vcmp.lt.s32.totalorder %v18614_v56, %v17999_v44  ;;  %v9777_v5 = vadd.f32 %v9776_v27, %v9599_v19  ;;  %v9803_v23 = vadd.f32 %v9802_v9, %v9601_v61  ;;  %v9600_v54 = vsel %vm19033_vm0, %v8751_v13, 0.0  ;;  %v8755_v27 = vpop.f32.mrb[136].mxu1  ;;  %v8868_v9 = vpop.f32.mrb[152].mxu0 }
 0xc2e   : > { %v9602_v58 = vsel %vm19051_vm9, %v8864_v62, 0.0  ;;  %vm19111_vm12 = vmand %vm9224_vm11, %vm9360_vm5  ;;  %vm9273_vm2 = vcmp.ge.s32.totalorder %v18643_v16, %v17934_v52  ;;  %vm9409_vm14 = vcmp.lt.s32.totalorder %v18643_v16, %v17999_v44  ;;  %v9790_v48 = vadd.f32 %v9789_v55, %v9600_v54 }
 0xc2f   : > { %v9816_v53 = vadd.f32 %v9815_v57, %v9602_v58  ;;  %vm20302_vm0 = vcmp.lt.s32.totalorder %v18663_v2, %v17770_v60  ;;  %vm20303_vm9 = vcmp.ge.s32.totalorder %v18663_v2, %v17700_v50  ;;  %v19134_v39 = vadd.s32 1664, %v17651_v34 }
 0xc30   : > { %vm19125_vm6 = vmand %vm20303_vm9, %vm20302_vm0  ;;  %v9679_v46 = vadd.f32 %v9678_v26, %v18279_v20  ;;  %v9705_v15 = vadd.f32 %v9704_v63, %v18281_v25  ;;  %v19153_v20 = vadd.s32 1920, %v17651_v34  ;;  %v9692_v25 = vadd.f32 %v9691_v59, %v18297_v4  ;;  %v8757_v26 = vpop.f32.mrb[137].mxu1  ;;  %v8870_v63 = vpop.f32.mrb[153].mxu0 }
 0xc31   : > { %vm19144_vm0 = vmand %vm9239_vm1, %vm9375_vm4  ;;  %v9718_v33 = vadd.f32 %v9717_v8, %v18299_v29  ;;  %v9615_v1 = vsel %vm19073_vm3, %v8755_v27, 0.0  ;;  %v9617_v45 = vsel %vm19093_vm10, %v8868_v9, 0.0  ;;  %vm20308_vm1 = vcmp.lt.s32.totalorder %v18643_v16, %v17846_v28  ;;  %v8761_v61 = vpop.f32.mrb[138].mxu1  ;;  %v8874_v13 = vpop.f32.mrb[154].mxu0 }
 0xc32   : > { %vm20309_vm4 = vcmp.ge.s32.totalorder %v18643_v16, %v17772_v24  ;;  %v9778_v4 = vadd.f32 %v9777_v5, %v9615_v1  ;;  %v9804_v29 = vadd.f32 %v9803_v23, %v9617_v45  ;;  %v9616_v55 = vsel %vm19111_vm12, %v8757_v26, 0.0  ;;  %v8763_v58 = vpop.f32.mrb[139].mxu1  ;;  %v8876_v21 = vpop.f32.mrb[155].mxu0 }
 0xc33   : > { %vm19167_vm9 = vmand %vm20309_vm4, %vm20308_vm1  ;;  %v9618_v57 = vsel %vm19125_vm6, %v8870_v63, 0.0  ;;  %vm20312_vm10 = vcmp.lt.s32.totalorder %v18660_v17, %v17846_v28  ;;  %vm20313_vm1 = vcmp.ge.s32.totalorder %v18660_v17, %v17772_v24  ;;  %vm9301_vm3 = vcmp.lt.s32.totalorder %v19063_v3, %v17655_v7 }
 0xc34   : > { %vm19185_vm4 = vmand %vm20313_vm1, %vm20312_vm10  ;;  %v9791_v47 = vadd.f32 %v9790_v48, %v9616_v55  ;;  %v9817_v49 = vadd.f32 %v9816_v53, %v9618_v57  ;;  %vm20316_vm6 = vcmp.lt.s32.totalorder %v18663_v2, %v17846_v28  ;;  %vm20317_vm12 = vcmp.ge.s32.totalorder %v18663_v2, %v17772_v24 }
 0xc35   : > { %vm19199_vm11 = vmand %vm20317_vm12, %vm20316_vm6  ;;  %vm9300_vm1 = vcmp.lt.s32.totalorder %v19134_v39, %v17655_v7  ;;  %v9680_v8 = vrot.slane %v9679_v46, 2  ;;  %v9706_v19 = vrot.slane %v9705_v15, 2  ;;  %vm20320_vm5 = vcmp.ge.s32.totalorder %v18614_v56, %v17866_v35 }
 0xc36   : > { %vm19213_vm6 = vmand %vm20320_vm5, %vm9391_vm8  ;;  %v9693_v40 = vrot.slane %v9692_v25, 2  ;;  %v9719_v5 = vrot.slane %v9718_v33, 2  ;;  %v9631_v23 = vsel %vm19144_vm0, %v8761_v61, 0.0  ;;  %v9633_v54 = vsel %vm19167_vm9, %v8874_v13, 0.0 }
 0xc37   : > { %vm20323_vm8 = vcmp.lt.s32.totalorder %v18643_v16, %v17932_v11  ;;  %vm20324_vm5 = vcmp.ge.s32.totalorder %v18643_v16, %v17866_v35  ;;  %vm9315_vm0 = vcmp.lt.s32.totalorder %v19060_v32, %v17677_v36  ;;  %v9779_v53 = vadd.f32 %v9778_v4, %v9631_v23  ;;  %vm19249_vm9 = vmand %vm9256_vm13, %vm9392_vm15  ;;  %v8767_v4 = vpop.f32.mrb[140].mxu1 }
 0xc38   : > { %vm19231_vm12 = vmand %vm20324_vm5, %vm20323_vm8  ;;  %v9805_v37 = vadd.f32 %v9804_v29, %v9633_v54  ;;  %v9632_v27 = vsel %vm19185_vm4, %v8763_v58, 0.0  ;;  %v9634_v9 = vsel %vm19199_vm11, %v8876_v21, 0.0  ;;  %vm9181_vm8 = vcmp.ge.s32.totalorder %v19063_v3, %v17657_v38  ;;  %v8880_v29 = vpop.f32.mrb[156].mxu0  ;;  %v8769_v30 = vpop.f32.mrb[141].mxu1 }
 0xc39   : > { %vm9317_vm5 = vcmp.lt.s32.totalorder %v19063_v3, %v17677_v36  ;;  %v9792_v1 = vadd.f32 %v9791_v47, %v9632_v27  ;;  %v9818_v45 = vadd.f32 %v9817_v49, %v9634_v9  ;;  %vm20329_vm11 = vcmp.lt.s32.totalorder %v18663_v2, %v17932_v11  ;;  %v8882_v47 = vpop.f32.mrb[157].mxu0 }
 0xc3a   : > { %vm20330_vm4 = vcmp.ge.s32.totalorder %v18663_v2, %v17866_v35  ;;  %v19271_v63 = vadd.f32 %v9680_v8, %v9679_v46  ;;  %v19273_v34 = vadd.f32 %v9706_v19, %v9705_v15  ;;  %vm9318_vm15 = vcmp.lt.s32.totalorder %v19153_v20, %v17677_v36 }
 0xc3b   : > { %vm19263_vm10 = vmand %vm20330_vm4, %vm20329_vm11  ;;  %vm20333_vm11 = vcmp.ge.s32.totalorder %v18614_v56, %v17934_v52  ;;  %v19289_v46 = vadd.f32 %v9693_v40, %v9692_v25  ;;  %v19291_v15 = vadd.f32 %v9719_v5, %v9718_v33  ;;  %v9647_v57 = vsel %vm19213_vm6, %v8767_v4, 0.0  ;;  %v8773_v40 = vpop.f32.mrb[142].mxu1  ;;  %v8886_v5 = vpop.f32.mrb[158].mxu0 }
 0xc3c   : > { %vm19281_vm4 = vmand %vm20333_vm11, %vm9407_vm7  ;;  %v9649_v56 = vsel %vm19231_vm12, %v8880_v29, 0.0  ;;  %v9780_v25 = vadd.f32 %v9779_v53, %v9647_v57  ;;  %v9648_v59 = vsel %vm19249_vm9, %v8769_v30, 0.0  ;;  %v9650_v8 = vsel %vm19263_vm10, %v8882_v47, 0.0  ;;  %v8775_v48 = vpop.f32.mrb[143].mxu1  ;;  %v8888_v53 = vpop.f32.mrb[159].mxu0 }
 0xc3d   : > { %vm19303_vm7 = vmand %vm9273_vm2, %vm9409_vm14  ;;  %v9806_v33 = vadd.f32 %v9805_v37, %v9649_v56  ;;  %vm20338_vm2 = vcmp.lt.s32.totalorder %v18660_v17, %v17999_v44  ;;  %vm20339_vm14 = vcmp.ge.s32.totalorder %v18660_v17, %v17934_v52  ;;  %vm9333_vm6 = vcmp.lt.s32.totalorder %v19063_v3, %v17694_v0  ;;  %v8957_v56 = vpop.f32.mrb[144].mxu1  ;;  %v9070_v30 = vpop.f32.mrb[160].mxu0 }
 0xc3e   : > { %vm19321_vm12 = vmand %vm20339_vm14, %vm20338_vm2  ;;  %v9793_v19 = vadd.f32 %v9792_v1, %v9648_v59  ;;  %v9819_v61 = vadd.f32 %v9818_v45, %v9650_v8  ;;  %vm20342_vm10 = vcmp.lt.s32.totalorder %v18663_v2, %v17999_v44  ;;  %vm20343_vm9 = vcmp.ge.s32.totalorder %v18663_v2, %v17934_v52  ;;  %v9072_v59 = vpop.f32.mrb[161].mxu0 }
 0xc3f   : > { %vm19335_vm13 = vmand %vm20343_vm9, %vm20342_vm10  ;;  %v9682_v13 = vrot.slane %v19271_v63, 1  ;;  %v9708_v62 = vrot.slane %v19273_v34, 1  ;;  %vm20346_vm11 = vcmp.lt.s32.totalorder %v19060_v32, %v17655_v7  ;;  %vm20347_vm10 = vcmp.ge.s32.totalorder %v19060_v32, %v17648_v31 }
 0xc40   : > { %vm19351_vm9 = vmand %vm20347_vm10, %vm20346_vm11  ;;  %vm9334_vm14 = vcmp.lt.s32.totalorder %v19153_v20, %v17694_v0  ;;  %v9695_v23 = vrot.slane %v19289_v46, 1  ;;  %v9721_v54 = vrot.slane %v19291_v15, 1  ;;  %v9663_v58 = vsel %vm19281_vm4, %v8773_v40, 0.0 }
 0xc41   : > { %v9665_v21 = vsel %vm19303_vm7, %v8886_v5, 0.0  ;;  %vm20350_vm11 = vcmp.ge.s32.totalorder %v19063_v3, %v17648_v31  ;;  %v9781_v27 = vadd.f32 %v9780_v25, %v9663_v58  ;;  %v9664_v41 = vsel %vm19321_vm12, %v8775_v48, 0.0 }
 0xc42   : > { %vm19371_vm10 = vmand %vm20350_vm11, %vm9301_vm3  ;;  %v9807_v9 = vadd.f32 %v9806_v33, %v9665_v21  ;;  %v9666_v1 = vsel %vm19335_vm13, %v8888_v53, 0.0  ;;  %vm20353_vm3 = vcmp.ge.s32.totalorder %v19134_v39, %v17648_v31  ;;  %vm9349_vm2 = vcmp.lt.s32.totalorder %v19063_v3, %v17735_v43  ;;  %v8959_v33 = vpop.f32.mrb[145].mxu1 }
 0xc43   : > { %vm19389_vm7 = vmand %vm20353_vm3, %vm9300_vm1  ;;  %v9794_v26 = vadd.f32 %v9793_v19, %v9664_v41  ;;  %v9820_v4 = vadd.f32 %v9819_v61, %v9666_v1  ;;  %vm20356_vm13 = vcmp.lt.s32.totalorder %v19153_v20, %v17655_v7  ;;  %vm20357_vm12 = vcmp.ge.s32.totalorder %v19153_v20, %v17648_v31 }
 0xc44   : > { %vm19403_vm4 = vmand %vm20357_vm12, %vm20356_vm13  ;;  %vm9348_vm3 = vcmp.lt.s32.totalorder %v19134_v39, %v17735_v43  ;;  %v9782_v55 = vrot.slane %v9781_v27, 4  ;;  %v9808_v57 = vrot.slane %v9807_v9, 4  ;;  %vm20360_vm11 = vcmp.ge.s32.totalorder %v19060_v32, %v17657_v38 }
 0xc45   : > { %vm19417_vm13 = vmand %vm20360_vm11, %vm9315_vm0  ;;  %v19426_v7 = vadd.f32 %v9682_v13, %v19271_v63  ;;  %v19429_v47 = vadd.f32 %v9708_v62, %v19273_v34  ;;  %v9795_v49 = vrot.slane %v9794_v26, 4  ;;  %v9821_v25 = vrot.slane %v9820_v4, 4 }
 0xc46   : > { %vm19437_vm0 = vmand %vm9181_vm8, %vm9317_vm5  ;;  %v19446_v63 = vadd.f32 %v9695_v23, %v19289_v46  ;;  %v19449_v34 = vadd.f32 %v9721_v54, %v19291_v15  ;;  %v9783_v16 = vadd.f32 %v9782_v55, %v9781_v27  ;;  %v9809_v19 = vadd.f32 %v9808_v57, %v9807_v9  ;;  %v8963_v23 = vpop.f32.mrb[146].mxu1 }
 0xc47   : > { %vm20365_vm8 = vcmp.lt.s32.totalorder %v19134_v39, %v17677_v36  ;;  %vm20366_vm5 = vcmp.ge.s32.totalorder %v19134_v39, %v17657_v38  ;;  %v9796_v46 = vadd.f32 %v9795_v49, %v9794_v26  ;;  %v9822_v15 = vadd.f32 %v9821_v25, %v9820_v4  ;;  %v8965_v37 = vpop.f32.mrb[147].mxu1 }
 0xc48   : > { %vm19457_vm1 = vmand %vm20366_vm5, %vm20365_vm8  ;;  %v9555_v17 = vsel %vm19351_vm9, %v8957_v56, 0.0  ;;  %v9557_v13 = vsel %vm19371_vm10, %v9070_v30, 0.0  ;;  %vm20369_vm8 = vcmp.ge.s32.totalorder %v19153_v20, %v17657_v38  ;;  %vm9228_vm11 = vcmp.ge.s32.totalorder %v19134_v39, %v17700_v50  ;;  %v9076_v38 = vpop.f32.mrb[162].mxu0 }
 0xc49   : > { %vm19475_vm5 = vmand %vm20369_vm8, %vm9318_vm15  ;;  %vm9364_vm12 = vcmp.lt.s32.totalorder %v19134_v39, %v17770_v60  ;;  %v9784_v40 = vrot.slane %v9783_v16, 2  ;;  %v9810_v5 = vrot.slane %v9809_v19, 2  ;;  %v9556_v2 = vsel %vm19389_vm7, %v8959_v33, 0.0  ;;  %v9078_v27 = vpop.f32.mrb[163].mxu0 }
 0xc4a   : > { %v9558_v36 = vsel %vm19403_vm4, %v9072_v59, 0.0  ;;  %vm20372_vm15 = vcmp.lt.s32.totalorder %v19060_v32, %v17694_v0  ;;  %vm20373_vm9 = vcmp.ge.s32.totalorder %v19060_v32, %v17669_v18  ;;  %vm9366_vm7 = vcmp.lt.s32.totalorder %v19153_v20, %v17770_v60  ;;  %v8969_v59 = vpop.f32.mrb[148].mxu1  ;;  %v9082_v8 = vpop.f32.mrb[164].mxu0 }
 0xc4b   : > { %vm19493_vm10 = vmand %vm20373_vm9, %vm20372_vm15  ;;  %v9797_v58 = vrot.slane %v9796_v46, 2  ;;  %v9823_v21 = vrot.slane %v9822_v15, 2  ;;  %v9571_v48 = vsel %vm19417_vm13, %v8963_v23, 0.0  ;;  %v9573_v53 = vsel %vm19437_vm0, %v9076_v38, 0.0 }
 0xc4c   : > { %vm20376_vm4 = vcmp.ge.s32.totalorder %v19063_v3, %v17669_v18  ;;  %vm9379_vm13 = vcmp.lt.s32.totalorder %v19060_v32, %v17846_v28  ;;  %v9785_v41 = vadd.f32 %v9784_v40, %v9783_v16  ;;  %v9811_v1 = vadd.f32 %v9810_v5, %v9809_v19 }
 0xc4d   : > { %vm19511_vm15 = vmand %vm20376_vm4, %vm9333_vm6  ;;  %v9827_v45 = vadd.f32 %v9571_v48, %v9555_v17  ;;  %v9853_v26 = vadd.f32 %v9573_v53, %v9557_v13  ;;  %vm20379_vm0 = vcmp.lt.s32.totalorder %v19134_v39, %v17694_v0  ;;  %vm20380_vm8 = vcmp.ge.s32.totalorder %v19134_v39, %v17669_v18 }
 0xc4e   : > { %vm19525_vm6 = vmand %vm20380_vm8, %vm20379_vm0  ;;  %v9798_v29 = vadd.f32 %v9797_v58, %v9796_v46  ;;  %v9824_v55 = vadd.f32 %v9823_v21, %v9822_v15  ;;  %v9572_v57 = vsel %vm19457_vm1, %v8965_v37, 0.0  ;;  %v9574_v56 = vsel %vm19475_vm5, %v9078_v27, 0.0  ;;  %v8971_v46 = vpop.f32.mrb[149].mxu1  ;;  %v9084_v15 = vpop.f32.mrb[165].mxu0 }
 0xc4f   : > { %vm20383_vm8 = vcmp.ge.s32.totalorder %v19153_v20, %v17669_v18  ;;  %vm9380_vm9 = vcmp.lt.s32.totalorder %v19134_v39, %v17846_v28  ;;  %v9786_v31 = vrot.slane %v9785_v41, 1  ;;  %v9812_v49 = vrot.slane %v9811_v1, 1  ;;  %v8975_v27 = vpop.f32.mrb[150].mxu1  ;;  %v9088_v9 = vpop.f32.mrb[166].mxu0 }
 0xc50   : > { %vm19543_vm0 = vmand %vm20383_vm8, %vm9334_vm14  ;;  %v9840_v25 = vadd.f32 %v9572_v57, %v9556_v2  ;;  %v9866_v33 = vadd.f32 %v9574_v56, %v9558_v36  ;;  %vm20386_vm1 = vcmp.lt.s32.totalorder %v19060_v32, %v17735_v43  ;;  %vm20387_vm14 = vcmp.ge.s32.totalorder %v19060_v32, %v17685_v14 }
 0xc51   : > { %vm19557_vm5 = vmand %vm20387_vm14, %vm20386_vm1  ;;  %vm9382_vm4 = vcmp.lt.s32.totalorder %v19153_v20, %v17846_v28  ;;  %v9799_v0 = vrot.slane %v9798_v29, 1  ;;  %v9825_v16 = vrot.slane %v9824_v55, 1  ;;  %v9587_v19 = vsel %vm19493_vm10, %v8969_v59, 0.0 }
 0xc52   : > { %v9589_v61 = vsel %vm19511_vm15, %v9082_v8, 0.0  ;;  %vm20390_vm1 = vcmp.ge.s32.totalorder %v19063_v3, %v17685_v14  ;;  %v9787_v13 = vadd.f32 %v9786_v31, %v9785_v41  ;;  %v9813_v62 = vadd.f32 %v9812_v49, %v9811_v1  ;;  %v8977_v1 = vpop.f32.mrb[151].mxu1 }
 0xc53   : > { %vm19575_vm14 = vmand %vm20390_vm1, %vm9349_vm2  ;;  %v9828_v40 = vadd.f32 %v9827_v45, %v9587_v19  ;;  %v9854_v5 = vadd.f32 %v9853_v26, %v9589_v61  ;;  %vm20393_vm10 = vcmp.ge.s32.totalorder %v19134_v39, %v17685_v14  ;;  %v9800_v36 = vadd.f32 %v9799_v0, %v9798_v29  ;;  %v9090_v45 = vpop.f32.mrb[167].mxu0  ;;  %v8981_v31 = vpop.f32.mrb[152].mxu1 }
 0xc54   : > { %vm19585_vm15 = vmand %vm20393_vm10, %vm9348_vm3  ;;  %v9826_v23 = vadd.f32 %v9825_v16, %v9824_v55  ;;  %v9588_v38 = vsel %vm19525_vm6, %v8971_v46, 0.0  ;;  %v9590_v54 = vsel %vm19543_vm0, %v9084_v15, 0.0  ;;  %vm20396_vm2 = vcmp.lt.s32.totalorder %v19153_v20, %v17735_v43  ;;  %v9094_v49 = vpop.f32.mrb[168].mxu0 }
 0xc55   : > { %vm20397_vm1 = vcmp.ge.s32.totalorder %v19153_v20, %v17685_v14  ;;  %v19604_v21 = vadd.f32 %v9787_v13, %v19426_v7  ;;  %v19607_v48 = vadd.f32 %v9813_v62, %v19429_v47  ;;  %v9841_v53 = vadd.f32 %v9840_v25, %v9588_v38  ;;  %v9096_v59 = vpop.f32.mrb[169].mxu0 }
 0xc56   : > { %vm19599_vm8 = vmand %vm20397_vm1, %vm20396_vm2  ;;  %v9867_v37 = vadd.f32 %v9866_v33, %v9590_v54  ;;  %vm20400_vm3 = vcmp.lt.s32.totalorder %v19060_v32, %v17770_v60  ;;  %vm20401_vm6 = vcmp.ge.s32.totalorder %v19060_v32, %v17700_v50  ;;  %v19620_v43 = vadd.f32 %v9800_v36, %v19446_v63  ;;  %v8983_v33 = vpop.f32.mrb[153].mxu1 }
 0xc57   : > { %vm19615_vm0 = vmand %vm20401_vm6, %vm20400_vm3  ;;  %v19623_v7 = vadd.f32 %v9826_v23, %v19449_v34  ;;  %v9603_v47 = vsel %vm19557_vm5, %v8975_v27, 0.0  ;;  %v9605_v41 = vsel %vm19575_vm14, %v9088_v9, 0.0  ;;  %vm20404_vm10 = vcmp.lt.s32.totalorder %v19063_v3, %v17770_v60  ;;  %v8987_v62 = vpop.f32.mrb[154].mxu1 }
 0xc58   : > { %vm20405_vm2 = vcmp.ge.s32.totalorder %v19063_v3, %v17700_v50  ;;  %v9829_v34 = vadd.f32 %v9828_v40, %v9603_v47  ;;  %v9855_v26 = vadd.f32 %v9854_v5, %v9605_v41  ;;  %v9604_v4 = vsel %vm19585_vm15, %v8977_v1, 0.0  ;;  %vm19649_vm5 = vmand %vm9228_vm11, %vm9364_vm12  ;;  %v9100_v40 = vpop.f32.mrb[170].mxu0  ;;  %v8989_v23 = vpop.f32.mrb[155].mxu1 }
 0xc59   : > { %vm19635_vm1 = vmand %vm20405_vm2, %vm20404_vm10  ;;  %v9606_v29 = vsel %vm19599_vm8, %v9090_v45, 0.0  ;;  %v9842_v57 = vadd.f32 %v9841_v53, %v9604_v4  ;;  %vm20410_vm14 = vcmp.ge.s32.totalorder %v19153_v20, %v17700_v50  ;;  %vm9259_vm8 = vcmp.ge.s32.totalorder %v19060_v32, %v17866_v35  ;;  %v9102_v38 = vpop.f32.mrb[171].mxu0  ;;  %v8993_v63 = vpop.f32.mrb[156].mxu1 }
 0xc5a   : > { %v9868_v56 = vadd.f32 %v9867_v37, %v9606_v29  ;;  %vm19659_vm15 = vmand %vm20410_vm14, %vm9366_vm7  ;;  %vm9395_vm12 = vcmp.lt.s32.totalorder %v19060_v32, %v17932_v11  ;;  %vm20413_vm11 = vcmp.ge.s32.totalorder %v19060_v32, %v17772_v24  ;;  %vm9261_vm7 = vcmp.ge.s32.totalorder %v19063_v3, %v17866_v35  ;;  %v8995_v4 = vpop.f32.mrb[157].mxu1 }
 0xc5b   : > { %vm19673_vm3 = vmand %vm20413_vm11, %vm9379_vm13  ;;  %vm9397_vm6 = vcmp.lt.s32.totalorder %v19063_v3, %v17932_v11  ;;  %vm9396_vm2 = vcmp.lt.s32.totalorder %v19134_v39, %v17932_v11  ;;  %v9619_v60 = vsel %vm19615_vm0, %v8981_v31, 0.0  ;;  %v9621_v25 = vsel %vm19635_vm1, %v9094_v49, 0.0 }
 0xc5c   : > { %vm20416_vm13 = vcmp.lt.s32.totalorder %v19063_v3, %v17846_v28  ;;  %vm20417_vm14 = vcmp.ge.s32.totalorder %v19063_v3, %v17772_v24  ;;  %vm9262_vm10 = vcmp.ge.s32.totalorder %v19153_v20, %v17866_v35  ;;  %vm9398_vm0 = vcmp.lt.s32.totalorder %v19153_v20, %v17932_v11 }
 0xc5d   : > { %vm19695_vm11 = vmand %vm20417_vm14, %vm20416_vm13  ;;  %v9830_v18 = vadd.f32 %v9829_v34, %v9619_v60  ;;  %v9856_v0 = vadd.f32 %v9855_v26, %v9621_v25  ;;  %v9620_v16 = vsel %vm19649_vm5, %v8983_v33, 0.0  ;;  %v9622_v19 = vsel %vm19659_vm15, %v9096_v59, 0.0  ;;  %v9106_v34 = vpop.f32.mrb[172].mxu0 }
 0xc5e   : > { %vm20420_vm1 = vcmp.ge.s32.totalorder %v19134_v39, %v17772_v24  ;;  %v9843_v46 = vadd.f32 %v9842_v57, %v9620_v16  ;;  %v9869_v15 = vadd.f32 %v9868_v56, %v9622_v19  ;;  %vm20423_vm5 = vcmp.ge.s32.totalorder %v19153_v20, %v17772_v24  ;;  %v9108_v29 = vpop.f32.mrb[173].mxu0 }
 0xc5f   : > { %vm19713_vm13 = vmand %vm20420_vm1, %vm9380_vm9  ;;  %vm9411_vm9 = vcmp.lt.s32.totalorder %v19060_v32, %v17999_v44  ;;  %v9730_v13 = vrot.slane %v18811_v51, 4  ;;  %vm9277_vm1 = vcmp.ge.s32.totalorder %v19063_v3, %v17934_v52  ;;  %vm9276_vm15 = vcmp.ge.s32.totalorder %v19134_v39, %v17934_v52  ;;  %v9112_v25 = vpop.f32.mrb[174].mxu0 }
 0xc60   : > { %vm19723_vm14 = vmand %vm20423_vm5, %vm9382_vm4  ;;  %vm9413_vm5 = vcmp.lt.s32.totalorder %v19063_v3, %v17999_v44  ;;  %v9756_v28 = vrot.slane %v18813_v42, 4  ;;  %v9743_v5 = vrot.slane %v18829_v22, 4  ;;  %v9635_v2 = vsel %vm19673_vm3, %v8987_v62, 0.0 }
 0xc61   : > { %vm19738_vm4 = vmand %vm9259_vm8, %vm9395_vm12  ;;  %v9637_v36 = vsel %vm19695_vm11, %v9100_v40, 0.0  ;;  %v9831_v58 = vadd.f32 %v9830_v18, %v9635_v2  ;;  %v9636_v37 = vsel %vm19713_vm13, %v8989_v23, 0.0  ;;  %v9638_v27 = vsel %vm19723_vm14, %v9102_v38, 0.0 }
 0xc62   : > { %vm19760_vm8 = vmand %vm9261_vm7, %vm9397_vm6  ;;  %v9857_v53 = vadd.f32 %v9856_v0, %v9637_v36  ;;  %vm20430_vm12 = vcmp.ge.s32.totalorder %v19134_v39, %v17866_v35  ;;  %v9769_v14 = vrot.slane %v18831_v6, 4  ;;  %v9844_v47 = vadd.f32 %v9843_v46, %v9636_v37 }
 0xc63   : > { %vm19774_vm3 = vmand %vm20430_vm12, %vm9396_vm2  ;;  %v9870_v41 = vadd.f32 %v9869_v15, %v9638_v27  ;;  %vm9412_vm6 = vcmp.lt.s32.totalorder %v19134_v39, %v17999_v44  ;;  %v9731_v45 = vadd.f32 %v9730_v13, %v18811_v51  ;;  %vm20435_vm2 = vcmp.ge.s32.totalorder %v19060_v32, %v17934_v52  ;;  %v8999_v39 = vpop.f32.mrb[158].mxu1 }
 0xc64   : > { %vm19785_vm7 = vmand %vm9262_vm10, %vm9398_vm0  ;;  %vm9278_vm10 = vcmp.ge.s32.totalorder %v19153_v20, %v17934_v52  ;;  %vm9414_vm0 = vcmp.lt.s32.totalorder %v19153_v20, %v17999_v44  ;;  %v9757_v35 = vadd.f32 %v9756_v28, %v18813_v42  ;;  %v9744_v51 = vadd.f32 %v9743_v5, %v18829_v22  ;;  %v9001_v18 = vpop.f32.mrb[159].mxu1  ;;  %v9114_v44 = vpop.f32.mrb[175].mxu0 }
 0xc65   : > { %vm19798_vm11 = vmand %vm20435_vm2, %vm9411_vm9  ;;  %v9651_v26 = vsel %vm19738_vm4, %v8993_v63, 0.0  ;;  %v9653_v32 = vsel %vm19760_vm8, %v9106_v34, 0.0  ;;  %v9652_v57 = vsel %vm19774_vm3, %v8995_v4, 0.0  ;;  %v9654_v56 = vsel %vm19785_vm7, %v9108_v29, 0.0 }
 0xc66   : > { %vm19818_vm13 = vmand %vm9277_vm1, %vm9413_vm5  ;;  %v9832_v42 = vadd.f32 %v9831_v58, %v9651_v26  ;;  %v9858_v22 = vadd.f32 %v9857_v53, %v9653_v32  ;;  %v9770_v30 = vadd.f32 %v9769_v14, %v18831_v6  ;;  %v9845_v31 = vadd.f32 %v9844_v47, %v9652_v57 }
 0xc67   : > { %vm19832_vm14 = vmand %vm9276_vm15, %vm9412_vm6  ;;  %v9871_v49 = vadd.f32 %v9870_v41, %v9654_v56  ;;  %v9732_v60 = vrot.slane %v9731_v45, 2  ;;  %v9758_v33 = vrot.slane %v9757_v35, 2  ;;  %v9745_v59 = vrot.slane %v9744_v51, 2 }
 0xc68   : > { %vm19843_vm9 = vmand %vm9278_vm10, %vm9414_vm0  ;;  %v9667_v6 = vsel %vm19798_vm11, %v8999_v39, 0.0  ;;  %v9669_v8 = vsel %vm19818_vm13, %v9112_v25, 0.0  ;;  %v9668_v52 = vsel %vm19832_vm14, %v9001_v18, 0.0  ;;  %v9771_v19 = vrot.slane %v9770_v30, 2 }
 0xc69   : > { %v9833_v0 = vadd.f32 %v9832_v42, %v9667_v6  ;;  %v9859_v16 = vadd.f32 %v9858_v22, %v9669_v8  ;;  %v9670_v20 = vsel %vm19843_vm9, %v9114_v44, 0.0  ;;  %v9846_v61 = vadd.f32 %v9845_v31, %v9668_v52  ;;  %v9907_v42 = vld [vmem:[%s19963_s13] sm:$0xff]  ;;  %v9908_v22 = vld [vmem:[%s19963_s13 + $0x8] sm:$0xff]  ;;  %v9909_v44 = vld [vmem:[%s19963_s13 + $0x10] sm:$0xff] }
 0xc6a   : > { %v9872_v46 = vadd.f32 %v9871_v49, %v9670_v20  ;;  %v9733_v13 = vadd.f32 %v9732_v60, %v9731_v45  ;;  %v9759_v24 = vadd.f32 %v9758_v33, %v9757_v35  ;;  %v9746_v28 = vadd.f32 %v9745_v59, %v9744_v51  ;;  %v9986_v20 = vld [vmem:[%s19965_s15] sm:$0xff] }
 0xc6b   : > { %v9834_v15 = vrot.slane %v9833_v0, 4  ;;  %v9860_v17 = vrot.slane %v9859_v16, 4  ;;  %v9847_v62 = vrot.slane %v9846_v61, 4  ;;  %v9772_v36 = vadd.f32 %v9771_v19, %v9770_v30  ;;  %v9987_v19 = vld [vmem:[%s19965_s15 + $0x8] sm:$0xff] }
 0xc6c   : > { %v9873_v40 = vrot.slane %v9872_v46, 4  ;;  %v9734_v53 = vrot.slane %v9733_v13, 1  ;;  %v9760_v9 = vrot.slane %v9759_v24, 1  ;;  %v9747_v14 = vrot.slane %v9746_v28, 1 }
 0xc6d   : > { %v9835_v5 = vadd.f32 %v9834_v15, %v9833_v0  ;;  %v9861_v2 = vadd.f32 %v9860_v17, %v9859_v16  ;;  %v9848_v23 = vadd.f32 %v9847_v62, %v9846_v61  ;;  %v9773_v1 = vrot.slane %v9772_v36, 1  ;;  %v9904_v0 = vld [vmem:[%s19962_s12] sm:$0x1]  ;;  %v9988_v17 = vld [vmem:[%s19965_s15 + $0x10] sm:$0xff] }
 0xc6e   : > { %v9874_v38 = vadd.f32 %v9873_v40, %v9872_v46  ;;  %v9735_v35 = vadd.f32 %v9734_v53, %v9733_v13  ;;  %v9761_v32 = vadd.f32 %v9760_v9, %v9759_v24  ;;  %v9748_v4 = vadd.f32 %v9747_v14, %v9746_v28  ;;  %v9989_v13 = vld [vmem:[%s19965_s15 + $0x18] sm:$0xff]  ;;  %v9911_v40 = vld [vmem:[%s19964_s14] sm:$0x1] }
 0xc6f   : > { %v9836_v54 = vrot.slane %v9835_v5, 2  ;;  %v9862_v58 = vrot.slane %v9861_v2, 2  ;;  %v9849_v37 = vrot.slane %v9848_v23, 2  ;;  %v9774_v57 = vadd.f32 %v9773_v1, %v9772_v36 }
 0xc70   : > { %v9875_v27 = vrot.slane %v9874_v38, 2  ;;  %v10792_v30 = vpack.c.bf16 %v9908_v22, %v9907_v42  ;;  %vm12119_vm15 = vmmov 0   ;;  %v10798_v46 = vpack.c.bf16 %v9987_v19, %v9986_v20 }
 0xc71   : > { %v9837_v47 = vadd.f32 %v9836_v54, %v9835_v5  ;;  %v9863_v41 = vadd.f32 %v9862_v58, %v9861_v2  ;;  %v9850_v45 = vadd.f32 %v9849_v37, %v9848_v23  ;;  %10635 = vmatprep.mubr.msk.f32.mxu1 %vm12119_vm15, %v12094_v12  ;;  %vm20445_vm4 = vcmask 261120  }
 0xc72   : > { %v9876_v63 = vadd.f32 %v9875_v27, %v9874_v38  ;;  %10793 = vmatpush3.bf16.msra.mxu1 %v10792_v30  ;;  %v10801_v62 = vpack.c.bf16 %v9989_v13, %v9988_v17  ;;  %vm20446_vm1 = vmmov %vm20445_vm4  ;;  %vm10064_vm5 = vcmask 32768  }
 0xc73   : > { %v9838_v34 = vrot.slane %v9837_v47, 1  ;;  %v9864_v11 = vrot.slane %v9863_v41, 1  ;;  %v9851_v51 = vrot.slane %v9850_v45, 1  ;;  %10794 = vmatprep.subr.bf16.mxu1 %v12111_v10 }
 0xc74   : > { %v9877_v26 = vrot.slane %v9876_v63, 1 }
 0xc75   : > { %v9839_v29 = vadd.f32 %v9838_v34, %v9837_v47  ;;  %v9865_v55 = vadd.f32 %v9864_v11, %v9863_v41  ;;  %v9852_v56 = vadd.f32 %v9851_v51, %v9850_v45 }
 0xc76   : > { %v9878_v3 = vadd.f32 %v9877_v26, %v9876_v63 }
 0xc77   : > { %v9883_v31 = vadd.f32 %v9839_v29, %v9735_v35  ;;  %v9885_v49 = vadd.f32 %v9865_v55, %v9761_v32  ;;  %v9884_v50 = vadd.f32 %v9852_v56, %v9748_v4 }
 0xc78   : > { %v9886_v60 = vadd.f32 %v9878_v3, %v9774_v57 }
 0xc79   : > { %v9887_v39 = vadd.f32 %v9883_v31, %v19604_v21  ;;  %v9889_v25 = vadd.f32 %v9885_v49, %v19607_v48  ;;  %v9888_v33 = vadd.f32 %v9884_v50, %v19620_v43  ;;  %v9910_v21 = vld [vmem:[%s19963_s13 + $0x18] sm:$0xff] }
 0xc7a   : > { %v9890_v59 = vadd.f32 %v9886_v60, %v19623_v7  ;;  %v10795_v48 = vpack.c.bf16 %v9910_v21, %v9909_v44 }
 0xc7b   : > { %v9891_v6 = vadd.f32 %v9889_v25, %v9887_v39 }
 0xc7c   : > { %v9892_v8 = vadd.f32 %v9890_v59, %v9888_v33  ;;  %10796 = vmatpush3.bf16.msra.mxu1 %v10795_v48 }
 0xc7d   : > { %10797 = vmatprep.subr.bf16.mxu1 %v12111_v10 }
 0xc7e   : > { %v9893_v18 = vadd.f32 %v9892_v8, %v9891_v6 }
 0xc80   : > { %9895 = vrot.lane.b32.xlu1 %v9893_v18, %s20444_s26 }
 0xcf2   : > { %v9896_v43 = vpop.permute.xlu1 %9895 }
 0xcf3   : > { %v9898_v7 = vadd.f32 %v9896_v43, %v9893_v18 }
 0xcf5   : > { %9900 = vrot.lane.b32.xlu0 %v9898_v7, %s20038_s23 }
 0xd67   : > { %v9901_v16 = vpop.permute.xlu0 %9900 }
 0xd68   : > { %v9903_v52 = vadd.f32 %v9901_v16, %v9898_v7 }
 0xd6a   : > { %v9905_v61 = vadd.f32 %v9904_v0, %v9903_v52 }
 0xd6c   : > { %v9906_v15 = vmax.f32 %v9905_v61, 0.0 }
 0xd6e   : > { %10636 = vmatmul.mubr.msk.f32.vlgmr.msra.gmra.mrb[160].mxu1 %vm20445_vm4, %v9906_v15 }
 0xd6f   : > { %10799 = vmatpush3.bf16.msra.mxu1 %v10798_v46  ;;  %10646 = vmatprep.mubr.msk.f32.mxu1 %vm12119_vm15, %v12094_v12 }
 0xd70   : > { %10800 = vmatprep.subr.bf16.mxu1 %v12111_v10  ;;  %v9990_v10 = vld [vmem:[%s19966_s16] sm:$0x1] }
 0xd73   : > { %10802 = vmatpush3.bf16.msra.mxu1 %v10801_v62 }
 0xe41   : > { %v9981_v24 = vpop.f32.mrb[160].mxu1 }
 0xe42   : > { %v9982_v28 = vadd.f32 %v9981_v24, %v9911_v40  ;;  %v10637_v5 = vpop.f32.mrb[161].mxu1 }
 0xe44   : > { %v9985_v12 = vmax.f32 %v9982_v28, 0.0 }
 0xe46   : > { %10647 = vmatmul.mubr.msk.f32.vlgmr.msra.gmra.mrb[162].mxu1 %vm20446_vm1, %v9985_v12 }
 0xf19   : > { %v10060_v2 = vpop.f32.mrb[162].mxu1 }
 0xf1a   : > { %v10061_v36 = vadd.f32 %v10060_v2, %v9990_v10  ;;  %v10648_v23 = vpop.f32.mrb[163].mxu1 }
 0xf1c   : > { %10065 = vst.msk [vmem:[%s555_s19] sm:$0x1] %vm10064_vm5, %v10061_v36 }
 0xf1d   : > { %12042 = shalt.err (!%p12039_p3)
}
 0xf1e   : > { %s12043_s3 = scalar_lea.hbm %s19908_s29, 16  ;;  %s12047_s19 = scalar_lea.hbm %s19967_s17, 32 }
 0xf1f   : > { %p12044_p4 = scmp.ne.s32.totalorder %s19908_s29, %s12043_s3  ;;  %p12048_p9 = scmp.lt.u32.totalorder %s19908_s29, %s19967_s17 }
 0xf20   : > { %p12049_p10 = scmp.lt.u32.totalorder %s12047_s19, %s12043_s3  ;;  %p12051_p12 = scmp.lt.u32.totalorder %s12043_s3, %s19908_s29 }
 0xf21   : > { %p12045_p7 = pnand %p12044_p4, %p12249_p5 }
 0xf22   : > { %p12050_p11 = por %p12049_p10, %p12048_p9 }
 0xf23   : > { %p12046_p8 = pneg %p12045_p7 }
 0xf24   : > { %p12052_p13 = por %p12051_p12, %p12050_p11 }
 0xf26   : > { %p12053_p0 = pnand %p12052_p13, %p12046_p8 }
 0xf28   : > { %12056 = shalt.err (!%p12053_p0)
}
 0xf29   : > { %10803 = dma.vmem_to_hbm [thread:$0]  (%p12249_p5), %s19910_s2, 16, %s19908_s29, %s10067_s18  }
 0xf2a PF: > { %p10809_p1 = scmp.ge.s32.totalorder %s12091_s27, 2  ;;  %s10091_s28 = sand.u32 1, %s12079_s24  }
 0xf2b   : > { %s10092_s22 = scalar_lea.sflag [#allocation4], %s10091_s28 }
 0xf2c   : > { %p10806_p2 = pnand %p10809_p1, %p12253_p6 }
 0xf2e   : > { %12074 = dma.done.wait (!%p10806_p2), %s10092_s22, 16  }
 0xf2f   : > { %12076 = vsyncadd (!%p10806_p2), %s10092_s22, 4294967280  ;;  %s20448_s27 = sld [smem:[#allocation7_spill]]  ;;  %s20449_s20 = sld [smem:[#allocation6_spill]] }
 0xf30   : > { %s20450_s26 = sld [smem:[#allocation8_spill]]  ;;  %s20451_s24 = smov %s12083_s25 }
 0xf35   : > { %p27_p3 = scmp.ge.s32.totalorder %s20448_s27, 4   ;;  %s20452_s25 = smov %s20449_s20 }
 0xf37   :  { %29 = sbr.rel (!%p27_p3) target bundleno = 8 (0x8), region = 127 }
 0xf3e   :  { %10096 = vsyncpa [#allocation4], 1 }
 0xf3f   :  { %10098 = vsyncpa [#allocation4 + $0x1], 1 }

</bundles_post_ra>
